<compile_context>
chip_gen: v7x
topology: tpu7x:2x2x1
jax: 0.10.0
libtpu: 0.0.40
codegen_flags: <defaults>
</compile_context>

<pallas_src>
import functools
from collections import OrderedDict

import jax
import jax.numpy as jnp
from jax.experimental import pallas as pl
from jax.experimental.pallas import tpu as pltpu


def _make_fused_kernel(num_layers, shifts, collect_slots, cmax):
    """Builds the fused multi-layer kernel.

    shifts:        static lane-roll amount per 3x3 tap (len 9), modulo lanes.
    collect_slots: {layer_idx: output_slot} for collected intermediates.
    """

    def kernel(x_ref, w_ref, b_ref, m_ref, o_ref, kmat_ref):
        # x_ref:    (Cmax, lanes)          activation slab (f32)
        # w_ref:    (L, Cout, 9*Cmax)      packed weights (bf16), K = tap*Cmax + cin
        # b_ref:    (L, Cout, 1)           biases (f32)
        # m_ref:    (9, 1, lanes)          0/1 spatial validity mask per tap (f32)
        # o_ref:    (num_collect, Cout, lanes)
        # kmat_ref: (9*Cmax, lanes)        persistent VMEM scratch (f32)
        act = x_ref[...]
        for l in range(num_layers):
            # Assemble the 9 shifted/masked taps directly into VMEM scratch
            # (no per-layer concatenate -> fewer live vregs / copies).
            for k, s in enumerate(shifts):
                if s == 0:
                    tap = act                                   # center tap
                else:
                    tap = pltpu.roll(act, shift=s, axis=1) * m_ref[k]
                kmat_ref[k * cmax:(k + 1) * cmax, :] = tap
            # One MXU contraction per layer: bf16 operands, f32 accumulation.
            acc = jnp.dot(w_ref[l],
                          kmat_ref[...].astype(jnp.bfloat16),
                          preferred_element_type=jnp.float32)   # (Cout, lanes)
            act = jnp.maximum(acc + b_ref[l], 0.0)              # f32 bias + ReLU
            if l in collect_slots:
                o_ref[collect_slots[l]] = act.astype(o_ref.dtype)

    return kernel


def _num_core_groups(batch):
    """Pick how many grid steps (one per TensorCore) to split the batch into.

    Multi-TC-per-chip parts (v7x, and v4/v5p megacore): one batch group per
    TC so the serial 19-layer chain splits across cores.  Single-TC chips
    (v5e/v6e): fold the whole batch into the lane axis and use grid=(1,).
    """
    try:
        kind = jax.devices()[0].device_kind.lower()
    except Exception:
        kind = ""
    multi_tc = any(tag in kind for tag in ("v7", "v4", "v5p"))
    groups = 2 if multi_tc else 1
    if groups > batch or batch % groups != 0:
        groups = 1
    return groups


@functools.partial(jax.jit,
                   static_argnames=("indexes", "cmax", "cout", "groups"))
def _fused_features_call(x_nchw, w_packed, b_packed, *, indexes, cmax, cout,
                         groups):
    N, cin, H, W = x_nchw.shape
    HW = H * W
    bg = N // groups          # batch elements folded into lanes per grid step
    lanes = bg * HW
    L = w_packed.shape[0]
    num_collect = len(indexes)

    # ---- layout prep (tiny, done by XLA in the wrapper) --------------------
    # NCHW -> (groups, Cmax, bg*HW): batch folded into the lane axis.
    x = x_nchw.astype(jnp.float32).reshape(groups, bg, cin, HW)
    x = jnp.transpose(x, (0, 2, 1, 3)).reshape(groups, cin, lanes)
    if cin < cmax:
        x = jnp.pad(x, ((0, 0), (0, cmax - cin), (0, 0)))

    # Static roll shifts + thin (9, 1, HW) edge masks for the 9 taps of a
    # 3x3 SAME conv, tiled per image along the folded lane axis so every roll
    # wrap (image->image and around the buffer) lands on a zeroed position.
    shifts = []
    mask_rows = []
    hh = jnp.arange(H)[:, None]
    ww = jnp.arange(W)[None, :]
    for kh in range(3):
        for kw in range(3):
            dh, dw = kh - 1, kw - 1
            shifts.append((-(dh * W + dw)) % lanes)
            valid = ((hh + dh >= 0) & (hh + dh < H) &
                     (ww + dw >= 0) & (ww + dw < W))
            mask_rows.append(valid.reshape(HW).astype(jnp.float32))
    masks = jnp.tile(jnp.stack(mask_rows, 0)[:, None, :], (1, 1, bg))

    collect_slots = {idx: i for i, idx in enumerate(indexes)}
    kernel = _make_fused_kernel(L, tuple(shifts), collect_slots, cmax)

    out = pl.pallas_call(
        kernel,
        out_shape=jax.ShapeDtypeStruct((num_collect, groups, cout, lanes),
                                       jnp.float32),
        grid_spec=pltpu.PrefetchScalarGridSpec(
            num_scalar_prefetch=0,
            grid=(groups,),
            in_specs=[
                pl.BlockSpec((None, cmax, lanes), lambda g: (g, 0, 0)),
                pl.BlockSpec((L, cout, 9 * cmax), lambda g: (0, 0, 0)),
                pl.BlockSpec((L, cout, 1), lambda g: (0, 0, 0)),
                pl.BlockSpec((9, 1, lanes), lambda g: (0, 0, 0)),
            ],
            out_specs=pl.BlockSpec((num_collect, None, cout, lanes),
                                   lambda g: (0, g, 0, 0)),
            scratch_shapes=[pltpu.VMEM((9 * cmax, lanes), jnp.float32)],
        ),
        compiler_params=pltpu.CompilerParams(
            dimension_semantics=("parallel",)),
    )(x, w_packed, b_packed, masks)

    # (num_collect, groups, cout, bg*HW) -> (num_collect, N, cout, H, W)
    out = out.reshape(num_collect, groups, cout, bg, H, W)
    out = jnp.transpose(out, (0, 1, 3, 2, 4, 5))
    return out.reshape(num_collect, N, cout, H, W)


def init_features_params(key, in_channels=4, hidden=8, num_layers=19):
    """Deterministic synthetic params for 19 Conv3x3+ReLU feature layers."""
    params = []
    cin = in_channels
    for _ in range(num_layers):
        key, kw, kb = jax.random.split(key, 3)
        scale = (2.0 / (9 * cin)) ** 0.5
        w = scale * jax.random.normal(kw, (3, 3, cin, hidden), jnp.float32)
        b = 0.01 * jax.random.normal(kb, (hidden,), jnp.float32)
        params.append((w, b))
        cin = hidden
    return params


class IntermediateLayerGetterByIndex:
    """JAX/Pallas port of the PyTorch module.

    Runs `features` (a sequence of Conv3x3(pad=1)+ReLU layers) fused inside a
    single Pallas kernel and collects the activation after each layer whose
    index is in `indexes`, keyed 'layer_{idx}', in an OrderedDict (NCHW).
    """

    def __init__(self, features_params, indexes=(6, 13, 18)):
        self.features = list(features_params)
        self.indexes = list(indexes)

        couts = [w.shape[-1] for w, _ in self.features]
        cins = [w.shape[-2] for w, _ in self.features]
        cout = couts[0]
        assert all(c == cout for c in couts), "uniform Cout required"
        cmax = max(max(cins), cout)
        assert cout == cmax and all(c <= cmax for c in cins)
        self.cout = cout
        self.cmax = cmax

        # Pack weights to (L, Cout, 9*Cmax) in bf16 (MXU-native operand dtype,
        # accumulation stays f32 in-kernel).  K index = tap*Cmax + cin
        # (tap-major); layer-0's Cin is zero-padded up to Cmax.
        w_list, b_list = [], []
        for w, b in self.features:
            cin_l = w.shape[-2]
            w9 = w.reshape(9, cin_l, cout)
            if cin_l < cmax:
                w9 = jnp.pad(w9, ((0, 0), (0, cmax - cin_l), (0, 0)))
            w_list.append(jnp.transpose(w9, (2, 0, 1)).reshape(cout, 9 * cmax))
            b_list.append(b.reshape(cout, 1))
        self.w_packed = jnp.stack(w_list, 0).astype(jnp.bfloat16)
        self.b_packed = jnp.stack(b_list, 0).astype(jnp.float32)

    def __call__(self, x_nchw):
        groups = _num_core_groups(x_nchw.shape[0])
        out = _fused_features_call(
            x_nchw, self.w_packed, self.b_packed,
            indexes=tuple(self.indexes), cmax=self.cmax, cout=self.cout,
            groups=groups)
        outputs = OrderedDict()
        for i, idx in enumerate(self.indexes):
            outputs[f"layer_{idx}"] = out[i]   # NCHW
        return outputs


def _reference_forward_f32(x_nchw, params, indexes):
    """Pure-JAX full-f32 reference (lax.conv, HIGHEST precision)."""
    outs = OrderedDict()
    x = x_nchw
    for idx, (w, b) in enumerate(params):
        y = jax.lax.conv_general_dilated(
            x, w, window_strides=(1, 1), padding="SAME",
            dimension_numbers=("NCHW", "HWIO", "NCHW"),
            precision=jax.lax.Precision.HIGHEST)
        x = jnp.maximum(y + b[None, :, None, None], 0.0)
        if idx in indexes:
            outs[f"layer_{idx}"] = x
    return outs


def _reference_forward_mixed(x_nchw, params, indexes):
    """Reference with the kernel's precision: bf16 conv operands, f32 accum."""
    outs = OrderedDict()
    x = x_nchw.astype(jnp.float32)
    for idx, (w, b) in enumerate(params):
        y = jax.lax.conv_general_dilated(
            x.astype(jnp.bfloat16), w.astype(jnp.bfloat16),
            window_strides=(1, 1), padding="SAME",
            dimension_numbers=("NCHW", "HWIO", "NCHW"),
            preferred_element_type=jnp.float32)
        x = jnp.maximum(y + b[None, :, None, None], 0.0)
        if idx in indexes:
            outs[f"layer_{idx}"] = x
    return outs


if __name__ == "__main__":
    key = jax.random.PRNGKey(0)
    kx, kp = jax.random.split(key)

    # Small shapes consistent with the module: NCHW input.
    x = jax.random.normal(kx, (2, 4, 16, 16), jnp.float32)
    params = init_features_params(kp, in_channels=4, hidden=8, num_layers=19)

    model = IntermediateLayerGetterByIndex(params, indexes=[6, 13, 18])
    outs = model(x)
    jax.block_until_ready([v for v in outs.values()])

    assert list(outs.keys()) == ["layer_6", "layer_13", "layer_18"]
    assert all(v.shape == (2, 8, 16, 16) for v in outs.values())
    assert all(bool(jnp.all(jnp.isfinite(v))) for v in outs.values())

    # Tight check against a reference with matching matmul precision
    # (bf16 operands, f32 accumulation) -- catches any math/layout bug.
    ref_mixed = _reference_forward_mixed(x, params, {6, 13, 18})
    for name in outs:
        assert bool(jnp.allclose(outs[name], ref_mixed[name],
                                 atol=1e-3, rtol=1e-3)), f"mismatch: {name}"

    # Loose drift bound vs. full-f32 HIGHEST reference (bf16 operand rounding
    # compounds across 19 chained conv+ReLU layers).
    ref_f32 = _reference_forward_f32(x, params, {6, 13, 18})
    for name in outs:
        assert bool(jnp.allclose(outs[name], ref_f32[name],
                                 atol=1e-1, rtol=1e-1)), f"drift: {name}"

    print("KERNEL_OK")
</pallas_src>

<mosaic_0001>
module attributes {stable_mosaic.version = 11 : i64} {
  func.func @kernel(%arg0: i32, %arg1: memref<1x8x512xf32, #tpu.memory_space<vmem>>, %arg2: memref<19x8x72xbf16, #tpu.memory_space<vmem>>, %arg3: memref<19x8x1xf32, #tpu.memory_space<vmem>>, %arg4: memref<9x1x512xf32, #tpu.memory_space<vmem>>, %arg5: memref<3x1x8x512xf32, #tpu.memory_space<vmem>>, %arg6: memref<72x512xf32, #tpu.memory_space<vmem>>) attributes {dimension_semantics = [#tpu.dimension_semantics<parallel>], iteration_bounds = array<i64: 1>, scalar_prefetch = 0 : i64, scratch_operands = 1 : i64, tpu.core_type = #tpu.core_type<tc>, window_params = [{transform_indices = @transform_0, window_bounds = array<i64: 1, 8, 512>}, {pipeline_mode = #tpu.pipeline_mode<synchronous>, transform_indices = @transform_1, window_bounds = array<i64: 19, 8, 72>}, {pipeline_mode = #tpu.pipeline_mode<synchronous>, transform_indices = @transform_2, window_bounds = array<i64: 19, 8, 1>}, {pipeline_mode = #tpu.pipeline_mode<synchronous>, transform_indices = @transform_3, window_bounds = array<i64: 9, 1, 512>}, {transform_indices = @transform_4, window_bounds = array<i64: 3, 1, 8, 512>}]} {
    %c0 = arith.constant 0 : index
    %c0_0 = arith.constant 0 : index
    %c0_1 = arith.constant 0 : index
    %0 = vector.load %arg1[%c0, %c0_0, %c0_1] : memref<1x8x512xf32, #tpu.memory_space<vmem>>, vector<1x8x512xf32>
    %1 = vector.shape_cast %0 : vector<1x8x512xf32> to vector<8x512xf32>
    %c17_i32 = arith.constant 17 : i32
    %2 = tpu.dynamic_rotate %1 by %c17_i32 dim 1 : vector<8x512xf32>, i32 -> vector<8x512xf32>
    %c0_2 = arith.constant 0 : index
    %c0_3 = arith.constant 0 : index
    %c0_4 = arith.constant 0 : index
    %3 = vector.load %arg4[%c0_2, %c0_3, %c0_4] : memref<9x1x512xf32, #tpu.memory_space<vmem>>, vector<1x1x512xf32>
    %4 = vector.shape_cast %3 : vector<1x1x512xf32> to vector<1x512xf32>
    %5 = vector.broadcast %4 : vector<1x512xf32> to vector<8x512xf32>
    %6 = arith.mulf %2, %5 : vector<8x512xf32>
    %c0_5 = arith.constant 0 : index
    %c0_6 = arith.constant 0 : index
    %7 = vector.load %arg6[%c0_5, %c0_6] : memref<72x512xf32, #tpu.memory_space<vmem>>, vector<8x512xf32>
    tpu.vector_store %arg6[%c0_5, %c0_6], %6 {strides = array<i32>} : memref<72x512xf32, #tpu.memory_space<vmem>>, vector<8x512xf32>,
    %c16_i32 = arith.constant 16 : i32
    %8 = tpu.dynamic_rotate %1 by %c16_i32 dim 1 : vector<8x512xf32>, i32 -> vector<8x512xf32>
    %c1 = arith.constant 1 : index
    %c0_7 = arith.constant 0 : index
    %c0_8 = arith.constant 0 : index
    %9 = vector.load %arg4[%c1, %c0_7, %c0_8] : memref<9x1x512xf32, #tpu.memory_space<vmem>>, vector<1x1x512xf32>
    %10 = vector.shape_cast %9 : vector<1x1x512xf32> to vector<1x512xf32>
    %11 = vector.broadcast %10 : vector<1x512xf32> to vector<8x512xf32>
    %12 = arith.mulf %8, %11 : vector<8x512xf32>
    %c8 = arith.constant 8 : index
    %c0_9 = arith.constant 0 : index
    %13 = vector.load %arg6[%c8, %c0_9] : memref<72x512xf32, #tpu.memory_space<vmem>>, vector<8x512xf32>
    tpu.vector_store %arg6[%c8, %c0_9], %12 {strides = array<i32>} : memref<72x512xf32, #tpu.memory_space<vmem>>, vector<8x512xf32>,
    %c15_i32 = arith.constant 15 : i32
    %14 = tpu.dynamic_rotate %1 by %c15_i32 dim 1 : vector<8x512xf32>, i32 -> vector<8x512xf32>
    %c2 = arith.constant 2 : index
    %c0_10 = arith.constant 0 : index
    %c0_11 = arith.constant 0 : index
    %15 = vector.load %arg4[%c2, %c0_10, %c0_11] : memref<9x1x512xf32, #tpu.memory_space<vmem>>, vector<1x1x512xf32>
    %16 = vector.shape_cast %15 : vector<1x1x512xf32> to vector<1x512xf32>
    %17 = vector.broadcast %16 : vector<1x512xf32> to vector<8x512xf32>
    %18 = arith.mulf %14, %17 : vector<8x512xf32>
    %c16 = arith.constant 16 : index
    %c0_12 = arith.constant 0 : index
    %19 = vector.load %arg6[%c16, %c0_12] : memref<72x512xf32, #tpu.memory_space<vmem>>, vector<8x512xf32>
    tpu.vector_store %arg6[%c16, %c0_12], %18 {strides = array<i32>} : memref<72x512xf32, #tpu.memory_space<vmem>>, vector<8x512xf32>,
    %c1_i32 = arith.constant 1 : i32
    %20 = tpu.dynamic_rotate %1 by %c1_i32 dim 1 : vector<8x512xf32>, i32 -> vector<8x512xf32>
    %c3 = arith.constant 3 : index
    %c0_13 = arith.constant 0 : index
    %c0_14 = arith.constant 0 : index
    %21 = vector.load %arg4[%c3, %c0_13, %c0_14] : memref<9x1x512xf32, #tpu.memory_space<vmem>>, vector<1x1x512xf32>
    %22 = vector.shape_cast %21 : vector<1x1x512xf32> to vector<1x512xf32>
    %23 = vector.broadcast %22 : vector<1x512xf32> to vector<8x512xf32>
    %24 = arith.mulf %20, %23 : vector<8x512xf32>
    %c24 = arith.constant 24 : index
    %c0_15 = arith.constant 0 : index
    %25 = vector.load %arg6[%c24, %c0_15] : memref<72x512xf32, #tpu.memory_space<vmem>>, vector<8x512xf32>
    tpu.vector_store %arg6[%c24, %c0_15], %24 {strides = array<i32>} : memref<72x512xf32, #tpu.memory_space<vmem>>, vector<8x512xf32>,
    %c32 = arith.constant 32 : index
    %c0_16 = arith.constant 0 : index
    %26 = vector.load %arg6[%c32, %c0_16] : memref<72x512xf32, #tpu.memory_space<vmem>>, vector<8x512xf32>
    tpu.vector_store %arg6[%c32, %c0_16], %1 {strides = array<i32>} : memref<72x512xf32, #tpu.memory_space<vmem>>, vector<8x512xf32>,
    %c511_i32 = arith.constant 511 : i32
    %27 = tpu.dynamic_rotate %1 by %c511_i32 dim 1 : vector<8x512xf32>, i32 -> vector<8x512xf32>
    %c5 = arith.constant 5 : index
    %c0_17 = arith.constant 0 : index
    %c0_18 = arith.constant 0 : index
    %28 = vector.load %arg4[%c5, %c0_17, %c0_18] : memref<9x1x512xf32, #tpu.memory_space<vmem>>, vector<1x1x512xf32>
    %29 = vector.shape_cast %28 : vector<1x1x512xf32> to vector<1x512xf32>
    %30 = vector.broadcast %29 : vector<1x512xf32> to vector<8x512xf32>
    %31 = arith.mulf %27, %30 : vector<8x512xf32>
    %c40 = arith.constant 40 : index
    %c0_19 = arith.constant 0 : index
    %32 = vector.load %arg6[%c40, %c0_19] : memref<72x512xf32, #tpu.memory_space<vmem>>, vector<8x512xf32>
    tpu.vector_store %arg6[%c40, %c0_19], %31 {strides = array<i32>} : memref<72x512xf32, #tpu.memory_space<vmem>>, vector<8x512xf32>,
    %c497_i32 = arith.constant 497 : i32
    %33 = tpu.dynamic_rotate %1 by %c497_i32 dim 1 : vector<8x512xf32>, i32 -> vector<8x512xf32>
    %c6 = arith.constant 6 : index
    %c0_20 = arith.constant 0 : index
    %c0_21 = arith.constant 0 : index
    %34 = vector.load %arg4[%c6, %c0_20, %c0_21] : memref<9x1x512xf32, #tpu.memory_space<vmem>>, vector<1x1x512xf32>
    %35 = vector.shape_cast %34 : vector<1x1x512xf32> to vector<1x512xf32>
    %36 = vector.broadcast %35 : vector<1x512xf32> to vector<8x512xf32>
    %37 = arith.mulf %33, %36 : vector<8x512xf32>
    %c48 = arith.constant 48 : index
    %c0_22 = arith.constant 0 : index
    %38 = vector.load %arg6[%c48, %c0_22] : memref<72x512xf32, #tpu.memory_space<vmem>>, vector<8x512xf32>
    tpu.vector_store %arg6[%c48, %c0_22], %37 {strides = array<i32>} : memref<72x512xf32, #tpu.memory_space<vmem>>, vector<8x512xf32>,
    %c496_i32 = arith.constant 496 : i32
    %39 = tpu.dynamic_rotate %1 by %c496_i32 dim 1 : vector<8x512xf32>, i32 -> vector<8x512xf32>
    %c7 = arith.constant 7 : index
    %c0_23 = arith.constant 0 : index
    %c0_24 = arith.constant 0 : index
    %40 = vector.load %arg4[%c7, %c0_23, %c0_24] : memref<9x1x512xf32, #tpu.memory_space<vmem>>, vector<1x1x512xf32>
    %41 = vector.shape_cast %40 : vector<1x1x512xf32> to vector<1x512xf32>
    %42 = vector.broadcast %41 : vector<1x512xf32> to vector<8x512xf32>
    %43 = arith.mulf %39, %42 : vector<8x512xf32>
    %c56 = arith.constant 56 : index
    %c0_25 = arith.constant 0 : index
    %44 = vector.load %arg6[%c56, %c0_25] : memref<72x512xf32, #tpu.memory_space<vmem>>, vector<8x512xf32>
    tpu.vector_store %arg6[%c56, %c0_25], %43 {strides = array<i32>} : memref<72x512xf32, #tpu.memory_space<vmem>>, vector<8x512xf32>,
    %c495_i32 = arith.constant 495 : i32
    %45 = tpu.dynamic_rotate %1 by %c495_i32 dim 1 : vector<8x512xf32>, i32 -> vector<8x512xf32>
    %c8_26 = arith.constant 8 : index
    %c0_27 = arith.constant 0 : index
    %c0_28 = arith.constant 0 : index
    %46 = vector.load %arg4[%c8_26, %c0_27, %c0_28] : memref<9x1x512xf32, #tpu.memory_space<vmem>>, vector<1x1x512xf32>
    %47 = vector.shape_cast %46 : vector<1x1x512xf32> to vector<1x512xf32>
    %48 = vector.broadcast %47 : vector<1x512xf32> to vector<8x512xf32>
    %49 = arith.mulf %45, %48 : vector<8x512xf32>
    %c64 = arith.constant 64 : index
    %c0_29 = arith.constant 0 : index
    %50 = vector.load %arg6[%c64, %c0_29] : memref<72x512xf32, #tpu.memory_space<vmem>>, vector<8x512xf32>
    tpu.vector_store %arg6[%c64, %c0_29], %49 {strides = array<i32>} : memref<72x512xf32, #tpu.memory_space<vmem>>, vector<8x512xf32>,
    %c0_30 = arith.constant 0 : index
    %c0_31 = arith.constant 0 : index
    %c0_32 = arith.constant 0 : index
    %51 = vector.load %arg2[%c0_30, %c0_31, %c0_32] : memref<19x8x72xbf16, #tpu.memory_space<vmem>>, vector<1x8x72xbf16>
    %52 = vector.shape_cast %51 : vector<1x8x72xbf16> to vector<8x72xbf16>
    %c0_33 = arith.constant 0 : index
    %c0_34 = arith.constant 0 : index
    %53 = vector.load %arg6[%c0_33, %c0_34] : memref<72x512xf32, #tpu.memory_space<vmem>>, vector<72x512xf32>
    %54 = arith.truncf %53 : vector<72x512xf32> to vector<72x512xbf16>
    %cst = arith.constant dense<0.000000e+00> : vector<8x512xf32>
    %55 = tpu.matmul %52, %54, %cst {dimension_numbers = #tpu.dot_dimension_numbers<[1], [0], [0], [1], [0, 0, 1, 1], [], []>} : vector<8x72xbf16>, vector<72x512xbf16>, vector<8x512xf32> -> vector<8x512xf32>
    %c0_35 = arith.constant 0 : index
    %c0_36 = arith.constant 0 : index
    %c0_37 = arith.constant 0 : index
    %56 = vector.load %arg3[%c0_35, %c0_36, %c0_37] : memref<19x8x1xf32, #tpu.memory_space<vmem>>, vector<1x8x1xf32>
    %57 = vector.shape_cast %56 : vector<1x8x1xf32> to vector<8x1xf32>
    %58 = vector.broadcast %57 : vector<8x1xf32> to vector<8x512xf32>
    %59 = arith.addf %55, %58 : vector<8x512xf32>
    %cst_38 = arith.constant 0.000000e+00 : f32
    %60 = vector.broadcast %cst_38 : f32 to vector<8x512xf32>
    %61 = arith.maximumf %59, %60 : vector<8x512xf32>
    %c17_i32_39 = arith.constant 17 : i32
    %62 = tpu.dynamic_rotate %61 by %c17_i32_39 dim 1 : vector<8x512xf32>, i32 -> vector<8x512xf32>
    %c0_40 = arith.constant 0 : index
    %c0_41 = arith.constant 0 : index
    %c0_42 = arith.constant 0 : index
    %63 = vector.load %arg4[%c0_40, %c0_41, %c0_42] : memref<9x1x512xf32, #tpu.memory_space<vmem>>, vector<1x1x512xf32>
    %64 = vector.shape_cast %63 : vector<1x1x512xf32> to vector<1x512xf32>
    %65 = vector.broadcast %64 : vector<1x512xf32> to vector<8x512xf32>
    %66 = arith.mulf %62, %65 : vector<8x512xf32>
    %c0_43 = arith.constant 0 : index
    %c0_44 = arith.constant 0 : index
    %67 = vector.load %arg6[%c0_43, %c0_44] : memref<72x512xf32, #tpu.memory_space<vmem>>, vector<8x512xf32>
    tpu.vector_store %arg6[%c0_43, %c0_44], %66 {strides = array<i32>} : memref<72x512xf32, #tpu.memory_space<vmem>>, vector<8x512xf32>,
    %c16_i32_45 = arith.constant 16 : i32
    %68 = tpu.dynamic_rotate %61 by %c16_i32_45 dim 1 : vector<8x512xf32>, i32 -> vector<8x512xf32>
    %c1_46 = arith.constant 1 : index
    %c0_47 = arith.constant 0 : index
    %c0_48 = arith.constant 0 : index
    %69 = vector.load %arg4[%c1_46, %c0_47, %c0_48] : memref<9x1x512xf32, #tpu.memory_space<vmem>>, vector<1x1x512xf32>
    %70 = vector.shape_cast %69 : vector<1x1x512xf32> to vector<1x512xf32>
    %71 = vector.broadcast %70 : vector<1x512xf32> to vector<8x512xf32>
    %72 = arith.mulf %68, %71 : vector<8x512xf32>
    %c8_49 = arith.constant 8 : index
    %c0_50 = arith.constant 0 : index
    %73 = vector.load %arg6[%c8_49, %c0_50] : memref<72x512xf32, #tpu.memory_space<vmem>>, vector<8x512xf32>
    tpu.vector_store %arg6[%c8_49, %c0_50], %72 {strides = array<i32>} : memref<72x512xf32, #tpu.memory_space<vmem>>, vector<8x512xf32>,
    %c15_i32_51 = arith.constant 15 : i32
    %74 = tpu.dynamic_rotate %61 by %c15_i32_51 dim 1 : vector<8x512xf32>, i32 -> vector<8x512xf32>
    %c2_52 = arith.constant 2 : index
    %c0_53 = arith.constant 0 : index
    %c0_54 = arith.constant 0 : index
    %75 = vector.load %arg4[%c2_52, %c0_53, %c0_54] : memref<9x1x512xf32, #tpu.memory_space<vmem>>, vector<1x1x512xf32>
    %76 = vector.shape_cast %75 : vector<1x1x512xf32> to vector<1x512xf32>
    %77 = vector.broadcast %76 : vector<1x512xf32> to vector<8x512xf32>
    %78 = arith.mulf %74, %77 : vector<8x512xf32>
    %c16_55 = arith.constant 16 : index
    %c0_56 = arith.constant 0 : index
    %79 = vector.load %arg6[%c16_55, %c0_56] : memref<72x512xf32, #tpu.memory_space<vmem>>, vector<8x512xf32>
    tpu.vector_store %arg6[%c16_55, %c0_56], %78 {strides = array<i32>} : memref<72x512xf32, #tpu.memory_space<vmem>>, vector<8x512xf32>,
    %c1_i32_57 = arith.constant 1 : i32
    %80 = tpu.dynamic_rotate %61 by %c1_i32_57 dim 1 : vector<8x512xf32>, i32 -> vector<8x512xf32>
    %c3_58 = arith.constant 3 : index
    %c0_59 = arith.constant 0 : index
    %c0_60 = arith.constant 0 : index
    %81 = vector.load %arg4[%c3_58, %c0_59, %c0_60] : memref<9x1x512xf32, #tpu.memory_space<vmem>>, vector<1x1x512xf32>
    %82 = vector.shape_cast %81 : vector<1x1x512xf32> to vector<1x512xf32>
    %83 = vector.broadcast %82 : vector<1x512xf32> to vector<8x512xf32>
    %84 = arith.mulf %80, %83 : vector<8x512xf32>
    %c24_61 = arith.constant 24 : index
    %c0_62 = arith.constant 0 : index
    %85 = vector.load %arg6[%c24_61, %c0_62] : memref<72x512xf32, #tpu.memory_space<vmem>>, vector<8x512xf32>
    tpu.vector_store %arg6[%c24_61, %c0_62], %84 {strides = array<i32>} : memref<72x512xf32, #tpu.memory_space<vmem>>, vector<8x512xf32>,
    %c32_63 = arith.constant 32 : index
    %c0_64 = arith.constant 0 : index
    %86 = vector.load %arg6[%c32_63, %c0_64] : memref<72x512xf32, #tpu.memory_space<vmem>>, vector<8x512xf32>
    tpu.vector_store %arg6[%c32_63, %c0_64], %61 {strides = array<i32>} : memref<72x512xf32, #tpu.memory_space<vmem>>, vector<8x512xf32>,
    %c511_i32_65 = arith.constant 511 : i32
    %87 = tpu.dynamic_rotate %61 by %c511_i32_65 dim 1 : vector<8x512xf32>, i32 -> vector<8x512xf32>
    %c5_66 = arith.constant 5 : index
    %c0_67 = arith.constant 0 : index
    %c0_68 = arith.constant 0 : index
    %88 = vector.load %arg4[%c5_66, %c0_67, %c0_68] : memref<9x1x512xf32, #tpu.memory_space<vmem>>, vector<1x1x512xf32>
    %89 = vector.shape_cast %88 : vector<1x1x512xf32> to vector<1x512xf32>
    %90 = vector.broadcast %89 : vector<1x512xf32> to vector<8x512xf32>
    %91 = arith.mulf %87, %90 : vector<8x512xf32>
    %c40_69 = arith.constant 40 : index
    %c0_70 = arith.constant 0 : index
    %92 = vector.load %arg6[%c40_69, %c0_70] : memref<72x512xf32, #tpu.memory_space<vmem>>, vector<8x512xf32>
    tpu.vector_store %arg6[%c40_69, %c0_70], %91 {strides = array<i32>} : memref<72x512xf32, #tpu.memory_space<vmem>>, vector<8x512xf32>,
    %c497_i32_71 = arith.constant 497 : i32
    %93 = tpu.dynamic_rotate %61 by %c497_i32_71 dim 1 : vector<8x512xf32>, i32 -> vector<8x512xf32>
    %c6_72 = arith.constant 6 : index
    %c0_73 = arith.constant 0 : index
    %c0_74 = arith.constant 0 : index
    %94 = vector.load %arg4[%c6_72, %c0_73, %c0_74] : memref<9x1x512xf32, #tpu.memory_space<vmem>>, vector<1x1x512xf32>
    %95 = vector.shape_cast %94 : vector<1x1x512xf32> to vector<1x512xf32>
    %96 = vector.broadcast %95 : vector<1x512xf32> to vector<8x512xf32>
    %97 = arith.mulf %93, %96 : vector<8x512xf32>
    %c48_75 = arith.constant 48 : index
    %c0_76 = arith.constant 0 : index
    %98 = vector.load %arg6[%c48_75, %c0_76] : memref<72x512xf32, #tpu.memory_space<vmem>>, vector<8x512xf32>
    tpu.vector_store %arg6[%c48_75, %c0_76], %97 {strides = array<i32>} : memref<72x512xf32, #tpu.memory_space<vmem>>, vector<8x512xf32>,
    %c496_i32_77 = arith.constant 496 : i32
    %99 = tpu.dynamic_rotate %61 by %c496_i32_77 dim 1 : vector<8x512xf32>, i32 -> vector<8x512xf32>
    %c7_78 = arith.constant 7 : index
    %c0_79 = arith.constant 0 : index
    %c0_80 = arith.constant 0 : index
    %100 = vector.load %arg4[%c7_78, %c0_79, %c0_80] : memref<9x1x512xf32, #tpu.memory_space<vmem>>, vector<1x1x512xf32>
    %101 = vector.shape_cast %100 : vector<1x1x512xf32> to vector<1x512xf32>
    %102 = vector.broadcast %101 : vector<1x512xf32> to vector<8x512xf32>
    %103 = arith.mulf %99, %102 : vector<8x512xf32>
    %c56_81 = arith.constant 56 : index
    %c0_82 = arith.constant 0 : index
    %104 = vector.load %arg6[%c56_81, %c0_82] : memref<72x512xf32, #tpu.memory_space<vmem>>, vector<8x512xf32>
    tpu.vector_store %arg6[%c56_81, %c0_82], %103 {strides = array<i32>} : memref<72x512xf32, #tpu.memory_space<vmem>>, vector<8x512xf32>,
    %c495_i32_83 = arith.constant 495 : i32
    %105 = tpu.dynamic_rotate %61 by %c495_i32_83 dim 1 : vector<8x512xf32>, i32 -> vector<8x512xf32>
    %c8_84 = arith.constant 8 : index
    %c0_85 = arith.constant 0 : index
    %c0_86 = arith.constant 0 : index
    %106 = vector.load %arg4[%c8_84, %c0_85, %c0_86] : memref<9x1x512xf32, #tpu.memory_space<vmem>>, vector<1x1x512xf32>
    %107 = vector.shape_cast %106 : vector<1x1x512xf32> to vector<1x512xf32>
    %108 = vector.broadcast %107 : vector<1x512xf32> to vector<8x512xf32>
    %109 = arith.mulf %105, %108 : vector<8x512xf32>
    %c64_87 = arith.constant 64 : index
    %c0_88 = arith.constant 0 : index
    %110 = vector.load %arg6[%c64_87, %c0_88] : memref<72x512xf32, #tpu.memory_space<vmem>>, vector<8x512xf32>
    tpu.vector_store %arg6[%c64_87, %c0_88], %109 {strides = array<i32>} : memref<72x512xf32, #tpu.memory_space<vmem>>, vector<8x512xf32>,
    %c1_89 = arith.constant 1 : index
    %c0_90 = arith.constant 0 : index
    %c0_91 = arith.constant 0 : index
    %111 = vector.load %arg2[%c1_89, %c0_90, %c0_91] : memref<19x8x72xbf16, #tpu.memory_space<vmem>>, vector<1x8x72xbf16>
    %112 = vector.shape_cast %111 : vector<1x8x72xbf16> to vector<8x72xbf16>
    %c0_92 = arith.constant 0 : index
    %c0_93 = arith.constant 0 : index
    %113 = vector.load %arg6[%c0_92, %c0_93] : memref<72x512xf32, #tpu.memory_space<vmem>>, vector<72x512xf32>
    %114 = arith.truncf %113 : vector<72x512xf32> to vector<72x512xbf16>
    %cst_94 = arith.constant dense<0.000000e+00> : vector<8x512xf32>
    %115 = tpu.matmul %112, %114, %cst_94 {dimension_numbers = #tpu.dot_dimension_numbers<[1], [0], [0], [1], [0, 0, 1, 1], [], []>} : vector<8x72xbf16>, vector<72x512xbf16>, vector<8x512xf32> -> vector<8x512xf32>
    %c1_95 = arith.constant 1 : index
    %c0_96 = arith.constant 0 : index
    %c0_97 = arith.constant 0 : index
    %116 = vector.load %arg3[%c1_95, %c0_96, %c0_97] : memref<19x8x1xf32, #tpu.memory_space<vmem>>, vector<1x8x1xf32>
    %117 = vector.shape_cast %116 : vector<1x8x1xf32> to vector<8x1xf32>
    %118 = vector.broadcast %117 : vector<8x1xf32> to vector<8x512xf32>
    %119 = arith.addf %115, %118 : vector<8x512xf32>
    %cst_98 = arith.constant 0.000000e+00 : f32
    %120 = vector.broadcast %cst_98 : f32 to vector<8x512xf32>
    %121 = arith.maximumf %119, %120 : vector<8x512xf32>
    %c17_i32_99 = arith.constant 17 : i32
    %122 = tpu.dynamic_rotate %121 by %c17_i32_99 dim 1 : vector<8x512xf32>, i32 -> vector<8x512xf32>
    %c0_100 = arith.constant 0 : index
    %c0_101 = arith.constant 0 : index
    %c0_102 = arith.constant 0 : index
    %123 = vector.load %arg4[%c0_100, %c0_101, %c0_102] : memref<9x1x512xf32, #tpu.memory_space<vmem>>, vector<1x1x512xf32>
    %124 = vector.shape_cast %123 : vector<1x1x512xf32> to vector<1x512xf32>
    %125 = vector.broadcast %124 : vector<1x512xf32> to vector<8x512xf32>
    %126 = arith.mulf %122, %125 : vector<8x512xf32>
    %c0_103 = arith.constant 0 : index
    %c0_104 = arith.constant 0 : index
    %127 = vector.load %arg6[%c0_103, %c0_104] : memref<72x512xf32, #tpu.memory_space<vmem>>, vector<8x512xf32>
    tpu.vector_store %arg6[%c0_103, %c0_104], %126 {strides = array<i32>} : memref<72x512xf32, #tpu.memory_space<vmem>>, vector<8x512xf32>,
    %c16_i32_105 = arith.constant 16 : i32
    %128 = tpu.dynamic_rotate %121 by %c16_i32_105 dim 1 : vector<8x512xf32>, i32 -> vector<8x512xf32>
    %c1_106 = arith.constant 1 : index
    %c0_107 = arith.constant 0 : index
    %c0_108 = arith.constant 0 : index
    %129 = vector.load %arg4[%c1_106, %c0_107, %c0_108] : memref<9x1x512xf32, #tpu.memory_space<vmem>>, vector<1x1x512xf32>
    %130 = vector.shape_cast %129 : vector<1x1x512xf32> to vector<1x512xf32>
    %131 = vector.broadcast %130 : vector<1x512xf32> to vector<8x512xf32>
    %132 = arith.mulf %128, %131 : vector<8x512xf32>
    %c8_109 = arith.constant 8 : index
    %c0_110 = arith.constant 0 : index
    %133 = vector.load %arg6[%c8_109, %c0_110] : memref<72x512xf32, #tpu.memory_space<vmem>>, vector<8x512xf32>
    tpu.vector_store %arg6[%c8_109, %c0_110], %132 {strides = array<i32>} : memref<72x512xf32, #tpu.memory_space<vmem>>, vector<8x512xf32>,
    %c15_i32_111 = arith.constant 15 : i32
    %134 = tpu.dynamic_rotate %121 by %c15_i32_111 dim 1 : vector<8x512xf32>, i32 -> vector<8x512xf32>
    %c2_112 = arith.constant 2 : index
    %c0_113 = arith.constant 0 : index
    %c0_114 = arith.constant 0 : index
    %135 = vector.load %arg4[%c2_112, %c0_113, %c0_114] : memref<9x1x512xf32, #tpu.memory_space<vmem>>, vector<1x1x512xf32>
    %136 = vector.shape_cast %135 : vector<1x1x512xf32> to vector<1x512xf32>
    %137 = vector.broadcast %136 : vector<1x512xf32> to vector<8x512xf32>
    %138 = arith.mulf %134, %137 : vector<8x512xf32>
    %c16_115 = arith.constant 16 : index
    %c0_116 = arith.constant 0 : index
    %139 = vector.load %arg6[%c16_115, %c0_116] : memref<72x512xf32, #tpu.memory_space<vmem>>, vector<8x512xf32>
    tpu.vector_store %arg6[%c16_115, %c0_116], %138 {strides = array<i32>} : memref<72x512xf32, #tpu.memory_space<vmem>>, vector<8x512xf32>,
    %c1_i32_117 = arith.constant 1 : i32
    %140 = tpu.dynamic_rotate %121 by %c1_i32_117 dim 1 : vector<8x512xf32>, i32 -> vector<8x512xf32>
    %c3_118 = arith.constant 3 : index
    %c0_119 = arith.constant 0 : index
    %c0_120 = arith.constant 0 : index
    %141 = vector.load %arg4[%c3_118, %c0_119, %c0_120] : memref<9x1x512xf32, #tpu.memory_space<vmem>>, vector<1x1x512xf32>
    %142 = vector.shape_cast %141 : vector<1x1x512xf32> to vector<1x512xf32>
    %143 = vector.broadcast %142 : vector<1x512xf32> to vector<8x512xf32>
    %144 = arith.mulf %140, %143 : vector<8x512xf32>
    %c24_121 = arith.constant 24 : index
    %c0_122 = arith.constant 0 : index
    %145 = vector.load %arg6[%c24_121, %c0_122] : memref<72x512xf32, #tpu.memory_space<vmem>>, vector<8x512xf32>
    tpu.vector_store %arg6[%c24_121, %c0_122], %144 {strides = array<i32>} : memref<72x512xf32, #tpu.memory_space<vmem>>, vector<8x512xf32>,
    %c32_123 = arith.constant 32 : index
    %c0_124 = arith.constant 0 : index
    %146 = vector.load %arg6[%c32_123, %c0_124] : memref<72x512xf32, #tpu.memory_space<vmem>>, vector<8x512xf32>
    tpu.vector_store %arg6[%c32_123, %c0_124], %121 {strides = array<i32>} : memref<72x512xf32, #tpu.memory_space<vmem>>, vector<8x512xf32>,
    %c511_i32_125 = arith.constant 511 : i32
    %147 = tpu.dynamic_rotate %121 by %c511_i32_125 dim 1 : vector<8x512xf32>, i32 -> vector<8x512xf32>
    %c5_126 = arith.constant 5 : index
    %c0_127 = arith.constant 0 : index
    %c0_128 = arith.constant 0 : index
    %148 = vector.load %arg4[%c5_126, %c0_127, %c0_128] : memref<9x1x512xf32, #tpu.memory_space<vmem>>, vector<1x1x512xf32>
    %149 = vector.shape_cast %148 : vector<1x1x512xf32> to vector<1x512xf32>
    %150 = vector.broadcast %149 : vector<1x512xf32> to vector<8x512xf32>
    %151 = arith.mulf %147, %150 : vector<8x512xf32>
    %c40_129 = arith.constant 40 : index
    %c0_130 = arith.constant 0 : index
    %152 = vector.load %arg6[%c40_129, %c0_130] : memref<72x512xf32, #tpu.memory_space<vmem>>, vector<8x512xf32>
    tpu.vector_store %arg6[%c40_129, %c0_130], %151 {strides = array<i32>} : memref<72x512xf32, #tpu.memory_space<vmem>>, vector<8x512xf32>,
    %c497_i32_131 = arith.constant 497 : i32
    %153 = tpu.dynamic_rotate %121 by %c497_i32_131 dim 1 : vector<8x512xf32>, i32 -> vector<8x512xf32>
    %c6_132 = arith.constant 6 : index
    %c0_133 = arith.constant 0 : index
    %c0_134 = arith.constant 0 : index
    %154 = vector.load %arg4[%c6_132, %c0_133, %c0_134] : memref<9x1x512xf32, #tpu.memory_space<vmem>>, vector<1x1x512xf32>
    %155 = vector.shape_cast %154 : vector<1x1x512xf32> to vector<1x512xf32>
    %156 = vector.broadcast %155 : vector<1x512xf32> to vector<8x512xf32>
    %157 = arith.mulf %153, %156 : vector<8x512xf32>
    %c48_135 = arith.constant 48 : index
    %c0_136 = arith.constant 0 : index
    %158 = vector.load %arg6[%c48_135, %c0_136] : memref<72x512xf32, #tpu.memory_space<vmem>>, vector<8x512xf32>
    tpu.vector_store %arg6[%c48_135, %c0_136], %157 {strides = array<i32>} : memref<72x512xf32, #tpu.memory_space<vmem>>, vector<8x512xf32>,
    %c496_i32_137 = arith.constant 496 : i32
    %159 = tpu.dynamic_rotate %121 by %c496_i32_137 dim 1 : vector<8x512xf32>, i32 -> vector<8x512xf32>
    %c7_138 = arith.constant 7 : index
    %c0_139 = arith.constant 0 : index
    %c0_140 = arith.constant 0 : index
    %160 = vector.load %arg4[%c7_138, %c0_139, %c0_140] : memref<9x1x512xf32, #tpu.memory_space<vmem>>, vector<1x1x512xf32>
    %161 = vector.shape_cast %160 : vector<1x1x512xf32> to vector<1x512xf32>
    %162 = vector.broadcast %161 : vector<1x512xf32> to vector<8x512xf32>
    %163 = arith.mulf %159, %162 : vector<8x512xf32>
    %c56_141 = arith.constant 56 : index
    %c0_142 = arith.constant 0 : index
    %164 = vector.load %arg6[%c56_141, %c0_142] : memref<72x512xf32, #tpu.memory_space<vmem>>, vector<8x512xf32>
    tpu.vector_store %arg6[%c56_141, %c0_142], %163 {strides = array<i32>} : memref<72x512xf32, #tpu.memory_space<vmem>>, vector<8x512xf32>,
    %c495_i32_143 = arith.constant 495 : i32
    %165 = tpu.dynamic_rotate %121 by %c495_i32_143 dim 1 : vector<8x512xf32>, i32 -> vector<8x512xf32>
    %c8_144 = arith.constant 8 : index
    %c0_145 = arith.constant 0 : index
    %c0_146 = arith.constant 0 : index
    %166 = vector.load %arg4[%c8_144, %c0_145, %c0_146] : memref<9x1x512xf32, #tpu.memory_space<vmem>>, vector<1x1x512xf32>
    %167 = vector.shape_cast %166 : vector<1x1x512xf32> to vector<1x512xf32>
    %168 = vector.broadcast %167 : vector<1x512xf32> to vector<8x512xf32>
    %169 = arith.mulf %165, %168 : vector<8x512xf32>
    %c64_147 = arith.constant 64 : index
    %c0_148 = arith.constant 0 : index
    %170 = vector.load %arg6[%c64_147, %c0_148] : memref<72x512xf32, #tpu.memory_space<vmem>>, vector<8x512xf32>
    tpu.vector_store %arg6[%c64_147, %c0_148], %169 {strides = array<i32>} : memref<72x512xf32, #tpu.memory_space<vmem>>, vector<8x512xf32>,
    %c2_149 = arith.constant 2 : index
    %c0_150 = arith.constant 0 : index
    %c0_151 = arith.constant 0 : index
    %171 = vector.load %arg2[%c2_149, %c0_150, %c0_151] : memref<19x8x72xbf16, #tpu.memory_space<vmem>>, vector<1x8x72xbf16>
    %172 = vector.shape_cast %171 : vector<1x8x72xbf16> to vector<8x72xbf16>
    %c0_152 = arith.constant 0 : index
    %c0_153 = arith.constant 0 : index
    %173 = vector.load %arg6[%c0_152, %c0_153] : memref<72x512xf32, #tpu.memory_space<vmem>>, vector<72x512xf32>
    %174 = arith.truncf %173 : vector<72x512xf32> to vector<72x512xbf16>
    %cst_154 = arith.constant dense<0.000000e+00> : vector<8x512xf32>
    %175 = tpu.matmul %172, %174, %cst_154 {dimension_numbers = #tpu.dot_dimension_numbers<[1], [0], [0], [1], [0, 0, 1, 1], [], []>} : vector<8x72xbf16>, vector<72x512xbf16>, vector<8x512xf32> -> vector<8x512xf32>
    %c2_155 = arith.constant 2 : index
    %c0_156 = arith.constant 0 : index
    %c0_157 = arith.constant 0 : index
    %176 = vector.load %arg3[%c2_155, %c0_156, %c0_157] : memref<19x8x1xf32, #tpu.memory_space<vmem>>, vector<1x8x1xf32>
    %177 = vector.shape_cast %176 : vector<1x8x1xf32> to vector<8x1xf32>
    %178 = vector.broadcast %177 : vector<8x1xf32> to vector<8x512xf32>
    %179 = arith.addf %175, %178 : vector<8x512xf32>
    %cst_158 = arith.constant 0.000000e+00 : f32
    %180 = vector.broadcast %cst_158 : f32 to vector<8x512xf32>
    %181 = arith.maximumf %179, %180 : vector<8x512xf32>
    %c17_i32_159 = arith.constant 17 : i32
    %182 = tpu.dynamic_rotate %181 by %c17_i32_159 dim 1 : vector<8x512xf32>, i32 -> vector<8x512xf32>
    %c0_160 = arith.constant 0 : index
    %c0_161 = arith.constant 0 : index
    %c0_162 = arith.constant 0 : index
    %183 = vector.load %arg4[%c0_160, %c0_161, %c0_162] : memref<9x1x512xf32, #tpu.memory_space<vmem>>, vector<1x1x512xf32>
    %184 = vector.shape_cast %183 : vector<1x1x512xf32> to vector<1x512xf32>
    %185 = vector.broadcast %184 : vector<1x512xf32> to vector<8x512xf32>
    %186 = arith.mulf %182, %185 : vector<8x512xf32>
    %c0_163 = arith.constant 0 : index
    %c0_164 = arith.constant 0 : index
    %187 = vector.load %arg6[%c0_163, %c0_164] : memref<72x512xf32, #tpu.memory_space<vmem>>, vector<8x512xf32>
    tpu.vector_store %arg6[%c0_163, %c0_164], %186 {strides = array<i32>} : memref<72x512xf32, #tpu.memory_space<vmem>>, vector<8x512xf32>,
    %c16_i32_165 = arith.constant 16 : i32
    %188 = tpu.dynamic_rotate %181 by %c16_i32_165 dim 1 : vector<8x512xf32>, i32 -> vector<8x512xf32>
    %c1_166 = arith.constant 1 : index
    %c0_167 = arith.constant 0 : index
    %c0_168 = arith.constant 0 : index
    %189 = vector.load %arg4[%c1_166, %c0_167, %c0_168] : memref<9x1x512xf32, #tpu.memory_space<vmem>>, vector<1x1x512xf32>
    %190 = vector.shape_cast %189 : vector<1x1x512xf32> to vector<1x512xf32>
    %191 = vector.broadcast %190 : vector<1x512xf32> to vector<8x512xf32>
    %192 = arith.mulf %188, %191 : vector<8x512xf32>
    %c8_169 = arith.constant 8 : index
    %c0_170 = arith.constant 0 : index
    %193 = vector.load %arg6[%c8_169, %c0_170] : memref<72x512xf32, #tpu.memory_space<vmem>>, vector<8x512xf32>
    tpu.vector_store %arg6[%c8_169, %c0_170], %192 {strides = array<i32>} : memref<72x512xf32, #tpu.memory_space<vmem>>, vector<8x512xf32>,
    %c15_i32_171 = arith.constant 15 : i32
    %194 = tpu.dynamic_rotate %181 by %c15_i32_171 dim 1 : vector<8x512xf32>, i32 -> vector<8x512xf32>
    %c2_172 = arith.constant 2 : index
    %c0_173 = arith.constant 0 : index
    %c0_174 = arith.constant 0 : index
    %195 = vector.load %arg4[%c2_172, %c0_173, %c0_174] : memref<9x1x512xf32, #tpu.memory_space<vmem>>, vector<1x1x512xf32>
    %196 = vector.shape_cast %195 : vector<1x1x512xf32> to vector<1x512xf32>
    %197 = vector.broadcast %196 : vector<1x512xf32> to vector<8x512xf32>
    %198 = arith.mulf %194, %197 : vector<8x512xf32>
    %c16_175 = arith.constant 16 : index
    %c0_176 = arith.constant 0 : index
    %199 = vector.load %arg6[%c16_175, %c0_176] : memref<72x512xf32, #tpu.memory_space<vmem>>, vector<8x512xf32>
    tpu.vector_store %arg6[%c16_175, %c0_176], %198 {strides = array<i32>} : memref<72x512xf32, #tpu.memory_space<vmem>>, vector<8x512xf32>,
    %c1_i32_177 = arith.constant 1 : i32
    %200 = tpu.dynamic_rotate %181 by %c1_i32_177 dim 1 : vector<8x512xf32>, i32 -> vector<8x512xf32>
    %c3_178 = arith.constant 3 : index
    %c0_179 = arith.constant 0 : index
    %c0_180 = arith.constant 0 : index
    %201 = vector.load %arg4[%c3_178, %c0_179, %c0_180] : memref<9x1x512xf32, #tpu.memory_space<vmem>>, vector<1x1x512xf32>
    %202 = vector.shape_cast %201 : vector<1x1x512xf32> to vector<1x512xf32>
    %203 = vector.broadcast %202 : vector<1x512xf32> to vector<8x512xf32>
    %204 = arith.mulf %200, %203 : vector<8x512xf32>
    %c24_181 = arith.constant 24 : index
    %c0_182 = arith.constant 0 : index
    %205 = vector.load %arg6[%c24_181, %c0_182] : memref<72x512xf32, #tpu.memory_space<vmem>>, vector<8x512xf32>
    tpu.vector_store %arg6[%c24_181, %c0_182], %204 {strides = array<i32>} : memref<72x512xf32, #tpu.memory_space<vmem>>, vector<8x512xf32>,
    %c32_183 = arith.constant 32 : index
    %c0_184 = arith.constant 0 : index
    %206 = vector.load %arg6[%c32_183, %c0_184] : memref<72x512xf32, #tpu.memory_space<vmem>>, vector<8x512xf32>
    tpu.vector_store %arg6[%c32_183, %c0_184], %181 {strides = array<i32>} : memref<72x512xf32, #tpu.memory_space<vmem>>, vector<8x512xf32>,
    %c511_i32_185 = arith.constant 511 : i32
    %207 = tpu.dynamic_rotate %181 by %c511_i32_185 dim 1 : vector<8x512xf32>, i32 -> vector<8x512xf32>
    %c5_186 = arith.constant 5 : index
    %c0_187 = arith.constant 0 : index
    %c0_188 = arith.constant 0 : index
    %208 = vector.load %arg4[%c5_186, %c0_187, %c0_188] : memref<9x1x512xf32, #tpu.memory_space<vmem>>, vector<1x1x512xf32>
    %209 = vector.shape_cast %208 : vector<1x1x512xf32> to vector<1x512xf32>
    %210 = vector.broadcast %209 : vector<1x512xf32> to vector<8x512xf32>
    %211 = arith.mulf %207, %210 : vector<8x512xf32>
    %c40_189 = arith.constant 40 : index
    %c0_190 = arith.constant 0 : index
    %212 = vector.load %arg6[%c40_189, %c0_190] : memref<72x512xf32, #tpu.memory_space<vmem>>, vector<8x512xf32>
    tpu.vector_store %arg6[%c40_189, %c0_190], %211 {strides = array<i32>} : memref<72x512xf32, #tpu.memory_space<vmem>>, vector<8x512xf32>,
    %c497_i32_191 = arith.constant 497 : i32
    %213 = tpu.dynamic_rotate %181 by %c497_i32_191 dim 1 : vector<8x512xf32>, i32 -> vector<8x512xf32>
    %c6_192 = arith.constant 6 : index
    %c0_193 = arith.constant 0 : index
    %c0_194 = arith.constant 0 : index
    %214 = vector.load %arg4[%c6_192, %c0_193, %c0_194] : memref<9x1x512xf32, #tpu.memory_space<vmem>>, vector<1x1x512xf32>
    %215 = vector.shape_cast %214 : vector<1x1x512xf32> to vector<1x512xf32>
    %216 = vector.broadcast %215 : vector<1x512xf32> to vector<8x512xf32>
    %217 = arith.mulf %213, %216 : vector<8x512xf32>
    %c48_195 = arith.constant 48 : index
    %c0_196 = arith.constant 0 : index
    %218 = vector.load %arg6[%c48_195, %c0_196] : memref<72x512xf32, #tpu.memory_space<vmem>>, vector<8x512xf32>
    tpu.vector_store %arg6[%c48_195, %c0_196], %217 {strides = array<i32>} : memref<72x512xf32, #tpu.memory_space<vmem>>, vector<8x512xf32>,
    %c496_i32_197 = arith.constant 496 : i32
    %219 = tpu.dynamic_rotate %181 by %c496_i32_197 dim 1 : vector<8x512xf32>, i32 -> vector<8x512xf32>
    %c7_198 = arith.constant 7 : index
    %c0_199 = arith.constant 0 : index
    %c0_200 = arith.constant 0 : index
    %220 = vector.load %arg4[%c7_198, %c0_199, %c0_200] : memref<9x1x512xf32, #tpu.memory_space<vmem>>, vector<1x1x512xf32>
    %221 = vector.shape_cast %220 : vector<1x1x512xf32> to vector<1x512xf32>
    %222 = vector.broadcast %221 : vector<1x512xf32> to vector<8x512xf32>
    %223 = arith.mulf %219, %222 : vector<8x512xf32>
    %c56_201 = arith.constant 56 : index
    %c0_202 = arith.constant 0 : index
    %224 = vector.load %arg6[%c56_201, %c0_202] : memref<72x512xf32, #tpu.memory_space<vmem>>, vector<8x512xf32>
    tpu.vector_store %arg6[%c56_201, %c0_202], %223 {strides = array<i32>} : memref<72x512xf32, #tpu.memory_space<vmem>>, vector<8x512xf32>,
    %c495_i32_203 = arith.constant 495 : i32
    %225 = tpu.dynamic_rotate %181 by %c495_i32_203 dim 1 : vector<8x512xf32>, i32 -> vector<8x512xf32>
    %c8_204 = arith.constant 8 : index
    %c0_205 = arith.constant 0 : index
    %c0_206 = arith.constant 0 : index
    %226 = vector.load %arg4[%c8_204, %c0_205, %c0_206] : memref<9x1x512xf32, #tpu.memory_space<vmem>>, vector<1x1x512xf32>
    %227 = vector.shape_cast %226 : vector<1x1x512xf32> to vector<1x512xf32>
    %228 = vector.broadcast %227 : vector<1x512xf32> to vector<8x512xf32>
    %229 = arith.mulf %225, %228 : vector<8x512xf32>
    %c64_207 = arith.constant 64 : index
    %c0_208 = arith.constant 0 : index
    %230 = vector.load %arg6[%c64_207, %c0_208] : memref<72x512xf32, #tpu.memory_space<vmem>>, vector<8x512xf32>
    tpu.vector_store %arg6[%c64_207, %c0_208], %229 {strides = array<i32>} : memref<72x512xf32, #tpu.memory_space<vmem>>, vector<8x512xf32>,
    %c3_209 = arith.constant 3 : index
    %c0_210 = arith.constant 0 : index
    %c0_211 = arith.constant 0 : index
    %231 = vector.load %arg2[%c3_209, %c0_210, %c0_211] : memref<19x8x72xbf16, #tpu.memory_space<vmem>>, vector<1x8x72xbf16>
    %232 = vector.shape_cast %231 : vector<1x8x72xbf16> to vector<8x72xbf16>
    %c0_212 = arith.constant 0 : index
    %c0_213 = arith.constant 0 : index
    %233 = vector.load %arg6[%c0_212, %c0_213] : memref<72x512xf32, #tpu.memory_space<vmem>>, vector<72x512xf32>
    %234 = arith.truncf %233 : vector<72x512xf32> to vector<72x512xbf16>
    %cst_214 = arith.constant dense<0.000000e+00> : vector<8x512xf32>
    %235 = tpu.matmul %232, %234, %cst_214 {dimension_numbers = #tpu.dot_dimension_numbers<[1], [0], [0], [1], [0, 0, 1, 1], [], []>} : vector<8x72xbf16>, vector<72x512xbf16>, vector<8x512xf32> -> vector<8x512xf32>
    %c3_215 = arith.constant 3 : index
    %c0_216 = arith.constant 0 : index
    %c0_217 = arith.constant 0 : index
    %236 = vector.load %arg3[%c3_215, %c0_216, %c0_217] : memref<19x8x1xf32, #tpu.memory_space<vmem>>, vector<1x8x1xf32>
    %237 = vector.shape_cast %236 : vector<1x8x1xf32> to vector<8x1xf32>
    %238 = vector.broadcast %237 : vector<8x1xf32> to vector<8x512xf32>
    %239 = arith.addf %235, %238 : vector<8x512xf32>
    %cst_218 = arith.constant 0.000000e+00 : f32
    %240 = vector.broadcast %cst_218 : f32 to vector<8x512xf32>
    %241 = arith.maximumf %239, %240 : vector<8x512xf32>
    %c17_i32_219 = arith.constant 17 : i32
    %242 = tpu.dynamic_rotate %241 by %c17_i32_219 dim 1 : vector<8x512xf32>, i32 -> vector<8x512xf32>
    %c0_220 = arith.constant 0 : index
    %c0_221 = arith.constant 0 : index
    %c0_222 = arith.constant 0 : index
    %243 = vector.load %arg4[%c0_220, %c0_221, %c0_222] : memref<9x1x512xf32, #tpu.memory_space<vmem>>, vector<1x1x512xf32>
    %244 = vector.shape_cast %243 : vector<1x1x512xf32> to vector<1x512xf32>
    %245 = vector.broadcast %244 : vector<1x512xf32> to vector<8x512xf32>
    %246 = arith.mulf %242, %245 : vector<8x512xf32>
    %c0_223 = arith.constant 0 : index
    %c0_224 = arith.constant 0 : index
    %247 = vector.load %arg6[%c0_223, %c0_224] : memref<72x512xf32, #tpu.memory_space<vmem>>, vector<8x512xf32>
    tpu.vector_store %arg6[%c0_223, %c0_224], %246 {strides = array<i32>} : memref<72x512xf32, #tpu.memory_space<vmem>>, vector<8x512xf32>,
    %c16_i32_225 = arith.constant 16 : i32
    %248 = tpu.dynamic_rotate %241 by %c16_i32_225 dim 1 : vector<8x512xf32>, i32 -> vector<8x512xf32>
    %c1_226 = arith.constant 1 : index
    %c0_227 = arith.constant 0 : index
    %c0_228 = arith.constant 0 : index
    %249 = vector.load %arg4[%c1_226, %c0_227, %c0_228] : memref<9x1x512xf32, #tpu.memory_space<vmem>>, vector<1x1x512xf32>
    %250 = vector.shape_cast %249 : vector<1x1x512xf32> to vector<1x512xf32>
    %251 = vector.broadcast %250 : vector<1x512xf32> to vector<8x512xf32>
    %252 = arith.mulf %248, %251 : vector<8x512xf32>
    %c8_229 = arith.constant 8 : index
    %c0_230 = arith.constant 0 : index
    %253 = vector.load %arg6[%c8_229, %c0_230] : memref<72x512xf32, #tpu.memory_space<vmem>>, vector<8x512xf32>
    tpu.vector_store %arg6[%c8_229, %c0_230], %252 {strides = array<i32>} : memref<72x512xf32, #tpu.memory_space<vmem>>, vector<8x512xf32>,
    %c15_i32_231 = arith.constant 15 : i32
    %254 = tpu.dynamic_rotate %241 by %c15_i32_231 dim 1 : vector<8x512xf32>, i32 -> vector<8x512xf32>
    %c2_232 = arith.constant 2 : index
    %c0_233 = arith.constant 0 : index
    %c0_234 = arith.constant 0 : index
    %255 = vector.load %arg4[%c2_232, %c0_233, %c0_234] : memref<9x1x512xf32, #tpu.memory_space<vmem>>, vector<1x1x512xf32>
    %256 = vector.shape_cast %255 : vector<1x1x512xf32> to vector<1x512xf32>
    %257 = vector.broadcast %256 : vector<1x512xf32> to vector<8x512xf32>
    %258 = arith.mulf %254, %257 : vector<8x512xf32>
    %c16_235 = arith.constant 16 : index
    %c0_236 = arith.constant 0 : index
    %259 = vector.load %arg6[%c16_235, %c0_236] : memref<72x512xf32, #tpu.memory_space<vmem>>, vector<8x512xf32>
    tpu.vector_store %arg6[%c16_235, %c0_236], %258 {strides = array<i32>} : memref<72x512xf32, #tpu.memory_space<vmem>>, vector<8x512xf32>,
    %c1_i32_237 = arith.constant 1 : i32
    %260 = tpu.dynamic_rotate %241 by %c1_i32_237 dim 1 : vector<8x512xf32>, i32 -> vector<8x512xf32>
    %c3_238 = arith.constant 3 : index
    %c0_239 = arith.constant 0 : index
    %c0_240 = arith.constant 0 : index
    %261 = vector.load %arg4[%c3_238, %c0_239, %c0_240] : memref<9x1x512xf32, #tpu.memory_space<vmem>>, vector<1x1x512xf32>
    %262 = vector.shape_cast %261 : vector<1x1x512xf32> to vector<1x512xf32>
    %263 = vector.broadcast %262 : vector<1x512xf32> to vector<8x512xf32>
    %264 = arith.mulf %260, %263 : vector<8x512xf32>
    %c24_241 = arith.constant 24 : index
    %c0_242 = arith.constant 0 : index
    %265 = vector.load %arg6[%c24_241, %c0_242] : memref<72x512xf32, #tpu.memory_space<vmem>>, vector<8x512xf32>
    tpu.vector_store %arg6[%c24_241, %c0_242], %264 {strides = array<i32>} : memref<72x512xf32, #tpu.memory_space<vmem>>, vector<8x512xf32>,
    %c32_243 = arith.constant 32 : index
    %c0_244 = arith.constant 0 : index
    %266 = vector.load %arg6[%c32_243, %c0_244] : memref<72x512xf32, #tpu.memory_space<vmem>>, vector<8x512xf32>
    tpu.vector_store %arg6[%c32_243, %c0_244], %241 {strides = array<i32>} : memref<72x512xf32, #tpu.memory_space<vmem>>, vector<8x512xf32>,
    %c511_i32_245 = arith.constant 511 : i32
    %267 = tpu.dynamic_rotate %241 by %c511_i32_245 dim 1 : vector<8x512xf32>, i32 -> vector<8x512xf32>
    %c5_246 = arith.constant 5 : index
    %c0_247 = arith.constant 0 : index
    %c0_248 = arith.constant 0 : index
    %268 = vector.load %arg4[%c5_246, %c0_247, %c0_248] : memref<9x1x512xf32, #tpu.memory_space<vmem>>, vector<1x1x512xf32>
    %269 = vector.shape_cast %268 : vector<1x1x512xf32> to vector<1x512xf32>
    %270 = vector.broadcast %269 : vector<1x512xf32> to vector<8x512xf32>
    %271 = arith.mulf %267, %270 : vector<8x512xf32>
    %c40_249 = arith.constant 40 : index
    %c0_250 = arith.constant 0 : index
    %272 = vector.load %arg6[%c40_249, %c0_250] : memref<72x512xf32, #tpu.memory_space<vmem>>, vector<8x512xf32>
    tpu.vector_store %arg6[%c40_249, %c0_250], %271 {strides = array<i32>} : memref<72x512xf32, #tpu.memory_space<vmem>>, vector<8x512xf32>,
    %c497_i32_251 = arith.constant 497 : i32
    %273 = tpu.dynamic_rotate %241 by %c497_i32_251 dim 1 : vector<8x512xf32>, i32 -> vector<8x512xf32>
    %c6_252 = arith.constant 6 : index
    %c0_253 = arith.constant 0 : index
    %c0_254 = arith.constant 0 : index
    %274 = vector.load %arg4[%c6_252, %c0_253, %c0_254] : memref<9x1x512xf32, #tpu.memory_space<vmem>>, vector<1x1x512xf32>
    %275 = vector.shape_cast %274 : vector<1x1x512xf32> to vector<1x512xf32>
    %276 = vector.broadcast %275 : vector<1x512xf32> to vector<8x512xf32>
    %277 = arith.mulf %273, %276 : vector<8x512xf32>
    %c48_255 = arith.constant 48 : index
    %c0_256 = arith.constant 0 : index
    %278 = vector.load %arg6[%c48_255, %c0_256] : memref<72x512xf32, #tpu.memory_space<vmem>>, vector<8x512xf32>
    tpu.vector_store %arg6[%c48_255, %c0_256], %277 {strides = array<i32>} : memref<72x512xf32, #tpu.memory_space<vmem>>, vector<8x512xf32>,
    %c496_i32_257 = arith.constant 496 : i32
    %279 = tpu.dynamic_rotate %241 by %c496_i32_257 dim 1 : vector<8x512xf32>, i32 -> vector<8x512xf32>
    %c7_258 = arith.constant 7 : index
    %c0_259 = arith.constant 0 : index
    %c0_260 = arith.constant 0 : index
    %280 = vector.load %arg4[%c7_258, %c0_259, %c0_260] : memref<9x1x512xf32, #tpu.memory_space<vmem>>, vector<1x1x512xf32>
    %281 = vector.shape_cast %280 : vector<1x1x512xf32> to vector<1x512xf32>
    %282 = vector.broadcast %281 : vector<1x512xf32> to vector<8x512xf32>
    %283 = arith.mulf %279, %282 : vector<8x512xf32>
    %c56_261 = arith.constant 56 : index
    %c0_262 = arith.constant 0 : index
    %284 = vector.load %arg6[%c56_261, %c0_262] : memref<72x512xf32, #tpu.memory_space<vmem>>, vector<8x512xf32>
    tpu.vector_store %arg6[%c56_261, %c0_262], %283 {strides = array<i32>} : memref<72x512xf32, #tpu.memory_space<vmem>>, vector<8x512xf32>,
    %c495_i32_263 = arith.constant 495 : i32
    %285 = tpu.dynamic_rotate %241 by %c495_i32_263 dim 1 : vector<8x512xf32>, i32 -> vector<8x512xf32>
    %c8_264 = arith.constant 8 : index
    %c0_265 = arith.constant 0 : index
    %c0_266 = arith.constant 0 : index
    %286 = vector.load %arg4[%c8_264, %c0_265, %c0_266] : memref<9x1x512xf32, #tpu.memory_space<vmem>>, vector<1x1x512xf32>
    %287 = vector.shape_cast %286 : vector<1x1x512xf32> to vector<1x512xf32>
    %288 = vector.broadcast %287 : vector<1x512xf32> to vector<8x512xf32>
    %289 = arith.mulf %285, %288 : vector<8x512xf32>
    %c64_267 = arith.constant 64 : index
    %c0_268 = arith.constant 0 : index
    %290 = vector.load %arg6[%c64_267, %c0_268] : memref<72x512xf32, #tpu.memory_space<vmem>>, vector<8x512xf32>
    tpu.vector_store %arg6[%c64_267, %c0_268], %289 {strides = array<i32>} : memref<72x512xf32, #tpu.memory_space<vmem>>, vector<8x512xf32>,
    %c4 = arith.constant 4 : index
    %c0_269 = arith.constant 0 : index
    %c0_270 = arith.constant 0 : index
    %291 = vector.load %arg2[%c4, %c0_269, %c0_270] : memref<19x8x72xbf16, #tpu.memory_space<vmem>>, vector<1x8x72xbf16>
    %292 = vector.shape_cast %291 : vector<1x8x72xbf16> to vector<8x72xbf16>
    %c0_271 = arith.constant 0 : index
    %c0_272 = arith.constant 0 : index
    %293 = vector.load %arg6[%c0_271, %c0_272] : memref<72x512xf32, #tpu.memory_space<vmem>>, vector<72x512xf32>
    %294 = arith.truncf %293 : vector<72x512xf32> to vector<72x512xbf16>
    %cst_273 = arith.constant dense<0.000000e+00> : vector<8x512xf32>
    %295 = tpu.matmul %292, %294, %cst_273 {dimension_numbers = #tpu.dot_dimension_numbers<[1], [0], [0], [1], [0, 0, 1, 1], [], []>} : vector<8x72xbf16>, vector<72x512xbf16>, vector<8x512xf32> -> vector<8x512xf32>
    %c4_274 = arith.constant 4 : index
    %c0_275 = arith.constant 0 : index
    %c0_276 = arith.constant 0 : index
    %296 = vector.load %arg3[%c4_274, %c0_275, %c0_276] : memref<19x8x1xf32, #tpu.memory_space<vmem>>, vector<1x8x1xf32>
    %297 = vector.shape_cast %296 : vector<1x8x1xf32> to vector<8x1xf32>
    %298 = vector.broadcast %297 : vector<8x1xf32> to vector<8x512xf32>
    %299 = arith.addf %295, %298 : vector<8x512xf32>
    %cst_277 = arith.constant 0.000000e+00 : f32
    %300 = vector.broadcast %cst_277 : f32 to vector<8x512xf32>
    %301 = arith.maximumf %299, %300 : vector<8x512xf32>
    %c17_i32_278 = arith.constant 17 : i32
    %302 = tpu.dynamic_rotate %301 by %c17_i32_278 dim 1 : vector<8x512xf32>, i32 -> vector<8x512xf32>
    %c0_279 = arith.constant 0 : index
    %c0_280 = arith.constant 0 : index
    %c0_281 = arith.constant 0 : index
    %303 = vector.load %arg4[%c0_279, %c0_280, %c0_281] : memref<9x1x512xf32, #tpu.memory_space<vmem>>, vector<1x1x512xf32>
    %304 = vector.shape_cast %303 : vector<1x1x512xf32> to vector<1x512xf32>
    %305 = vector.broadcast %304 : vector<1x512xf32> to vector<8x512xf32>
    %306 = arith.mulf %302, %305 : vector<8x512xf32>
    %c0_282 = arith.constant 0 : index
    %c0_283 = arith.constant 0 : index
    %307 = vector.load %arg6[%c0_282, %c0_283] : memref<72x512xf32, #tpu.memory_space<vmem>>, vector<8x512xf32>
    tpu.vector_store %arg6[%c0_282, %c0_283], %306 {strides = array<i32>} : memref<72x512xf32, #tpu.memory_space<vmem>>, vector<8x512xf32>,
    %c16_i32_284 = arith.constant 16 : i32
    %308 = tpu.dynamic_rotate %301 by %c16_i32_284 dim 1 : vector<8x512xf32>, i32 -> vector<8x512xf32>
    %c1_285 = arith.constant 1 : index
    %c0_286 = arith.constant 0 : index
    %c0_287 = arith.constant 0 : index
    %309 = vector.load %arg4[%c1_285, %c0_286, %c0_287] : memref<9x1x512xf32, #tpu.memory_space<vmem>>, vector<1x1x512xf32>
    %310 = vector.shape_cast %309 : vector<1x1x512xf32> to vector<1x512xf32>
    %311 = vector.broadcast %310 : vector<1x512xf32> to vector<8x512xf32>
    %312 = arith.mulf %308, %311 : vector<8x512xf32>
    %c8_288 = arith.constant 8 : index
    %c0_289 = arith.constant 0 : index
    %313 = vector.load %arg6[%c8_288, %c0_289] : memref<72x512xf32, #tpu.memory_space<vmem>>, vector<8x512xf32>
    tpu.vector_store %arg6[%c8_288, %c0_289], %312 {strides = array<i32>} : memref<72x512xf32, #tpu.memory_space<vmem>>, vector<8x512xf32>,
    %c15_i32_290 = arith.constant 15 : i32
    %314 = tpu.dynamic_rotate %301 by %c15_i32_290 dim 1 : vector<8x512xf32>, i32 -> vector<8x512xf32>
    %c2_291 = arith.constant 2 : index
    %c0_292 = arith.constant 0 : index
    %c0_293 = arith.constant 0 : index
    %315 = vector.load %arg4[%c2_291, %c0_292, %c0_293] : memref<9x1x512xf32, #tpu.memory_space<vmem>>, vector<1x1x512xf32>
    %316 = vector.shape_cast %315 : vector<1x1x512xf32> to vector<1x512xf32>
    %317 = vector.broadcast %316 : vector<1x512xf32> to vector<8x512xf32>
    %318 = arith.mulf %314, %317 : vector<8x512xf32>
    %c16_294 = arith.constant 16 : index
    %c0_295 = arith.constant 0 : index
    %319 = vector.load %arg6[%c16_294, %c0_295] : memref<72x512xf32, #tpu.memory_space<vmem>>, vector<8x512xf32>
    tpu.vector_store %arg6[%c16_294, %c0_295], %318 {strides = array<i32>} : memref<72x512xf32, #tpu.memory_space<vmem>>, vector<8x512xf32>,
    %c1_i32_296 = arith.constant 1 : i32
    %320 = tpu.dynamic_rotate %301 by %c1_i32_296 dim 1 : vector<8x512xf32>, i32 -> vector<8x512xf32>
    %c3_297 = arith.constant 3 : index
    %c0_298 = arith.constant 0 : index
    %c0_299 = arith.constant 0 : index
    %321 = vector.load %arg4[%c3_297, %c0_298, %c0_299] : memref<9x1x512xf32, #tpu.memory_space<vmem>>, vector<1x1x512xf32>
    %322 = vector.shape_cast %321 : vector<1x1x512xf32> to vector<1x512xf32>
    %323 = vector.broadcast %322 : vector<1x512xf32> to vector<8x512xf32>
    %324 = arith.mulf %320, %323 : vector<8x512xf32>
    %c24_300 = arith.constant 24 : index
    %c0_301 = arith.constant 0 : index
    %325 = vector.load %arg6[%c24_300, %c0_301] : memref<72x512xf32, #tpu.memory_space<vmem>>, vector<8x512xf32>
    tpu.vector_store %arg6[%c24_300, %c0_301], %324 {strides = array<i32>} : memref<72x512xf32, #tpu.memory_space<vmem>>, vector<8x512xf32>,
    %c32_302 = arith.constant 32 : index
    %c0_303 = arith.constant 0 : index
    %326 = vector.load %arg6[%c32_302, %c0_303] : memref<72x512xf32, #tpu.memory_space<vmem>>, vector<8x512xf32>
    tpu.vector_store %arg6[%c32_302, %c0_303], %301 {strides = array<i32>} : memref<72x512xf32, #tpu.memory_space<vmem>>, vector<8x512xf32>,
    %c511_i32_304 = arith.constant 511 : i32
    %327 = tpu.dynamic_rotate %301 by %c511_i32_304 dim 1 : vector<8x512xf32>, i32 -> vector<8x512xf32>
    %c5_305 = arith.constant 5 : index
    %c0_306 = arith.constant 0 : index
    %c0_307 = arith.constant 0 : index
    %328 = vector.load %arg4[%c5_305, %c0_306, %c0_307] : memref<9x1x512xf32, #tpu.memory_space<vmem>>, vector<1x1x512xf32>
    %329 = vector.shape_cast %328 : vector<1x1x512xf32> to vector<1x512xf32>
    %330 = vector.broadcast %329 : vector<1x512xf32> to vector<8x512xf32>
    %331 = arith.mulf %327, %330 : vector<8x512xf32>
    %c40_308 = arith.constant 40 : index
    %c0_309 = arith.constant 0 : index
    %332 = vector.load %arg6[%c40_308, %c0_309] : memref<72x512xf32, #tpu.memory_space<vmem>>, vector<8x512xf32>
    tpu.vector_store %arg6[%c40_308, %c0_309], %331 {strides = array<i32>} : memref<72x512xf32, #tpu.memory_space<vmem>>, vector<8x512xf32>,
    %c497_i32_310 = arith.constant 497 : i32
    %333 = tpu.dynamic_rotate %301 by %c497_i32_310 dim 1 : vector<8x512xf32>, i32 -> vector<8x512xf32>
    %c6_311 = arith.constant 6 : index
    %c0_312 = arith.constant 0 : index
    %c0_313 = arith.constant 0 : index
    %334 = vector.load %arg4[%c6_311, %c0_312, %c0_313] : memref<9x1x512xf32, #tpu.memory_space<vmem>>, vector<1x1x512xf32>
    %335 = vector.shape_cast %334 : vector<1x1x512xf32> to vector<1x512xf32>
    %336 = vector.broadcast %335 : vector<1x512xf32> to vector<8x512xf32>
    %337 = arith.mulf %333, %336 : vector<8x512xf32>
    %c48_314 = arith.constant 48 : index
    %c0_315 = arith.constant 0 : index
    %338 = vector.load %arg6[%c48_314, %c0_315] : memref<72x512xf32, #tpu.memory_space<vmem>>, vector<8x512xf32>
    tpu.vector_store %arg6[%c48_314, %c0_315], %337 {strides = array<i32>} : memref<72x512xf32, #tpu.memory_space<vmem>>, vector<8x512xf32>,
    %c496_i32_316 = arith.constant 496 : i32
    %339 = tpu.dynamic_rotate %301 by %c496_i32_316 dim 1 : vector<8x512xf32>, i32 -> vector<8x512xf32>
    %c7_317 = arith.constant 7 : index
    %c0_318 = arith.constant 0 : index
    %c0_319 = arith.constant 0 : index
    %340 = vector.load %arg4[%c7_317, %c0_318, %c0_319] : memref<9x1x512xf32, #tpu.memory_space<vmem>>, vector<1x1x512xf32>
    %341 = vector.shape_cast %340 : vector<1x1x512xf32> to vector<1x512xf32>
    %342 = vector.broadcast %341 : vector<1x512xf32> to vector<8x512xf32>
    %343 = arith.mulf %339, %342 : vector<8x512xf32>
    %c56_320 = arith.constant 56 : index
    %c0_321 = arith.constant 0 : index
    %344 = vector.load %arg6[%c56_320, %c0_321] : memref<72x512xf32, #tpu.memory_space<vmem>>, vector<8x512xf32>
    tpu.vector_store %arg6[%c56_320, %c0_321], %343 {strides = array<i32>} : memref<72x512xf32, #tpu.memory_space<vmem>>, vector<8x512xf32>,
    %c495_i32_322 = arith.constant 495 : i32
    %345 = tpu.dynamic_rotate %301 by %c495_i32_322 dim 1 : vector<8x512xf32>, i32 -> vector<8x512xf32>
    %c8_323 = arith.constant 8 : index
    %c0_324 = arith.constant 0 : index
    %c0_325 = arith.constant 0 : index
    %346 = vector.load %arg4[%c8_323, %c0_324, %c0_325] : memref<9x1x512xf32, #tpu.memory_space<vmem>>, vector<1x1x512xf32>
    %347 = vector.shape_cast %346 : vector<1x1x512xf32> to vector<1x512xf32>
    %348 = vector.broadcast %347 : vector<1x512xf32> to vector<8x512xf32>
    %349 = arith.mulf %345, %348 : vector<8x512xf32>
    %c64_326 = arith.constant 64 : index
    %c0_327 = arith.constant 0 : index
    %350 = vector.load %arg6[%c64_326, %c0_327] : memref<72x512xf32, #tpu.memory_space<vmem>>, vector<8x512xf32>
    tpu.vector_store %arg6[%c64_326, %c0_327], %349 {strides = array<i32>} : memref<72x512xf32, #tpu.memory_space<vmem>>, vector<8x512xf32>,
    %c5_328 = arith.constant 5 : index
    %c0_329 = arith.constant 0 : index
    %c0_330 = arith.constant 0 : index
    %351 = vector.load %arg2[%c5_328, %c0_329, %c0_330] : memref<19x8x72xbf16, #tpu.memory_space<vmem>>, vector<1x8x72xbf16>
    %352 = vector.shape_cast %351 : vector<1x8x72xbf16> to vector<8x72xbf16>
    %c0_331 = arith.constant 0 : index
    %c0_332 = arith.constant 0 : index
    %353 = vector.load %arg6[%c0_331, %c0_332] : memref<72x512xf32, #tpu.memory_space<vmem>>, vector<72x512xf32>
    %354 = arith.truncf %353 : vector<72x512xf32> to vector<72x512xbf16>
    %cst_333 = arith.constant dense<0.000000e+00> : vector<8x512xf32>
    %355 = tpu.matmul %352, %354, %cst_333 {dimension_numbers = #tpu.dot_dimension_numbers<[1], [0], [0], [1], [0, 0, 1, 1], [], []>} : vector<8x72xbf16>, vector<72x512xbf16>, vector<8x512xf32> -> vector<8x512xf32>
    %c5_334 = arith.constant 5 : index
    %c0_335 = arith.constant 0 : index
    %c0_336 = arith.constant 0 : index
    %356 = vector.load %arg3[%c5_334, %c0_335, %c0_336] : memref<19x8x1xf32, #tpu.memory_space<vmem>>, vector<1x8x1xf32>
    %357 = vector.shape_cast %356 : vector<1x8x1xf32> to vector<8x1xf32>
    %358 = vector.broadcast %357 : vector<8x1xf32> to vector<8x512xf32>
    %359 = arith.addf %355, %358 : vector<8x512xf32>
    %cst_337 = arith.constant 0.000000e+00 : f32
    %360 = vector.broadcast %cst_337 : f32 to vector<8x512xf32>
    %361 = arith.maximumf %359, %360 : vector<8x512xf32>
    %c17_i32_338 = arith.constant 17 : i32
    %362 = tpu.dynamic_rotate %361 by %c17_i32_338 dim 1 : vector<8x512xf32>, i32 -> vector<8x512xf32>
    %c0_339 = arith.constant 0 : index
    %c0_340 = arith.constant 0 : index
    %c0_341 = arith.constant 0 : index
    %363 = vector.load %arg4[%c0_339, %c0_340, %c0_341] : memref<9x1x512xf32, #tpu.memory_space<vmem>>, vector<1x1x512xf32>
    %364 = vector.shape_cast %363 : vector<1x1x512xf32> to vector<1x512xf32>
    %365 = vector.broadcast %364 : vector<1x512xf32> to vector<8x512xf32>
    %366 = arith.mulf %362, %365 : vector<8x512xf32>
    %c0_342 = arith.constant 0 : index
    %c0_343 = arith.constant 0 : index
    %367 = vector.load %arg6[%c0_342, %c0_343] : memref<72x512xf32, #tpu.memory_space<vmem>>, vector<8x512xf32>
    tpu.vector_store %arg6[%c0_342, %c0_343], %366 {strides = array<i32>} : memref<72x512xf32, #tpu.memory_space<vmem>>, vector<8x512xf32>,
    %c16_i32_344 = arith.constant 16 : i32
    %368 = tpu.dynamic_rotate %361 by %c16_i32_344 dim 1 : vector<8x512xf32>, i32 -> vector<8x512xf32>
    %c1_345 = arith.constant 1 : index
    %c0_346 = arith.constant 0 : index
    %c0_347 = arith.constant 0 : index
    %369 = vector.load %arg4[%c1_345, %c0_346, %c0_347] : memref<9x1x512xf32, #tpu.memory_space<vmem>>, vector<1x1x512xf32>
    %370 = vector.shape_cast %369 : vector<1x1x512xf32> to vector<1x512xf32>
    %371 = vector.broadcast %370 : vector<1x512xf32> to vector<8x512xf32>
    %372 = arith.mulf %368, %371 : vector<8x512xf32>
    %c8_348 = arith.constant 8 : index
    %c0_349 = arith.constant 0 : index
    %373 = vector.load %arg6[%c8_348, %c0_349] : memref<72x512xf32, #tpu.memory_space<vmem>>, vector<8x512xf32>
    tpu.vector_store %arg6[%c8_348, %c0_349], %372 {strides = array<i32>} : memref<72x512xf32, #tpu.memory_space<vmem>>, vector<8x512xf32>,
    %c15_i32_350 = arith.constant 15 : i32
    %374 = tpu.dynamic_rotate %361 by %c15_i32_350 dim 1 : vector<8x512xf32>, i32 -> vector<8x512xf32>
    %c2_351 = arith.constant 2 : index
    %c0_352 = arith.constant 0 : index
    %c0_353 = arith.constant 0 : index
    %375 = vector.load %arg4[%c2_351, %c0_352, %c0_353] : memref<9x1x512xf32, #tpu.memory_space<vmem>>, vector<1x1x512xf32>
    %376 = vector.shape_cast %375 : vector<1x1x512xf32> to vector<1x512xf32>
    %377 = vector.broadcast %376 : vector<1x512xf32> to vector<8x512xf32>
    %378 = arith.mulf %374, %377 : vector<8x512xf32>
    %c16_354 = arith.constant 16 : index
    %c0_355 = arith.constant 0 : index
    %379 = vector.load %arg6[%c16_354, %c0_355] : memref<72x512xf32, #tpu.memory_space<vmem>>, vector<8x512xf32>
    tpu.vector_store %arg6[%c16_354, %c0_355], %378 {strides = array<i32>} : memref<72x512xf32, #tpu.memory_space<vmem>>, vector<8x512xf32>,
    %c1_i32_356 = arith.constant 1 : i32
    %380 = tpu.dynamic_rotate %361 by %c1_i32_356 dim 1 : vector<8x512xf32>, i32 -> vector<8x512xf32>
    %c3_357 = arith.constant 3 : index
    %c0_358 = arith.constant 0 : index
    %c0_359 = arith.constant 0 : index
    %381 = vector.load %arg4[%c3_357, %c0_358, %c0_359] : memref<9x1x512xf32, #tpu.memory_space<vmem>>, vector<1x1x512xf32>
    %382 = vector.shape_cast %381 : vector<1x1x512xf32> to vector<1x512xf32>
    %383 = vector.broadcast %382 : vector<1x512xf32> to vector<8x512xf32>
    %384 = arith.mulf %380, %383 : vector<8x512xf32>
    %c24_360 = arith.constant 24 : index
    %c0_361 = arith.constant 0 : index
    %385 = vector.load %arg6[%c24_360, %c0_361] : memref<72x512xf32, #tpu.memory_space<vmem>>, vector<8x512xf32>
    tpu.vector_store %arg6[%c24_360, %c0_361], %384 {strides = array<i32>} : memref<72x512xf32, #tpu.memory_space<vmem>>, vector<8x512xf32>,
    %c32_362 = arith.constant 32 : index
    %c0_363 = arith.constant 0 : index
    %386 = vector.load %arg6[%c32_362, %c0_363] : memref<72x512xf32, #tpu.memory_space<vmem>>, vector<8x512xf32>
    tpu.vector_store %arg6[%c32_362, %c0_363], %361 {strides = array<i32>} : memref<72x512xf32, #tpu.memory_space<vmem>>, vector<8x512xf32>,
    %c511_i32_364 = arith.constant 511 : i32
    %387 = tpu.dynamic_rotate %361 by %c511_i32_364 dim 1 : vector<8x512xf32>, i32 -> vector<8x512xf32>
    %c5_365 = arith.constant 5 : index
    %c0_366 = arith.constant 0 : index
    %c0_367 = arith.constant 0 : index
    %388 = vector.load %arg4[%c5_365, %c0_366, %c0_367] : memref<9x1x512xf32, #tpu.memory_space<vmem>>, vector<1x1x512xf32>
    %389 = vector.shape_cast %388 : vector<1x1x512xf32> to vector<1x512xf32>
    %390 = vector.broadcast %389 : vector<1x512xf32> to vector<8x512xf32>
    %391 = arith.mulf %387, %390 : vector<8x512xf32>
    %c40_368 = arith.constant 40 : index
    %c0_369 = arith.constant 0 : index
    %392 = vector.load %arg6[%c40_368, %c0_369] : memref<72x512xf32, #tpu.memory_space<vmem>>, vector<8x512xf32>
    tpu.vector_store %arg6[%c40_368, %c0_369], %391 {strides = array<i32>} : memref<72x512xf32, #tpu.memory_space<vmem>>, vector<8x512xf32>,
    %c497_i32_370 = arith.constant 497 : i32
    %393 = tpu.dynamic_rotate %361 by %c497_i32_370 dim 1 : vector<8x512xf32>, i32 -> vector<8x512xf32>
    %c6_371 = arith.constant 6 : index
    %c0_372 = arith.constant 0 : index
    %c0_373 = arith.constant 0 : index
    %394 = vector.load %arg4[%c6_371, %c0_372, %c0_373] : memref<9x1x512xf32, #tpu.memory_space<vmem>>, vector<1x1x512xf32>
    %395 = vector.shape_cast %394 : vector<1x1x512xf32> to vector<1x512xf32>
    %396 = vector.broadcast %395 : vector<1x512xf32> to vector<8x512xf32>
    %397 = arith.mulf %393, %396 : vector<8x512xf32>
    %c48_374 = arith.constant 48 : index
    %c0_375 = arith.constant 0 : index
    %398 = vector.load %arg6[%c48_374, %c0_375] : memref<72x512xf32, #tpu.memory_space<vmem>>, vector<8x512xf32>
    tpu.vector_store %arg6[%c48_374, %c0_375], %397 {strides = array<i32>} : memref<72x512xf32, #tpu.memory_space<vmem>>, vector<8x512xf32>,
    %c496_i32_376 = arith.constant 496 : i32
    %399 = tpu.dynamic_rotate %361 by %c496_i32_376 dim 1 : vector<8x512xf32>, i32 -> vector<8x512xf32>
    %c7_377 = arith.constant 7 : index
    %c0_378 = arith.constant 0 : index
    %c0_379 = arith.constant 0 : index
    %400 = vector.load %arg4[%c7_377, %c0_378, %c0_379] : memref<9x1x512xf32, #tpu.memory_space<vmem>>, vector<1x1x512xf32>
    %401 = vector.shape_cast %400 : vector<1x1x512xf32> to vector<1x512xf32>
    %402 = vector.broadcast %401 : vector<1x512xf32> to vector<8x512xf32>
    %403 = arith.mulf %399, %402 : vector<8x512xf32>
    %c56_380 = arith.constant 56 : index
    %c0_381 = arith.constant 0 : index
    %404 = vector.load %arg6[%c56_380, %c0_381] : memref<72x512xf32, #tpu.memory_space<vmem>>, vector<8x512xf32>
    tpu.vector_store %arg6[%c56_380, %c0_381], %403 {strides = array<i32>} : memref<72x512xf32, #tpu.memory_space<vmem>>, vector<8x512xf32>,
    %c495_i32_382 = arith.constant 495 : i32
    %405 = tpu.dynamic_rotate %361 by %c495_i32_382 dim 1 : vector<8x512xf32>, i32 -> vector<8x512xf32>
    %c8_383 = arith.constant 8 : index
    %c0_384 = arith.constant 0 : index
    %c0_385 = arith.constant 0 : index
    %406 = vector.load %arg4[%c8_383, %c0_384, %c0_385] : memref<9x1x512xf32, #tpu.memory_space<vmem>>, vector<1x1x512xf32>
    %407 = vector.shape_cast %406 : vector<1x1x512xf32> to vector<1x512xf32>
    %408 = vector.broadcast %407 : vector<1x512xf32> to vector<8x512xf32>
    %409 = arith.mulf %405, %408 : vector<8x512xf32>
    %c64_386 = arith.constant 64 : index
    %c0_387 = arith.constant 0 : index
    %410 = vector.load %arg6[%c64_386, %c0_387] : memref<72x512xf32, #tpu.memory_space<vmem>>, vector<8x512xf32>
    tpu.vector_store %arg6[%c64_386, %c0_387], %409 {strides = array<i32>} : memref<72x512xf32, #tpu.memory_space<vmem>>, vector<8x512xf32>,
    %c6_388 = arith.constant 6 : index
    %c0_389 = arith.constant 0 : index
    %c0_390 = arith.constant 0 : index
    %411 = vector.load %arg2[%c6_388, %c0_389, %c0_390] : memref<19x8x72xbf16, #tpu.memory_space<vmem>>, vector<1x8x72xbf16>
    %412 = vector.shape_cast %411 : vector<1x8x72xbf16> to vector<8x72xbf16>
    %c0_391 = arith.constant 0 : index
    %c0_392 = arith.constant 0 : index
    %413 = vector.load %arg6[%c0_391, %c0_392] : memref<72x512xf32, #tpu.memory_space<vmem>>, vector<72x512xf32>
    %414 = arith.truncf %413 : vector<72x512xf32> to vector<72x512xbf16>
    %cst_393 = arith.constant dense<0.000000e+00> : vector<8x512xf32>
    %415 = tpu.matmul %412, %414, %cst_393 {dimension_numbers = #tpu.dot_dimension_numbers<[1], [0], [0], [1], [0, 0, 1, 1], [], []>} : vector<8x72xbf16>, vector<72x512xbf16>, vector<8x512xf32> -> vector<8x512xf32>
    %c6_394 = arith.constant 6 : index
    %c0_395 = arith.constant 0 : index
    %c0_396 = arith.constant 0 : index
    %416 = vector.load %arg3[%c6_394, %c0_395, %c0_396] : memref<19x8x1xf32, #tpu.memory_space<vmem>>, vector<1x8x1xf32>
    %417 = vector.shape_cast %416 : vector<1x8x1xf32> to vector<8x1xf32>
    %418 = vector.broadcast %417 : vector<8x1xf32> to vector<8x512xf32>
    %419 = arith.addf %415, %418 : vector<8x512xf32>
    %cst_397 = arith.constant 0.000000e+00 : f32
    %420 = vector.broadcast %cst_397 : f32 to vector<8x512xf32>
    %421 = arith.maximumf %419, %420 : vector<8x512xf32>
    %c0_398 = arith.constant 0 : index
    %c0_399 = arith.constant 0 : index
    %c0_400 = arith.constant 0 : index
    %c0_401 = arith.constant 0 : index
    %422 = vector.load %arg5[%c0_398, %c0_399, %c0_400, %c0_401] : memref<3x1x8x512xf32, #tpu.memory_space<vmem>>, vector<1x1x8x512xf32>
    %423 = vector.shape_cast %422 : vector<1x1x8x512xf32> to vector<8x512xf32>
    %424 = vector.shape_cast %421 : vector<8x512xf32> to vector<1x1x8x512xf32>
    tpu.vector_store %arg5[%c0_398, %c0_399, %c0_400, %c0_401], %424 {strides = array<i32>} : memref<3x1x8x512xf32, #tpu.memory_space<vmem>>, vector<1x1x8x512xf32>,
    %c17_i32_402 = arith.constant 17 : i32
    %425 = tpu.dynamic_rotate %421 by %c17_i32_402 dim 1 : vector<8x512xf32>, i32 -> vector<8x512xf32>
    %c0_403 = arith.constant 0 : index
    %c0_404 = arith.constant 0 : index
    %c0_405 = arith.constant 0 : index
    %426 = vector.load %arg4[%c0_403, %c0_404, %c0_405] : memref<9x1x512xf32, #tpu.memory_space<vmem>>, vector<1x1x512xf32>
    %427 = vector.shape_cast %426 : vector<1x1x512xf32> to vector<1x512xf32>
    %428 = vector.broadcast %427 : vector<1x512xf32> to vector<8x512xf32>
    %429 = arith.mulf %425, %428 : vector<8x512xf32>
    %c0_406 = arith.constant 0 : index
    %c0_407 = arith.constant 0 : index
    %430 = vector.load %arg6[%c0_406, %c0_407] : memref<72x512xf32, #tpu.memory_space<vmem>>, vector<8x512xf32>
    tpu.vector_store %arg6[%c0_406, %c0_407], %429 {strides = array<i32>} : memref<72x512xf32, #tpu.memory_space<vmem>>, vector<8x512xf32>,
    %c16_i32_408 = arith.constant 16 : i32
    %431 = tpu.dynamic_rotate %421 by %c16_i32_408 dim 1 : vector<8x512xf32>, i32 -> vector<8x512xf32>
    %c1_409 = arith.constant 1 : index
    %c0_410 = arith.constant 0 : index
    %c0_411 = arith.constant 0 : index
    %432 = vector.load %arg4[%c1_409, %c0_410, %c0_411] : memref<9x1x512xf32, #tpu.memory_space<vmem>>, vector<1x1x512xf32>
    %433 = vector.shape_cast %432 : vector<1x1x512xf32> to vector<1x512xf32>
    %434 = vector.broadcast %433 : vector<1x512xf32> to vector<8x512xf32>
    %435 = arith.mulf %431, %434 : vector<8x512xf32>
    %c8_412 = arith.constant 8 : index
    %c0_413 = arith.constant 0 : index
    %436 = vector.load %arg6[%c8_412, %c0_413] : memref<72x512xf32, #tpu.memory_space<vmem>>, vector<8x512xf32>
    tpu.vector_store %arg6[%c8_412, %c0_413], %435 {strides = array<i32>} : memref<72x512xf32, #tpu.memory_space<vmem>>, vector<8x512xf32>,
    %c15_i32_414 = arith.constant 15 : i32
    %437 = tpu.dynamic_rotate %421 by %c15_i32_414 dim 1 : vector<8x512xf32>, i32 -> vector<8x512xf32>
    %c2_415 = arith.constant 2 : index
    %c0_416 = arith.constant 0 : index
    %c0_417 = arith.constant 0 : index
    %438 = vector.load %arg4[%c2_415, %c0_416, %c0_417] : memref<9x1x512xf32, #tpu.memory_space<vmem>>, vector<1x1x512xf32>
    %439 = vector.shape_cast %438 : vector<1x1x512xf32> to vector<1x512xf32>
    %440 = vector.broadcast %439 : vector<1x512xf32> to vector<8x512xf32>
    %441 = arith.mulf %437, %440 : vector<8x512xf32>
    %c16_418 = arith.constant 16 : index
    %c0_419 = arith.constant 0 : index
    %442 = vector.load %arg6[%c16_418, %c0_419] : memref<72x512xf32, #tpu.memory_space<vmem>>, vector<8x512xf32>
    tpu.vector_store %arg6[%c16_418, %c0_419], %441 {strides = array<i32>} : memref<72x512xf32, #tpu.memory_space<vmem>>, vector<8x512xf32>,
    %c1_i32_420 = arith.constant 1 : i32
    %443 = tpu.dynamic_rotate %421 by %c1_i32_420 dim 1 : vector<8x512xf32>, i32 -> vector<8x512xf32>
    %c3_421 = arith.constant 3 : index
    %c0_422 = arith.constant 0 : index
    %c0_423 = arith.constant 0 : index
    %444 = vector.load %arg4[%c3_421, %c0_422, %c0_423] : memref<9x1x512xf32, #tpu.memory_space<vmem>>, vector<1x1x512xf32>
    %445 = vector.shape_cast %444 : vector<1x1x512xf32> to vector<1x512xf32>
    %446 = vector.broadcast %445 : vector<1x512xf32> to vector<8x512xf32>
    %447 = arith.mulf %443, %446 : vector<8x512xf32>
    %c24_424 = arith.constant 24 : index
    %c0_425 = arith.constant 0 : index
    %448 = vector.load %arg6[%c24_424, %c0_425] : memref<72x512xf32, #tpu.memory_space<vmem>>, vector<8x512xf32>
    tpu.vector_store %arg6[%c24_424, %c0_425], %447 {strides = array<i32>} : memref<72x512xf32, #tpu.memory_space<vmem>>, vector<8x512xf32>,
    %c32_426 = arith.constant 32 : index
    %c0_427 = arith.constant 0 : index
    %449 = vector.load %arg6[%c32_426, %c0_427] : memref<72x512xf32, #tpu.memory_space<vmem>>, vector<8x512xf32>
    tpu.vector_store %arg6[%c32_426, %c0_427], %421 {strides = array<i32>} : memref<72x512xf32, #tpu.memory_space<vmem>>, vector<8x512xf32>,
    %c511_i32_428 = arith.constant 511 : i32
    %450 = tpu.dynamic_rotate %421 by %c511_i32_428 dim 1 : vector<8x512xf32>, i32 -> vector<8x512xf32>
    %c5_429 = arith.constant 5 : index
    %c0_430 = arith.constant 0 : index
    %c0_431 = arith.constant 0 : index
    %451 = vector.load %arg4[%c5_429, %c0_430, %c0_431] : memref<9x1x512xf32, #tpu.memory_space<vmem>>, vector<1x1x512xf32>
    %452 = vector.shape_cast %451 : vector<1x1x512xf32> to vector<1x512xf32>
    %453 = vector.broadcast %452 : vector<1x512xf32> to vector<8x512xf32>
    %454 = arith.mulf %450, %453 : vector<8x512xf32>
    %c40_432 = arith.constant 40 : index
    %c0_433 = arith.constant 0 : index
    %455 = vector.load %arg6[%c40_432, %c0_433] : memref<72x512xf32, #tpu.memory_space<vmem>>, vector<8x512xf32>
    tpu.vector_store %arg6[%c40_432, %c0_433], %454 {strides = array<i32>} : memref<72x512xf32, #tpu.memory_space<vmem>>, vector<8x512xf32>,
    %c497_i32_434 = arith.constant 497 : i32
    %456 = tpu.dynamic_rotate %421 by %c497_i32_434 dim 1 : vector<8x512xf32>, i32 -> vector<8x512xf32>
    %c6_435 = arith.constant 6 : index
    %c0_436 = arith.constant 0 : index
    %c0_437 = arith.constant 0 : index
    %457 = vector.load %arg4[%c6_435, %c0_436, %c0_437] : memref<9x1x512xf32, #tpu.memory_space<vmem>>, vector<1x1x512xf32>
    %458 = vector.shape_cast %457 : vector<1x1x512xf32> to vector<1x512xf32>
    %459 = vector.broadcast %458 : vector<1x512xf32> to vector<8x512xf32>
    %460 = arith.mulf %456, %459 : vector<8x512xf32>
    %c48_438 = arith.constant 48 : index
    %c0_439 = arith.constant 0 : index
    %461 = vector.load %arg6[%c48_438, %c0_439] : memref<72x512xf32, #tpu.memory_space<vmem>>, vector<8x512xf32>
    tpu.vector_store %arg6[%c48_438, %c0_439], %460 {strides = array<i32>} : memref<72x512xf32, #tpu.memory_space<vmem>>, vector<8x512xf32>,
    %c496_i32_440 = arith.constant 496 : i32
    %462 = tpu.dynamic_rotate %421 by %c496_i32_440 dim 1 : vector<8x512xf32>, i32 -> vector<8x512xf32>
    %c7_441 = arith.constant 7 : index
    %c0_442 = arith.constant 0 : index
    %c0_443 = arith.constant 0 : index
    %463 = vector.load %arg4[%c7_441, %c0_442, %c0_443] : memref<9x1x512xf32, #tpu.memory_space<vmem>>, vector<1x1x512xf32>
    %464 = vector.shape_cast %463 : vector<1x1x512xf32> to vector<1x512xf32>
    %465 = vector.broadcast %464 : vector<1x512xf32> to vector<8x512xf32>
    %466 = arith.mulf %462, %465 : vector<8x512xf32>
    %c56_444 = arith.constant 56 : index
    %c0_445 = arith.constant 0 : index
    %467 = vector.load %arg6[%c56_444, %c0_445] : memref<72x512xf32, #tpu.memory_space<vmem>>, vector<8x512xf32>
    tpu.vector_store %arg6[%c56_444, %c0_445], %466 {strides = array<i32>} : memref<72x512xf32, #tpu.memory_space<vmem>>, vector<8x512xf32>,
    %c495_i32_446 = arith.constant 495 : i32
    %468 = tpu.dynamic_rotate %421 by %c495_i32_446 dim 1 : vector<8x512xf32>, i32 -> vector<8x512xf32>
    %c8_447 = arith.constant 8 : index
    %c0_448 = arith.constant 0 : index
    %c0_449 = arith.constant 0 : index
    %469 = vector.load %arg4[%c8_447, %c0_448, %c0_449] : memref<9x1x512xf32, #tpu.memory_space<vmem>>, vector<1x1x512xf32>
    %470 = vector.shape_cast %469 : vector<1x1x512xf32> to vector<1x512xf32>
    %471 = vector.broadcast %470 : vector<1x512xf32> to vector<8x512xf32>
    %472 = arith.mulf %468, %471 : vector<8x512xf32>
    %c64_450 = arith.constant 64 : index
    %c0_451 = arith.constant 0 : index
    %473 = vector.load %arg6[%c64_450, %c0_451] : memref<72x512xf32, #tpu.memory_space<vmem>>, vector<8x512xf32>
    tpu.vector_store %arg6[%c64_450, %c0_451], %472 {strides = array<i32>} : memref<72x512xf32, #tpu.memory_space<vmem>>, vector<8x512xf32>,
    %c7_452 = arith.constant 7 : index
    %c0_453 = arith.constant 0 : index
    %c0_454 = arith.constant 0 : index
    %474 = vector.load %arg2[%c7_452, %c0_453, %c0_454] : memref<19x8x72xbf16, #tpu.memory_space<vmem>>, vector<1x8x72xbf16>
    %475 = vector.shape_cast %474 : vector<1x8x72xbf16> to vector<8x72xbf16>
    %c0_455 = arith.constant 0 : index
    %c0_456 = arith.constant 0 : index
    %476 = vector.load %arg6[%c0_455, %c0_456] : memref<72x512xf32, #tpu.memory_space<vmem>>, vector<72x512xf32>
    %477 = arith.truncf %476 : vector<72x512xf32> to vector<72x512xbf16>
    %cst_457 = arith.constant dense<0.000000e+00> : vector<8x512xf32>
    %478 = tpu.matmul %475, %477, %cst_457 {dimension_numbers = #tpu.dot_dimension_numbers<[1], [0], [0], [1], [0, 0, 1, 1], [], []>} : vector<8x72xbf16>, vector<72x512xbf16>, vector<8x512xf32> -> vector<8x512xf32>
    %c7_458 = arith.constant 7 : index
    %c0_459 = arith.constant 0 : index
    %c0_460 = arith.constant 0 : index
    %479 = vector.load %arg3[%c7_458, %c0_459, %c0_460] : memref<19x8x1xf32, #tpu.memory_space<vmem>>, vector<1x8x1xf32>
    %480 = vector.shape_cast %479 : vector<1x8x1xf32> to vector<8x1xf32>
    %481 = vector.broadcast %480 : vector<8x1xf32> to vector<8x512xf32>
    %482 = arith.addf %478, %481 : vector<8x512xf32>
    %cst_461 = arith.constant 0.000000e+00 : f32
    %483 = vector.broadcast %cst_461 : f32 to vector<8x512xf32>
    %484 = arith.maximumf %482, %483 : vector<8x512xf32>
    %c17_i32_462 = arith.constant 17 : i32
    %485 = tpu.dynamic_rotate %484 by %c17_i32_462 dim 1 : vector<8x512xf32>, i32 -> vector<8x512xf32>
    %c0_463 = arith.constant 0 : index
    %c0_464 = arith.constant 0 : index
    %c0_465 = arith.constant 0 : index
    %486 = vector.load %arg4[%c0_463, %c0_464, %c0_465] : memref<9x1x512xf32, #tpu.memory_space<vmem>>, vector<1x1x512xf32>
    %487 = vector.shape_cast %486 : vector<1x1x512xf32> to vector<1x512xf32>
    %488 = vector.broadcast %487 : vector<1x512xf32> to vector<8x512xf32>
    %489 = arith.mulf %485, %488 : vector<8x512xf32>
    %c0_466 = arith.constant 0 : index
    %c0_467 = arith.constant 0 : index
    %490 = vector.load %arg6[%c0_466, %c0_467] : memref<72x512xf32, #tpu.memory_space<vmem>>, vector<8x512xf32>
    tpu.vector_store %arg6[%c0_466, %c0_467], %489 {strides = array<i32>} : memref<72x512xf32, #tpu.memory_space<vmem>>, vector<8x512xf32>,
    %c16_i32_468 = arith.constant 16 : i32
    %491 = tpu.dynamic_rotate %484 by %c16_i32_468 dim 1 : vector<8x512xf32>, i32 -> vector<8x512xf32>
    %c1_469 = arith.constant 1 : index
    %c0_470 = arith.constant 0 : index
    %c0_471 = arith.constant 0 : index
    %492 = vector.load %arg4[%c1_469, %c0_470, %c0_471] : memref<9x1x512xf32, #tpu.memory_space<vmem>>, vector<1x1x512xf32>
    %493 = vector.shape_cast %492 : vector<1x1x512xf32> to vector<1x512xf32>
    %494 = vector.broadcast %493 : vector<1x512xf32> to vector<8x512xf32>
    %495 = arith.mulf %491, %494 : vector<8x512xf32>
    %c8_472 = arith.constant 8 : index
    %c0_473 = arith.constant 0 : index
    %496 = vector.load %arg6[%c8_472, %c0_473] : memref<72x512xf32, #tpu.memory_space<vmem>>, vector<8x512xf32>
    tpu.vector_store %arg6[%c8_472, %c0_473], %495 {strides = array<i32>} : memref<72x512xf32, #tpu.memory_space<vmem>>, vector<8x512xf32>,
    %c15_i32_474 = arith.constant 15 : i32
    %497 = tpu.dynamic_rotate %484 by %c15_i32_474 dim 1 : vector<8x512xf32>, i32 -> vector<8x512xf32>
    %c2_475 = arith.constant 2 : index
    %c0_476 = arith.constant 0 : index
    %c0_477 = arith.constant 0 : index
    %498 = vector.load %arg4[%c2_475, %c0_476, %c0_477] : memref<9x1x512xf32, #tpu.memory_space<vmem>>, vector<1x1x512xf32>
    %499 = vector.shape_cast %498 : vector<1x1x512xf32> to vector<1x512xf32>
    %500 = vector.broadcast %499 : vector<1x512xf32> to vector<8x512xf32>
    %501 = arith.mulf %497, %500 : vector<8x512xf32>
    %c16_478 = arith.constant 16 : index
    %c0_479 = arith.constant 0 : index
    %502 = vector.load %arg6[%c16_478, %c0_479] : memref<72x512xf32, #tpu.memory_space<vmem>>, vector<8x512xf32>
    tpu.vector_store %arg6[%c16_478, %c0_479], %501 {strides = array<i32>} : memref<72x512xf32, #tpu.memory_space<vmem>>, vector<8x512xf32>,
    %c1_i32_480 = arith.constant 1 : i32
    %503 = tpu.dynamic_rotate %484 by %c1_i32_480 dim 1 : vector<8x512xf32>, i32 -> vector<8x512xf32>
    %c3_481 = arith.constant 3 : index
    %c0_482 = arith.constant 0 : index
    %c0_483 = arith.constant 0 : index
    %504 = vector.load %arg4[%c3_481, %c0_482, %c0_483] : memref<9x1x512xf32, #tpu.memory_space<vmem>>, vector<1x1x512xf32>
    %505 = vector.shape_cast %504 : vector<1x1x512xf32> to vector<1x512xf32>
    %506 = vector.broadcast %505 : vector<1x512xf32> to vector<8x512xf32>
    %507 = arith.mulf %503, %506 : vector<8x512xf32>
    %c24_484 = arith.constant 24 : index
    %c0_485 = arith.constant 0 : index
    %508 = vector.load %arg6[%c24_484, %c0_485] : memref<72x512xf32, #tpu.memory_space<vmem>>, vector<8x512xf32>
    tpu.vector_store %arg6[%c24_484, %c0_485], %507 {strides = array<i32>} : memref<72x512xf32, #tpu.memory_space<vmem>>, vector<8x512xf32>,
    %c32_486 = arith.constant 32 : index
    %c0_487 = arith.constant 0 : index
    %509 = vector.load %arg6[%c32_486, %c0_487] : memref<72x512xf32, #tpu.memory_space<vmem>>, vector<8x512xf32>
    tpu.vector_store %arg6[%c32_486, %c0_487], %484 {strides = array<i32>} : memref<72x512xf32, #tpu.memory_space<vmem>>, vector<8x512xf32>,
    %c511_i32_488 = arith.constant 511 : i32
    %510 = tpu.dynamic_rotate %484 by %c511_i32_488 dim 1 : vector<8x512xf32>, i32 -> vector<8x512xf32>
    %c5_489 = arith.constant 5 : index
    %c0_490 = arith.constant 0 : index
    %c0_491 = arith.constant 0 : index
    %511 = vector.load %arg4[%c5_489, %c0_490, %c0_491] : memref<9x1x512xf32, #tpu.memory_space<vmem>>, vector<1x1x512xf32>
    %512 = vector.shape_cast %511 : vector<1x1x512xf32> to vector<1x512xf32>
    %513 = vector.broadcast %512 : vector<1x512xf32> to vector<8x512xf32>
    %514 = arith.mulf %510, %513 : vector<8x512xf32>
    %c40_492 = arith.constant 40 : index
    %c0_493 = arith.constant 0 : index
    %515 = vector.load %arg6[%c40_492, %c0_493] : memref<72x512xf32, #tpu.memory_space<vmem>>, vector<8x512xf32>
    tpu.vector_store %arg6[%c40_492, %c0_493], %514 {strides = array<i32>} : memref<72x512xf32, #tpu.memory_space<vmem>>, vector<8x512xf32>,
    %c497_i32_494 = arith.constant 497 : i32
    %516 = tpu.dynamic_rotate %484 by %c497_i32_494 dim 1 : vector<8x512xf32>, i32 -> vector<8x512xf32>
    %c6_495 = arith.constant 6 : index
    %c0_496 = arith.constant 0 : index
    %c0_497 = arith.constant 0 : index
    %517 = vector.load %arg4[%c6_495, %c0_496, %c0_497] : memref<9x1x512xf32, #tpu.memory_space<vmem>>, vector<1x1x512xf32>
    %518 = vector.shape_cast %517 : vector<1x1x512xf32> to vector<1x512xf32>
    %519 = vector.broadcast %518 : vector<1x512xf32> to vector<8x512xf32>
    %520 = arith.mulf %516, %519 : vector<8x512xf32>
    %c48_498 = arith.constant 48 : index
    %c0_499 = arith.constant 0 : index
    %521 = vector.load %arg6[%c48_498, %c0_499] : memref<72x512xf32, #tpu.memory_space<vmem>>, vector<8x512xf32>
    tpu.vector_store %arg6[%c48_498, %c0_499], %520 {strides = array<i32>} : memref<72x512xf32, #tpu.memory_space<vmem>>, vector<8x512xf32>,
    %c496_i32_500 = arith.constant 496 : i32
    %522 = tpu.dynamic_rotate %484 by %c496_i32_500 dim 1 : vector<8x512xf32>, i32 -> vector<8x512xf32>
    %c7_501 = arith.constant 7 : index
    %c0_502 = arith.constant 0 : index
    %c0_503 = arith.constant 0 : index
    %523 = vector.load %arg4[%c7_501, %c0_502, %c0_503] : memref<9x1x512xf32, #tpu.memory_space<vmem>>, vector<1x1x512xf32>
    %524 = vector.shape_cast %523 : vector<1x1x512xf32> to vector<1x512xf32>
    %525 = vector.broadcast %524 : vector<1x512xf32> to vector<8x512xf32>
    %526 = arith.mulf %522, %525 : vector<8x512xf32>
    %c56_504 = arith.constant 56 : index
    %c0_505 = arith.constant 0 : index
    %527 = vector.load %arg6[%c56_504, %c0_505] : memref<72x512xf32, #tpu.memory_space<vmem>>, vector<8x512xf32>
    tpu.vector_store %arg6[%c56_504, %c0_505], %526 {strides = array<i32>} : memref<72x512xf32, #tpu.memory_space<vmem>>, vector<8x512xf32>,
    %c495_i32_506 = arith.constant 495 : i32
    %528 = tpu.dynamic_rotate %484 by %c495_i32_506 dim 1 : vector<8x512xf32>, i32 -> vector<8x512xf32>
    %c8_507 = arith.constant 8 : index
    %c0_508 = arith.constant 0 : index
    %c0_509 = arith.constant 0 : index
    %529 = vector.load %arg4[%c8_507, %c0_508, %c0_509] : memref<9x1x512xf32, #tpu.memory_space<vmem>>, vector<1x1x512xf32>
    %530 = vector.shape_cast %529 : vector<1x1x512xf32> to vector<1x512xf32>
    %531 = vector.broadcast %530 : vector<1x512xf32> to vector<8x512xf32>
    %532 = arith.mulf %528, %531 : vector<8x512xf32>
    %c64_510 = arith.constant 64 : index
    %c0_511 = arith.constant 0 : index
    %533 = vector.load %arg6[%c64_510, %c0_511] : memref<72x512xf32, #tpu.memory_space<vmem>>, vector<8x512xf32>
    tpu.vector_store %arg6[%c64_510, %c0_511], %532 {strides = array<i32>} : memref<72x512xf32, #tpu.memory_space<vmem>>, vector<8x512xf32>,
    %c8_512 = arith.constant 8 : index
    %c0_513 = arith.constant 0 : index
    %c0_514 = arith.constant 0 : index
    %534 = vector.load %arg2[%c8_512, %c0_513, %c0_514] : memref<19x8x72xbf16, #tpu.memory_space<vmem>>, vector<1x8x72xbf16>
    %535 = vector.shape_cast %534 : vector<1x8x72xbf16> to vector<8x72xbf16>
    %c0_515 = arith.constant 0 : index
    %c0_516 = arith.constant 0 : index
    %536 = vector.load %arg6[%c0_515, %c0_516] : memref<72x512xf32, #tpu.memory_space<vmem>>, vector<72x512xf32>
    %537 = arith.truncf %536 : vector<72x512xf32> to vector<72x512xbf16>
    %cst_517 = arith.constant dense<0.000000e+00> : vector<8x512xf32>
    %538 = tpu.matmul %535, %537, %cst_517 {dimension_numbers = #tpu.dot_dimension_numbers<[1], [0], [0], [1], [0, 0, 1, 1], [], []>} : vector<8x72xbf16>, vector<72x512xbf16>, vector<8x512xf32> -> vector<8x512xf32>
    %c8_518 = arith.constant 8 : index
    %c0_519 = arith.constant 0 : index
    %c0_520 = arith.constant 0 : index
    %539 = vector.load %arg3[%c8_518, %c0_519, %c0_520] : memref<19x8x1xf32, #tpu.memory_space<vmem>>, vector<1x8x1xf32>
    %540 = vector.shape_cast %539 : vector<1x8x1xf32> to vector<8x1xf32>
    %541 = vector.broadcast %540 : vector<8x1xf32> to vector<8x512xf32>
    %542 = arith.addf %538, %541 : vector<8x512xf32>
    %cst_521 = arith.constant 0.000000e+00 : f32
    %543 = vector.broadcast %cst_521 : f32 to vector<8x512xf32>
    %544 = arith.maximumf %542, %543 : vector<8x512xf32>
    %c17_i32_522 = arith.constant 17 : i32
    %545 = tpu.dynamic_rotate %544 by %c17_i32_522 dim 1 : vector<8x512xf32>, i32 -> vector<8x512xf32>
    %c0_523 = arith.constant 0 : index
    %c0_524 = arith.constant 0 : index
    %c0_525 = arith.constant 0 : index
    %546 = vector.load %arg4[%c0_523, %c0_524, %c0_525] : memref<9x1x512xf32, #tpu.memory_space<vmem>>, vector<1x1x512xf32>
    %547 = vector.shape_cast %546 : vector<1x1x512xf32> to vector<1x512xf32>
    %548 = vector.broadcast %547 : vector<1x512xf32> to vector<8x512xf32>
    %549 = arith.mulf %545, %548 : vector<8x512xf32>
    %c0_526 = arith.constant 0 : index
    %c0_527 = arith.constant 0 : index
    %550 = vector.load %arg6[%c0_526, %c0_527] : memref<72x512xf32, #tpu.memory_space<vmem>>, vector<8x512xf32>
    tpu.vector_store %arg6[%c0_526, %c0_527], %549 {strides = array<i32>} : memref<72x512xf32, #tpu.memory_space<vmem>>, vector<8x512xf32>,
    %c16_i32_528 = arith.constant 16 : i32
    %551 = tpu.dynamic_rotate %544 by %c16_i32_528 dim 1 : vector<8x512xf32>, i32 -> vector<8x512xf32>
    %c1_529 = arith.constant 1 : index
    %c0_530 = arith.constant 0 : index
    %c0_531 = arith.constant 0 : index
    %552 = vector.load %arg4[%c1_529, %c0_530, %c0_531] : memref<9x1x512xf32, #tpu.memory_space<vmem>>, vector<1x1x512xf32>
    %553 = vector.shape_cast %552 : vector<1x1x512xf32> to vector<1x512xf32>
    %554 = vector.broadcast %553 : vector<1x512xf32> to vector<8x512xf32>
    %555 = arith.mulf %551, %554 : vector<8x512xf32>
    %c8_532 = arith.constant 8 : index
    %c0_533 = arith.constant 0 : index
    %556 = vector.load %arg6[%c8_532, %c0_533] : memref<72x512xf32, #tpu.memory_space<vmem>>, vector<8x512xf32>
    tpu.vector_store %arg6[%c8_532, %c0_533], %555 {strides = array<i32>} : memref<72x512xf32, #tpu.memory_space<vmem>>, vector<8x512xf32>,
    %c15_i32_534 = arith.constant 15 : i32
    %557 = tpu.dynamic_rotate %544 by %c15_i32_534 dim 1 : vector<8x512xf32>, i32 -> vector<8x512xf32>
    %c2_535 = arith.constant 2 : index
    %c0_536 = arith.constant 0 : index
    %c0_537 = arith.constant 0 : index
    %558 = vector.load %arg4[%c2_535, %c0_536, %c0_537] : memref<9x1x512xf32, #tpu.memory_space<vmem>>, vector<1x1x512xf32>
    %559 = vector.shape_cast %558 : vector<1x1x512xf32> to vector<1x512xf32>
    %560 = vector.broadcast %559 : vector<1x512xf32> to vector<8x512xf32>
    %561 = arith.mulf %557, %560 : vector<8x512xf32>
    %c16_538 = arith.constant 16 : index
    %c0_539 = arith.constant 0 : index
    %562 = vector.load %arg6[%c16_538, %c0_539] : memref<72x512xf32, #tpu.memory_space<vmem>>, vector<8x512xf32>
    tpu.vector_store %arg6[%c16_538, %c0_539], %561 {strides = array<i32>} : memref<72x512xf32, #tpu.memory_space<vmem>>, vector<8x512xf32>,
    %c1_i32_540 = arith.constant 1 : i32
    %563 = tpu.dynamic_rotate %544 by %c1_i32_540 dim 1 : vector<8x512xf32>, i32 -> vector<8x512xf32>
    %c3_541 = arith.constant 3 : index
    %c0_542 = arith.constant 0 : index
    %c0_543 = arith.constant 0 : index
    %564 = vector.load %arg4[%c3_541, %c0_542, %c0_543] : memref<9x1x512xf32, #tpu.memory_space<vmem>>, vector<1x1x512xf32>
    %565 = vector.shape_cast %564 : vector<1x1x512xf32> to vector<1x512xf32>
    %566 = vector.broadcast %565 : vector<1x512xf32> to vector<8x512xf32>
    %567 = arith.mulf %563, %566 : vector<8x512xf32>
    %c24_544 = arith.constant 24 : index
    %c0_545 = arith.constant 0 : index
    %568 = vector.load %arg6[%c24_544, %c0_545] : memref<72x512xf32, #tpu.memory_space<vmem>>, vector<8x512xf32>
    tpu.vector_store %arg6[%c24_544, %c0_545], %567 {strides = array<i32>} : memref<72x512xf32, #tpu.memory_space<vmem>>, vector<8x512xf32>,
    %c32_546 = arith.constant 32 : index
    %c0_547 = arith.constant 0 : index
    %569 = vector.load %arg6[%c32_546, %c0_547] : memref<72x512xf32, #tpu.memory_space<vmem>>, vector<8x512xf32>
    tpu.vector_store %arg6[%c32_546, %c0_547], %544 {strides = array<i32>} : memref<72x512xf32, #tpu.memory_space<vmem>>, vector<8x512xf32>,
    %c511_i32_548 = arith.constant 511 : i32
    %570 = tpu.dynamic_rotate %544 by %c511_i32_548 dim 1 : vector<8x512xf32>, i32 -> vector<8x512xf32>
    %c5_549 = arith.constant 5 : index
    %c0_550 = arith.constant 0 : index
    %c0_551 = arith.constant 0 : index
    %571 = vector.load %arg4[%c5_549, %c0_550, %c0_551] : memref<9x1x512xf32, #tpu.memory_space<vmem>>, vector<1x1x512xf32>
    %572 = vector.shape_cast %571 : vector<1x1x512xf32> to vector<1x512xf32>
    %573 = vector.broadcast %572 : vector<1x512xf32> to vector<8x512xf32>
    %574 = arith.mulf %570, %573 : vector<8x512xf32>
    %c40_552 = arith.constant 40 : index
    %c0_553 = arith.constant 0 : index
    %575 = vector.load %arg6[%c40_552, %c0_553] : memref<72x512xf32, #tpu.memory_space<vmem>>, vector<8x512xf32>
    tpu.vector_store %arg6[%c40_552, %c0_553], %574 {strides = array<i32>} : memref<72x512xf32, #tpu.memory_space<vmem>>, vector<8x512xf32>,
    %c497_i32_554 = arith.constant 497 : i32
    %576 = tpu.dynamic_rotate %544 by %c497_i32_554 dim 1 : vector<8x512xf32>, i32 -> vector<8x512xf32>
    %c6_555 = arith.constant 6 : index
    %c0_556 = arith.constant 0 : index
    %c0_557 = arith.constant 0 : index
    %577 = vector.load %arg4[%c6_555, %c0_556, %c0_557] : memref<9x1x512xf32, #tpu.memory_space<vmem>>, vector<1x1x512xf32>
    %578 = vector.shape_cast %577 : vector<1x1x512xf32> to vector<1x512xf32>
    %579 = vector.broadcast %578 : vector<1x512xf32> to vector<8x512xf32>
    %580 = arith.mulf %576, %579 : vector<8x512xf32>
    %c48_558 = arith.constant 48 : index
    %c0_559 = arith.constant 0 : index
    %581 = vector.load %arg6[%c48_558, %c0_559] : memref<72x512xf32, #tpu.memory_space<vmem>>, vector<8x512xf32>
    tpu.vector_store %arg6[%c48_558, %c0_559], %580 {strides = array<i32>} : memref<72x512xf32, #tpu.memory_space<vmem>>, vector<8x512xf32>,
    %c496_i32_560 = arith.constant 496 : i32
    %582 = tpu.dynamic_rotate %544 by %c496_i32_560 dim 1 : vector<8x512xf32>, i32 -> vector<8x512xf32>
    %c7_561 = arith.constant 7 : index
    %c0_562 = arith.constant 0 : index
    %c0_563 = arith.constant 0 : index
    %583 = vector.load %arg4[%c7_561, %c0_562, %c0_563] : memref<9x1x512xf32, #tpu.memory_space<vmem>>, vector<1x1x512xf32>
    %584 = vector.shape_cast %583 : vector<1x1x512xf32> to vector<1x512xf32>
    %585 = vector.broadcast %584 : vector<1x512xf32> to vector<8x512xf32>
    %586 = arith.mulf %582, %585 : vector<8x512xf32>
    %c56_564 = arith.constant 56 : index
    %c0_565 = arith.constant 0 : index
    %587 = vector.load %arg6[%c56_564, %c0_565] : memref<72x512xf32, #tpu.memory_space<vmem>>, vector<8x512xf32>
    tpu.vector_store %arg6[%c56_564, %c0_565], %586 {strides = array<i32>} : memref<72x512xf32, #tpu.memory_space<vmem>>, vector<8x512xf32>,
    %c495_i32_566 = arith.constant 495 : i32
    %588 = tpu.dynamic_rotate %544 by %c495_i32_566 dim 1 : vector<8x512xf32>, i32 -> vector<8x512xf32>
    %c8_567 = arith.constant 8 : index
    %c0_568 = arith.constant 0 : index
    %c0_569 = arith.constant 0 : index
    %589 = vector.load %arg4[%c8_567, %c0_568, %c0_569] : memref<9x1x512xf32, #tpu.memory_space<vmem>>, vector<1x1x512xf32>
    %590 = vector.shape_cast %589 : vector<1x1x512xf32> to vector<1x512xf32>
    %591 = vector.broadcast %590 : vector<1x512xf32> to vector<8x512xf32>
    %592 = arith.mulf %588, %591 : vector<8x512xf32>
    %c64_570 = arith.constant 64 : index
    %c0_571 = arith.constant 0 : index
    %593 = vector.load %arg6[%c64_570, %c0_571] : memref<72x512xf32, #tpu.memory_space<vmem>>, vector<8x512xf32>
    tpu.vector_store %arg6[%c64_570, %c0_571], %592 {strides = array<i32>} : memref<72x512xf32, #tpu.memory_space<vmem>>, vector<8x512xf32>,
    %c9 = arith.constant 9 : index
    %c0_572 = arith.constant 0 : index
    %c0_573 = arith.constant 0 : index
    %594 = vector.load %arg2[%c9, %c0_572, %c0_573] : memref<19x8x72xbf16, #tpu.memory_space<vmem>>, vector<1x8x72xbf16>
    %595 = vector.shape_cast %594 : vector<1x8x72xbf16> to vector<8x72xbf16>
    %c0_574 = arith.constant 0 : index
    %c0_575 = arith.constant 0 : index
    %596 = vector.load %arg6[%c0_574, %c0_575] : memref<72x512xf32, #tpu.memory_space<vmem>>, vector<72x512xf32>
    %597 = arith.truncf %596 : vector<72x512xf32> to vector<72x512xbf16>
    %cst_576 = arith.constant dense<0.000000e+00> : vector<8x512xf32>
    %598 = tpu.matmul %595, %597, %cst_576 {dimension_numbers = #tpu.dot_dimension_numbers<[1], [0], [0], [1], [0, 0, 1, 1], [], []>} : vector<8x72xbf16>, vector<72x512xbf16>, vector<8x512xf32> -> vector<8x512xf32>
    %c9_577 = arith.constant 9 : index
    %c0_578 = arith.constant 0 : index
    %c0_579 = arith.constant 0 : index
    %599 = vector.load %arg3[%c9_577, %c0_578, %c0_579] : memref<19x8x1xf32, #tpu.memory_space<vmem>>, vector<1x8x1xf32>
    %600 = vector.shape_cast %599 : vector<1x8x1xf32> to vector<8x1xf32>
    %601 = vector.broadcast %600 : vector<8x1xf32> to vector<8x512xf32>
    %602 = arith.addf %598, %601 : vector<8x512xf32>
    %cst_580 = arith.constant 0.000000e+00 : f32
    %603 = vector.broadcast %cst_580 : f32 to vector<8x512xf32>
    %604 = arith.maximumf %602, %603 : vector<8x512xf32>
    %c17_i32_581 = arith.constant 17 : i32
    %605 = tpu.dynamic_rotate %604 by %c17_i32_581 dim 1 : vector<8x512xf32>, i32 -> vector<8x512xf32>
    %c0_582 = arith.constant 0 : index
    %c0_583 = arith.constant 0 : index
    %c0_584 = arith.constant 0 : index
    %606 = vector.load %arg4[%c0_582, %c0_583, %c0_584] : memref<9x1x512xf32, #tpu.memory_space<vmem>>, vector<1x1x512xf32>
    %607 = vector.shape_cast %606 : vector<1x1x512xf32> to vector<1x512xf32>
    %608 = vector.broadcast %607 : vector<1x512xf32> to vector<8x512xf32>
    %609 = arith.mulf %605, %608 : vector<8x512xf32>
    %c0_585 = arith.constant 0 : index
    %c0_586 = arith.constant 0 : index
    %610 = vector.load %arg6[%c0_585, %c0_586] : memref<72x512xf32, #tpu.memory_space<vmem>>, vector<8x512xf32>
    tpu.vector_store %arg6[%c0_585, %c0_586], %609 {strides = array<i32>} : memref<72x512xf32, #tpu.memory_space<vmem>>, vector<8x512xf32>,
    %c16_i32_587 = arith.constant 16 : i32
    %611 = tpu.dynamic_rotate %604 by %c16_i32_587 dim 1 : vector<8x512xf32>, i32 -> vector<8x512xf32>
    %c1_588 = arith.constant 1 : index
    %c0_589 = arith.constant 0 : index
    %c0_590 = arith.constant 0 : index
    %612 = vector.load %arg4[%c1_588, %c0_589, %c0_590] : memref<9x1x512xf32, #tpu.memory_space<vmem>>, vector<1x1x512xf32>
    %613 = vector.shape_cast %612 : vector<1x1x512xf32> to vector<1x512xf32>
    %614 = vector.broadcast %613 : vector<1x512xf32> to vector<8x512xf32>
    %615 = arith.mulf %611, %614 : vector<8x512xf32>
    %c8_591 = arith.constant 8 : index
    %c0_592 = arith.constant 0 : index
    %616 = vector.load %arg6[%c8_591, %c0_592] : memref<72x512xf32, #tpu.memory_space<vmem>>, vector<8x512xf32>
    tpu.vector_store %arg6[%c8_591, %c0_592], %615 {strides = array<i32>} : memref<72x512xf32, #tpu.memory_space<vmem>>, vector<8x512xf32>,
    %c15_i32_593 = arith.constant 15 : i32
    %617 = tpu.dynamic_rotate %604 by %c15_i32_593 dim 1 : vector<8x512xf32>, i32 -> vector<8x512xf32>
    %c2_594 = arith.constant 2 : index
    %c0_595 = arith.constant 0 : index
    %c0_596 = arith.constant 0 : index
    %618 = vector.load %arg4[%c2_594, %c0_595, %c0_596] : memref<9x1x512xf32, #tpu.memory_space<vmem>>, vector<1x1x512xf32>
    %619 = vector.shape_cast %618 : vector<1x1x512xf32> to vector<1x512xf32>
    %620 = vector.broadcast %619 : vector<1x512xf32> to vector<8x512xf32>
    %621 = arith.mulf %617, %620 : vector<8x512xf32>
    %c16_597 = arith.constant 16 : index
    %c0_598 = arith.constant 0 : index
    %622 = vector.load %arg6[%c16_597, %c0_598] : memref<72x512xf32, #tpu.memory_space<vmem>>, vector<8x512xf32>
    tpu.vector_store %arg6[%c16_597, %c0_598], %621 {strides = array<i32>} : memref<72x512xf32, #tpu.memory_space<vmem>>, vector<8x512xf32>,
    %c1_i32_599 = arith.constant 1 : i32
    %623 = tpu.dynamic_rotate %604 by %c1_i32_599 dim 1 : vector<8x512xf32>, i32 -> vector<8x512xf32>
    %c3_600 = arith.constant 3 : index
    %c0_601 = arith.constant 0 : index
    %c0_602 = arith.constant 0 : index
    %624 = vector.load %arg4[%c3_600, %c0_601, %c0_602] : memref<9x1x512xf32, #tpu.memory_space<vmem>>, vector<1x1x512xf32>
    %625 = vector.shape_cast %624 : vector<1x1x512xf32> to vector<1x512xf32>
    %626 = vector.broadcast %625 : vector<1x512xf32> to vector<8x512xf32>
    %627 = arith.mulf %623, %626 : vector<8x512xf32>
    %c24_603 = arith.constant 24 : index
    %c0_604 = arith.constant 0 : index
    %628 = vector.load %arg6[%c24_603, %c0_604] : memref<72x512xf32, #tpu.memory_space<vmem>>, vector<8x512xf32>
    tpu.vector_store %arg6[%c24_603, %c0_604], %627 {strides = array<i32>} : memref<72x512xf32, #tpu.memory_space<vmem>>, vector<8x512xf32>,
    %c32_605 = arith.constant 32 : index
    %c0_606 = arith.constant 0 : index
    %629 = vector.load %arg6[%c32_605, %c0_606] : memref<72x512xf32, #tpu.memory_space<vmem>>, vector<8x512xf32>
    tpu.vector_store %arg6[%c32_605, %c0_606], %604 {strides = array<i32>} : memref<72x512xf32, #tpu.memory_space<vmem>>, vector<8x512xf32>,
    %c511_i32_607 = arith.constant 511 : i32
    %630 = tpu.dynamic_rotate %604 by %c511_i32_607 dim 1 : vector<8x512xf32>, i32 -> vector<8x512xf32>
    %c5_608 = arith.constant 5 : index
    %c0_609 = arith.constant 0 : index
    %c0_610 = arith.constant 0 : index
    %631 = vector.load %arg4[%c5_608, %c0_609, %c0_610] : memref<9x1x512xf32, #tpu.memory_space<vmem>>, vector<1x1x512xf32>
    %632 = vector.shape_cast %631 : vector<1x1x512xf32> to vector<1x512xf32>
    %633 = vector.broadcast %632 : vector<1x512xf32> to vector<8x512xf32>
    %634 = arith.mulf %630, %633 : vector<8x512xf32>
    %c40_611 = arith.constant 40 : index
    %c0_612 = arith.constant 0 : index
    %635 = vector.load %arg6[%c40_611, %c0_612] : memref<72x512xf32, #tpu.memory_space<vmem>>, vector<8x512xf32>
    tpu.vector_store %arg6[%c40_611, %c0_612], %634 {strides = array<i32>} : memref<72x512xf32, #tpu.memory_space<vmem>>, vector<8x512xf32>,
    %c497_i32_613 = arith.constant 497 : i32
    %636 = tpu.dynamic_rotate %604 by %c497_i32_613 dim 1 : vector<8x512xf32>, i32 -> vector<8x512xf32>
    %c6_614 = arith.constant 6 : index
    %c0_615 = arith.constant 0 : index
    %c0_616 = arith.constant 0 : index
    %637 = vector.load %arg4[%c6_614, %c0_615, %c0_616] : memref<9x1x512xf32, #tpu.memory_space<vmem>>, vector<1x1x512xf32>
    %638 = vector.shape_cast %637 : vector<1x1x512xf32> to vector<1x512xf32>
    %639 = vector.broadcast %638 : vector<1x512xf32> to vector<8x512xf32>
    %640 = arith.mulf %636, %639 : vector<8x512xf32>
    %c48_617 = arith.constant 48 : index
    %c0_618 = arith.constant 0 : index
    %641 = vector.load %arg6[%c48_617, %c0_618] : memref<72x512xf32, #tpu.memory_space<vmem>>, vector<8x512xf32>
    tpu.vector_store %arg6[%c48_617, %c0_618], %640 {strides = array<i32>} : memref<72x512xf32, #tpu.memory_space<vmem>>, vector<8x512xf32>,
    %c496_i32_619 = arith.constant 496 : i32
    %642 = tpu.dynamic_rotate %604 by %c496_i32_619 dim 1 : vector<8x512xf32>, i32 -> vector<8x512xf32>
    %c7_620 = arith.constant 7 : index
    %c0_621 = arith.constant 0 : index
    %c0_622 = arith.constant 0 : index
    %643 = vector.load %arg4[%c7_620, %c0_621, %c0_622] : memref<9x1x512xf32, #tpu.memory_space<vmem>>, vector<1x1x512xf32>
    %644 = vector.shape_cast %643 : vector<1x1x512xf32> to vector<1x512xf32>
    %645 = vector.broadcast %644 : vector<1x512xf32> to vector<8x512xf32>
    %646 = arith.mulf %642, %645 : vector<8x512xf32>
    %c56_623 = arith.constant 56 : index
    %c0_624 = arith.constant 0 : index
    %647 = vector.load %arg6[%c56_623, %c0_624] : memref<72x512xf32, #tpu.memory_space<vmem>>, vector<8x512xf32>
    tpu.vector_store %arg6[%c56_623, %c0_624], %646 {strides = array<i32>} : memref<72x512xf32, #tpu.memory_space<vmem>>, vector<8x512xf32>,
    %c495_i32_625 = arith.constant 495 : i32
    %648 = tpu.dynamic_rotate %604 by %c495_i32_625 dim 1 : vector<8x512xf32>, i32 -> vector<8x512xf32>
    %c8_626 = arith.constant 8 : index
    %c0_627 = arith.constant 0 : index
    %c0_628 = arith.constant 0 : index
    %649 = vector.load %arg4[%c8_626, %c0_627, %c0_628] : memref<9x1x512xf32, #tpu.memory_space<vmem>>, vector<1x1x512xf32>
    %650 = vector.shape_cast %649 : vector<1x1x512xf32> to vector<1x512xf32>
    %651 = vector.broadcast %650 : vector<1x512xf32> to vector<8x512xf32>
    %652 = arith.mulf %648, %651 : vector<8x512xf32>
    %c64_629 = arith.constant 64 : index
    %c0_630 = arith.constant 0 : index
    %653 = vector.load %arg6[%c64_629, %c0_630] : memref<72x512xf32, #tpu.memory_space<vmem>>, vector<8x512xf32>
    tpu.vector_store %arg6[%c64_629, %c0_630], %652 {strides = array<i32>} : memref<72x512xf32, #tpu.memory_space<vmem>>, vector<8x512xf32>,
    %c10 = arith.constant 10 : index
    %c0_631 = arith.constant 0 : index
    %c0_632 = arith.constant 0 : index
    %654 = vector.load %arg2[%c10, %c0_631, %c0_632] : memref<19x8x72xbf16, #tpu.memory_space<vmem>>, vector<1x8x72xbf16>
    %655 = vector.shape_cast %654 : vector<1x8x72xbf16> to vector<8x72xbf16>
    %c0_633 = arith.constant 0 : index
    %c0_634 = arith.constant 0 : index
    %656 = vector.load %arg6[%c0_633, %c0_634] : memref<72x512xf32, #tpu.memory_space<vmem>>, vector<72x512xf32>
    %657 = arith.truncf %656 : vector<72x512xf32> to vector<72x512xbf16>
    %cst_635 = arith.constant dense<0.000000e+00> : vector<8x512xf32>
    %658 = tpu.matmul %655, %657, %cst_635 {dimension_numbers = #tpu.dot_dimension_numbers<[1], [0], [0], [1], [0, 0, 1, 1], [], []>} : vector<8x72xbf16>, vector<72x512xbf16>, vector<8x512xf32> -> vector<8x512xf32>
    %c10_636 = arith.constant 10 : index
    %c0_637 = arith.constant 0 : index
    %c0_638 = arith.constant 0 : index
    %659 = vector.load %arg3[%c10_636, %c0_637, %c0_638] : memref<19x8x1xf32, #tpu.memory_space<vmem>>, vector<1x8x1xf32>
    %660 = vector.shape_cast %659 : vector<1x8x1xf32> to vector<8x1xf32>
    %661 = vector.broadcast %660 : vector<8x1xf32> to vector<8x512xf32>
    %662 = arith.addf %658, %661 : vector<8x512xf32>
    %cst_639 = arith.constant 0.000000e+00 : f32
    %663 = vector.broadcast %cst_639 : f32 to vector<8x512xf32>
    %664 = arith.maximumf %662, %663 : vector<8x512xf32>
    %c17_i32_640 = arith.constant 17 : i32
    %665 = tpu.dynamic_rotate %664 by %c17_i32_640 dim 1 : vector<8x512xf32>, i32 -> vector<8x512xf32>
    %c0_641 = arith.constant 0 : index
    %c0_642 = arith.constant 0 : index
    %c0_643 = arith.constant 0 : index
    %666 = vector.load %arg4[%c0_641, %c0_642, %c0_643] : memref<9x1x512xf32, #tpu.memory_space<vmem>>, vector<1x1x512xf32>
    %667 = vector.shape_cast %666 : vector<1x1x512xf32> to vector<1x512xf32>
    %668 = vector.broadcast %667 : vector<1x512xf32> to vector<8x512xf32>
    %669 = arith.mulf %665, %668 : vector<8x512xf32>
    %c0_644 = arith.constant 0 : index
    %c0_645 = arith.constant 0 : index
    %670 = vector.load %arg6[%c0_644, %c0_645] : memref<72x512xf32, #tpu.memory_space<vmem>>, vector<8x512xf32>
    tpu.vector_store %arg6[%c0_644, %c0_645], %669 {strides = array<i32>} : memref<72x512xf32, #tpu.memory_space<vmem>>, vector<8x512xf32>,
    %c16_i32_646 = arith.constant 16 : i32
    %671 = tpu.dynamic_rotate %664 by %c16_i32_646 dim 1 : vector<8x512xf32>, i32 -> vector<8x512xf32>
    %c1_647 = arith.constant 1 : index
    %c0_648 = arith.constant 0 : index
    %c0_649 = arith.constant 0 : index
    %672 = vector.load %arg4[%c1_647, %c0_648, %c0_649] : memref<9x1x512xf32, #tpu.memory_space<vmem>>, vector<1x1x512xf32>
    %673 = vector.shape_cast %672 : vector<1x1x512xf32> to vector<1x512xf32>
    %674 = vector.broadcast %673 : vector<1x512xf32> to vector<8x512xf32>
    %675 = arith.mulf %671, %674 : vector<8x512xf32>
    %c8_650 = arith.constant 8 : index
    %c0_651 = arith.constant 0 : index
    %676 = vector.load %arg6[%c8_650, %c0_651] : memref<72x512xf32, #tpu.memory_space<vmem>>, vector<8x512xf32>
    tpu.vector_store %arg6[%c8_650, %c0_651], %675 {strides = array<i32>} : memref<72x512xf32, #tpu.memory_space<vmem>>, vector<8x512xf32>,
    %c15_i32_652 = arith.constant 15 : i32
    %677 = tpu.dynamic_rotate %664 by %c15_i32_652 dim 1 : vector<8x512xf32>, i32 -> vector<8x512xf32>
    %c2_653 = arith.constant 2 : index
    %c0_654 = arith.constant 0 : index
    %c0_655 = arith.constant 0 : index
    %678 = vector.load %arg4[%c2_653, %c0_654, %c0_655] : memref<9x1x512xf32, #tpu.memory_space<vmem>>, vector<1x1x512xf32>
    %679 = vector.shape_cast %678 : vector<1x1x512xf32> to vector<1x512xf32>
    %680 = vector.broadcast %679 : vector<1x512xf32> to vector<8x512xf32>
    %681 = arith.mulf %677, %680 : vector<8x512xf32>
    %c16_656 = arith.constant 16 : index
    %c0_657 = arith.constant 0 : index
    %682 = vector.load %arg6[%c16_656, %c0_657] : memref<72x512xf32, #tpu.memory_space<vmem>>, vector<8x512xf32>
    tpu.vector_store %arg6[%c16_656, %c0_657], %681 {strides = array<i32>} : memref<72x512xf32, #tpu.memory_space<vmem>>, vector<8x512xf32>,
    %c1_i32_658 = arith.constant 1 : i32
    %683 = tpu.dynamic_rotate %664 by %c1_i32_658 dim 1 : vector<8x512xf32>, i32 -> vector<8x512xf32>
    %c3_659 = arith.constant 3 : index
    %c0_660 = arith.constant 0 : index
    %c0_661 = arith.constant 0 : index
    %684 = vector.load %arg4[%c3_659, %c0_660, %c0_661] : memref<9x1x512xf32, #tpu.memory_space<vmem>>, vector<1x1x512xf32>
    %685 = vector.shape_cast %684 : vector<1x1x512xf32> to vector<1x512xf32>
    %686 = vector.broadcast %685 : vector<1x512xf32> to vector<8x512xf32>
    %687 = arith.mulf %683, %686 : vector<8x512xf32>
    %c24_662 = arith.constant 24 : index
    %c0_663 = arith.constant 0 : index
    %688 = vector.load %arg6[%c24_662, %c0_663] : memref<72x512xf32, #tpu.memory_space<vmem>>, vector<8x512xf32>
    tpu.vector_store %arg6[%c24_662, %c0_663], %687 {strides = array<i32>} : memref<72x512xf32, #tpu.memory_space<vmem>>, vector<8x512xf32>,
    %c32_664 = arith.constant 32 : index
    %c0_665 = arith.constant 0 : index
    %689 = vector.load %arg6[%c32_664, %c0_665] : memref<72x512xf32, #tpu.memory_space<vmem>>, vector<8x512xf32>
    tpu.vector_store %arg6[%c32_664, %c0_665], %664 {strides = array<i32>} : memref<72x512xf32, #tpu.memory_space<vmem>>, vector<8x512xf32>,
    %c511_i32_666 = arith.constant 511 : i32
    %690 = tpu.dynamic_rotate %664 by %c511_i32_666 dim 1 : vector<8x512xf32>, i32 -> vector<8x512xf32>
    %c5_667 = arith.constant 5 : index
    %c0_668 = arith.constant 0 : index
    %c0_669 = arith.constant 0 : index
    %691 = vector.load %arg4[%c5_667, %c0_668, %c0_669] : memref<9x1x512xf32, #tpu.memory_space<vmem>>, vector<1x1x512xf32>
    %692 = vector.shape_cast %691 : vector<1x1x512xf32> to vector<1x512xf32>
    %693 = vector.broadcast %692 : vector<1x512xf32> to vector<8x512xf32>
    %694 = arith.mulf %690, %693 : vector<8x512xf32>
    %c40_670 = arith.constant 40 : index
    %c0_671 = arith.constant 0 : index
    %695 = vector.load %arg6[%c40_670, %c0_671] : memref<72x512xf32, #tpu.memory_space<vmem>>, vector<8x512xf32>
    tpu.vector_store %arg6[%c40_670, %c0_671], %694 {strides = array<i32>} : memref<72x512xf32, #tpu.memory_space<vmem>>, vector<8x512xf32>,
    %c497_i32_672 = arith.constant 497 : i32
    %696 = tpu.dynamic_rotate %664 by %c497_i32_672 dim 1 : vector<8x512xf32>, i32 -> vector<8x512xf32>
    %c6_673 = arith.constant 6 : index
    %c0_674 = arith.constant 0 : index
    %c0_675 = arith.constant 0 : index
    %697 = vector.load %arg4[%c6_673, %c0_674, %c0_675] : memref<9x1x512xf32, #tpu.memory_space<vmem>>, vector<1x1x512xf32>
    %698 = vector.shape_cast %697 : vector<1x1x512xf32> to vector<1x512xf32>
    %699 = vector.broadcast %698 : vector<1x512xf32> to vector<8x512xf32>
    %700 = arith.mulf %696, %699 : vector<8x512xf32>
    %c48_676 = arith.constant 48 : index
    %c0_677 = arith.constant 0 : index
    %701 = vector.load %arg6[%c48_676, %c0_677] : memref<72x512xf32, #tpu.memory_space<vmem>>, vector<8x512xf32>
    tpu.vector_store %arg6[%c48_676, %c0_677], %700 {strides = array<i32>} : memref<72x512xf32, #tpu.memory_space<vmem>>, vector<8x512xf32>,
    %c496_i32_678 = arith.constant 496 : i32
    %702 = tpu.dynamic_rotate %664 by %c496_i32_678 dim 1 : vector<8x512xf32>, i32 -> vector<8x512xf32>
    %c7_679 = arith.constant 7 : index
    %c0_680 = arith.constant 0 : index
    %c0_681 = arith.constant 0 : index
    %703 = vector.load %arg4[%c7_679, %c0_680, %c0_681] : memref<9x1x512xf32, #tpu.memory_space<vmem>>, vector<1x1x512xf32>
    %704 = vector.shape_cast %703 : vector<1x1x512xf32> to vector<1x512xf32>
    %705 = vector.broadcast %704 : vector<1x512xf32> to vector<8x512xf32>
    %706 = arith.mulf %702, %705 : vector<8x512xf32>
    %c56_682 = arith.constant 56 : index
    %c0_683 = arith.constant 0 : index
    %707 = vector.load %arg6[%c56_682, %c0_683] : memref<72x512xf32, #tpu.memory_space<vmem>>, vector<8x512xf32>
    tpu.vector_store %arg6[%c56_682, %c0_683], %706 {strides = array<i32>} : memref<72x512xf32, #tpu.memory_space<vmem>>, vector<8x512xf32>,
    %c495_i32_684 = arith.constant 495 : i32
    %708 = tpu.dynamic_rotate %664 by %c495_i32_684 dim 1 : vector<8x512xf32>, i32 -> vector<8x512xf32>
    %c8_685 = arith.constant 8 : index
    %c0_686 = arith.constant 0 : index
    %c0_687 = arith.constant 0 : index
    %709 = vector.load %arg4[%c8_685, %c0_686, %c0_687] : memref<9x1x512xf32, #tpu.memory_space<vmem>>, vector<1x1x512xf32>
    %710 = vector.shape_cast %709 : vector<1x1x512xf32> to vector<1x512xf32>
    %711 = vector.broadcast %710 : vector<1x512xf32> to vector<8x512xf32>
    %712 = arith.mulf %708, %711 : vector<8x512xf32>
    %c64_688 = arith.constant 64 : index
    %c0_689 = arith.constant 0 : index
    %713 = vector.load %arg6[%c64_688, %c0_689] : memref<72x512xf32, #tpu.memory_space<vmem>>, vector<8x512xf32>
    tpu.vector_store %arg6[%c64_688, %c0_689], %712 {strides = array<i32>} : memref<72x512xf32, #tpu.memory_space<vmem>>, vector<8x512xf32>,
    %c11 = arith.constant 11 : index
    %c0_690 = arith.constant 0 : index
    %c0_691 = arith.constant 0 : index
    %714 = vector.load %arg2[%c11, %c0_690, %c0_691] : memref<19x8x72xbf16, #tpu.memory_space<vmem>>, vector<1x8x72xbf16>
    %715 = vector.shape_cast %714 : vector<1x8x72xbf16> to vector<8x72xbf16>
    %c0_692 = arith.constant 0 : index
    %c0_693 = arith.constant 0 : index
    %716 = vector.load %arg6[%c0_692, %c0_693] : memref<72x512xf32, #tpu.memory_space<vmem>>, vector<72x512xf32>
    %717 = arith.truncf %716 : vector<72x512xf32> to vector<72x512xbf16>
    %cst_694 = arith.constant dense<0.000000e+00> : vector<8x512xf32>
    %718 = tpu.matmul %715, %717, %cst_694 {dimension_numbers = #tpu.dot_dimension_numbers<[1], [0], [0], [1], [0, 0, 1, 1], [], []>} : vector<8x72xbf16>, vector<72x512xbf16>, vector<8x512xf32> -> vector<8x512xf32>
    %c11_695 = arith.constant 11 : index
    %c0_696 = arith.constant 0 : index
    %c0_697 = arith.constant 0 : index
    %719 = vector.load %arg3[%c11_695, %c0_696, %c0_697] : memref<19x8x1xf32, #tpu.memory_space<vmem>>, vector<1x8x1xf32>
    %720 = vector.shape_cast %719 : vector<1x8x1xf32> to vector<8x1xf32>
    %721 = vector.broadcast %720 : vector<8x1xf32> to vector<8x512xf32>
    %722 = arith.addf %718, %721 : vector<8x512xf32>
    %cst_698 = arith.constant 0.000000e+00 : f32
    %723 = vector.broadcast %cst_698 : f32 to vector<8x512xf32>
    %724 = arith.maximumf %722, %723 : vector<8x512xf32>
    %c17_i32_699 = arith.constant 17 : i32
    %725 = tpu.dynamic_rotate %724 by %c17_i32_699 dim 1 : vector<8x512xf32>, i32 -> vector<8x512xf32>
    %c0_700 = arith.constant 0 : index
    %c0_701 = arith.constant 0 : index
    %c0_702 = arith.constant 0 : index
    %726 = vector.load %arg4[%c0_700, %c0_701, %c0_702] : memref<9x1x512xf32, #tpu.memory_space<vmem>>, vector<1x1x512xf32>
    %727 = vector.shape_cast %726 : vector<1x1x512xf32> to vector<1x512xf32>
    %728 = vector.broadcast %727 : vector<1x512xf32> to vector<8x512xf32>
    %729 = arith.mulf %725, %728 : vector<8x512xf32>
    %c0_703 = arith.constant 0 : index
    %c0_704 = arith.constant 0 : index
    %730 = vector.load %arg6[%c0_703, %c0_704] : memref<72x512xf32, #tpu.memory_space<vmem>>, vector<8x512xf32>
    tpu.vector_store %arg6[%c0_703, %c0_704], %729 {strides = array<i32>} : memref<72x512xf32, #tpu.memory_space<vmem>>, vector<8x512xf32>,
    %c16_i32_705 = arith.constant 16 : i32
    %731 = tpu.dynamic_rotate %724 by %c16_i32_705 dim 1 : vector<8x512xf32>, i32 -> vector<8x512xf32>
    %c1_706 = arith.constant 1 : index
    %c0_707 = arith.constant 0 : index
    %c0_708 = arith.constant 0 : index
    %732 = vector.load %arg4[%c1_706, %c0_707, %c0_708] : memref<9x1x512xf32, #tpu.memory_space<vmem>>, vector<1x1x512xf32>
    %733 = vector.shape_cast %732 : vector<1x1x512xf32> to vector<1x512xf32>
    %734 = vector.broadcast %733 : vector<1x512xf32> to vector<8x512xf32>
    %735 = arith.mulf %731, %734 : vector<8x512xf32>
    %c8_709 = arith.constant 8 : index
    %c0_710 = arith.constant 0 : index
    %736 = vector.load %arg6[%c8_709, %c0_710] : memref<72x512xf32, #tpu.memory_space<vmem>>, vector<8x512xf32>
    tpu.vector_store %arg6[%c8_709, %c0_710], %735 {strides = array<i32>} : memref<72x512xf32, #tpu.memory_space<vmem>>, vector<8x512xf32>,
    %c15_i32_711 = arith.constant 15 : i32
    %737 = tpu.dynamic_rotate %724 by %c15_i32_711 dim 1 : vector<8x512xf32>, i32 -> vector<8x512xf32>
    %c2_712 = arith.constant 2 : index
    %c0_713 = arith.constant 0 : index
    %c0_714 = arith.constant 0 : index
    %738 = vector.load %arg4[%c2_712, %c0_713, %c0_714] : memref<9x1x512xf32, #tpu.memory_space<vmem>>, vector<1x1x512xf32>
    %739 = vector.shape_cast %738 : vector<1x1x512xf32> to vector<1x512xf32>
    %740 = vector.broadcast %739 : vector<1x512xf32> to vector<8x512xf32>
    %741 = arith.mulf %737, %740 : vector<8x512xf32>
    %c16_715 = arith.constant 16 : index
    %c0_716 = arith.constant 0 : index
    %742 = vector.load %arg6[%c16_715, %c0_716] : memref<72x512xf32, #tpu.memory_space<vmem>>, vector<8x512xf32>
    tpu.vector_store %arg6[%c16_715, %c0_716], %741 {strides = array<i32>} : memref<72x512xf32, #tpu.memory_space<vmem>>, vector<8x512xf32>,
    %c1_i32_717 = arith.constant 1 : i32
    %743 = tpu.dynamic_rotate %724 by %c1_i32_717 dim 1 : vector<8x512xf32>, i32 -> vector<8x512xf32>
    %c3_718 = arith.constant 3 : index
    %c0_719 = arith.constant 0 : index
    %c0_720 = arith.constant 0 : index
    %744 = vector.load %arg4[%c3_718, %c0_719, %c0_720] : memref<9x1x512xf32, #tpu.memory_space<vmem>>, vector<1x1x512xf32>
    %745 = vector.shape_cast %744 : vector<1x1x512xf32> to vector<1x512xf32>
    %746 = vector.broadcast %745 : vector<1x512xf32> to vector<8x512xf32>
    %747 = arith.mulf %743, %746 : vector<8x512xf32>
    %c24_721 = arith.constant 24 : index
    %c0_722 = arith.constant 0 : index
    %748 = vector.load %arg6[%c24_721, %c0_722] : memref<72x512xf32, #tpu.memory_space<vmem>>, vector<8x512xf32>
    tpu.vector_store %arg6[%c24_721, %c0_722], %747 {strides = array<i32>} : memref<72x512xf32, #tpu.memory_space<vmem>>, vector<8x512xf32>,
    %c32_723 = arith.constant 32 : index
    %c0_724 = arith.constant 0 : index
    %749 = vector.load %arg6[%c32_723, %c0_724] : memref<72x512xf32, #tpu.memory_space<vmem>>, vector<8x512xf32>
    tpu.vector_store %arg6[%c32_723, %c0_724], %724 {strides = array<i32>} : memref<72x512xf32, #tpu.memory_space<vmem>>, vector<8x512xf32>,
    %c511_i32_725 = arith.constant 511 : i32
    %750 = tpu.dynamic_rotate %724 by %c511_i32_725 dim 1 : vector<8x512xf32>, i32 -> vector<8x512xf32>
    %c5_726 = arith.constant 5 : index
    %c0_727 = arith.constant 0 : index
    %c0_728 = arith.constant 0 : index
    %751 = vector.load %arg4[%c5_726, %c0_727, %c0_728] : memref<9x1x512xf32, #tpu.memory_space<vmem>>, vector<1x1x512xf32>
    %752 = vector.shape_cast %751 : vector<1x1x512xf32> to vector<1x512xf32>
    %753 = vector.broadcast %752 : vector<1x512xf32> to vector<8x512xf32>
    %754 = arith.mulf %750, %753 : vector<8x512xf32>
    %c40_729 = arith.constant 40 : index
    %c0_730 = arith.constant 0 : index
    %755 = vector.load %arg6[%c40_729, %c0_730] : memref<72x512xf32, #tpu.memory_space<vmem>>, vector<8x512xf32>
    tpu.vector_store %arg6[%c40_729, %c0_730], %754 {strides = array<i32>} : memref<72x512xf32, #tpu.memory_space<vmem>>, vector<8x512xf32>,
    %c497_i32_731 = arith.constant 497 : i32
    %756 = tpu.dynamic_rotate %724 by %c497_i32_731 dim 1 : vector<8x512xf32>, i32 -> vector<8x512xf32>
    %c6_732 = arith.constant 6 : index
    %c0_733 = arith.constant 0 : index
    %c0_734 = arith.constant 0 : index
    %757 = vector.load %arg4[%c6_732, %c0_733, %c0_734] : memref<9x1x512xf32, #tpu.memory_space<vmem>>, vector<1x1x512xf32>
    %758 = vector.shape_cast %757 : vector<1x1x512xf32> to vector<1x512xf32>
    %759 = vector.broadcast %758 : vector<1x512xf32> to vector<8x512xf32>
    %760 = arith.mulf %756, %759 : vector<8x512xf32>
    %c48_735 = arith.constant 48 : index
    %c0_736 = arith.constant 0 : index
    %761 = vector.load %arg6[%c48_735, %c0_736] : memref<72x512xf32, #tpu.memory_space<vmem>>, vector<8x512xf32>
    tpu.vector_store %arg6[%c48_735, %c0_736], %760 {strides = array<i32>} : memref<72x512xf32, #tpu.memory_space<vmem>>, vector<8x512xf32>,
    %c496_i32_737 = arith.constant 496 : i32
    %762 = tpu.dynamic_rotate %724 by %c496_i32_737 dim 1 : vector<8x512xf32>, i32 -> vector<8x512xf32>
    %c7_738 = arith.constant 7 : index
    %c0_739 = arith.constant 0 : index
    %c0_740 = arith.constant 0 : index
    %763 = vector.load %arg4[%c7_738, %c0_739, %c0_740] : memref<9x1x512xf32, #tpu.memory_space<vmem>>, vector<1x1x512xf32>
    %764 = vector.shape_cast %763 : vector<1x1x512xf32> to vector<1x512xf32>
    %765 = vector.broadcast %764 : vector<1x512xf32> to vector<8x512xf32>
    %766 = arith.mulf %762, %765 : vector<8x512xf32>
    %c56_741 = arith.constant 56 : index
    %c0_742 = arith.constant 0 : index
    %767 = vector.load %arg6[%c56_741, %c0_742] : memref<72x512xf32, #tpu.memory_space<vmem>>, vector<8x512xf32>
    tpu.vector_store %arg6[%c56_741, %c0_742], %766 {strides = array<i32>} : memref<72x512xf32, #tpu.memory_space<vmem>>, vector<8x512xf32>,
    %c495_i32_743 = arith.constant 495 : i32
    %768 = tpu.dynamic_rotate %724 by %c495_i32_743 dim 1 : vector<8x512xf32>, i32 -> vector<8x512xf32>
    %c8_744 = arith.constant 8 : index
    %c0_745 = arith.constant 0 : index
    %c0_746 = arith.constant 0 : index
    %769 = vector.load %arg4[%c8_744, %c0_745, %c0_746] : memref<9x1x512xf32, #tpu.memory_space<vmem>>, vector<1x1x512xf32>
    %770 = vector.shape_cast %769 : vector<1x1x512xf32> to vector<1x512xf32>
    %771 = vector.broadcast %770 : vector<1x512xf32> to vector<8x512xf32>
    %772 = arith.mulf %768, %771 : vector<8x512xf32>
    %c64_747 = arith.constant 64 : index
    %c0_748 = arith.constant 0 : index
    %773 = vector.load %arg6[%c64_747, %c0_748] : memref<72x512xf32, #tpu.memory_space<vmem>>, vector<8x512xf32>
    tpu.vector_store %arg6[%c64_747, %c0_748], %772 {strides = array<i32>} : memref<72x512xf32, #tpu.memory_space<vmem>>, vector<8x512xf32>,
    %c12 = arith.constant 12 : index
    %c0_749 = arith.constant 0 : index
    %c0_750 = arith.constant 0 : index
    %774 = vector.load %arg2[%c12, %c0_749, %c0_750] : memref<19x8x72xbf16, #tpu.memory_space<vmem>>, vector<1x8x72xbf16>
    %775 = vector.shape_cast %774 : vector<1x8x72xbf16> to vector<8x72xbf16>
    %c0_751 = arith.constant 0 : index
    %c0_752 = arith.constant 0 : index
    %776 = vector.load %arg6[%c0_751, %c0_752] : memref<72x512xf32, #tpu.memory_space<vmem>>, vector<72x512xf32>
    %777 = arith.truncf %776 : vector<72x512xf32> to vector<72x512xbf16>
    %cst_753 = arith.constant dense<0.000000e+00> : vector<8x512xf32>
    %778 = tpu.matmul %775, %777, %cst_753 {dimension_numbers = #tpu.dot_dimension_numbers<[1], [0], [0], [1], [0, 0, 1, 1], [], []>} : vector<8x72xbf16>, vector<72x512xbf16>, vector<8x512xf32> -> vector<8x512xf32>
    %c12_754 = arith.constant 12 : index
    %c0_755 = arith.constant 0 : index
    %c0_756 = arith.constant 0 : index
    %779 = vector.load %arg3[%c12_754, %c0_755, %c0_756] : memref<19x8x1xf32, #tpu.memory_space<vmem>>, vector<1x8x1xf32>
    %780 = vector.shape_cast %779 : vector<1x8x1xf32> to vector<8x1xf32>
    %781 = vector.broadcast %780 : vector<8x1xf32> to vector<8x512xf32>
    %782 = arith.addf %778, %781 : vector<8x512xf32>
    %cst_757 = arith.constant 0.000000e+00 : f32
    %783 = vector.broadcast %cst_757 : f32 to vector<8x512xf32>
    %784 = arith.maximumf %782, %783 : vector<8x512xf32>
    %c17_i32_758 = arith.constant 17 : i32
    %785 = tpu.dynamic_rotate %784 by %c17_i32_758 dim 1 : vector<8x512xf32>, i32 -> vector<8x512xf32>
    %c0_759 = arith.constant 0 : index
    %c0_760 = arith.constant 0 : index
    %c0_761 = arith.constant 0 : index
    %786 = vector.load %arg4[%c0_759, %c0_760, %c0_761] : memref<9x1x512xf32, #tpu.memory_space<vmem>>, vector<1x1x512xf32>
    %787 = vector.shape_cast %786 : vector<1x1x512xf32> to vector<1x512xf32>
    %788 = vector.broadcast %787 : vector<1x512xf32> to vector<8x512xf32>
    %789 = arith.mulf %785, %788 : vector<8x512xf32>
    %c0_762 = arith.constant 0 : index
    %c0_763 = arith.constant 0 : index
    %790 = vector.load %arg6[%c0_762, %c0_763] : memref<72x512xf32, #tpu.memory_space<vmem>>, vector<8x512xf32>
    tpu.vector_store %arg6[%c0_762, %c0_763], %789 {strides = array<i32>} : memref<72x512xf32, #tpu.memory_space<vmem>>, vector<8x512xf32>,
    %c16_i32_764 = arith.constant 16 : i32
    %791 = tpu.dynamic_rotate %784 by %c16_i32_764 dim 1 : vector<8x512xf32>, i32 -> vector<8x512xf32>
    %c1_765 = arith.constant 1 : index
    %c0_766 = arith.constant 0 : index
    %c0_767 = arith.constant 0 : index
    %792 = vector.load %arg4[%c1_765, %c0_766, %c0_767] : memref<9x1x512xf32, #tpu.memory_space<vmem>>, vector<1x1x512xf32>
    %793 = vector.shape_cast %792 : vector<1x1x512xf32> to vector<1x512xf32>
    %794 = vector.broadcast %793 : vector<1x512xf32> to vector<8x512xf32>
    %795 = arith.mulf %791, %794 : vector<8x512xf32>
    %c8_768 = arith.constant 8 : index
    %c0_769 = arith.constant 0 : index
    %796 = vector.load %arg6[%c8_768, %c0_769] : memref<72x512xf32, #tpu.memory_space<vmem>>, vector<8x512xf32>
    tpu.vector_store %arg6[%c8_768, %c0_769], %795 {strides = array<i32>} : memref<72x512xf32, #tpu.memory_space<vmem>>, vector<8x512xf32>,
    %c15_i32_770 = arith.constant 15 : i32
    %797 = tpu.dynamic_rotate %784 by %c15_i32_770 dim 1 : vector<8x512xf32>, i32 -> vector<8x512xf32>
    %c2_771 = arith.constant 2 : index
    %c0_772 = arith.constant 0 : index
    %c0_773 = arith.constant 0 : index
    %798 = vector.load %arg4[%c2_771, %c0_772, %c0_773] : memref<9x1x512xf32, #tpu.memory_space<vmem>>, vector<1x1x512xf32>
    %799 = vector.shape_cast %798 : vector<1x1x512xf32> to vector<1x512xf32>
    %800 = vector.broadcast %799 : vector<1x512xf32> to vector<8x512xf32>
    %801 = arith.mulf %797, %800 : vector<8x512xf32>
    %c16_774 = arith.constant 16 : index
    %c0_775 = arith.constant 0 : index
    %802 = vector.load %arg6[%c16_774, %c0_775] : memref<72x512xf32, #tpu.memory_space<vmem>>, vector<8x512xf32>
    tpu.vector_store %arg6[%c16_774, %c0_775], %801 {strides = array<i32>} : memref<72x512xf32, #tpu.memory_space<vmem>>, vector<8x512xf32>,
    %c1_i32_776 = arith.constant 1 : i32
    %803 = tpu.dynamic_rotate %784 by %c1_i32_776 dim 1 : vector<8x512xf32>, i32 -> vector<8x512xf32>
    %c3_777 = arith.constant 3 : index
    %c0_778 = arith.constant 0 : index
    %c0_779 = arith.constant 0 : index
    %804 = vector.load %arg4[%c3_777, %c0_778, %c0_779] : memref<9x1x512xf32, #tpu.memory_space<vmem>>, vector<1x1x512xf32>
    %805 = vector.shape_cast %804 : vector<1x1x512xf32> to vector<1x512xf32>
    %806 = vector.broadcast %805 : vector<1x512xf32> to vector<8x512xf32>
    %807 = arith.mulf %803, %806 : vector<8x512xf32>
    %c24_780 = arith.constant 24 : index
    %c0_781 = arith.constant 0 : index
    %808 = vector.load %arg6[%c24_780, %c0_781] : memref<72x512xf32, #tpu.memory_space<vmem>>, vector<8x512xf32>
    tpu.vector_store %arg6[%c24_780, %c0_781], %807 {strides = array<i32>} : memref<72x512xf32, #tpu.memory_space<vmem>>, vector<8x512xf32>,
    %c32_782 = arith.constant 32 : index
    %c0_783 = arith.constant 0 : index
    %809 = vector.load %arg6[%c32_782, %c0_783] : memref<72x512xf32, #tpu.memory_space<vmem>>, vector<8x512xf32>
    tpu.vector_store %arg6[%c32_782, %c0_783], %784 {strides = array<i32>} : memref<72x512xf32, #tpu.memory_space<vmem>>, vector<8x512xf32>,
    %c511_i32_784 = arith.constant 511 : i32
    %810 = tpu.dynamic_rotate %784 by %c511_i32_784 dim 1 : vector<8x512xf32>, i32 -> vector<8x512xf32>
    %c5_785 = arith.constant 5 : index
    %c0_786 = arith.constant 0 : index
    %c0_787 = arith.constant 0 : index
    %811 = vector.load %arg4[%c5_785, %c0_786, %c0_787] : memref<9x1x512xf32, #tpu.memory_space<vmem>>, vector<1x1x512xf32>
    %812 = vector.shape_cast %811 : vector<1x1x512xf32> to vector<1x512xf32>
    %813 = vector.broadcast %812 : vector<1x512xf32> to vector<8x512xf32>
    %814 = arith.mulf %810, %813 : vector<8x512xf32>
    %c40_788 = arith.constant 40 : index
    %c0_789 = arith.constant 0 : index
    %815 = vector.load %arg6[%c40_788, %c0_789] : memref<72x512xf32, #tpu.memory_space<vmem>>, vector<8x512xf32>
    tpu.vector_store %arg6[%c40_788, %c0_789], %814 {strides = array<i32>} : memref<72x512xf32, #tpu.memory_space<vmem>>, vector<8x512xf32>,
    %c497_i32_790 = arith.constant 497 : i32
    %816 = tpu.dynamic_rotate %784 by %c497_i32_790 dim 1 : vector<8x512xf32>, i32 -> vector<8x512xf32>
    %c6_791 = arith.constant 6 : index
    %c0_792 = arith.constant 0 : index
    %c0_793 = arith.constant 0 : index
    %817 = vector.load %arg4[%c6_791, %c0_792, %c0_793] : memref<9x1x512xf32, #tpu.memory_space<vmem>>, vector<1x1x512xf32>
    %818 = vector.shape_cast %817 : vector<1x1x512xf32> to vector<1x512xf32>
    %819 = vector.broadcast %818 : vector<1x512xf32> to vector<8x512xf32>
    %820 = arith.mulf %816, %819 : vector<8x512xf32>
    %c48_794 = arith.constant 48 : index
    %c0_795 = arith.constant 0 : index
    %821 = vector.load %arg6[%c48_794, %c0_795] : memref<72x512xf32, #tpu.memory_space<vmem>>, vector<8x512xf32>
    tpu.vector_store %arg6[%c48_794, %c0_795], %820 {strides = array<i32>} : memref<72x512xf32, #tpu.memory_space<vmem>>, vector<8x512xf32>,
    %c496_i32_796 = arith.constant 496 : i32
    %822 = tpu.dynamic_rotate %784 by %c496_i32_796 dim 1 : vector<8x512xf32>, i32 -> vector<8x512xf32>
    %c7_797 = arith.constant 7 : index
    %c0_798 = arith.constant 0 : index
    %c0_799 = arith.constant 0 : index
    %823 = vector.load %arg4[%c7_797, %c0_798, %c0_799] : memref<9x1x512xf32, #tpu.memory_space<vmem>>, vector<1x1x512xf32>
    %824 = vector.shape_cast %823 : vector<1x1x512xf32> to vector<1x512xf32>
    %825 = vector.broadcast %824 : vector<1x512xf32> to vector<8x512xf32>
    %826 = arith.mulf %822, %825 : vector<8x512xf32>
    %c56_800 = arith.constant 56 : index
    %c0_801 = arith.constant 0 : index
    %827 = vector.load %arg6[%c56_800, %c0_801] : memref<72x512xf32, #tpu.memory_space<vmem>>, vector<8x512xf32>
    tpu.vector_store %arg6[%c56_800, %c0_801], %826 {strides = array<i32>} : memref<72x512xf32, #tpu.memory_space<vmem>>, vector<8x512xf32>,
    %c495_i32_802 = arith.constant 495 : i32
    %828 = tpu.dynamic_rotate %784 by %c495_i32_802 dim 1 : vector<8x512xf32>, i32 -> vector<8x512xf32>
    %c8_803 = arith.constant 8 : index
    %c0_804 = arith.constant 0 : index
    %c0_805 = arith.constant 0 : index
    %829 = vector.load %arg4[%c8_803, %c0_804, %c0_805] : memref<9x1x512xf32, #tpu.memory_space<vmem>>, vector<1x1x512xf32>
    %830 = vector.shape_cast %829 : vector<1x1x512xf32> to vector<1x512xf32>
    %831 = vector.broadcast %830 : vector<1x512xf32> to vector<8x512xf32>
    %832 = arith.mulf %828, %831 : vector<8x512xf32>
    %c64_806 = arith.constant 64 : index
    %c0_807 = arith.constant 0 : index
    %833 = vector.load %arg6[%c64_806, %c0_807] : memref<72x512xf32, #tpu.memory_space<vmem>>, vector<8x512xf32>
    tpu.vector_store %arg6[%c64_806, %c0_807], %832 {strides = array<i32>} : memref<72x512xf32, #tpu.memory_space<vmem>>, vector<8x512xf32>,
    %c13 = arith.constant 13 : index
    %c0_808 = arith.constant 0 : index
    %c0_809 = arith.constant 0 : index
    %834 = vector.load %arg2[%c13, %c0_808, %c0_809] : memref<19x8x72xbf16, #tpu.memory_space<vmem>>, vector<1x8x72xbf16>
    %835 = vector.shape_cast %834 : vector<1x8x72xbf16> to vector<8x72xbf16>
    %c0_810 = arith.constant 0 : index
    %c0_811 = arith.constant 0 : index
    %836 = vector.load %arg6[%c0_810, %c0_811] : memref<72x512xf32, #tpu.memory_space<vmem>>, vector<72x512xf32>
    %837 = arith.truncf %836 : vector<72x512xf32> to vector<72x512xbf16>
    %cst_812 = arith.constant dense<0.000000e+00> : vector<8x512xf32>
    %838 = tpu.matmul %835, %837, %cst_812 {dimension_numbers = #tpu.dot_dimension_numbers<[1], [0], [0], [1], [0, 0, 1, 1], [], []>} : vector<8x72xbf16>, vector<72x512xbf16>, vector<8x512xf32> -> vector<8x512xf32>
    %c13_813 = arith.constant 13 : index
    %c0_814 = arith.constant 0 : index
    %c0_815 = arith.constant 0 : index
    %839 = vector.load %arg3[%c13_813, %c0_814, %c0_815] : memref<19x8x1xf32, #tpu.memory_space<vmem>>, vector<1x8x1xf32>
    %840 = vector.shape_cast %839 : vector<1x8x1xf32> to vector<8x1xf32>
    %841 = vector.broadcast %840 : vector<8x1xf32> to vector<8x512xf32>
    %842 = arith.addf %838, %841 : vector<8x512xf32>
    %cst_816 = arith.constant 0.000000e+00 : f32
    %843 = vector.broadcast %cst_816 : f32 to vector<8x512xf32>
    %844 = arith.maximumf %842, %843 : vector<8x512xf32>
    %c1_817 = arith.constant 1 : index
    %c0_818 = arith.constant 0 : index
    %c0_819 = arith.constant 0 : index
    %c0_820 = arith.constant 0 : index
    %845 = vector.load %arg5[%c1_817, %c0_818, %c0_819, %c0_820] : memref<3x1x8x512xf32, #tpu.memory_space<vmem>>, vector<1x1x8x512xf32>
    %846 = vector.shape_cast %845 : vector<1x1x8x512xf32> to vector<8x512xf32>
    %847 = vector.shape_cast %844 : vector<8x512xf32> to vector<1x1x8x512xf32>
    tpu.vector_store %arg5[%c1_817, %c0_818, %c0_819, %c0_820], %847 {strides = array<i32>} : memref<3x1x8x512xf32, #tpu.memory_space<vmem>>, vector<1x1x8x512xf32>,
    %c17_i32_821 = arith.constant 17 : i32
    %848 = tpu.dynamic_rotate %844 by %c17_i32_821 dim 1 : vector<8x512xf32>, i32 -> vector<8x512xf32>
    %c0_822 = arith.constant 0 : index
    %c0_823 = arith.constant 0 : index
    %c0_824 = arith.constant 0 : index
    %849 = vector.load %arg4[%c0_822, %c0_823, %c0_824] : memref<9x1x512xf32, #tpu.memory_space<vmem>>, vector<1x1x512xf32>
    %850 = vector.shape_cast %849 : vector<1x1x512xf32> to vector<1x512xf32>
    %851 = vector.broadcast %850 : vector<1x512xf32> to vector<8x512xf32>
    %852 = arith.mulf %848, %851 : vector<8x512xf32>
    %c0_825 = arith.constant 0 : index
    %c0_826 = arith.constant 0 : index
    %853 = vector.load %arg6[%c0_825, %c0_826] : memref<72x512xf32, #tpu.memory_space<vmem>>, vector<8x512xf32>
    tpu.vector_store %arg6[%c0_825, %c0_826], %852 {strides = array<i32>} : memref<72x512xf32, #tpu.memory_space<vmem>>, vector<8x512xf32>,
    %c16_i32_827 = arith.constant 16 : i32
    %854 = tpu.dynamic_rotate %844 by %c16_i32_827 dim 1 : vector<8x512xf32>, i32 -> vector<8x512xf32>
    %c1_828 = arith.constant 1 : index
    %c0_829 = arith.constant 0 : index
    %c0_830 = arith.constant 0 : index
    %855 = vector.load %arg4[%c1_828, %c0_829, %c0_830] : memref<9x1x512xf32, #tpu.memory_space<vmem>>, vector<1x1x512xf32>
    %856 = vector.shape_cast %855 : vector<1x1x512xf32> to vector<1x512xf32>
    %857 = vector.broadcast %856 : vector<1x512xf32> to vector<8x512xf32>
    %858 = arith.mulf %854, %857 : vector<8x512xf32>
    %c8_831 = arith.constant 8 : index
    %c0_832 = arith.constant 0 : index
    %859 = vector.load %arg6[%c8_831, %c0_832] : memref<72x512xf32, #tpu.memory_space<vmem>>, vector<8x512xf32>
    tpu.vector_store %arg6[%c8_831, %c0_832], %858 {strides = array<i32>} : memref<72x512xf32, #tpu.memory_space<vmem>>, vector<8x512xf32>,
    %c15_i32_833 = arith.constant 15 : i32
    %860 = tpu.dynamic_rotate %844 by %c15_i32_833 dim 1 : vector<8x512xf32>, i32 -> vector<8x512xf32>
    %c2_834 = arith.constant 2 : index
    %c0_835 = arith.constant 0 : index
    %c0_836 = arith.constant 0 : index
    %861 = vector.load %arg4[%c2_834, %c0_835, %c0_836] : memref<9x1x512xf32, #tpu.memory_space<vmem>>, vector<1x1x512xf32>
    %862 = vector.shape_cast %861 : vector<1x1x512xf32> to vector<1x512xf32>
    %863 = vector.broadcast %862 : vector<1x512xf32> to vector<8x512xf32>
    %864 = arith.mulf %860, %863 : vector<8x512xf32>
    %c16_837 = arith.constant 16 : index
    %c0_838 = arith.constant 0 : index
    %865 = vector.load %arg6[%c16_837, %c0_838] : memref<72x512xf32, #tpu.memory_space<vmem>>, vector<8x512xf32>
    tpu.vector_store %arg6[%c16_837, %c0_838], %864 {strides = array<i32>} : memref<72x512xf32, #tpu.memory_space<vmem>>, vector<8x512xf32>,
    %c1_i32_839 = arith.constant 1 : i32
    %866 = tpu.dynamic_rotate %844 by %c1_i32_839 dim 1 : vector<8x512xf32>, i32 -> vector<8x512xf32>
    %c3_840 = arith.constant 3 : index
    %c0_841 = arith.constant 0 : index
    %c0_842 = arith.constant 0 : index
    %867 = vector.load %arg4[%c3_840, %c0_841, %c0_842] : memref<9x1x512xf32, #tpu.memory_space<vmem>>, vector<1x1x512xf32>
    %868 = vector.shape_cast %867 : vector<1x1x512xf32> to vector<1x512xf32>
    %869 = vector.broadcast %868 : vector<1x512xf32> to vector<8x512xf32>
    %870 = arith.mulf %866, %869 : vector<8x512xf32>
    %c24_843 = arith.constant 24 : index
    %c0_844 = arith.constant 0 : index
    %871 = vector.load %arg6[%c24_843, %c0_844] : memref<72x512xf32, #tpu.memory_space<vmem>>, vector<8x512xf32>
    tpu.vector_store %arg6[%c24_843, %c0_844], %870 {strides = array<i32>} : memref<72x512xf32, #tpu.memory_space<vmem>>, vector<8x512xf32>,
    %c32_845 = arith.constant 32 : index
    %c0_846 = arith.constant 0 : index
    %872 = vector.load %arg6[%c32_845, %c0_846] : memref<72x512xf32, #tpu.memory_space<vmem>>, vector<8x512xf32>
    tpu.vector_store %arg6[%c32_845, %c0_846], %844 {strides = array<i32>} : memref<72x512xf32, #tpu.memory_space<vmem>>, vector<8x512xf32>,
    %c511_i32_847 = arith.constant 511 : i32
    %873 = tpu.dynamic_rotate %844 by %c511_i32_847 dim 1 : vector<8x512xf32>, i32 -> vector<8x512xf32>
    %c5_848 = arith.constant 5 : index
    %c0_849 = arith.constant 0 : index
    %c0_850 = arith.constant 0 : index
    %874 = vector.load %arg4[%c5_848, %c0_849, %c0_850] : memref<9x1x512xf32, #tpu.memory_space<vmem>>, vector<1x1x512xf32>
    %875 = vector.shape_cast %874 : vector<1x1x512xf32> to vector<1x512xf32>
    %876 = vector.broadcast %875 : vector<1x512xf32> to vector<8x512xf32>
    %877 = arith.mulf %873, %876 : vector<8x512xf32>
    %c40_851 = arith.constant 40 : index
    %c0_852 = arith.constant 0 : index
    %878 = vector.load %arg6[%c40_851, %c0_852] : memref<72x512xf32, #tpu.memory_space<vmem>>, vector<8x512xf32>
    tpu.vector_store %arg6[%c40_851, %c0_852], %877 {strides = array<i32>} : memref<72x512xf32, #tpu.memory_space<vmem>>, vector<8x512xf32>,
    %c497_i32_853 = arith.constant 497 : i32
    %879 = tpu.dynamic_rotate %844 by %c497_i32_853 dim 1 : vector<8x512xf32>, i32 -> vector<8x512xf32>
    %c6_854 = arith.constant 6 : index
    %c0_855 = arith.constant 0 : index
    %c0_856 = arith.constant 0 : index
    %880 = vector.load %arg4[%c6_854, %c0_855, %c0_856] : memref<9x1x512xf32, #tpu.memory_space<vmem>>, vector<1x1x512xf32>
    %881 = vector.shape_cast %880 : vector<1x1x512xf32> to vector<1x512xf32>
    %882 = vector.broadcast %881 : vector<1x512xf32> to vector<8x512xf32>
    %883 = arith.mulf %879, %882 : vector<8x512xf32>
    %c48_857 = arith.constant 48 : index
    %c0_858 = arith.constant 0 : index
    %884 = vector.load %arg6[%c48_857, %c0_858] : memref<72x512xf32, #tpu.memory_space<vmem>>, vector<8x512xf32>
    tpu.vector_store %arg6[%c48_857, %c0_858], %883 {strides = array<i32>} : memref<72x512xf32, #tpu.memory_space<vmem>>, vector<8x512xf32>,
    %c496_i32_859 = arith.constant 496 : i32
    %885 = tpu.dynamic_rotate %844 by %c496_i32_859 dim 1 : vector<8x512xf32>, i32 -> vector<8x512xf32>
    %c7_860 = arith.constant 7 : index
    %c0_861 = arith.constant 0 : index
    %c0_862 = arith.constant 0 : index
    %886 = vector.load %arg4[%c7_860, %c0_861, %c0_862] : memref<9x1x512xf32, #tpu.memory_space<vmem>>, vector<1x1x512xf32>
    %887 = vector.shape_cast %886 : vector<1x1x512xf32> to vector<1x512xf32>
    %888 = vector.broadcast %887 : vector<1x512xf32> to vector<8x512xf32>
    %889 = arith.mulf %885, %888 : vector<8x512xf32>
    %c56_863 = arith.constant 56 : index
    %c0_864 = arith.constant 0 : index
    %890 = vector.load %arg6[%c56_863, %c0_864] : memref<72x512xf32, #tpu.memory_space<vmem>>, vector<8x512xf32>
    tpu.vector_store %arg6[%c56_863, %c0_864], %889 {strides = array<i32>} : memref<72x512xf32, #tpu.memory_space<vmem>>, vector<8x512xf32>,
    %c495_i32_865 = arith.constant 495 : i32
    %891 = tpu.dynamic_rotate %844 by %c495_i32_865 dim 1 : vector<8x512xf32>, i32 -> vector<8x512xf32>
    %c8_866 = arith.constant 8 : index
    %c0_867 = arith.constant 0 : index
    %c0_868 = arith.constant 0 : index
    %892 = vector.load %arg4[%c8_866, %c0_867, %c0_868] : memref<9x1x512xf32, #tpu.memory_space<vmem>>, vector<1x1x512xf32>
    %893 = vector.shape_cast %892 : vector<1x1x512xf32> to vector<1x512xf32>
    %894 = vector.broadcast %893 : vector<1x512xf32> to vector<8x512xf32>
    %895 = arith.mulf %891, %894 : vector<8x512xf32>
    %c64_869 = arith.constant 64 : index
    %c0_870 = arith.constant 0 : index
    %896 = vector.load %arg6[%c64_869, %c0_870] : memref<72x512xf32, #tpu.memory_space<vmem>>, vector<8x512xf32>
    tpu.vector_store %arg6[%c64_869, %c0_870], %895 {strides = array<i32>} : memref<72x512xf32, #tpu.memory_space<vmem>>, vector<8x512xf32>,
    %c14 = arith.constant 14 : index
    %c0_871 = arith.constant 0 : index
    %c0_872 = arith.constant 0 : index
    %897 = vector.load %arg2[%c14, %c0_871, %c0_872] : memref<19x8x72xbf16, #tpu.memory_space<vmem>>, vector<1x8x72xbf16>
    %898 = vector.shape_cast %897 : vector<1x8x72xbf16> to vector<8x72xbf16>
    %c0_873 = arith.constant 0 : index
    %c0_874 = arith.constant 0 : index
    %899 = vector.load %arg6[%c0_873, %c0_874] : memref<72x512xf32, #tpu.memory_space<vmem>>, vector<72x512xf32>
    %900 = arith.truncf %899 : vector<72x512xf32> to vector<72x512xbf16>
    %cst_875 = arith.constant dense<0.000000e+00> : vector<8x512xf32>
    %901 = tpu.matmul %898, %900, %cst_875 {dimension_numbers = #tpu.dot_dimension_numbers<[1], [0], [0], [1], [0, 0, 1, 1], [], []>} : vector<8x72xbf16>, vector<72x512xbf16>, vector<8x512xf32> -> vector<8x512xf32>
    %c14_876 = arith.constant 14 : index
    %c0_877 = arith.constant 0 : index
    %c0_878 = arith.constant 0 : index
    %902 = vector.load %arg3[%c14_876, %c0_877, %c0_878] : memref<19x8x1xf32, #tpu.memory_space<vmem>>, vector<1x8x1xf32>
    %903 = vector.shape_cast %902 : vector<1x8x1xf32> to vector<8x1xf32>
    %904 = vector.broadcast %903 : vector<8x1xf32> to vector<8x512xf32>
    %905 = arith.addf %901, %904 : vector<8x512xf32>
    %cst_879 = arith.constant 0.000000e+00 : f32
    %906 = vector.broadcast %cst_879 : f32 to vector<8x512xf32>
    %907 = arith.maximumf %905, %906 : vector<8x512xf32>
    %c17_i32_880 = arith.constant 17 : i32
    %908 = tpu.dynamic_rotate %907 by %c17_i32_880 dim 1 : vector<8x512xf32>, i32 -> vector<8x512xf32>
    %c0_881 = arith.constant 0 : index
    %c0_882 = arith.constant 0 : index
    %c0_883 = arith.constant 0 : index
    %909 = vector.load %arg4[%c0_881, %c0_882, %c0_883] : memref<9x1x512xf32, #tpu.memory_space<vmem>>, vector<1x1x512xf32>
    %910 = vector.shape_cast %909 : vector<1x1x512xf32> to vector<1x512xf32>
    %911 = vector.broadcast %910 : vector<1x512xf32> to vector<8x512xf32>
    %912 = arith.mulf %908, %911 : vector<8x512xf32>
    %c0_884 = arith.constant 0 : index
    %c0_885 = arith.constant 0 : index
    %913 = vector.load %arg6[%c0_884, %c0_885] : memref<72x512xf32, #tpu.memory_space<vmem>>, vector<8x512xf32>
    tpu.vector_store %arg6[%c0_884, %c0_885], %912 {strides = array<i32>} : memref<72x512xf32, #tpu.memory_space<vmem>>, vector<8x512xf32>,
    %c16_i32_886 = arith.constant 16 : i32
    %914 = tpu.dynamic_rotate %907 by %c16_i32_886 dim 1 : vector<8x512xf32>, i32 -> vector<8x512xf32>
    %c1_887 = arith.constant 1 : index
    %c0_888 = arith.constant 0 : index
    %c0_889 = arith.constant 0 : index
    %915 = vector.load %arg4[%c1_887, %c0_888, %c0_889] : memref<9x1x512xf32, #tpu.memory_space<vmem>>, vector<1x1x512xf32>
    %916 = vector.shape_cast %915 : vector<1x1x512xf32> to vector<1x512xf32>
    %917 = vector.broadcast %916 : vector<1x512xf32> to vector<8x512xf32>
    %918 = arith.mulf %914, %917 : vector<8x512xf32>
    %c8_890 = arith.constant 8 : index
    %c0_891 = arith.constant 0 : index
    %919 = vector.load %arg6[%c8_890, %c0_891] : memref<72x512xf32, #tpu.memory_space<vmem>>, vector<8x512xf32>
    tpu.vector_store %arg6[%c8_890, %c0_891], %918 {strides = array<i32>} : memref<72x512xf32, #tpu.memory_space<vmem>>, vector<8x512xf32>,
    %c15_i32_892 = arith.constant 15 : i32
    %920 = tpu.dynamic_rotate %907 by %c15_i32_892 dim 1 : vector<8x512xf32>, i32 -> vector<8x512xf32>
    %c2_893 = arith.constant 2 : index
    %c0_894 = arith.constant 0 : index
    %c0_895 = arith.constant 0 : index
    %921 = vector.load %arg4[%c2_893, %c0_894, %c0_895] : memref<9x1x512xf32, #tpu.memory_space<vmem>>, vector<1x1x512xf32>
    %922 = vector.shape_cast %921 : vector<1x1x512xf32> to vector<1x512xf32>
    %923 = vector.broadcast %922 : vector<1x512xf32> to vector<8x512xf32>
    %924 = arith.mulf %920, %923 : vector<8x512xf32>
    %c16_896 = arith.constant 16 : index
    %c0_897 = arith.constant 0 : index
    %925 = vector.load %arg6[%c16_896, %c0_897] : memref<72x512xf32, #tpu.memory_space<vmem>>, vector<8x512xf32>
    tpu.vector_store %arg6[%c16_896, %c0_897], %924 {strides = array<i32>} : memref<72x512xf32, #tpu.memory_space<vmem>>, vector<8x512xf32>,
    %c1_i32_898 = arith.constant 1 : i32
    %926 = tpu.dynamic_rotate %907 by %c1_i32_898 dim 1 : vector<8x512xf32>, i32 -> vector<8x512xf32>
    %c3_899 = arith.constant 3 : index
    %c0_900 = arith.constant 0 : index
    %c0_901 = arith.constant 0 : index
    %927 = vector.load %arg4[%c3_899, %c0_900, %c0_901] : memref<9x1x512xf32, #tpu.memory_space<vmem>>, vector<1x1x512xf32>
    %928 = vector.shape_cast %927 : vector<1x1x512xf32> to vector<1x512xf32>
    %929 = vector.broadcast %928 : vector<1x512xf32> to vector<8x512xf32>
    %930 = arith.mulf %926, %929 : vector<8x512xf32>
    %c24_902 = arith.constant 24 : index
    %c0_903 = arith.constant 0 : index
    %931 = vector.load %arg6[%c24_902, %c0_903] : memref<72x512xf32, #tpu.memory_space<vmem>>, vector<8x512xf32>
    tpu.vector_store %arg6[%c24_902, %c0_903], %930 {strides = array<i32>} : memref<72x512xf32, #tpu.memory_space<vmem>>, vector<8x512xf32>,
    %c32_904 = arith.constant 32 : index
    %c0_905 = arith.constant 0 : index
    %932 = vector.load %arg6[%c32_904, %c0_905] : memref<72x512xf32, #tpu.memory_space<vmem>>, vector<8x512xf32>
    tpu.vector_store %arg6[%c32_904, %c0_905], %907 {strides = array<i32>} : memref<72x512xf32, #tpu.memory_space<vmem>>, vector<8x512xf32>,
    %c511_i32_906 = arith.constant 511 : i32
    %933 = tpu.dynamic_rotate %907 by %c511_i32_906 dim 1 : vector<8x512xf32>, i32 -> vector<8x512xf32>
    %c5_907 = arith.constant 5 : index
    %c0_908 = arith.constant 0 : index
    %c0_909 = arith.constant 0 : index
    %934 = vector.load %arg4[%c5_907, %c0_908, %c0_909] : memref<9x1x512xf32, #tpu.memory_space<vmem>>, vector<1x1x512xf32>
    %935 = vector.shape_cast %934 : vector<1x1x512xf32> to vector<1x512xf32>
    %936 = vector.broadcast %935 : vector<1x512xf32> to vector<8x512xf32>
    %937 = arith.mulf %933, %936 : vector<8x512xf32>
    %c40_910 = arith.constant 40 : index
    %c0_911 = arith.constant 0 : index
    %938 = vector.load %arg6[%c40_910, %c0_911] : memref<72x512xf32, #tpu.memory_space<vmem>>, vector<8x512xf32>
    tpu.vector_store %arg6[%c40_910, %c0_911], %937 {strides = array<i32>} : memref<72x512xf32, #tpu.memory_space<vmem>>, vector<8x512xf32>,
    %c497_i32_912 = arith.constant 497 : i32
    %939 = tpu.dynamic_rotate %907 by %c497_i32_912 dim 1 : vector<8x512xf32>, i32 -> vector<8x512xf32>
    %c6_913 = arith.constant 6 : index
    %c0_914 = arith.constant 0 : index
    %c0_915 = arith.constant 0 : index
    %940 = vector.load %arg4[%c6_913, %c0_914, %c0_915] : memref<9x1x512xf32, #tpu.memory_space<vmem>>, vector<1x1x512xf32>
    %941 = vector.shape_cast %940 : vector<1x1x512xf32> to vector<1x512xf32>
    %942 = vector.broadcast %941 : vector<1x512xf32> to vector<8x512xf32>
    %943 = arith.mulf %939, %942 : vector<8x512xf32>
    %c48_916 = arith.constant 48 : index
    %c0_917 = arith.constant 0 : index
    %944 = vector.load %arg6[%c48_916, %c0_917] : memref<72x512xf32, #tpu.memory_space<vmem>>, vector<8x512xf32>
    tpu.vector_store %arg6[%c48_916, %c0_917], %943 {strides = array<i32>} : memref<72x512xf32, #tpu.memory_space<vmem>>, vector<8x512xf32>,
    %c496_i32_918 = arith.constant 496 : i32
    %945 = tpu.dynamic_rotate %907 by %c496_i32_918 dim 1 : vector<8x512xf32>, i32 -> vector<8x512xf32>
    %c7_919 = arith.constant 7 : index
    %c0_920 = arith.constant 0 : index
    %c0_921 = arith.constant 0 : index
    %946 = vector.load %arg4[%c7_919, %c0_920, %c0_921] : memref<9x1x512xf32, #tpu.memory_space<vmem>>, vector<1x1x512xf32>
    %947 = vector.shape_cast %946 : vector<1x1x512xf32> to vector<1x512xf32>
    %948 = vector.broadcast %947 : vector<1x512xf32> to vector<8x512xf32>
    %949 = arith.mulf %945, %948 : vector<8x512xf32>
    %c56_922 = arith.constant 56 : index
    %c0_923 = arith.constant 0 : index
    %950 = vector.load %arg6[%c56_922, %c0_923] : memref<72x512xf32, #tpu.memory_space<vmem>>, vector<8x512xf32>
    tpu.vector_store %arg6[%c56_922, %c0_923], %949 {strides = array<i32>} : memref<72x512xf32, #tpu.memory_space<vmem>>, vector<8x512xf32>,
    %c495_i32_924 = arith.constant 495 : i32
    %951 = tpu.dynamic_rotate %907 by %c495_i32_924 dim 1 : vector<8x512xf32>, i32 -> vector<8x512xf32>
    %c8_925 = arith.constant 8 : index
    %c0_926 = arith.constant 0 : index
    %c0_927 = arith.constant 0 : index
    %952 = vector.load %arg4[%c8_925, %c0_926, %c0_927] : memref<9x1x512xf32, #tpu.memory_space<vmem>>, vector<1x1x512xf32>
    %953 = vector.shape_cast %952 : vector<1x1x512xf32> to vector<1x512xf32>
    %954 = vector.broadcast %953 : vector<1x512xf32> to vector<8x512xf32>
    %955 = arith.mulf %951, %954 : vector<8x512xf32>
    %c64_928 = arith.constant 64 : index
    %c0_929 = arith.constant 0 : index
    %956 = vector.load %arg6[%c64_928, %c0_929] : memref<72x512xf32, #tpu.memory_space<vmem>>, vector<8x512xf32>
    tpu.vector_store %arg6[%c64_928, %c0_929], %955 {strides = array<i32>} : memref<72x512xf32, #tpu.memory_space<vmem>>, vector<8x512xf32>,
    %c15 = arith.constant 15 : index
    %c0_930 = arith.constant 0 : index
    %c0_931 = arith.constant 0 : index
    %957 = vector.load %arg2[%c15, %c0_930, %c0_931] : memref<19x8x72xbf16, #tpu.memory_space<vmem>>, vector<1x8x72xbf16>
    %958 = vector.shape_cast %957 : vector<1x8x72xbf16> to vector<8x72xbf16>
    %c0_932 = arith.constant 0 : index
    %c0_933 = arith.constant 0 : index
    %959 = vector.load %arg6[%c0_932, %c0_933] : memref<72x512xf32, #tpu.memory_space<vmem>>, vector<72x512xf32>
    %960 = arith.truncf %959 : vector<72x512xf32> to vector<72x512xbf16>
    %cst_934 = arith.constant dense<0.000000e+00> : vector<8x512xf32>
    %961 = tpu.matmul %958, %960, %cst_934 {dimension_numbers = #tpu.dot_dimension_numbers<[1], [0], [0], [1], [0, 0, 1, 1], [], []>} : vector<8x72xbf16>, vector<72x512xbf16>, vector<8x512xf32> -> vector<8x512xf32>
    %c15_935 = arith.constant 15 : index
    %c0_936 = arith.constant 0 : index
    %c0_937 = arith.constant 0 : index
    %962 = vector.load %arg3[%c15_935, %c0_936, %c0_937] : memref<19x8x1xf32, #tpu.memory_space<vmem>>, vector<1x8x1xf32>
    %963 = vector.shape_cast %962 : vector<1x8x1xf32> to vector<8x1xf32>
    %964 = vector.broadcast %963 : vector<8x1xf32> to vector<8x512xf32>
    %965 = arith.addf %961, %964 : vector<8x512xf32>
    %cst_938 = arith.constant 0.000000e+00 : f32
    %966 = vector.broadcast %cst_938 : f32 to vector<8x512xf32>
    %967 = arith.maximumf %965, %966 : vector<8x512xf32>
    %c17_i32_939 = arith.constant 17 : i32
    %968 = tpu.dynamic_rotate %967 by %c17_i32_939 dim 1 : vector<8x512xf32>, i32 -> vector<8x512xf32>
    %c0_940 = arith.constant 0 : index
    %c0_941 = arith.constant 0 : index
    %c0_942 = arith.constant 0 : index
    %969 = vector.load %arg4[%c0_940, %c0_941, %c0_942] : memref<9x1x512xf32, #tpu.memory_space<vmem>>, vector<1x1x512xf32>
    %970 = vector.shape_cast %969 : vector<1x1x512xf32> to vector<1x512xf32>
    %971 = vector.broadcast %970 : vector<1x512xf32> to vector<8x512xf32>
    %972 = arith.mulf %968, %971 : vector<8x512xf32>
    %c0_943 = arith.constant 0 : index
    %c0_944 = arith.constant 0 : index
    %973 = vector.load %arg6[%c0_943, %c0_944] : memref<72x512xf32, #tpu.memory_space<vmem>>, vector<8x512xf32>
    tpu.vector_store %arg6[%c0_943, %c0_944], %972 {strides = array<i32>} : memref<72x512xf32, #tpu.memory_space<vmem>>, vector<8x512xf32>,
    %c16_i32_945 = arith.constant 16 : i32
    %974 = tpu.dynamic_rotate %967 by %c16_i32_945 dim 1 : vector<8x512xf32>, i32 -> vector<8x512xf32>
    %c1_946 = arith.constant 1 : index
    %c0_947 = arith.constant 0 : index
    %c0_948 = arith.constant 0 : index
    %975 = vector.load %arg4[%c1_946, %c0_947, %c0_948] : memref<9x1x512xf32, #tpu.memory_space<vmem>>, vector<1x1x512xf32>
    %976 = vector.shape_cast %975 : vector<1x1x512xf32> to vector<1x512xf32>
    %977 = vector.broadcast %976 : vector<1x512xf32> to vector<8x512xf32>
    %978 = arith.mulf %974, %977 : vector<8x512xf32>
    %c8_949 = arith.constant 8 : index
    %c0_950 = arith.constant 0 : index
    %979 = vector.load %arg6[%c8_949, %c0_950] : memref<72x512xf32, #tpu.memory_space<vmem>>, vector<8x512xf32>
    tpu.vector_store %arg6[%c8_949, %c0_950], %978 {strides = array<i32>} : memref<72x512xf32, #tpu.memory_space<vmem>>, vector<8x512xf32>,
    %c15_i32_951 = arith.constant 15 : i32
    %980 = tpu.dynamic_rotate %967 by %c15_i32_951 dim 1 : vector<8x512xf32>, i32 -> vector<8x512xf32>
    %c2_952 = arith.constant 2 : index
    %c0_953 = arith.constant 0 : index
    %c0_954 = arith.constant 0 : index
    %981 = vector.load %arg4[%c2_952, %c0_953, %c0_954] : memref<9x1x512xf32, #tpu.memory_space<vmem>>, vector<1x1x512xf32>
    %982 = vector.shape_cast %981 : vector<1x1x512xf32> to vector<1x512xf32>
    %983 = vector.broadcast %982 : vector<1x512xf32> to vector<8x512xf32>
    %984 = arith.mulf %980, %983 : vector<8x512xf32>
    %c16_955 = arith.constant 16 : index
    %c0_956 = arith.constant 0 : index
    %985 = vector.load %arg6[%c16_955, %c0_956] : memref<72x512xf32, #tpu.memory_space<vmem>>, vector<8x512xf32>
    tpu.vector_store %arg6[%c16_955, %c0_956], %984 {strides = array<i32>} : memref<72x512xf32, #tpu.memory_space<vmem>>, vector<8x512xf32>,
    %c1_i32_957 = arith.constant 1 : i32
    %986 = tpu.dynamic_rotate %967 by %c1_i32_957 dim 1 : vector<8x512xf32>, i32 -> vector<8x512xf32>
    %c3_958 = arith.constant 3 : index
    %c0_959 = arith.constant 0 : index
    %c0_960 = arith.constant 0 : index
    %987 = vector.load %arg4[%c3_958, %c0_959, %c0_960] : memref<9x1x512xf32, #tpu.memory_space<vmem>>, vector<1x1x512xf32>
    %988 = vector.shape_cast %987 : vector<1x1x512xf32> to vector<1x512xf32>
    %989 = vector.broadcast %988 : vector<1x512xf32> to vector<8x512xf32>
    %990 = arith.mulf %986, %989 : vector<8x512xf32>
    %c24_961 = arith.constant 24 : index
    %c0_962 = arith.constant 0 : index
    %991 = vector.load %arg6[%c24_961, %c0_962] : memref<72x512xf32, #tpu.memory_space<vmem>>, vector<8x512xf32>
    tpu.vector_store %arg6[%c24_961, %c0_962], %990 {strides = array<i32>} : memref<72x512xf32, #tpu.memory_space<vmem>>, vector<8x512xf32>,
    %c32_963 = arith.constant 32 : index
    %c0_964 = arith.constant 0 : index
    %992 = vector.load %arg6[%c32_963, %c0_964] : memref<72x512xf32, #tpu.memory_space<vmem>>, vector<8x512xf32>
    tpu.vector_store %arg6[%c32_963, %c0_964], %967 {strides = array<i32>} : memref<72x512xf32, #tpu.memory_space<vmem>>, vector<8x512xf32>,
    %c511_i32_965 = arith.constant 511 : i32
    %993 = tpu.dynamic_rotate %967 by %c511_i32_965 dim 1 : vector<8x512xf32>, i32 -> vector<8x512xf32>
    %c5_966 = arith.constant 5 : index
    %c0_967 = arith.constant 0 : index
    %c0_968 = arith.constant 0 : index
    %994 = vector.load %arg4[%c5_966, %c0_967, %c0_968] : memref<9x1x512xf32, #tpu.memory_space<vmem>>, vector<1x1x512xf32>
    %995 = vector.shape_cast %994 : vector<1x1x512xf32> to vector<1x512xf32>
    %996 = vector.broadcast %995 : vector<1x512xf32> to vector<8x512xf32>
    %997 = arith.mulf %993, %996 : vector<8x512xf32>
    %c40_969 = arith.constant 40 : index
    %c0_970 = arith.constant 0 : index
    %998 = vector.load %arg6[%c40_969, %c0_970] : memref<72x512xf32, #tpu.memory_space<vmem>>, vector<8x512xf32>
    tpu.vector_store %arg6[%c40_969, %c0_970], %997 {strides = array<i32>} : memref<72x512xf32, #tpu.memory_space<vmem>>, vector<8x512xf32>,
    %c497_i32_971 = arith.constant 497 : i32
    %999 = tpu.dynamic_rotate %967 by %c497_i32_971 dim 1 : vector<8x512xf32>, i32 -> vector<8x512xf32>
    %c6_972 = arith.constant 6 : index
    %c0_973 = arith.constant 0 : index
    %c0_974 = arith.constant 0 : index
    %1000 = vector.load %arg4[%c6_972, %c0_973, %c0_974] : memref<9x1x512xf32, #tpu.memory_space<vmem>>, vector<1x1x512xf32>
    %1001 = vector.shape_cast %1000 : vector<1x1x512xf32> to vector<1x512xf32>
    %1002 = vector.broadcast %1001 : vector<1x512xf32> to vector<8x512xf32>
    %1003 = arith.mulf %999, %1002 : vector<8x512xf32>
    %c48_975 = arith.constant 48 : index
    %c0_976 = arith.constant 0 : index
    %1004 = vector.load %arg6[%c48_975, %c0_976] : memref<72x512xf32, #tpu.memory_space<vmem>>, vector<8x512xf32>
    tpu.vector_store %arg6[%c48_975, %c0_976], %1003 {strides = array<i32>} : memref<72x512xf32, #tpu.memory_space<vmem>>, vector<8x512xf32>,
    %c496_i32_977 = arith.constant 496 : i32
    %1005 = tpu.dynamic_rotate %967 by %c496_i32_977 dim 1 : vector<8x512xf32>, i32 -> vector<8x512xf32>
    %c7_978 = arith.constant 7 : index
    %c0_979 = arith.constant 0 : index
    %c0_980 = arith.constant 0 : index
    %1006 = vector.load %arg4[%c7_978, %c0_979, %c0_980] : memref<9x1x512xf32, #tpu.memory_space<vmem>>, vector<1x1x512xf32>
    %1007 = vector.shape_cast %1006 : vector<1x1x512xf32> to vector<1x512xf32>
    %1008 = vector.broadcast %1007 : vector<1x512xf32> to vector<8x512xf32>
    %1009 = arith.mulf %1005, %1008 : vector<8x512xf32>
    %c56_981 = arith.constant 56 : index
    %c0_982 = arith.constant 0 : index
    %1010 = vector.load %arg6[%c56_981, %c0_982] : memref<72x512xf32, #tpu.memory_space<vmem>>, vector<8x512xf32>
    tpu.vector_store %arg6[%c56_981, %c0_982], %1009 {strides = array<i32>} : memref<72x512xf32, #tpu.memory_space<vmem>>, vector<8x512xf32>,
    %c495_i32_983 = arith.constant 495 : i32
    %1011 = tpu.dynamic_rotate %967 by %c495_i32_983 dim 1 : vector<8x512xf32>, i32 -> vector<8x512xf32>
    %c8_984 = arith.constant 8 : index
    %c0_985 = arith.constant 0 : index
    %c0_986 = arith.constant 0 : index
    %1012 = vector.load %arg4[%c8_984, %c0_985, %c0_986] : memref<9x1x512xf32, #tpu.memory_space<vmem>>, vector<1x1x512xf32>
    %1013 = vector.shape_cast %1012 : vector<1x1x512xf32> to vector<1x512xf32>
    %1014 = vector.broadcast %1013 : vector<1x512xf32> to vector<8x512xf32>
    %1015 = arith.mulf %1011, %1014 : vector<8x512xf32>
    %c64_987 = arith.constant 64 : index
    %c0_988 = arith.constant 0 : index
    %1016 = vector.load %arg6[%c64_987, %c0_988] : memref<72x512xf32, #tpu.memory_space<vmem>>, vector<8x512xf32>
    tpu.vector_store %arg6[%c64_987, %c0_988], %1015 {strides = array<i32>} : memref<72x512xf32, #tpu.memory_space<vmem>>, vector<8x512xf32>,
    %c16_989 = arith.constant 16 : index
    %c0_990 = arith.constant 0 : index
    %c0_991 = arith.constant 0 : index
    %1017 = vector.load %arg2[%c16_989, %c0_990, %c0_991] : memref<19x8x72xbf16, #tpu.memory_space<vmem>>, vector<1x8x72xbf16>
    %1018 = vector.shape_cast %1017 : vector<1x8x72xbf16> to vector<8x72xbf16>
    %c0_992 = arith.constant 0 : index
    %c0_993 = arith.constant 0 : index
    %1019 = vector.load %arg6[%c0_992, %c0_993] : memref<72x512xf32, #tpu.memory_space<vmem>>, vector<72x512xf32>
    %1020 = arith.truncf %1019 : vector<72x512xf32> to vector<72x512xbf16>
    %cst_994 = arith.constant dense<0.000000e+00> : vector<8x512xf32>
    %1021 = tpu.matmul %1018, %1020, %cst_994 {dimension_numbers = #tpu.dot_dimension_numbers<[1], [0], [0], [1], [0, 0, 1, 1], [], []>} : vector<8x72xbf16>, vector<72x512xbf16>, vector<8x512xf32> -> vector<8x512xf32>
    %c16_995 = arith.constant 16 : index
    %c0_996 = arith.constant 0 : index
    %c0_997 = arith.constant 0 : index
    %1022 = vector.load %arg3[%c16_995, %c0_996, %c0_997] : memref<19x8x1xf32, #tpu.memory_space<vmem>>, vector<1x8x1xf32>
    %1023 = vector.shape_cast %1022 : vector<1x8x1xf32> to vector<8x1xf32>
    %1024 = vector.broadcast %1023 : vector<8x1xf32> to vector<8x512xf32>
    %1025 = arith.addf %1021, %1024 : vector<8x512xf32>
    %cst_998 = arith.constant 0.000000e+00 : f32
    %1026 = vector.broadcast %cst_998 : f32 to vector<8x512xf32>
    %1027 = arith.maximumf %1025, %1026 : vector<8x512xf32>
    %c17_i32_999 = arith.constant 17 : i32
    %1028 = tpu.dynamic_rotate %1027 by %c17_i32_999 dim 1 : vector<8x512xf32>, i32 -> vector<8x512xf32>
    %c0_1000 = arith.constant 0 : index
    %c0_1001 = arith.constant 0 : index
    %c0_1002 = arith.constant 0 : index
    %1029 = vector.load %arg4[%c0_1000, %c0_1001, %c0_1002] : memref<9x1x512xf32, #tpu.memory_space<vmem>>, vector<1x1x512xf32>
    %1030 = vector.shape_cast %1029 : vector<1x1x512xf32> to vector<1x512xf32>
    %1031 = vector.broadcast %1030 : vector<1x512xf32> to vector<8x512xf32>
    %1032 = arith.mulf %1028, %1031 : vector<8x512xf32>
    %c0_1003 = arith.constant 0 : index
    %c0_1004 = arith.constant 0 : index
    %1033 = vector.load %arg6[%c0_1003, %c0_1004] : memref<72x512xf32, #tpu.memory_space<vmem>>, vector<8x512xf32>
    tpu.vector_store %arg6[%c0_1003, %c0_1004], %1032 {strides = array<i32>} : memref<72x512xf32, #tpu.memory_space<vmem>>, vector<8x512xf32>,
    %c16_i32_1005 = arith.constant 16 : i32
    %1034 = tpu.dynamic_rotate %1027 by %c16_i32_1005 dim 1 : vector<8x512xf32>, i32 -> vector<8x512xf32>
    %c1_1006 = arith.constant 1 : index
    %c0_1007 = arith.constant 0 : index
    %c0_1008 = arith.constant 0 : index
    %1035 = vector.load %arg4[%c1_1006, %c0_1007, %c0_1008] : memref<9x1x512xf32, #tpu.memory_space<vmem>>, vector<1x1x512xf32>
    %1036 = vector.shape_cast %1035 : vector<1x1x512xf32> to vector<1x512xf32>
    %1037 = vector.broadcast %1036 : vector<1x512xf32> to vector<8x512xf32>
    %1038 = arith.mulf %1034, %1037 : vector<8x512xf32>
    %c8_1009 = arith.constant 8 : index
    %c0_1010 = arith.constant 0 : index
    %1039 = vector.load %arg6[%c8_1009, %c0_1010] : memref<72x512xf32, #tpu.memory_space<vmem>>, vector<8x512xf32>
    tpu.vector_store %arg6[%c8_1009, %c0_1010], %1038 {strides = array<i32>} : memref<72x512xf32, #tpu.memory_space<vmem>>, vector<8x512xf32>,
    %c15_i32_1011 = arith.constant 15 : i32
    %1040 = tpu.dynamic_rotate %1027 by %c15_i32_1011 dim 1 : vector<8x512xf32>, i32 -> vector<8x512xf32>
    %c2_1012 = arith.constant 2 : index
    %c0_1013 = arith.constant 0 : index
    %c0_1014 = arith.constant 0 : index
    %1041 = vector.load %arg4[%c2_1012, %c0_1013, %c0_1014] : memref<9x1x512xf32, #tpu.memory_space<vmem>>, vector<1x1x512xf32>
    %1042 = vector.shape_cast %1041 : vector<1x1x512xf32> to vector<1x512xf32>
    %1043 = vector.broadcast %1042 : vector<1x512xf32> to vector<8x512xf32>
    %1044 = arith.mulf %1040, %1043 : vector<8x512xf32>
    %c16_1015 = arith.constant 16 : index
    %c0_1016 = arith.constant 0 : index
    %1045 = vector.load %arg6[%c16_1015, %c0_1016] : memref<72x512xf32, #tpu.memory_space<vmem>>, vector<8x512xf32>
    tpu.vector_store %arg6[%c16_1015, %c0_1016], %1044 {strides = array<i32>} : memref<72x512xf32, #tpu.memory_space<vmem>>, vector<8x512xf32>,
    %c1_i32_1017 = arith.constant 1 : i32
    %1046 = tpu.dynamic_rotate %1027 by %c1_i32_1017 dim 1 : vector<8x512xf32>, i32 -> vector<8x512xf32>
    %c3_1018 = arith.constant 3 : index
    %c0_1019 = arith.constant 0 : index
    %c0_1020 = arith.constant 0 : index
    %1047 = vector.load %arg4[%c3_1018, %c0_1019, %c0_1020] : memref<9x1x512xf32, #tpu.memory_space<vmem>>, vector<1x1x512xf32>
    %1048 = vector.shape_cast %1047 : vector<1x1x512xf32> to vector<1x512xf32>
    %1049 = vector.broadcast %1048 : vector<1x512xf32> to vector<8x512xf32>
    %1050 = arith.mulf %1046, %1049 : vector<8x512xf32>
    %c24_1021 = arith.constant 24 : index
    %c0_1022 = arith.constant 0 : index
    %1051 = vector.load %arg6[%c24_1021, %c0_1022] : memref<72x512xf32, #tpu.memory_space<vmem>>, vector<8x512xf32>
    tpu.vector_store %arg6[%c24_1021, %c0_1022], %1050 {strides = array<i32>} : memref<72x512xf32, #tpu.memory_space<vmem>>, vector<8x512xf32>,
    %c32_1023 = arith.constant 32 : index
    %c0_1024 = arith.constant 0 : index
    %1052 = vector.load %arg6[%c32_1023, %c0_1024] : memref<72x512xf32, #tpu.memory_space<vmem>>, vector<8x512xf32>
    tpu.vector_store %arg6[%c32_1023, %c0_1024], %1027 {strides = array<i32>} : memref<72x512xf32, #tpu.memory_space<vmem>>, vector<8x512xf32>,
    %c511_i32_1025 = arith.constant 511 : i32
    %1053 = tpu.dynamic_rotate %1027 by %c511_i32_1025 dim 1 : vector<8x512xf32>, i32 -> vector<8x512xf32>
    %c5_1026 = arith.constant 5 : index
    %c0_1027 = arith.constant 0 : index
    %c0_1028 = arith.constant 0 : index
    %1054 = vector.load %arg4[%c5_1026, %c0_1027, %c0_1028] : memref<9x1x512xf32, #tpu.memory_space<vmem>>, vector<1x1x512xf32>
    %1055 = vector.shape_cast %1054 : vector<1x1x512xf32> to vector<1x512xf32>
    %1056 = vector.broadcast %1055 : vector<1x512xf32> to vector<8x512xf32>
    %1057 = arith.mulf %1053, %1056 : vector<8x512xf32>
    %c40_1029 = arith.constant 40 : index
    %c0_1030 = arith.constant 0 : index
    %1058 = vector.load %arg6[%c40_1029, %c0_1030] : memref<72x512xf32, #tpu.memory_space<vmem>>, vector<8x512xf32>
    tpu.vector_store %arg6[%c40_1029, %c0_1030], %1057 {strides = array<i32>} : memref<72x512xf32, #tpu.memory_space<vmem>>, vector<8x512xf32>,
    %c497_i32_1031 = arith.constant 497 : i32
    %1059 = tpu.dynamic_rotate %1027 by %c497_i32_1031 dim 1 : vector<8x512xf32>, i32 -> vector<8x512xf32>
    %c6_1032 = arith.constant 6 : index
    %c0_1033 = arith.constant 0 : index
    %c0_1034 = arith.constant 0 : index
    %1060 = vector.load %arg4[%c6_1032, %c0_1033, %c0_1034] : memref<9x1x512xf32, #tpu.memory_space<vmem>>, vector<1x1x512xf32>
    %1061 = vector.shape_cast %1060 : vector<1x1x512xf32> to vector<1x512xf32>
    %1062 = vector.broadcast %1061 : vector<1x512xf32> to vector<8x512xf32>
    %1063 = arith.mulf %1059, %1062 : vector<8x512xf32>
    %c48_1035 = arith.constant 48 : index
    %c0_1036 = arith.constant 0 : index
    %1064 = vector.load %arg6[%c48_1035, %c0_1036] : memref<72x512xf32, #tpu.memory_space<vmem>>, vector<8x512xf32>
    tpu.vector_store %arg6[%c48_1035, %c0_1036], %1063 {strides = array<i32>} : memref<72x512xf32, #tpu.memory_space<vmem>>, vector<8x512xf32>,
    %c496_i32_1037 = arith.constant 496 : i32
    %1065 = tpu.dynamic_rotate %1027 by %c496_i32_1037 dim 1 : vector<8x512xf32>, i32 -> vector<8x512xf32>
    %c7_1038 = arith.constant 7 : index
    %c0_1039 = arith.constant 0 : index
    %c0_1040 = arith.constant 0 : index
    %1066 = vector.load %arg4[%c7_1038, %c0_1039, %c0_1040] : memref<9x1x512xf32, #tpu.memory_space<vmem>>, vector<1x1x512xf32>
    %1067 = vector.shape_cast %1066 : vector<1x1x512xf32> to vector<1x512xf32>
    %1068 = vector.broadcast %1067 : vector<1x512xf32> to vector<8x512xf32>
    %1069 = arith.mulf %1065, %1068 : vector<8x512xf32>
    %c56_1041 = arith.constant 56 : index
    %c0_1042 = arith.constant 0 : index
    %1070 = vector.load %arg6[%c56_1041, %c0_1042] : memref<72x512xf32, #tpu.memory_space<vmem>>, vector<8x512xf32>
    tpu.vector_store %arg6[%c56_1041, %c0_1042], %1069 {strides = array<i32>} : memref<72x512xf32, #tpu.memory_space<vmem>>, vector<8x512xf32>,
    %c495_i32_1043 = arith.constant 495 : i32
    %1071 = tpu.dynamic_rotate %1027 by %c495_i32_1043 dim 1 : vector<8x512xf32>, i32 -> vector<8x512xf32>
    %c8_1044 = arith.constant 8 : index
    %c0_1045 = arith.constant 0 : index
    %c0_1046 = arith.constant 0 : index
    %1072 = vector.load %arg4[%c8_1044, %c0_1045, %c0_1046] : memref<9x1x512xf32, #tpu.memory_space<vmem>>, vector<1x1x512xf32>
    %1073 = vector.shape_cast %1072 : vector<1x1x512xf32> to vector<1x512xf32>
    %1074 = vector.broadcast %1073 : vector<1x512xf32> to vector<8x512xf32>
    %1075 = arith.mulf %1071, %1074 : vector<8x512xf32>
    %c64_1047 = arith.constant 64 : index
    %c0_1048 = arith.constant 0 : index
    %1076 = vector.load %arg6[%c64_1047, %c0_1048] : memref<72x512xf32, #tpu.memory_space<vmem>>, vector<8x512xf32>
    tpu.vector_store %arg6[%c64_1047, %c0_1048], %1075 {strides = array<i32>} : memref<72x512xf32, #tpu.memory_space<vmem>>, vector<8x512xf32>,
    %c17 = arith.constant 17 : index
    %c0_1049 = arith.constant 0 : index
    %c0_1050 = arith.constant 0 : index
    %1077 = vector.load %arg2[%c17, %c0_1049, %c0_1050] : memref<19x8x72xbf16, #tpu.memory_space<vmem>>, vector<1x8x72xbf16>
    %1078 = vector.shape_cast %1077 : vector<1x8x72xbf16> to vector<8x72xbf16>
    %c0_1051 = arith.constant 0 : index
    %c0_1052 = arith.constant 0 : index
    %1079 = vector.load %arg6[%c0_1051, %c0_1052] : memref<72x512xf32, #tpu.memory_space<vmem>>, vector<72x512xf32>
    %1080 = arith.truncf %1079 : vector<72x512xf32> to vector<72x512xbf16>
    %cst_1053 = arith.constant dense<0.000000e+00> : vector<8x512xf32>
    %1081 = tpu.matmul %1078, %1080, %cst_1053 {dimension_numbers = #tpu.dot_dimension_numbers<[1], [0], [0], [1], [0, 0, 1, 1], [], []>} : vector<8x72xbf16>, vector<72x512xbf16>, vector<8x512xf32> -> vector<8x512xf32>
    %c17_1054 = arith.constant 17 : index
    %c0_1055 = arith.constant 0 : index
    %c0_1056 = arith.constant 0 : index
    %1082 = vector.load %arg3[%c17_1054, %c0_1055, %c0_1056] : memref<19x8x1xf32, #tpu.memory_space<vmem>>, vector<1x8x1xf32>
    %1083 = vector.shape_cast %1082 : vector<1x8x1xf32> to vector<8x1xf32>
    %1084 = vector.broadcast %1083 : vector<8x1xf32> to vector<8x512xf32>
    %1085 = arith.addf %1081, %1084 : vector<8x512xf32>
    %cst_1057 = arith.constant 0.000000e+00 : f32
    %1086 = vector.broadcast %cst_1057 : f32 to vector<8x512xf32>
    %1087 = arith.maximumf %1085, %1086 : vector<8x512xf32>
    %c17_i32_1058 = arith.constant 17 : i32
    %1088 = tpu.dynamic_rotate %1087 by %c17_i32_1058 dim 1 : vector<8x512xf32>, i32 -> vector<8x512xf32>
    %c0_1059 = arith.constant 0 : index
    %c0_1060 = arith.constant 0 : index
    %c0_1061 = arith.constant 0 : index
    %1089 = vector.load %arg4[%c0_1059, %c0_1060, %c0_1061] : memref<9x1x512xf32, #tpu.memory_space<vmem>>, vector<1x1x512xf32>
    %1090 = vector.shape_cast %1089 : vector<1x1x512xf32> to vector<1x512xf32>
    %1091 = vector.broadcast %1090 : vector<1x512xf32> to vector<8x512xf32>
    %1092 = arith.mulf %1088, %1091 : vector<8x512xf32>
    %c0_1062 = arith.constant 0 : index
    %c0_1063 = arith.constant 0 : index
    %1093 = vector.load %arg6[%c0_1062, %c0_1063] : memref<72x512xf32, #tpu.memory_space<vmem>>, vector<8x512xf32>
    tpu.vector_store %arg6[%c0_1062, %c0_1063], %1092 {strides = array<i32>} : memref<72x512xf32, #tpu.memory_space<vmem>>, vector<8x512xf32>,
    %c16_i32_1064 = arith.constant 16 : i32
    %1094 = tpu.dynamic_rotate %1087 by %c16_i32_1064 dim 1 : vector<8x512xf32>, i32 -> vector<8x512xf32>
    %c1_1065 = arith.constant 1 : index
    %c0_1066 = arith.constant 0 : index
    %c0_1067 = arith.constant 0 : index
    %1095 = vector.load %arg4[%c1_1065, %c0_1066, %c0_1067] : memref<9x1x512xf32, #tpu.memory_space<vmem>>, vector<1x1x512xf32>
    %1096 = vector.shape_cast %1095 : vector<1x1x512xf32> to vector<1x512xf32>
    %1097 = vector.broadcast %1096 : vector<1x512xf32> to vector<8x512xf32>
    %1098 = arith.mulf %1094, %1097 : vector<8x512xf32>
    %c8_1068 = arith.constant 8 : index
    %c0_1069 = arith.constant 0 : index
    %1099 = vector.load %arg6[%c8_1068, %c0_1069] : memref<72x512xf32, #tpu.memory_space<vmem>>, vector<8x512xf32>
    tpu.vector_store %arg6[%c8_1068, %c0_1069], %1098 {strides = array<i32>} : memref<72x512xf32, #tpu.memory_space<vmem>>, vector<8x512xf32>,
    %c15_i32_1070 = arith.constant 15 : i32
    %1100 = tpu.dynamic_rotate %1087 by %c15_i32_1070 dim 1 : vector<8x512xf32>, i32 -> vector<8x512xf32>
    %c2_1071 = arith.constant 2 : index
    %c0_1072 = arith.constant 0 : index
    %c0_1073 = arith.constant 0 : index
    %1101 = vector.load %arg4[%c2_1071, %c0_1072, %c0_1073] : memref<9x1x512xf32, #tpu.memory_space<vmem>>, vector<1x1x512xf32>
    %1102 = vector.shape_cast %1101 : vector<1x1x512xf32> to vector<1x512xf32>
    %1103 = vector.broadcast %1102 : vector<1x512xf32> to vector<8x512xf32>
    %1104 = arith.mulf %1100, %1103 : vector<8x512xf32>
    %c16_1074 = arith.constant 16 : index
    %c0_1075 = arith.constant 0 : index
    %1105 = vector.load %arg6[%c16_1074, %c0_1075] : memref<72x512xf32, #tpu.memory_space<vmem>>, vector<8x512xf32>
    tpu.vector_store %arg6[%c16_1074, %c0_1075], %1104 {strides = array<i32>} : memref<72x512xf32, #tpu.memory_space<vmem>>, vector<8x512xf32>,
    %c1_i32_1076 = arith.constant 1 : i32
    %1106 = tpu.dynamic_rotate %1087 by %c1_i32_1076 dim 1 : vector<8x512xf32>, i32 -> vector<8x512xf32>
    %c3_1077 = arith.constant 3 : index
    %c0_1078 = arith.constant 0 : index
    %c0_1079 = arith.constant 0 : index
    %1107 = vector.load %arg4[%c3_1077, %c0_1078, %c0_1079] : memref<9x1x512xf32, #tpu.memory_space<vmem>>, vector<1x1x512xf32>
    %1108 = vector.shape_cast %1107 : vector<1x1x512xf32> to vector<1x512xf32>
    %1109 = vector.broadcast %1108 : vector<1x512xf32> to vector<8x512xf32>
    %1110 = arith.mulf %1106, %1109 : vector<8x512xf32>
    %c24_1080 = arith.constant 24 : index
    %c0_1081 = arith.constant 0 : index
    %1111 = vector.load %arg6[%c24_1080, %c0_1081] : memref<72x512xf32, #tpu.memory_space<vmem>>, vector<8x512xf32>
    tpu.vector_store %arg6[%c24_1080, %c0_1081], %1110 {strides = array<i32>} : memref<72x512xf32, #tpu.memory_space<vmem>>, vector<8x512xf32>,
    %c32_1082 = arith.constant 32 : index
    %c0_1083 = arith.constant 0 : index
    %1112 = vector.load %arg6[%c32_1082, %c0_1083] : memref<72x512xf32, #tpu.memory_space<vmem>>, vector<8x512xf32>
    tpu.vector_store %arg6[%c32_1082, %c0_1083], %1087 {strides = array<i32>} : memref<72x512xf32, #tpu.memory_space<vmem>>, vector<8x512xf32>,
    %c511_i32_1084 = arith.constant 511 : i32
    %1113 = tpu.dynamic_rotate %1087 by %c511_i32_1084 dim 1 : vector<8x512xf32>, i32 -> vector<8x512xf32>
    %c5_1085 = arith.constant 5 : index
    %c0_1086 = arith.constant 0 : index
    %c0_1087 = arith.constant 0 : index
    %1114 = vector.load %arg4[%c5_1085, %c0_1086, %c0_1087] : memref<9x1x512xf32, #tpu.memory_space<vmem>>, vector<1x1x512xf32>
    %1115 = vector.shape_cast %1114 : vector<1x1x512xf32> to vector<1x512xf32>
    %1116 = vector.broadcast %1115 : vector<1x512xf32> to vector<8x512xf32>
    %1117 = arith.mulf %1113, %1116 : vector<8x512xf32>
    %c40_1088 = arith.constant 40 : index
    %c0_1089 = arith.constant 0 : index
    %1118 = vector.load %arg6[%c40_1088, %c0_1089] : memref<72x512xf32, #tpu.memory_space<vmem>>, vector<8x512xf32>
    tpu.vector_store %arg6[%c40_1088, %c0_1089], %1117 {strides = array<i32>} : memref<72x512xf32, #tpu.memory_space<vmem>>, vector<8x512xf32>,
    %c497_i32_1090 = arith.constant 497 : i32
    %1119 = tpu.dynamic_rotate %1087 by %c497_i32_1090 dim 1 : vector<8x512xf32>, i32 -> vector<8x512xf32>
    %c6_1091 = arith.constant 6 : index
    %c0_1092 = arith.constant 0 : index
    %c0_1093 = arith.constant 0 : index
    %1120 = vector.load %arg4[%c6_1091, %c0_1092, %c0_1093] : memref<9x1x512xf32, #tpu.memory_space<vmem>>, vector<1x1x512xf32>
    %1121 = vector.shape_cast %1120 : vector<1x1x512xf32> to vector<1x512xf32>
    %1122 = vector.broadcast %1121 : vector<1x512xf32> to vector<8x512xf32>
    %1123 = arith.mulf %1119, %1122 : vector<8x512xf32>
    %c48_1094 = arith.constant 48 : index
    %c0_1095 = arith.constant 0 : index
    %1124 = vector.load %arg6[%c48_1094, %c0_1095] : memref<72x512xf32, #tpu.memory_space<vmem>>, vector<8x512xf32>
    tpu.vector_store %arg6[%c48_1094, %c0_1095], %1123 {strides = array<i32>} : memref<72x512xf32, #tpu.memory_space<vmem>>, vector<8x512xf32>,
    %c496_i32_1096 = arith.constant 496 : i32
    %1125 = tpu.dynamic_rotate %1087 by %c496_i32_1096 dim 1 : vector<8x512xf32>, i32 -> vector<8x512xf32>
    %c7_1097 = arith.constant 7 : index
    %c0_1098 = arith.constant 0 : index
    %c0_1099 = arith.constant 0 : index
    %1126 = vector.load %arg4[%c7_1097, %c0_1098, %c0_1099] : memref<9x1x512xf32, #tpu.memory_space<vmem>>, vector<1x1x512xf32>
    %1127 = vector.shape_cast %1126 : vector<1x1x512xf32> to vector<1x512xf32>
    %1128 = vector.broadcast %1127 : vector<1x512xf32> to vector<8x512xf32>
    %1129 = arith.mulf %1125, %1128 : vector<8x512xf32>
    %c56_1100 = arith.constant 56 : index
    %c0_1101 = arith.constant 0 : index
    %1130 = vector.load %arg6[%c56_1100, %c0_1101] : memref<72x512xf32, #tpu.memory_space<vmem>>, vector<8x512xf32>
    tpu.vector_store %arg6[%c56_1100, %c0_1101], %1129 {strides = array<i32>} : memref<72x512xf32, #tpu.memory_space<vmem>>, vector<8x512xf32>,
    %c495_i32_1102 = arith.constant 495 : i32
    %1131 = tpu.dynamic_rotate %1087 by %c495_i32_1102 dim 1 : vector<8x512xf32>, i32 -> vector<8x512xf32>
    %c8_1103 = arith.constant 8 : index
    %c0_1104 = arith.constant 0 : index
    %c0_1105 = arith.constant 0 : index
    %1132 = vector.load %arg4[%c8_1103, %c0_1104, %c0_1105] : memref<9x1x512xf32, #tpu.memory_space<vmem>>, vector<1x1x512xf32>
    %1133 = vector.shape_cast %1132 : vector<1x1x512xf32> to vector<1x512xf32>
    %1134 = vector.broadcast %1133 : vector<1x512xf32> to vector<8x512xf32>
    %1135 = arith.mulf %1131, %1134 : vector<8x512xf32>
    %c64_1106 = arith.constant 64 : index
    %c0_1107 = arith.constant 0 : index
    %1136 = vector.load %arg6[%c64_1106, %c0_1107] : memref<72x512xf32, #tpu.memory_space<vmem>>, vector<8x512xf32>
    tpu.vector_store %arg6[%c64_1106, %c0_1107], %1135 {strides = array<i32>} : memref<72x512xf32, #tpu.memory_space<vmem>>, vector<8x512xf32>,
    %c18 = arith.constant 18 : index
    %c0_1108 = arith.constant 0 : index
    %c0_1109 = arith.constant 0 : index
    %1137 = vector.load %arg2[%c18, %c0_1108, %c0_1109] : memref<19x8x72xbf16, #tpu.memory_space<vmem>>, vector<1x8x72xbf16>
    %1138 = vector.shape_cast %1137 : vector<1x8x72xbf16> to vector<8x72xbf16>
    %c0_1110 = arith.constant 0 : index
    %c0_1111 = arith.constant 0 : index
    %1139 = vector.load %arg6[%c0_1110, %c0_1111] : memref<72x512xf32, #tpu.memory_space<vmem>>, vector<72x512xf32>
    %1140 = arith.truncf %1139 : vector<72x512xf32> to vector<72x512xbf16>
    %cst_1112 = arith.constant dense<0.000000e+00> : vector<8x512xf32>
    %1141 = tpu.matmul %1138, %1140, %cst_1112 {dimension_numbers = #tpu.dot_dimension_numbers<[1], [0], [0], [1], [0, 0, 1, 1], [], []>} : vector<8x72xbf16>, vector<72x512xbf16>, vector<8x512xf32> -> vector<8x512xf32>
    %c18_1113 = arith.constant 18 : index
    %c0_1114 = arith.constant 0 : index
    %c0_1115 = arith.constant 0 : index
    %1142 = vector.load %arg3[%c18_1113, %c0_1114, %c0_1115] : memref<19x8x1xf32, #tpu.memory_space<vmem>>, vector<1x8x1xf32>
    %1143 = vector.shape_cast %1142 : vector<1x8x1xf32> to vector<8x1xf32>
    %1144 = vector.broadcast %1143 : vector<8x1xf32> to vector<8x512xf32>
    %1145 = arith.addf %1141, %1144 : vector<8x512xf32>
    %cst_1116 = arith.constant 0.000000e+00 : f32
    %1146 = vector.broadcast %cst_1116 : f32 to vector<8x512xf32>
    %1147 = arith.maximumf %1145, %1146 : vector<8x512xf32>
    %c2_1117 = arith.constant 2 : index
    %c0_1118 = arith.constant 0 : index
    %c0_1119 = arith.constant 0 : index
    %c0_1120 = arith.constant 0 : index
    %1148 = vector.load %arg5[%c2_1117, %c0_1118, %c0_1119, %c0_1120] : memref<3x1x8x512xf32, #tpu.memory_space<vmem>>, vector<1x1x8x512xf32>
    %1149 = vector.shape_cast %1148 : vector<1x1x8x512xf32> to vector<8x512xf32>
    %1150 = vector.shape_cast %1147 : vector<8x512xf32> to vector<1x1x8x512xf32>
    tpu.vector_store %arg5[%c2_1117, %c0_1118, %c0_1119, %c0_1120], %1150 {strides = array<i32>} : memref<3x1x8x512xf32, #tpu.memory_space<vmem>>, vector<1x1x8x512xf32>,
    return
  }
  func.func @transform_0(%arg0: i32) -> (i32, i32, i32) {
    %c0_i32 = arith.constant 0 : i32
    %c0_i32_0 = arith.constant 0 : i32
    %c0_i32_1 = arith.constant 0 : i32
    return %arg0, %c0_i32, %c0_i32_0 : i32, i32, i32
  }
  func.func @transform_1(%arg0: i32) -> (i32, i32, i32) {
    %c0_i32 = arith.constant 0 : i32
    %c0_i32_0 = arith.constant 0 : i32
    %c0_i32_1 = arith.constant 0 : i32
    %c0_i32_2 = arith.constant 0 : i32
    return %c0_i32, %c0_i32_0, %c0_i32_1 : i32, i32, i32
  }
  func.func @transform_2(%arg0: i32) -> (i32, i32, i32) {
    %c0_i32 = arith.constant 0 : i32
    %c0_i32_0 = arith.constant 0 : i32
    %c0_i32_1 = arith.constant 0 : i32
    %c0_i32_2 = arith.constant 0 : i32
    return %c0_i32, %c0_i32_0, %c0_i32_1 : i32, i32, i32
  }
  func.func @transform_3(%arg0: i32) -> (i32, i32, i32) {
    %c0_i32 = arith.constant 0 : i32
    %c0_i32_0 = arith.constant 0 : i32
    %c0_i32_1 = arith.constant 0 : i32
    %c0_i32_2 = arith.constant 0 : i32
    return %c0_i32, %c0_i32_0, %c0_i32_1 : i32, i32, i32
  }
  func.func @transform_4(%arg0: i32) -> (i32, i32, i32, i32) {
    %c0_i32 = arith.constant 0 : i32
    %c0_i32_0 = arith.constant 0 : i32
    %c0_i32_1 = arith.constant 0 : i32
    %c0_i32_2 = arith.constant 0 : i32
    return %c0_i32, %arg0, %c0_i32_0, %c0_i32_1 : i32, i32, i32, i32
  }
}

</mosaic_0001>

<bundles_post_ra>
// kernel: _fused_features_call.1
= control target key start
LH: loop header
LB: loop body
LE: loop exit
PB: predicated region body
PF: predicated region fallthrough
CT: control target
= control target key end

     0   :  { %s9935_s19 = smov 17   ;;  %s9936_s24 = smov 16   ;;  %v9942_v4 = vmov 0   ;;  %v30_v6 = vlaneseq  ;;  %vm446_vm8 = vcmask 1043456   ;;  %vm442_vm9 = vcmask 588800   ;;  %s14035_s0 = inlined_call_operand.vmem [shape: f32[1,8,512], index: 0, kind: input, shape index: {}]   ;;  %s14036_s2 = inlined_call_operand.vmem [shape: f32[19,8,1], index: 2, kind: input, shape index: {}]   ;;  %s14037_s3 = inlined_call_operand.vmem [shape: f32[9,1,512], index: 3, kind: input, shape index: {}]   ;;  %s14038_s1 = inlined_call_operand.vmem [shape: bf16[19,8,72], index: 1, kind: input, shape index: {}]   ;;  %s14039_s4 = inlined_call_operand.vmem [shape: f32[3,1,8,512], index: 4, kind: output, shape index: {}]  }
   0x1   :  { %v9972_v0 = vld [vmem:[%s14035_s0 + $0x10] sm:$0xff]  ;;  %v9977_v1 = vld [vmem:[%s14035_s0] sm:$0xff]  ;;  %v9986_v2 = vld [vmem:[%s14035_s0 + $0x18] sm:$0xff]  ;;  %s9938_s25 = smov 1   ;;  %s9939_s26 = smov 127   ;;  %491 = vmatprep.mubr.bf16.mxu0 %v9942_v4  ;;  %532 = vmatprep.mubr.bf16.mxu1 %v9942_v4 }
   0x2   :  { %26 = vrot.lane.b32.xlu1 %v9972_v0, %s9935_s19  ;;  %22 = vrot.lane.b32.xlu0 %v9977_v1, %s9935_s19  ;;  %v9991_v3 = vld [vmem:[%s14035_s0 + $0x8] sm:$0xff]  ;;  %s9937_s0 = smov 15   ;;  %s9940_s27 = smov 113   ;;  %v436_v5 = vld [vmem:[%s14036_s2] sm:$0xff]  ;;  %v40_v7 = vshrl.u32 %v30_v6, 7  ;;  %v10060_v10 = vand.u32 127, %v30_v6 }
   0x3   :  { %s9941_s28 = smov 112   ;;  %9933 = vset.pattern.permute.xlu0 %v9942_v4  ;;  %9934 = vset.pattern.permute.xlu1 %v9942_v4  ;;  %s9943_s29 = smov 111   ;;  %v37_v12 = vld [vmem:[%s14037_s3] sm:$0xf]  ;;  %v9671_v13 = vld [vmem:[%s14037_s3 + $0x4] sm:$0xf] }
   0x4   :  { %v10062_v11 = vsub.s32 1, %v40_v7  ;;  %vm32_vm0 = vcmp.lt.s32.totalorder %v10060_v10, 17  ;;  %v10071_v16 = vsub.s32 0, %v40_v7  ;;  %v10073_v17 = vsub.s32 3, %v40_v7  ;;  %v9672_v53 = vld [vmem:[%s14037_s3 + $0x8] sm:$0xf] }
   0x5   :  { %v10075_v18 = vsub.s32 2, %v40_v7  ;;  %vm75_vm1 = vcmp.lt.s32.totalorder %v10060_v10, 16  ;;  %v9673_v54 = vld [vmem:[%s14037_s3 + $0xc] sm:$0xf]  ;;  %vm119_vm2 = vcmp.lt.s32.totalorder %v10060_v10, 15  ;;  %vm163_vm3 = vcmp.lt.s32.totalorder %v10060_v10, 1 }
   0x6   :  { %28 = vrot.lane.b32.xlu1 %v9986_v2, %s9935_s19  ;;  %24 = vrot.lane.b32.xlu0 %v9991_v3, %s9935_s19  ;;  %v46_v19 = vrot.slane %v37_v12, %v10062_v11  ;;  %v90_v20 = vrot.slane %v9671_v13, %v10062_v11  ;;  %v42_v24 = vrot.slane %v37_v12, %v10071_v16  ;;  %vm211_vm4 = vcmp.lt.s32.totalorder %v10060_v10, 127 }
   0x7   :  { %v86_v25 = vrot.slane %v9671_v13, %v10071_v16  ;;  %v54_v26 = vrot.slane %v37_v12, %v10073_v17  ;;  %v98_v29 = vrot.slane %v9671_v13, %v10073_v17  ;;  %v50_v30 = vrot.slane %v37_v12, %v10075_v18 }
   0x8   :  { %v94_v34 = vrot.slane %v9671_v13, %v10075_v18  ;;  %v134_v57 = vrot.slane %v9672_v53, %v10062_v11  ;;  %v178_v58 = vrot.slane %v9673_v54, %v10062_v11  ;;  %v130_v60 = vrot.slane %v9672_v53, %v10071_v16 }
   0x9   :  { %v138_v61 = vrot.slane %v9672_v53, %v10075_v18  ;;  %v142_v62 = vrot.slane %v9672_v53, %v10073_v17  ;;  %vm299_vm5 = vcmp.lt.s32.totalorder %v10060_v10, 112  ;;  %vm255_vm6 = vcmp.lt.s32.totalorder %v10060_v10, 113 }
   0xa   :  { %69 = vrot.lane.b32.xlu1 %v9991_v3, %s9936_s24  ;;  %67 = vrot.lane.b32.xlu0 %v9977_v1, %s9936_s24  ;;  %vm343_vm7 = vcmp.lt.s32.totalorder %v10060_v10, 111 }
   0xe   :  { %73 = vrot.lane.b32.xlu1 %v9986_v2, %s9936_s24  ;;  %71 = vrot.lane.b32.xlu0 %v9972_v0, %s9936_s24 }
  0x12   :  { %113 = vrot.lane.b32.xlu1 %v9991_v3, %s9937_s0  ;;  %111 = vrot.lane.b32.xlu0 %v9977_v1, %s9937_s0 }
  0x16   :  { %117 = vrot.lane.b32.xlu1 %v9986_v2, %s9937_s0  ;;  %115 = vrot.lane.b32.xlu0 %v9972_v0, %s9937_s0 }
  0x1a   :  { %157 = vrot.lane.b32.xlu1 %v9991_v3, %s9938_s25  ;;  %155 = vrot.lane.b32.xlu0 %v9977_v1, %s9938_s25 }
  0x1e   :  { %161 = vrot.lane.b32.xlu1 %v9986_v2, %s9938_s25  ;;  %159 = vrot.lane.b32.xlu0 %v9972_v0, %s9938_s25 }
  0x22   :  { %205 = vrot.lane.b32.xlu1 %v9991_v3, %s9939_s26  ;;  %203 = vrot.lane.b32.xlu0 %v9977_v1, %s9939_s26 }
  0x26   :  { %209 = vrot.lane.b32.xlu1 %v9986_v2, %s9939_s26  ;;  %207 = vrot.lane.b32.xlu0 %v9972_v0, %s9939_s26 }
  0x2a   :  { %249 = vrot.lane.b32.xlu1 %v9991_v3, %s9940_s27  ;;  %247 = vrot.lane.b32.xlu0 %v9977_v1, %s9940_s27 }
  0x2e   :  { %253 = vrot.lane.b32.xlu1 %v9986_v2, %s9940_s27  ;;  %251 = vrot.lane.b32.xlu0 %v9972_v0, %s9940_s27 }
  0x32   :  { %293 = vrot.lane.b32.xlu1 %v9991_v3, %s9941_s28  ;;  %291 = vrot.lane.b32.xlu0 %v9977_v1, %s9941_s28 }
  0x36   :  { %297 = vrot.lane.b32.xlu1 %v9986_v2, %s9941_s28  ;;  %295 = vrot.lane.b32.xlu0 %v9972_v0, %s9941_s28 }
  0x3a   :  { %337 = vrot.lane.b32.xlu1 %v9991_v3, %s9943_s29  ;;  %335 = vrot.lane.b32.xlu0 %v9977_v1, %s9943_s29 }
  0x3e   :  { %341 = vrot.lane.b32.xlu1 %v9986_v2, %s9943_s29  ;;  %339 = vrot.lane.b32.xlu0 %v9972_v0, %s9943_s29 }
  0x42   :  { %439 = vperm.xlu0 %9933, %v436_v5  }
  0x74   :  { %v27_v8 = vpop.permute.xlu1 %26  ;;  %v23_v9 = vpop.permute.xlu0 %22 }
  0x78   :  { %v29_v14 = vpop.permute.xlu1 %28  ;;  %v25_v15 = vpop.permute.xlu0 %24 }
  0x79   :  { %v35_v21 = vsel %vm32_vm0, %v23_v9, %v25_v15  ;;  %v36_v27 = vsel %vm32_vm0, %v29_v14, %v23_v9  ;;  %v33_v33 = vsel %vm32_vm0, %v27_v8, %v29_v14  ;;  %v34_v35 = vsel %vm32_vm0, %v25_v15, %v27_v8 }
  0x7a   :  { %v60_v31 = vmul.f32 %v46_v19, %v35_v21  ;;  %v59_v39 = vmul.f32 %v42_v24, %v36_v27  ;;  %v62_v42 = vmul.f32 %v54_v26, %v33_v33  ;;  %v61_v46 = vmul.f32 %v50_v30, %v34_v35 }
  0x7b   :  { %v174_v8 = vrot.slane %v9673_v54, %v10071_v16  ;;  %v182_v9 = vrot.slane %v9673_v54, %v10075_v18  ;;  %v186_v15 = vrot.slane %v9673_v54, %v10073_v17 }
  0x7c   :  { %v70_v22 = vpop.permute.xlu1 %69  ;;  %v68_v23 = vpop.permute.xlu0 %67 }
  0x7d   :  { %v78_v28 = vsel %vm75_vm1, %v68_v23, %v70_v22 }
  0x7e   :  { %v104_v32 = vmul.f32 %v90_v20, %v78_v28 }
  0x80   :  { %v74_v36 = vpop.permute.xlu1 %73  ;;  %v72_v37 = vpop.permute.xlu0 %71  ;;  %v417_v38 = vpack.c.bf16 %v104_v32, %v60_v31  ;;  %v9674_v32 = vld [vmem:[%s14037_s3 + $0x14] sm:$0xf] }
  0x81   :  { %v79_v40 = vsel %vm75_vm1, %v74_v36, %v68_v23  ;;  %v77_v41 = vsel %vm75_vm1, %v70_v22, %v72_v37  ;;  %v76_v43 = vsel %vm75_vm1, %v72_v37, %v74_v36 }
  0x82   :  { %459 = vmatprep.subr.bf16.mxu0 %v417_v38  ;;  %v103_v44 = vmul.f32 %v86_v25, %v79_v40  ;;  %v106_v45 = vmul.f32 %v98_v29, %v76_v43  ;;  %v105_v47 = vmul.f32 %v94_v34, %v77_v41  ;;  %v222_v38 = vrot.slane %v9674_v32, %v10071_v16 }
  0x83   :  { %v226_v41 = vrot.slane %v9674_v32, %v10062_v11 }
  0x84   :  { %v114_v48 = vpop.permute.xlu1 %113  ;;  %v112_v49 = vpop.permute.xlu0 %111  ;;  %v416_v50 = vpack.c.bf16 %v103_v44, %v59_v39  ;;  %v419_v51 = vpack.c.bf16 %v106_v45, %v62_v42  ;;  %v418_v52 = vpack.c.bf16 %v105_v47, %v61_v46  ;;  %v234_v39 = vrot.slane %v9674_v32, %v10073_v17 }
  0x85   :  { %v122_v59 = vsel %vm119_vm2, %v112_v49, %v114_v48  ;;  %v230_v42 = vrot.slane %v9674_v32, %v10075_v18 }
  0x86   :  { %460 = vmatpush1.bf16.msra.mxu0 %v416_v50  ;;  %500 = vmatprep.subr.bf16.mxu1 %v419_v51  ;;  %v148_v12 = vmul.f32 %v134_v57, %v122_v59 }
  0x87   :  { %501 = vmatpush1.bf16.msra.mxu1 %v418_v52 }
  0x88   :  { %v118_v55 = vpop.permute.xlu1 %117  ;;  %v116_v56 = vpop.permute.xlu0 %115 }
  0x89   :  { %v123_v6 = vsel %vm119_vm2, %v118_v55, %v112_v49  ;;  %v121_v13 = vsel %vm119_vm2, %v114_v48, %v116_v56  ;;  %v120_v19 = vsel %vm119_vm2, %v116_v56, %v118_v55 }
  0x8a   :  { %v147_v20 = vmul.f32 %v130_v60, %v123_v6  ;;  %v149_v24 = vmul.f32 %v138_v61, %v121_v13  ;;  %v150_v28 = vmul.f32 %v142_v62, %v120_v19  ;;  %v9676_v60 = vld [vmem:[%s14037_s3 + $0x1c] sm:$0xf] }
  0x8b   :  { %v310_v6 = vrot.slane %v9676_v60, %v10071_v16  ;;  %v318_v13 = vrot.slane %v9676_v60, %v10075_v18 }
  0x8c   :  { %v158_v63 = vpop.permute.xlu1 %157  ;;  %v156_v5 = vpop.permute.xlu0 %155 }
  0x8d   :  { %v166_v7 = vsel %vm163_vm3, %v156_v5, %v158_v63 }
  0x8e   :  { %v192_v14 = vmul.f32 %v178_v58, %v166_v7  ;;  %v9677_v7 = vld [vmem:[%s14037_s3 + $0x20] sm:$0xf] }
  0x90   :  { %v162_v21 = vpop.permute.xlu1 %161  ;;  %v160_v22 = vpop.permute.xlu0 %159  ;;  %v421_v23 = vpack.c.bf16 %v192_v14, %v148_v12  ;;  %v314_v12 = vrot.slane %v9676_v60, %v10062_v11 }
  0x91   :  { %v167_v25 = vsel %vm163_vm3, %v162_v21, %v156_v5  ;;  %v164_v26 = vsel %vm163_vm3, %v160_v22, %v162_v21  ;;  %v165_v27 = vsel %vm163_vm3, %v158_v63, %v160_v22 }
  0x92   :  { %v191_v29 = vmul.f32 %v174_v8, %v167_v25  ;;  %v193_v30 = vmul.f32 %v182_v9, %v165_v27  ;;  %v194_v31 = vmul.f32 %v186_v15, %v164_v26  ;;  %461 = vmatprep.subr.bf16.mxu0 %v421_v23  ;;  %v322_v9 = vrot.slane %v9676_v60, %v10073_v17 }
  0x94   :  { %v206_v33 = vpop.permute.xlu1 %205  ;;  %v204_v34 = vpop.permute.xlu0 %203  ;;  %v420_v35 = vpack.c.bf16 %v191_v29, %v147_v20  ;;  %v423_v36 = vpack.c.bf16 %v194_v31, %v150_v28  ;;  %v422_v37 = vpack.c.bf16 %v193_v30, %v149_v24  ;;  %v354_v24 = vrot.slane %v9677_v7, %v10071_v16 }
  0x95   :  { %v214_v40 = vsel %vm211_vm4, %v204_v34, %v206_v33 }
  0x96   :  { %462 = vmatpush1.bf16.msra.mxu0 %v420_v35  ;;  %502 = vmatprep.subr.bf16.mxu1 %v423_v36  ;;  %v239_v45 = vmul.f32 %v222_v38, %v214_v40 }
  0x97   :  { %503 = vmatpush1.bf16.msra.mxu1 %v422_v37 }
  0x98   :  { %v210_v43 = vpop.permute.xlu1 %209  ;;  %v208_v44 = vpop.permute.xlu0 %207  ;;  %v424_v57 = vpack.c.bf16 %v239_v45, %v9977_v1 }
  0x99   :  { %v215_v46 = vsel %vm211_vm4, %v210_v43, %v204_v34  ;;  %v212_v47 = vsel %vm211_vm4, %v208_v44, %v210_v43  ;;  %v213_v48 = vsel %vm211_vm4, %v206_v33, %v208_v44  ;;  %v362_v44 = vrot.slane %v9677_v7, %v10075_v18 }
  0x9a   :  { %v242_v49 = vmul.f32 %v234_v39, %v215_v46  ;;  %v240_v50 = vmul.f32 %v226_v41, %v213_v48  ;;  %v241_v51 = vmul.f32 %v230_v42, %v212_v47  ;;  %v366_v41 = vrot.slane %v9677_v7, %v10073_v17 }
  0x9b   :  { %v358_v42 = vrot.slane %v9677_v7, %v10062_v11 }
  0x9c   :  { %v250_v52 = vpop.permute.xlu1 %249  ;;  %v248_v53 = vpop.permute.xlu0 %247  ;;  %v425_v54 = vpack.c.bf16 %v240_v50, %v9991_v3  ;;  %v427_v55 = vpack.c.bf16 %v242_v49, %v9986_v2  ;;  %v426_v56 = vpack.c.bf16 %v241_v51, %v9972_v0  ;;  %v9675_v3 = vld [vmem:[%s14037_s3 + $0x18] sm:$0xf] }
  0x9d   :  { %v278_v0 = vrot.slane %v9675_v3, %v10073_v17  ;;  %v270_v1 = vrot.slane %v9675_v3, %v10062_v11  ;;  %v274_v63 = vrot.slane %v9675_v3, %v10075_v18  ;;  %v266_v14 = vrot.slane %v9675_v3, %v10071_v16 }
  0x9e   :  { %463 = vmatprep.subr.bf16.mxu0 %v425_v54  ;;  %504 = vmatprep.subr.bf16.mxu1 %v427_v55  ;;  %v258_v19 = vsel %vm255_vm6, %v248_v53, %v250_v52 }
  0x9f   :  { %464 = vmatpush1.bf16.msra.mxu0 %v424_v57  ;;  %505 = vmatpush1.bf16.msra.mxu1 %v426_v56  ;;  %v283_v33 = vmul.f32 %v266_v14, %v258_v19  ;;  %v9690_v19 = vld [vmem:[%s14036_s2 + $0x8] sm:$0xff] }
  0xa0   :  { %v254_v58 = vpop.permute.xlu1 %253  ;;  %v252_v59 = vpop.permute.xlu0 %251 }
  0xa1   :  { %v259_v62 = vsel %vm255_vm6, %v254_v58, %v248_v53  ;;  %v257_v5 = vsel %vm255_vm6, %v250_v52, %v252_v59  ;;  %v256_v15 = vsel %vm255_vm6, %v252_v59, %v254_v58  ;;  %v379_v59 = vld [vmem:[%s14038_s1] sm:$0xf] }
  0xa2   :  { %v286_v20 = vmul.f32 %v278_v0, %v259_v62  ;;  %v284_v21 = vmul.f32 %v270_v1, %v257_v5  ;;  %v285_v29 = vmul.f32 %v274_v63, %v256_v15 }
  0xa4   :  { %v294_v2 = vpop.permute.xlu1 %293  ;;  %v292_v61 = vpop.permute.xlu0 %291 }
  0xa5   :  { %v302_v8 = vsel %vm299_vm5, %v292_v61, %v294_v2 }
  0xa6   :  { %v327_v25 = vmul.f32 %v310_v6, %v302_v8 }
  0xa8   :  { %v298_v22 = vpop.permute.xlu1 %297  ;;  %v296_v23 = vpop.permute.xlu0 %295  ;;  %v428_v40 = vpack.c.bf16 %v327_v25, %v283_v33  ;;  %v9682_v25 = vld [vmem:[%s14037_s3 + $0x4] sm:$0xf] }
  0xa9   :  { %v303_v26 = vsel %vm299_vm5, %v298_v22, %v292_v61  ;;  %v300_v27 = vsel %vm299_vm5, %v296_v23, %v298_v22  ;;  %v301_v28 = vsel %vm299_vm5, %v294_v2, %v296_v23 }
  0xaa   :  { %v330_v30 = vmul.f32 %v322_v9, %v303_v26  ;;  %v328_v31 = vmul.f32 %v314_v12, %v301_v28  ;;  %v329_v32 = vmul.f32 %v318_v13, %v300_v27 }
  0xac   :  { %v338_v34 = vpop.permute.xlu1 %337  ;;  %v336_v35 = vpop.permute.xlu0 %335  ;;  %v429_v36 = vpack.c.bf16 %v328_v31, %v284_v21  ;;  %v431_v37 = vpack.c.bf16 %v330_v30, %v286_v20  ;;  %v430_v38 = vpack.c.bf16 %v329_v32, %v285_v29  ;;  %v608_v29 = vrot.slane %v9682_v25, %v10062_v11 }
  0xad   :  { %v346_v39 = vsel %vm343_vm7, %v336_v35, %v338_v34 }
  0xae   :  { %465 = vmatprep.subr.bf16.mxu0 %v429_v36  ;;  %506 = vmatprep.subr.bf16.mxu1 %v431_v37  ;;  %v371_v43 = vmul.f32 %v354_v24, %v346_v39  ;;  %v557_v24 = vld [vmem:[%s14037_s3] sm:$0xf]  ;;  %v604_v37 = vrot.slane %v9682_v25, %v10071_v16 }
  0xaf   :  { %466 = vmatpush1.bf16.msra.mxu0 %v428_v40  ;;  %507 = vmatpush1.bf16.msra.mxu1 %v430_v38  ;;  %v566_v28 = vrot.slane %v557_v24, %v10062_v11  ;;  %v562_v31 = vrot.slane %v557_v24, %v10071_v16 }
  0xb0   :  { %v342_v45 = vpop.permute.xlu1 %341  ;;  %v340_v46 = vpop.permute.xlu0 %339  ;;  %v432_v52 = vpack.c.bf16 %v371_v43, %v371_v43 }
  0xb1   :  { %v347_v47 = vsel %vm343_vm7, %v342_v45, %v336_v35  ;;  %v344_v48 = vsel %vm343_vm7, %v340_v46, %v342_v45  ;;  %v345_v49 = vsel %vm343_vm7, %v338_v34, %v340_v46  ;;  %v574_v34 = vrot.slane %v557_v24, %v10073_v17 }
  0xb2   :  { %v374_v50 = vmul.f32 %v366_v41, %v347_v47  ;;  %v372_v51 = vmul.f32 %v358_v42, %v345_v49  ;;  %v373_v53 = vmul.f32 %v362_v44, %v344_v48  ;;  %v448_v57 = vsel %vm446_vm8, %v432_v52, 0 }
  0xb3   :  { %v612_v35 = vrot.slane %v9682_v25, %v10075_v18  ;;  %v616_v41 = vrot.slane %v9682_v25, %v10073_v17  ;;  %v570_v42 = vrot.slane %v557_v24, %v10075_v18 }
  0xb4   :  { %v435_v54 = vpack.c.bf16 %v374_v50, %v374_v50  ;;  %v433_v55 = vpack.c.bf16 %v372_v51, %v372_v51  ;;  %v434_v56 = vpack.c.bf16 %v373_v53, %v373_v53 }
  0xb6   :  { %9678 = vmatprep.subr.msk.bf16.mxu0 %vm446_vm8, %v433_v55  ;;  %9680 = vmatprep.subr.msk.bf16.mxu1 %vm446_vm8, %v435_v54  ;;  %v454_v58 = vsel %vm446_vm8, %v434_v56, 0 }
  0xb7   :  { %468 = vmatpush1.bf16.msra.mxu0 %v448_v57  ;;  %509 = vmatpush1.bf16.msra.mxu1 %v454_v58 }
  0xba   :  { %9679 = vmatmul.mubr.msk.bf16.vlgmr.msra.gmra.mrb[0].mxu0 %vm442_vm9, %v379_v59  ;;  %9681 = vmatmul.mubr.msk.bf16.vlgmr.msra.gmra.mrb[0].mxu1 %vm442_vm9, %v379_v59 }
  0xbb   :  { %997 = vmatprep.mubr.bf16.mxu0 %v9942_v4  ;;  %1038 = vmatprep.mubr.bf16.mxu1 %v9942_v4 }
  0xc1   :  { %v440_v60 = vpop.permute.xlu0 %439 }
 0x18d   :  { %v493_v3 = vpop.f32.mrb[0].mxu0  ;;  %v534_v0 = vpop.f32.mrb[0].mxu1 }
 0x18e   :  { %v494_v1 = vadd.f32 %v493_v3, %v440_v60  ;;  %v535_v2 = vadd.f32 %v534_v0, %v440_v60  ;;  %v495_v61 = vpop.f32.mrb[1].mxu0  ;;  %v536_v62 = vpop.f32.mrb[1].mxu1  ;;  %v9683_v0 = vld [vmem:[%s14037_s3 + $0x8] sm:$0xf] }
 0x18f   :  { %v497_v63 = vpop.f32.mrb[2].mxu0  ;;  %v538_v5 = vpop.f32.mrb[2].mxu1  ;;  %v496_v8 = vadd.f32 %v495_v61, %v440_v60  ;;  %v537_v14 = vadd.f32 %v536_v62, %v440_v60  ;;  %v650_v62 = vrot.slane %v9683_v0, %v10062_v11 }
 0x190   :  { %v10213_v6 = vmax.f32 %v494_v1, 0.0  ;;  %v10215_v7 = vmax.f32 %v535_v2, 0.0  ;;  %v498_v9 = vpop.f32.mrb[3].mxu0  ;;  %v539_v12 = vpop.f32.mrb[3].mxu1  ;;  %v9684_v1 = vld [vmem:[%s14037_s3 + $0xc] sm:$0xf] }
 0x191   :  { %v10221_v13 = vmax.f32 %v496_v8, 0.0  ;;  %v10227_v15 = vmax.f32 %v537_v14, 0.0  ;;  %v692_v63 = vrot.slane %v9684_v1, %v10062_v11  ;;  %v646_v8 = vrot.slane %v9683_v0, %v10071_v16 }
 0x192   :  { %549 = vrot.lane.b32.xlu0 %v10215_v7, %s9935_s19  ;;  %545 = vrot.lane.b32.xlu1 %v10213_v6, %s9935_s19  ;;  %v658_v14 = vrot.slane %v9683_v0, %v10073_v17 }
 0x196   :  { %587 = vrot.lane.b32.xlu0 %v10213_v6, %s9936_s24  ;;  %547 = vrot.lane.b32.xlu1 %v10221_v13, %s9935_s19 }
 0x19a   :  { %591 = vrot.lane.b32.xlu0 %v10215_v7, %s9936_s24  ;;  %551 = vrot.lane.b32.xlu1 %v10227_v15, %s9935_s19 }
 0x19e   :  { %629 = vrot.lane.b32.xlu0 %v10213_v6, %s9937_s0  ;;  %589 = vrot.lane.b32.xlu1 %v10221_v13, %s9936_s24 }
 0x1a2   :  { %633 = vrot.lane.b32.xlu0 %v10215_v7, %s9937_s0  ;;  %593 = vrot.lane.b32.xlu1 %v10227_v15, %s9936_s24 }
 0x1a6   :  { %671 = vrot.lane.b32.xlu0 %v10213_v6, %s9938_s25  ;;  %631 = vrot.lane.b32.xlu1 %v10221_v13, %s9937_s0 }
 0x1aa   :  { %675 = vrot.lane.b32.xlu0 %v10215_v7, %s9938_s25  ;;  %635 = vrot.lane.b32.xlu1 %v10227_v15, %s9937_s0 }
 0x1ae   :  { %717 = vrot.lane.b32.xlu0 %v10213_v6, %s9939_s26  ;;  %673 = vrot.lane.b32.xlu1 %v10221_v13, %s9938_s25 }
 0x1b2   :  { %721 = vrot.lane.b32.xlu0 %v10215_v7, %s9939_s26  ;;  %677 = vrot.lane.b32.xlu1 %v10227_v15, %s9938_s25 }
 0x1b6   :  { %759 = vrot.lane.b32.xlu0 %v10213_v6, %s9940_s27  ;;  %719 = vrot.lane.b32.xlu1 %v10221_v13, %s9939_s26 }
 0x1ba   :  { %763 = vrot.lane.b32.xlu0 %v10215_v7, %s9940_s27  ;;  %723 = vrot.lane.b32.xlu1 %v10227_v15, %s9939_s26 }
 0x1be   :  { %801 = vrot.lane.b32.xlu0 %v10213_v6, %s9941_s28  ;;  %761 = vrot.lane.b32.xlu1 %v10221_v13, %s9940_s27 }
 0x1c2   :  { %805 = vrot.lane.b32.xlu0 %v10215_v7, %s9941_s28  ;;  %765 = vrot.lane.b32.xlu1 %v10227_v15, %s9940_s27 }
 0x1c6   :  { %843 = vrot.lane.b32.xlu0 %v10213_v6, %s9943_s29  ;;  %803 = vrot.lane.b32.xlu1 %v10221_v13, %s9941_s28 }
 0x1ca   :  { %847 = vrot.lane.b32.xlu0 %v10215_v7, %s9943_s29  ;;  %807 = vrot.lane.b32.xlu1 %v10227_v15, %s9941_s28 }
 0x1ce   :  { %947 = vperm.xlu0 %9933, %v9690_v19   ;;  %845 = vrot.lane.b32.xlu1 %v10221_v13, %s9943_s29  ;;  %v696_v19 = vrot.slane %v9684_v1, %v10075_v18 }
 0x1d2   :  { %849 = vrot.lane.b32.xlu1 %v10227_v15, %s9943_s29 }
 0x204   :  { %v550_v20 = vpop.permute.xlu0 %549  ;;  %v546_v21 = vpop.permute.xlu1 %545 }
 0x208   :  { %v588_v22 = vpop.permute.xlu0 %587  ;;  %v548_v23 = vpop.permute.xlu1 %547 }
 0x209   :  { %v555_v30 = vsel %vm32_vm0, %v546_v21, %v548_v23  ;;  %v554_v45 = vsel %vm32_vm0, %v548_v23, %v550_v20 }
 0x20a   :  { %v580_v38 = vmul.f32 %v566_v28, %v555_v30  ;;  %v581_v56 = vmul.f32 %v570_v42, %v554_v45 }
 0x20c   :  { %v592_v26 = vpop.permute.xlu0 %591  ;;  %v552_v27 = vpop.permute.xlu1 %551 }
 0x20d   :  { %v553_v43 = vsel %vm32_vm0, %v550_v20, %v552_v27  ;;  %v556_v44 = vsel %vm32_vm0, %v552_v27, %v546_v21  ;;  %v688_v21 = vrot.slane %v9684_v1, %v10071_v16  ;;  %v654_v27 = vrot.slane %v9683_v0, %v10075_v18 }
 0x20e   :  { %v579_v52 = vmul.f32 %v562_v31, %v556_v44  ;;  %v582_v53 = vmul.f32 %v574_v34, %v553_v43 }
 0x210   :  { %v630_v32 = vpop.permute.xlu0 %629  ;;  %v590_v33 = vpop.permute.xlu1 %589 }
 0x211   :  { %v597_v36 = vsel %vm75_vm1, %v588_v22, %v590_v33  ;;  %v596_v39 = vsel %vm75_vm1, %v590_v33, %v592_v26 }
 0x212   :  { %v622_v40 = vmul.f32 %v608_v29, %v597_v36  ;;  %v623_v49 = vmul.f32 %v612_v35, %v596_v39 }
 0x214   :  { %v634_v46 = vpop.permute.xlu0 %633  ;;  %v594_v47 = vpop.permute.xlu1 %593  ;;  %v924_v48 = vpack.c.bf16 %v622_v40, %v580_v38  ;;  %v925_v3 = vpack.c.bf16 %v623_v49, %v581_v56 }
 0x215   :  { %v595_v50 = vsel %vm75_vm1, %v592_v26, %v594_v47  ;;  %v598_v51 = vsel %vm75_vm1, %v594_v47, %v588_v22  ;;  %v9685_v22 = vld [vmem:[%s14037_s3 + $0x14] sm:$0xf]  ;;  %v700_v26 = vrot.slane %v9684_v1, %v10073_v17 }
 0x216   :  { %v621_v54 = vmul.f32 %v604_v37, %v598_v51  ;;  %v624_v55 = vmul.f32 %v616_v41, %v595_v50  ;;  %965 = vmatprep.subr.bf16.mxu0 %v924_v48  ;;  %v734_v35 = vrot.slane %v9685_v22, %v10071_v16  ;;  %v738_v39 = vrot.slane %v9685_v22, %v10062_v11 }
 0x217   :  { %v742_v51 = vrot.slane %v9685_v22, %v10075_v18 }
 0x218   :  { %v923_v57 = vpack.c.bf16 %v621_v54, %v579_v52  ;;  %v672_v58 = vpop.permute.xlu0 %671  ;;  %v632_v59 = vpop.permute.xlu1 %631  ;;  %v926_v60 = vpack.c.bf16 %v624_v55, %v582_v53  ;;  %v746_v54 = vrot.slane %v9685_v22, %v10073_v17 }
 0x219   :  { %v639_v5 = vsel %vm119_vm2, %v630_v32, %v632_v59  ;;  %v638_v30 = vsel %vm119_vm2, %v632_v59, %v634_v46 }
 0x21a   :  { %966 = vmatpush1.bf16.msra.mxu0 %v923_v57  ;;  %1006 = vmatprep.subr.bf16.mxu1 %v926_v60  ;;  %v664_v23 = vmul.f32 %v650_v62, %v639_v5  ;;  %v665_v43 = vmul.f32 %v654_v27, %v638_v30  ;;  %v9687_v62 = vld [vmem:[%s14037_s3 + $0x1c] sm:$0xf] }
 0x21b   :  { %1007 = vmatpush1.bf16.msra.mxu1 %v925_v3 }
 0x21c   :  { %v676_v2 = vpop.permute.xlu0 %675  ;;  %v636_v61 = vpop.permute.xlu1 %635 }
 0x21d   :  { %v637_v28 = vsel %vm119_vm2, %v634_v46, %v636_v61  ;;  %v640_v29 = vsel %vm119_vm2, %v636_v61, %v630_v32 }
 0x21e   :  { %v663_v40 = vmul.f32 %v646_v8, %v640_v29  ;;  %v666_v41 = vmul.f32 %v658_v14, %v637_v28 }
 0x220   :  { %v718_v9 = vpop.permute.xlu0 %717  ;;  %v674_v12 = vpop.permute.xlu1 %673 }
 0x221   :  { %v681_v20 = vsel %vm163_vm3, %v672_v58, %v674_v12  ;;  %v680_v24 = vsel %vm163_vm3, %v674_v12, %v676_v2 }
 0x222   :  { %v706_v25 = vmul.f32 %v692_v63, %v681_v20  ;;  %v707_v36 = vmul.f32 %v696_v19, %v680_v24  ;;  %v826_v24 = vrot.slane %v9687_v62, %v10075_v18 }
 0x224   :  { %v722_v31 = vpop.permute.xlu0 %721  ;;  %v678_v33 = vpop.permute.xlu1 %677  ;;  %v928_v34 = vpack.c.bf16 %v706_v25, %v664_v23  ;;  %v929_v48 = vpack.c.bf16 %v707_v36, %v665_v43  ;;  %v830_v25 = vrot.slane %v9687_v62, %v10073_v17 }
 0x225   :  { %v679_v37 = vsel %vm163_vm3, %v676_v2, %v678_v33  ;;  %v682_v38 = vsel %vm163_vm3, %v678_v33, %v672_v58 }
 0x226   :  { %v705_v32 = vmul.f32 %v688_v21, %v682_v38  ;;  %v708_v42 = vmul.f32 %v700_v26, %v679_v37  ;;  %967 = vmatprep.subr.bf16.mxu0 %v928_v34 }
 0x228   :  { %v927_v44 = vpack.c.bf16 %v705_v32, %v663_v40  ;;  %v760_v45 = vpop.permute.xlu0 %759  ;;  %v720_v46 = vpop.permute.xlu1 %719  ;;  %v930_v47 = vpack.c.bf16 %v708_v42, %v666_v41 }
 0x229   :  { %v726_v49 = vsel %vm211_vm4, %v720_v46, %v722_v31  ;;  %v727_v50 = vsel %vm211_vm4, %v718_v9, %v720_v46 }
 0x22a   :  { %v751_v52 = vmul.f32 %v734_v35, %v727_v50  ;;  %v752_v53 = vmul.f32 %v738_v39, %v726_v49  ;;  %968 = vmatpush1.bf16.msra.mxu0 %v927_v44  ;;  %1008 = vmatprep.subr.bf16.mxu1 %v930_v47 }
 0x22b   :  { %1009 = vmatpush1.bf16.msra.mxu1 %v929_v48 }
 0x22c   :  { %v931_v55 = vpack.c.bf16 %v751_v52, %v10213_v6  ;;  %v764_v56 = vpop.permute.xlu0 %763  ;;  %v724_v57 = vpop.permute.xlu1 %723  ;;  %v932_v58 = vpack.c.bf16 %v752_v53, %v10221_v13  ;;  %v9686_v13 = vld [vmem:[%s14037_s3 + $0x18] sm:$0xf] }
 0x22d   :  { %v725_v59 = vsel %vm211_vm4, %v722_v31, %v724_v57  ;;  %v728_v60 = vsel %vm211_vm4, %v724_v57, %v718_v9  ;;  %v776_v8 = vrot.slane %v9686_v13, %v10071_v16  ;;  %v818_v9 = vrot.slane %v9687_v62, %v10071_v16  ;;  %v9688_v31 = vld [vmem:[%s14037_s3 + $0x20] sm:$0xf] }
 0x22e   :  { %v753_v3 = vmul.f32 %v742_v51, %v725_v59  ;;  %v754_v0 = vmul.f32 %v746_v54, %v728_v60  ;;  %969 = vmatprep.subr.bf16.mxu0 %v932_v58  ;;  %v784_v19 = vrot.slane %v9686_v13, %v10075_v18  ;;  %v788_v20 = vrot.slane %v9686_v13, %v10073_v17 }
 0x22f   :  { %970 = vmatpush1.bf16.msra.mxu0 %v931_v55  ;;  %v860_v40 = vrot.slane %v9688_v31, %v10071_v16  ;;  %v864_v41 = vrot.slane %v9688_v31, %v10062_v11  ;;  %v868_v53 = vrot.slane %v9688_v31, %v10075_v18  ;;  %v872_v54 = vrot.slane %v9688_v31, %v10073_v17  ;;  %v9695_v31 = vld [vmem:[%s14037_s3 + $0x4] sm:$0xf] }
 0x230   :  { %v933_v1 = vpack.c.bf16 %v753_v3, %v10215_v7  ;;  %v802_v2 = vpop.permute.xlu0 %801  ;;  %v762_v61 = vpop.permute.xlu1 %761  ;;  %v934_v6 = vpack.c.bf16 %v754_v0, %v10227_v15  ;;  %v780_v7 = vrot.slane %v9686_v13, %v10062_v11  ;;  %v822_v15 = vrot.slane %v9687_v62, %v10062_v11 }
 0x231   :  { %v768_v12 = vsel %vm255_vm6, %v762_v61, %v764_v56  ;;  %v769_v14 = vsel %vm255_vm6, %v760_v45, %v762_v61 }
 0x232   :  { %1010 = vmatprep.subr.bf16.mxu1 %v934_v6  ;;  %v793_v26 = vmul.f32 %v776_v8, %v769_v14  ;;  %v794_v27 = vmul.f32 %v780_v7, %v768_v12 }
 0x233   :  { %1011 = vmatpush1.bf16.msra.mxu1 %v933_v1  ;;  %v9689_v1 = vld [vmem:[%s14038_s1 + $0x4] sm:$0xf] }
 0x234   :  { %v806_v63 = vpop.permute.xlu0 %805  ;;  %v766_v5 = vpop.permute.xlu1 %765 }
 0x235   :  { %v767_v33 = vsel %vm255_vm6, %v764_v56, %v766_v5  ;;  %v770_v34 = vsel %vm255_vm6, %v766_v5, %v760_v45 }
 0x236   :  { %v795_v32 = vmul.f32 %v784_v19, %v767_v33  ;;  %v796_v42 = vmul.f32 %v788_v20, %v770_v34 }
 0x238   :  { %v804_v21 = vpop.permute.xlu1 %803  ;;  %v844_v28 = vpop.permute.xlu0 %843 }
 0x239   :  { %v810_v22 = vsel %vm299_vm5, %v804_v21, %v806_v63  ;;  %v811_v23 = vsel %vm299_vm5, %v802_v2, %v804_v21 }
 0x23a   :  { %v835_v29 = vmul.f32 %v818_v9, %v811_v23  ;;  %v836_v30 = vmul.f32 %v822_v15, %v810_v22 }
 0x23c   :  { %v935_v35 = vpack.c.bf16 %v835_v29, %v793_v26  ;;  %v808_v36 = vpop.permute.xlu1 %807  ;;  %v936_v37 = vpack.c.bf16 %v836_v30, %v794_v27  ;;  %v848_v45 = vpop.permute.xlu0 %847  ;;  %v9703_v26 = vld [vmem:[%s14036_s2 + $0x10] sm:$0xff]  ;;  %v1063_v29 = vld [vmem:[%s14037_s3] sm:$0xf] }
 0x23d   :  { %v809_v38 = vsel %vm299_vm5, %v806_v63, %v808_v36  ;;  %v812_v39 = vsel %vm299_vm5, %v808_v36, %v802_v2  ;;  %v1072_v34 = vrot.slane %v1063_v29, %v10062_v11 }
 0x23e   :  { %v837_v43 = vmul.f32 %v826_v24, %v809_v38  ;;  %v838_v44 = vmul.f32 %v830_v25, %v812_v39  ;;  %971 = vmatprep.subr.bf16.mxu0 %v936_v37  ;;  %v1068_v39 = vrot.slane %v1063_v29, %v10071_v16 }
 0x23f   :  { %972 = vmatpush1.bf16.msra.mxu0 %v935_v35  ;;  %v1114_v35 = vrot.slane %v9695_v31, %v10062_v11 }
 0x240   :  { %v937_v46 = vpack.c.bf16 %v837_v43, %v795_v32  ;;  %v846_v47 = vpop.permute.xlu1 %845  ;;  %v938_v48 = vpack.c.bf16 %v838_v44, %v796_v42  ;;  %v1118_v32 = vrot.slane %v9695_v31, %v10075_v18  ;;  %v1110_v44 = vrot.slane %v9695_v31, %v10071_v16 }
 0x241   :  { %v852_v49 = vsel %vm343_vm7, %v846_v47, %v848_v45  ;;  %v853_v50 = vsel %vm343_vm7, %v844_v28, %v846_v47 }
 0x242   :  { %v877_v51 = vmul.f32 %v860_v40, %v853_v50  ;;  %v878_v52 = vmul.f32 %v864_v41, %v852_v49  ;;  %1012 = vmatprep.subr.bf16.mxu1 %v938_v48  ;;  %v1080_v40 = vrot.slane %v1063_v29, %v10073_v17 }
 0x243   :  { %1013 = vmatpush1.bf16.msra.mxu1 %v937_v46  ;;  %v1076_v46 = vrot.slane %v1063_v29, %v10075_v18 }
 0x244   :  { %v939_v55 = vpack.c.bf16 %v877_v51, %v877_v51  ;;  %v940_v56 = vpack.c.bf16 %v878_v52, %v878_v52  ;;  %v850_v57 = vpop.permute.xlu1 %849 }
 0x245   :  { %v851_v58 = vsel %vm343_vm7, %v848_v45, %v850_v57  ;;  %v854_v59 = vsel %vm343_vm7, %v850_v57, %v844_v28  ;;  %v1122_v45 = vrot.slane %v9695_v31, %v10073_v17 }
 0x246   :  { %v879_v60 = vmul.f32 %v868_v53, %v851_v58  ;;  %v880_v3 = vmul.f32 %v872_v54, %v854_v59  ;;  %9691 = vmatprep.subr.msk.bf16.mxu0 %vm446_vm8, %v940_v56  ;;  %v954_v0 = vsel %vm446_vm8, %v939_v55, 0 }
 0x247   :  { %974 = vmatpush1.bf16.msra.mxu0 %v954_v0 }
 0x248   :  { %v941_v2 = vpack.c.bf16 %v879_v60, %v879_v60  ;;  %v942_v61 = vpack.c.bf16 %v880_v3, %v880_v3 }
 0x24a   :  { %9692 = vmatmul.mubr.msk.bf16.vlgmr.msra.gmra.mrb[4].mxu0 %vm442_vm9, %v9689_v1  ;;  %9693 = vmatprep.subr.msk.bf16.mxu1 %vm446_vm8, %v942_v61  ;;  %v960_v6 = vsel %vm446_vm8, %v941_v2, 0 }
 0x24b   :  { %1015 = vmatpush1.bf16.msra.mxu1 %v960_v6  ;;  %1503 = vmatprep.mubr.bf16.mxu0 %v9942_v4 }
 0x24d   :  { %v948_v13 = vpop.permute.xlu0 %947 }
 0x24e   :  { %9694 = vmatmul.mubr.msk.bf16.vlgmr.msra.gmra.mrb[4].mxu1 %vm442_vm9, %v9689_v1 }
 0x24f   :  { %1544 = vmatprep.mubr.bf16.mxu1 %v9942_v4 }
 0x31d   :  { %v999_v62 = vpop.f32.mrb[4].mxu0 }
 0x31e   :  { %v1000_v63 = vadd.f32 %v999_v62, %v948_v13  ;;  %v1001_v5 = vpop.f32.mrb[5].mxu0 }
 0x31f   :  { %v1002_v8 = vadd.f32 %v1001_v5, %v948_v13  ;;  %v1003_v7 = vpop.f32.mrb[6].mxu0 }
 0x320   :  { %v10423_v9 = vmax.f32 %v1000_v63, 0.0  ;;  %v1004_v15 = vpop.f32.mrb[7].mxu0  ;;  %v9697_v63 = vld [vmem:[%s14037_s3 + $0xc] sm:$0xf] }
 0x321   :  { %v10425_v12 = vmax.f32 %v1002_v8, 0.0  ;;  %v1040_v14 = vpop.f32.mrb[4].mxu1  ;;  %v1198_v7 = vrot.slane %v9697_v63, %v10062_v11  ;;  %v1206_v29 = vrot.slane %v9697_v63, %v10073_v17 }
 0x322   :  { %v1041_v19 = vadd.f32 %v1040_v14, %v948_v13  ;;  %1051 = vrot.lane.b32.xlu1 %v10423_v9, %s9935_s19  ;;  %v1042_v20 = vpop.f32.mrb[5].mxu1 }
 0x323   :  { %v1043_v21 = vadd.f32 %v1042_v20, %v948_v13  ;;  %1053 = vrot.lane.b32.xlu0 %v10425_v12, %s9935_s19  ;;  %v1044_v22 = vpop.f32.mrb[6].mxu1  ;;  %v9696_v13 = vld [vmem:[%s14037_s3 + $0x8] sm:$0xf] }
 0x324   :  { %v10431_v23 = vmax.f32 %v1041_v19, 0.0  ;;  %v1045_v24 = vpop.f32.mrb[7].mxu1  ;;  %v1156_v8 = vrot.slane %v9696_v13, %v10062_v11  ;;  %v1152_v20 = vrot.slane %v9696_v13, %v10071_v16 }
 0x325   :  { %v10433_v25 = vmax.f32 %v1043_v21, 0.0  ;;  %v1164_v21 = vrot.slane %v9696_v13, %v10073_v17  ;;  %v1202_v24 = vrot.slane %v9697_v63, %v10075_v18 }
 0x326   :  { %1055 = vrot.lane.b32.xlu1 %v10431_v23, %s9935_s19 }
 0x327   :  { %1057 = vrot.lane.b32.xlu0 %v10433_v25, %s9935_s19 }
 0x32a   :  { %1093 = vrot.lane.b32.xlu1 %v10423_v9, %s9936_s24 }
 0x32b   :  { %1095 = vrot.lane.b32.xlu0 %v10425_v12, %s9936_s24 }
 0x32e   :  { %1097 = vrot.lane.b32.xlu1 %v10431_v23, %s9936_s24 }
 0x32f   :  { %1099 = vrot.lane.b32.xlu0 %v10433_v25, %s9936_s24 }
 0x332   :  { %1135 = vrot.lane.b32.xlu1 %v10423_v9, %s9937_s0 }
 0x333   :  { %1137 = vrot.lane.b32.xlu0 %v10425_v12, %s9937_s0 }
 0x336   :  { %1139 = vrot.lane.b32.xlu1 %v10431_v23, %s9937_s0 }
 0x337   :  { %1141 = vrot.lane.b32.xlu0 %v10433_v25, %s9937_s0 }
 0x33a   :  { %1177 = vrot.lane.b32.xlu1 %v10423_v9, %s9938_s25 }
 0x33b   :  { %1179 = vrot.lane.b32.xlu0 %v10425_v12, %s9938_s25 }
 0x33e   :  { %1181 = vrot.lane.b32.xlu1 %v10431_v23, %s9938_s25 }
 0x33f   :  { %1183 = vrot.lane.b32.xlu0 %v10433_v25, %s9938_s25 }
 0x342   :  { %1223 = vrot.lane.b32.xlu1 %v10423_v9, %s9939_s26 }
 0x343   :  { %1225 = vrot.lane.b32.xlu0 %v10425_v12, %s9939_s26 }
 0x346   :  { %1227 = vrot.lane.b32.xlu1 %v10431_v23, %s9939_s26 }
 0x347   :  { %1229 = vrot.lane.b32.xlu0 %v10433_v25, %s9939_s26 }
 0x34a   :  { %1265 = vrot.lane.b32.xlu1 %v10423_v9, %s9940_s27 }
 0x34b   :  { %1267 = vrot.lane.b32.xlu0 %v10425_v12, %s9940_s27 }
 0x34e   :  { %1269 = vrot.lane.b32.xlu1 %v10431_v23, %s9940_s27 }
 0x34f   :  { %1271 = vrot.lane.b32.xlu0 %v10433_v25, %s9940_s27 }
 0x352   :  { %1307 = vrot.lane.b32.xlu1 %v10423_v9, %s9941_s28 }
 0x353   :  { %1309 = vrot.lane.b32.xlu0 %v10425_v12, %s9941_s28 }
 0x356   :  { %1311 = vrot.lane.b32.xlu1 %v10431_v23, %s9941_s28 }
 0x357   :  { %1313 = vrot.lane.b32.xlu0 %v10433_v25, %s9941_s28 }
 0x35a   :  { %1349 = vrot.lane.b32.xlu1 %v10423_v9, %s9943_s29 }
 0x35b   :  { %1351 = vrot.lane.b32.xlu0 %v10425_v12, %s9943_s29 }
 0x35e   :  { %1353 = vrot.lane.b32.xlu1 %v10431_v23, %s9943_s29 }
 0x35f   :  { %1355 = vrot.lane.b32.xlu0 %v10433_v25, %s9943_s29 }
 0x362   :  { %1453 = vperm.xlu1 %9934, %v9703_v26  }
 0x394   :  { %v1052_v27 = vpop.permute.xlu1 %1051 }
 0x395   :  { %v1054_v28 = vpop.permute.xlu0 %1053 }
 0x396   :  { %v1061_v36 = vsel %vm32_vm0, %v1052_v27, %v1054_v28 }
 0x397   :  { %v1086_v42 = vmul.f32 %v1072_v34, %v1061_v36 }
 0x398   :  { %v1056_v30 = vpop.permute.xlu1 %1055 }
 0x399   :  { %v1058_v33 = vpop.permute.xlu0 %1057  ;;  %v1060_v50 = vsel %vm32_vm0, %v1054_v28, %v1056_v30  ;;  %v1194_v28 = vrot.slane %v9697_v63, %v10071_v16 }
 0x39a   :  { %v1059_v47 = vsel %vm32_vm0, %v1056_v30, %v1058_v33  ;;  %v1062_v48 = vsel %vm32_vm0, %v1058_v33, %v1052_v27  ;;  %v1087_v3 = vmul.f32 %v1076_v46, %v1060_v50  ;;  %v1160_v30 = vrot.slane %v9696_v13, %v10075_v18 }
 0x39b   :  { %v1085_v57 = vmul.f32 %v1068_v39, %v1062_v48  ;;  %v1088_v58 = vmul.f32 %v1080_v40, %v1059_v47 }
 0x39c   :  { %v1094_v37 = vpop.permute.xlu1 %1093 }
 0x39d   :  { %v1096_v38 = vpop.permute.xlu0 %1095 }
 0x39e   :  { %v1103_v41 = vsel %vm75_vm1, %v1094_v37, %v1096_v38 }
 0x39f   :  { %v1128_v43 = vmul.f32 %v1114_v35, %v1103_v41 }
 0x3a0   :  { %v1098_v49 = vpop.permute.xlu1 %1097 }
 0x3a1   :  { %v1102_v51 = vsel %vm75_vm1, %v1096_v38, %v1098_v49  ;;  %v1100_v52 = vpop.permute.xlu0 %1099  ;;  %v1430_v53 = vpack.c.bf16 %v1128_v43, %v1086_v42 }
 0x3a2   :  { %v1129_v54 = vmul.f32 %v1118_v32, %v1102_v51  ;;  %v1101_v55 = vsel %vm75_vm1, %v1098_v49, %v1100_v52  ;;  %v1104_v56 = vsel %vm75_vm1, %v1100_v52, %v1094_v37  ;;  %v9698_v32 = vld [vmem:[%s14037_s3 + $0x14] sm:$0xf] }
 0x3a3   :  { %v1127_v59 = vmul.f32 %v1110_v44, %v1104_v56  ;;  %v1130_v60 = vmul.f32 %v1122_v45, %v1101_v55  ;;  %1471 = vmatprep.subr.bf16.mxu0 %v1430_v53  ;;  %v1240_v49 = vrot.slane %v9698_v32, %v10071_v16  ;;  %v1248_v55 = vrot.slane %v9698_v32, %v10075_v18 }
 0x3a4   :  { %v1136_v0 = vpop.permute.xlu1 %1135  ;;  %v1431_v6 = vpack.c.bf16 %v1129_v54, %v1087_v3  ;;  %v1244_v54 = vrot.slane %v9698_v32, %v10062_v11  ;;  %v1252_v56 = vrot.slane %v9698_v32, %v10073_v17 }
 0x3a5   :  { %v1429_v1 = vpack.c.bf16 %v1127_v59, %v1085_v57  ;;  %v1138_v2 = vpop.permute.xlu0 %1137  ;;  %v1432_v61 = vpack.c.bf16 %v1130_v60, %v1088_v58 }
 0x3a6   :  { %v1145_v15 = vsel %vm119_vm2, %v1136_v0, %v1138_v2 }
 0x3a7   :  { %1472 = vmatpush1.bf16.msra.mxu0 %v1429_v1  ;;  %1512 = vmatprep.subr.bf16.mxu1 %v1432_v61  ;;  %v1170_v26 = vmul.f32 %v1156_v8, %v1145_v15 }
 0x3a8   :  { %1513 = vmatpush1.bf16.msra.mxu1 %v1431_v6  ;;  %v1140_v62 = vpop.permute.xlu1 %1139 }
 0x3a9   :  { %v1142_v5 = vpop.permute.xlu0 %1141  ;;  %v1144_v35 = vsel %vm119_vm2, %v1138_v2, %v1140_v62 }
 0x3aa   :  { %v1143_v31 = vsel %vm119_vm2, %v1140_v62, %v1142_v5  ;;  %v1146_v33 = vsel %vm119_vm2, %v1142_v5, %v1136_v0  ;;  %v1171_v46 = vmul.f32 %v1160_v30, %v1144_v35 }
 0x3ab   :  { %v1169_v42 = vmul.f32 %v1152_v20, %v1146_v33  ;;  %v1172_v43 = vmul.f32 %v1164_v21, %v1143_v31 }
 0x3ac   :  { %v1178_v14 = vpop.permute.xlu1 %1177 }
 0x3ad   :  { %v1180_v19 = vpop.permute.xlu0 %1179 }
 0x3ae   :  { %v1187_v22 = vsel %vm163_vm3, %v1178_v14, %v1180_v19 }
 0x3af   :  { %v1212_v27 = vmul.f32 %v1198_v7, %v1187_v22 }
 0x3b0   :  { %v1182_v34 = vpop.permute.xlu1 %1181 }
 0x3b1   :  { %v1186_v36 = vsel %vm163_vm3, %v1180_v19, %v1182_v34  ;;  %v1184_v37 = vpop.permute.xlu0 %1183  ;;  %v1434_v38 = vpack.c.bf16 %v1212_v27, %v1170_v26  ;;  %v9701_v27 = vld [vmem:[%s14037_s3 + $0x20] sm:$0xf] }
 0x3b2   :  { %v1213_v39 = vmul.f32 %v1202_v24, %v1186_v36  ;;  %v1185_v40 = vsel %vm163_vm3, %v1182_v34, %v1184_v37  ;;  %v1188_v41 = vsel %vm163_vm3, %v1184_v37, %v1178_v14  ;;  %v9699_v14 = vld [vmem:[%s14037_s3 + $0x18] sm:$0xf] }
 0x3b3   :  { %v1211_v44 = vmul.f32 %v1194_v28, %v1188_v41  ;;  %v1214_v45 = vmul.f32 %v1206_v29, %v1185_v40  ;;  %1473 = vmatprep.subr.bf16.mxu0 %v1434_v38  ;;  %v1286_v19 = vrot.slane %v9699_v14, %v10062_v11  ;;  %v1290_v22 = vrot.slane %v9699_v14, %v10075_v18 }
 0x3b4   :  { %v1224_v47 = vpop.permute.xlu1 %1223  ;;  %v1435_v52 = vpack.c.bf16 %v1213_v39, %v1171_v46  ;;  %v1294_v29 = vrot.slane %v9699_v14, %v10073_v17  ;;  %v1366_v40 = vrot.slane %v9701_v27, %v10071_v16 }
 0x3b5   :  { %v1433_v48 = vpack.c.bf16 %v1211_v44, %v1169_v42  ;;  %v1226_v50 = vpop.permute.xlu0 %1225  ;;  %v1436_v51 = vpack.c.bf16 %v1214_v45, %v1172_v43 }
 0x3b6   :  { %v1233_v53 = vsel %vm211_vm4, %v1224_v47, %v1226_v50 }
 0x3b7   :  { %1474 = vmatpush1.bf16.msra.mxu0 %v1433_v48  ;;  %1514 = vmatprep.subr.bf16.mxu1 %v1436_v51  ;;  %v1257_v58 = vmul.f32 %v1240_v49, %v1233_v53 }
 0x3b8   :  { %1515 = vmatpush1.bf16.msra.mxu1 %v1435_v52  ;;  %v1228_v57 = vpop.permute.xlu1 %1227 }
 0x3b9   :  { %v1232_v59 = vsel %vm211_vm4, %v1226_v50, %v1228_v57  ;;  %v1230_v60 = vpop.permute.xlu0 %1229  ;;  %v1437_v62 = vpack.c.bf16 %v1257_v58, %v10423_v9  ;;  %v1378_v58 = vrot.slane %v9701_v27, %v10073_v17 }
 0x3ba   :  { %v1258_v3 = vmul.f32 %v1244_v54, %v1232_v59  ;;  %v1231_v0 = vsel %vm211_vm4, %v1228_v57, %v1230_v60  ;;  %v1234_v1 = vsel %vm211_vm4, %v1230_v60, %v1224_v47  ;;  %v1374_v57 = vrot.slane %v9701_v27, %v10075_v18 }
 0x3bb   :  { %v1259_v2 = vmul.f32 %v1248_v55, %v1231_v0  ;;  %v1260_v61 = vmul.f32 %v1252_v56, %v1234_v1  ;;  %v1370_v55 = vrot.slane %v9701_v27, %v10062_v11 }
 0x3bc   :  { %v1266_v6 = vpop.permute.xlu1 %1265  ;;  %v1438_v13 = vpack.c.bf16 %v1258_v3, %v10425_v12  ;;  %v9700_v12 = vld [vmem:[%s14037_s3 + $0x1c] sm:$0xf] }
 0x3bd   :  { %v1439_v63 = vpack.c.bf16 %v1259_v2, %v10431_v23  ;;  %v1268_v5 = vpop.permute.xlu0 %1267  ;;  %v1440_v8 = vpack.c.bf16 %v1260_v61, %v10433_v25  ;;  %v1282_v23 = vrot.slane %v9699_v14, %v10071_v16  ;;  %v1324_v25 = vrot.slane %v9700_v12, %v10071_v16 }
 0x3be   :  { %1475 = vmatprep.subr.bf16.mxu0 %v1438_v13  ;;  %v1275_v21 = vsel %vm255_vm6, %v1266_v6, %v1268_v5  ;;  %v1328_v26 = vrot.slane %v9700_v12, %v10062_v11  ;;  %v1332_v30 = vrot.slane %v9700_v12, %v10075_v18  ;;  %v1336_v31 = vrot.slane %v9700_v12, %v10073_v17 }
 0x3bf   :  { %1476 = vmatpush1.bf16.msra.mxu0 %v1437_v62  ;;  %1516 = vmatprep.subr.bf16.mxu1 %v1440_v8  ;;  %v1299_v36 = vmul.f32 %v1282_v23, %v1275_v21 }
 0x3c0   :  { %1517 = vmatpush1.bf16.msra.mxu1 %v1439_v63  ;;  %v1270_v7 = vpop.permute.xlu1 %1269 }
 0x3c1   :  { %v1272_v15 = vpop.permute.xlu0 %1271  ;;  %v1274_v28 = vsel %vm255_vm6, %v1268_v5, %v1270_v7 }
 0x3c2   :  { %v1273_v33 = vsel %vm255_vm6, %v1270_v7, %v1272_v15  ;;  %v1276_v34 = vsel %vm255_vm6, %v1272_v15, %v1266_v6  ;;  %v1300_v41 = vmul.f32 %v1286_v19, %v1274_v28  ;;  %v9702_v15 = vld [vmem:[%s14038_s1 + $0x8] sm:$0xf] }
 0x3c3   :  { %v1301_v44 = vmul.f32 %v1290_v22, %v1273_v33  ;;  %v1302_v45 = vmul.f32 %v1294_v29, %v1276_v34  ;;  %v9716_v34 = vld [vmem:[%s14036_s2 + $0x18] sm:$0xff] }
 0x3c4   :  { %v1308_v9 = vpop.permute.xlu1 %1307 }
 0x3c5   :  { %v1310_v20 = vpop.permute.xlu0 %1309 }
 0x3c6   :  { %v1317_v24 = vsel %vm299_vm5, %v1308_v9, %v1310_v20 }
 0x3c7   :  { %v1341_v37 = vmul.f32 %v1324_v25, %v1317_v24 }
 0x3c8   :  { %v1312_v35 = vpop.permute.xlu1 %1311 }
 0x3c9   :  { %v1316_v38 = vsel %vm299_vm5, %v1310_v20, %v1312_v35  ;;  %v1314_v39 = vpop.permute.xlu0 %1313  ;;  %v1441_v50 = vpack.c.bf16 %v1341_v37, %v1299_v36  ;;  %v1569_v37 = vld [vmem:[%s14037_s3] sm:$0xf] }
 0x3ca   :  { %v1342_v32 = vmul.f32 %v1328_v26, %v1316_v38  ;;  %v1315_v42 = vsel %vm299_vm5, %v1312_v35, %v1314_v39  ;;  %v1318_v43 = vsel %vm299_vm5, %v1314_v39, %v1308_v9  ;;  %v9708_v39 = vld [vmem:[%s14037_s3 + $0x4] sm:$0xf] }
 0x3cb   :  { %v1343_v46 = vmul.f32 %v1332_v30, %v1315_v42  ;;  %v1344_v47 = vmul.f32 %v1336_v31, %v1318_v43 }
 0x3cc   :  { %v1350_v48 = vpop.permute.xlu1 %1349  ;;  %v1442_v49 = vpack.c.bf16 %v1342_v32, %v1300_v41  ;;  %v1578_v41 = vrot.slane %v1569_v37, %v10062_v11  ;;  %v1620_v32 = vrot.slane %v9708_v39, %v10062_v11 }
 0x3cd   :  { %v1443_v51 = vpack.c.bf16 %v1343_v46, %v1301_v44  ;;  %v1352_v52 = vpop.permute.xlu0 %1351  ;;  %v1444_v53 = vpack.c.bf16 %v1344_v47, %v1302_v45  ;;  %v1574_v45 = vrot.slane %v1569_v37, %v10071_v16  ;;  %v1586_v46 = vrot.slane %v1569_v37, %v10073_v17 }
 0x3ce   :  { %v1359_v54 = vsel %vm343_vm7, %v1350_v48, %v1352_v52  ;;  %1477 = vmatprep.subr.bf16.mxu0 %v1442_v49 }
 0x3cf   :  { %v1383_v56 = vmul.f32 %v1366_v40, %v1359_v54  ;;  %1478 = vmatpush1.bf16.msra.mxu0 %v1441_v50  ;;  %1518 = vmatprep.subr.bf16.mxu1 %v1444_v53  ;;  %v1582_v53 = vrot.slane %v1569_v37, %v10075_v18 }
 0x3d0   :  { %1519 = vmatpush1.bf16.msra.mxu1 %v1443_v51  ;;  %v1354_v59 = vpop.permute.xlu1 %1353  ;;  %v1616_v51 = vrot.slane %v9708_v39, %v10071_v16 }
 0x3d1   :  { %v1358_v60 = vsel %vm343_vm7, %v1352_v52, %v1354_v59  ;;  %v1356_v3 = vpop.permute.xlu0 %1355  ;;  %v1445_v0 = vpack.c.bf16 %v1383_v56, %v1383_v56  ;;  %v1628_v52 = vrot.slane %v9708_v39, %v10073_v17 }
 0x3d2   :  { %v1384_v1 = vmul.f32 %v1370_v55, %v1358_v60  ;;  %v1357_v2 = vsel %vm343_vm7, %v1354_v59, %v1356_v3  ;;  %v1360_v61 = vsel %vm343_vm7, %v1356_v3, %v1350_v48  ;;  %v1624_v48 = vrot.slane %v9708_v39, %v10075_v18 }
 0x3d3   :  { %v1385_v6 = vmul.f32 %v1374_v57, %v1357_v2  ;;  %v1386_v13 = vmul.f32 %v1378_v58, %v1360_v61  ;;  %v1460_v8 = vsel %vm446_vm8, %v1445_v0, 0 }
 0x3d4   :  { %v1446_v62 = vpack.c.bf16 %v1384_v1, %v1384_v1 }
 0x3d5   :  { %v1447_v63 = vpack.c.bf16 %v1385_v6, %v1385_v6  ;;  %v1448_v5 = vpack.c.bf16 %v1386_v13, %v1386_v13 }
 0x3d6   :  { %9704 = vmatprep.subr.msk.bf16.mxu0 %vm446_vm8, %v1446_v62 }
 0x3d7   :  { %1480 = vmatpush1.bf16.msra.mxu0 %v1460_v8  ;;  %9706 = vmatprep.subr.msk.bf16.mxu1 %vm446_vm8, %v1448_v5  ;;  %v1466_v7 = vsel %vm446_vm8, %v1447_v63, 0 }
 0x3d8   :  { %1521 = vmatpush1.bf16.msra.mxu1 %v1466_v7 }
 0x3da   :  { %9705 = vmatmul.mubr.msk.bf16.vlgmr.msra.gmra.mrb[8].mxu0 %vm442_vm9, %v9702_v15 }
 0x3db   :  { %9707 = vmatmul.mubr.msk.bf16.vlgmr.msra.gmra.mrb[8].mxu1 %vm442_vm9, %v9702_v15  ;;  %2009 = vmatprep.mubr.bf16.mxu0 %v9942_v4 }
 0x3dc   :  { %2050 = vmatprep.mubr.bf16.mxu1 %v9942_v4 }
 0x3e1   :  { %v1454_v14 = vpop.permute.xlu1 %1453 }
 0x4ad   :  { %v1505_v12 = vpop.f32.mrb[8].mxu0 }
 0x4ae   :  { %v1506_v9 = vadd.f32 %v1505_v12, %v1454_v14  ;;  %v1507_v23 = vpop.f32.mrb[9].mxu0  ;;  %v1546_v19 = vpop.f32.mrb[8].mxu1 }
 0x4af   :  { %v1508_v25 = vadd.f32 %v1507_v23, %v1454_v14  ;;  %v1509_v20 = vpop.f32.mrb[10].mxu0  ;;  %v1548_v21 = vpop.f32.mrb[9].mxu1  ;;  %v1547_v24 = vadd.f32 %v1546_v19, %v1454_v14 }
 0x4b0   :  { %v10633_v22 = vmax.f32 %v1506_v9, 0.0  ;;  %v1510_v26 = vpop.f32.mrb[11].mxu0  ;;  %v1550_v27 = vpop.f32.mrb[10].mxu1  ;;  %v1549_v29 = vadd.f32 %v1548_v21, %v1454_v14  ;;  %v9709_v14 = vld [vmem:[%s14037_s3 + $0x8] sm:$0xf] }
 0x4b1   :  { %v10635_v28 = vmax.f32 %v1508_v25, 0.0  ;;  %v1551_v30 = vpop.f32.mrb[11].mxu1  ;;  %v10641_v31 = vmax.f32 %v1547_v24, 0.0  ;;  %v9710_v9 = vld [vmem:[%s14037_s3 + $0xc] sm:$0xf]  ;;  %v1662_v19 = vrot.slane %v9709_v14, %v10062_v11  ;;  %v1658_v26 = vrot.slane %v9709_v14, %v10071_v16 }
 0x4b2   :  { %1557 = vrot.lane.b32.xlu0 %v10633_v22, %s9935_s19  ;;  %v10643_v33 = vmax.f32 %v1549_v29, 0.0  ;;  %v1704_v25 = vrot.slane %v9710_v9, %v10062_v11  ;;  %v1670_v27 = vrot.slane %v9709_v14, %v10073_v17  ;;  %v1708_v30 = vrot.slane %v9710_v9, %v10075_v18 }
 0x4b3   :  { %1559 = vrot.lane.b32.xlu1 %v10635_v28, %s9935_s19  ;;  %v1712_v37 = vrot.slane %v9710_v9, %v10073_v17 }
 0x4b6   :  { %1561 = vrot.lane.b32.xlu0 %v10641_v31, %s9935_s19 }
 0x4b7   :  { %1563 = vrot.lane.b32.xlu1 %v10643_v33, %s9935_s19 }
 0x4ba   :  { %1599 = vrot.lane.b32.xlu0 %v10633_v22, %s9936_s24 }
 0x4bb   :  { %1601 = vrot.lane.b32.xlu1 %v10635_v28, %s9936_s24 }
 0x4be   :  { %1603 = vrot.lane.b32.xlu0 %v10641_v31, %s9936_s24 }
 0x4bf   :  { %1605 = vrot.lane.b32.xlu1 %v10643_v33, %s9936_s24 }
 0x4c2   :  { %1641 = vrot.lane.b32.xlu0 %v10633_v22, %s9937_s0 }
 0x4c3   :  { %1643 = vrot.lane.b32.xlu1 %v10635_v28, %s9937_s0 }
 0x4c6   :  { %1645 = vrot.lane.b32.xlu0 %v10641_v31, %s9937_s0 }
 0x4c7   :  { %1647 = vrot.lane.b32.xlu1 %v10643_v33, %s9937_s0 }
 0x4ca   :  { %1683 = vrot.lane.b32.xlu0 %v10633_v22, %s9938_s25 }
 0x4cb   :  { %1685 = vrot.lane.b32.xlu1 %v10635_v28, %s9938_s25 }
 0x4ce   :  { %1687 = vrot.lane.b32.xlu0 %v10641_v31, %s9938_s25 }
 0x4cf   :  { %1689 = vrot.lane.b32.xlu1 %v10643_v33, %s9938_s25 }
 0x4d2   :  { %1729 = vrot.lane.b32.xlu0 %v10633_v22, %s9939_s26 }
 0x4d3   :  { %1731 = vrot.lane.b32.xlu1 %v10635_v28, %s9939_s26 }
 0x4d6   :  { %1733 = vrot.lane.b32.xlu0 %v10641_v31, %s9939_s26 }
 0x4d7   :  { %1735 = vrot.lane.b32.xlu1 %v10643_v33, %s9939_s26 }
 0x4da   :  { %1771 = vrot.lane.b32.xlu0 %v10633_v22, %s9940_s27 }
 0x4db   :  { %1773 = vrot.lane.b32.xlu1 %v10635_v28, %s9940_s27 }
 0x4de   :  { %1775 = vrot.lane.b32.xlu0 %v10641_v31, %s9940_s27 }
 0x4df   :  { %1777 = vrot.lane.b32.xlu1 %v10643_v33, %s9940_s27 }
 0x4e2   :  { %1813 = vrot.lane.b32.xlu0 %v10633_v22, %s9941_s28 }
 0x4e3   :  { %1815 = vrot.lane.b32.xlu1 %v10635_v28, %s9941_s28 }
 0x4e6   :  { %1817 = vrot.lane.b32.xlu0 %v10641_v31, %s9941_s28 }
 0x4e7   :  { %1819 = vrot.lane.b32.xlu1 %v10643_v33, %s9941_s28 }
 0x4ea   :  { %1855 = vrot.lane.b32.xlu0 %v10633_v22, %s9943_s29 }
 0x4eb   :  { %1857 = vrot.lane.b32.xlu1 %v10635_v28, %s9943_s29 }
 0x4ee   :  { %1859 = vrot.lane.b32.xlu0 %v10641_v31, %s9943_s29 }
 0x4ef   :  { %1861 = vrot.lane.b32.xlu1 %v10643_v33, %s9943_s29 }
 0x4f2   :  { %1959 = vperm.xlu0 %9933, %v9716_v34  }
 0x524   :  { %v1558_v35 = vpop.permute.xlu0 %1557 }
 0x525   :  { %v1560_v36 = vpop.permute.xlu1 %1559 }
 0x526   :  { %v1567_v42 = vsel %vm32_vm0, %v1558_v35, %v1560_v36 }
 0x527   :  { %v1592_v49 = vmul.f32 %v1578_v41, %v1567_v42 }
 0x528   :  { %v1562_v38 = vpop.permute.xlu0 %1561 }
 0x529   :  { %v1564_v40 = vpop.permute.xlu1 %1563  ;;  %v1566_v57 = vsel %vm32_vm0, %v1560_v36, %v1562_v38  ;;  %v1700_v36 = vrot.slane %v9710_v9, %v10071_v16 }
 0x52a   :  { %v1565_v54 = vsel %vm32_vm0, %v1562_v38, %v1564_v40  ;;  %v1568_v55 = vsel %vm32_vm0, %v1564_v40, %v1558_v35  ;;  %v1593_v62 = vmul.f32 %v1582_v53, %v1566_v57  ;;  %v1666_v38 = vrot.slane %v9709_v14, %v10075_v18 }
 0x52b   :  { %v1591_v2 = vmul.f32 %v1574_v45, %v1568_v55  ;;  %v1594_v61 = vmul.f32 %v1586_v46, %v1565_v54 }
 0x52c   :  { %v1600_v43 = vpop.permute.xlu0 %1599 }
 0x52d   :  { %v1602_v44 = vpop.permute.xlu1 %1601 }
 0x52e   :  { %v1609_v47 = vsel %vm75_vm1, %v1600_v43, %v1602_v44 }
 0x52f   :  { %v1634_v50 = vmul.f32 %v1620_v32, %v1609_v47 }
 0x530   :  { %v1604_v56 = vpop.permute.xlu0 %1603 }
 0x531   :  { %v1608_v58 = vsel %vm75_vm1, %v1602_v44, %v1604_v56  ;;  %v1606_v59 = vpop.permute.xlu1 %1605  ;;  %v1936_v60 = vpack.c.bf16 %v1634_v50, %v1592_v49 }
 0x532   :  { %v1635_v3 = vmul.f32 %v1624_v48, %v1608_v58  ;;  %v1607_v0 = vsel %vm75_vm1, %v1604_v56, %v1606_v59  ;;  %v1610_v1 = vsel %vm75_vm1, %v1606_v59, %v1600_v43  ;;  %v9711_v48 = vld [vmem:[%s14037_s3 + $0x14] sm:$0xf] }
 0x533   :  { %v1633_v6 = vmul.f32 %v1616_v51, %v1610_v1  ;;  %v1636_v13 = vmul.f32 %v1628_v52, %v1607_v0  ;;  %1977 = vmatprep.subr.bf16.mxu0 %v1936_v60  ;;  %v1746_v56 = vrot.slane %v9711_v48, %v10071_v16  ;;  %v1754_v0 = vrot.slane %v9711_v48, %v10075_v18 }
 0x534   :  { %v1642_v63 = vpop.permute.xlu0 %1641  ;;  %v1937_v15 = vpack.c.bf16 %v1635_v3, %v1593_v62  ;;  %v1750_v3 = vrot.slane %v9711_v48, %v10062_v11  ;;  %v1758_v1 = vrot.slane %v9711_v48, %v10073_v17 }
 0x535   :  { %v1935_v5 = vpack.c.bf16 %v1633_v6, %v1591_v2  ;;  %v1644_v8 = vpop.permute.xlu1 %1643  ;;  %v1938_v7 = vpack.c.bf16 %v1636_v13, %v1594_v61 }
 0x536   :  { %v1651_v20 = vsel %vm119_vm2, %v1642_v63, %v1644_v8 }
 0x537   :  { %1978 = vmatpush1.bf16.msra.mxu0 %v1935_v5  ;;  %2018 = vmatprep.subr.bf16.mxu1 %v1938_v7  ;;  %v1676_v34 = vmul.f32 %v1662_v19, %v1651_v20 }
 0x538   :  { %2019 = vmatpush1.bf16.msra.mxu1 %v1937_v15  ;;  %v1646_v12 = vpop.permute.xlu0 %1645 }
 0x539   :  { %v1648_v23 = vpop.permute.xlu1 %1647  ;;  %v1650_v32 = vsel %vm119_vm2, %v1644_v8, %v1646_v12 }
 0x53a   :  { %v1649_v39 = vsel %vm119_vm2, %v1646_v12, %v1648_v23  ;;  %v1652_v40 = vsel %vm119_vm2, %v1648_v23, %v1642_v63  ;;  %v1677_v53 = vmul.f32 %v1666_v38, %v1650_v32 }
 0x53b   :  { %v1675_v49 = vmul.f32 %v1658_v26, %v1652_v40  ;;  %v1678_v50 = vmul.f32 %v1670_v27, %v1649_v39 }
 0x53c   :  { %v1684_v21 = vpop.permute.xlu0 %1683 }
 0x53d   :  { %v1686_v24 = vpop.permute.xlu1 %1685 }
 0x53e   :  { %v1693_v29 = vsel %vm163_vm3, %v1684_v21, %v1686_v24 }
 0x53f   :  { %v1718_v35 = vmul.f32 %v1704_v25, %v1693_v29 }
 0x540   :  { %v1688_v41 = vpop.permute.xlu0 %1687 }
 0x541   :  { %v1692_v42 = vsel %vm163_vm3, %v1686_v24, %v1688_v41  ;;  %v1690_v43 = vpop.permute.xlu1 %1689  ;;  %v1940_v44 = vpack.c.bf16 %v1718_v35, %v1676_v34  ;;  %v9714_v35 = vld [vmem:[%s14037_s3 + $0x20] sm:$0xf] }
 0x542   :  { %v1719_v45 = vmul.f32 %v1708_v30, %v1692_v42  ;;  %v1691_v46 = vsel %vm163_vm3, %v1688_v41, %v1690_v43  ;;  %v1694_v47 = vsel %vm163_vm3, %v1690_v43, %v1684_v21  ;;  %v9712_v21 = vld [vmem:[%s14037_s3 + $0x18] sm:$0xf] }
 0x543   :  { %v1717_v51 = vmul.f32 %v1700_v36, %v1694_v47  ;;  %v1720_v52 = vmul.f32 %v1712_v37, %v1691_v46  ;;  %1979 = vmatprep.subr.bf16.mxu0 %v1940_v44  ;;  %v1792_v24 = vrot.slane %v9712_v21, %v10062_v11  ;;  %v1796_v29 = vrot.slane %v9712_v21, %v10075_v18 }
 0x544   :  { %v1730_v54 = vpop.permute.xlu0 %1729  ;;  %v1941_v59 = vpack.c.bf16 %v1719_v45, %v1677_v53  ;;  %v1800_v37 = vrot.slane %v9712_v21, %v10073_v17  ;;  %v1872_v46 = vrot.slane %v9714_v35, %v10071_v16 }
 0x545   :  { %v1939_v55 = vpack.c.bf16 %v1717_v51, %v1675_v49  ;;  %v1732_v57 = vpop.permute.xlu1 %1731  ;;  %v1942_v58 = vpack.c.bf16 %v1720_v52, %v1678_v50 }
 0x546   :  { %v1739_v60 = vsel %vm211_vm4, %v1730_v54, %v1732_v57 }
 0x547   :  { %1980 = vmatpush1.bf16.msra.mxu0 %v1939_v55  ;;  %2020 = vmatprep.subr.bf16.mxu1 %v1942_v58  ;;  %v1763_v61 = vmul.f32 %v1746_v56, %v1739_v60 }
 0x548   :  { %2021 = vmatpush1.bf16.msra.mxu1 %v1941_v59  ;;  %v1734_v2 = vpop.permute.xlu0 %1733 }
 0x549   :  { %v1738_v6 = vsel %vm211_vm4, %v1732_v57, %v1734_v2  ;;  %v1736_v13 = vpop.permute.xlu1 %1735  ;;  %v1943_v12 = vpack.c.bf16 %v1763_v61, %v10633_v22  ;;  %v1884_v61 = vrot.slane %v9714_v35, %v10073_v17 }
 0x54a   :  { %v1764_v62 = vmul.f32 %v1750_v3, %v1738_v6  ;;  %v1737_v63 = vsel %vm211_vm4, %v1734_v2, %v1736_v13  ;;  %v1740_v5 = vsel %vm211_vm4, %v1736_v13, %v1730_v54  ;;  %v1880_v2 = vrot.slane %v9714_v35, %v10075_v18 }
 0x54b   :  { %v1765_v8 = vmul.f32 %v1754_v0, %v1737_v63  ;;  %v1766_v7 = vmul.f32 %v1758_v1, %v1740_v5  ;;  %v1876_v0 = vrot.slane %v9714_v35, %v10062_v11 }
 0x54c   :  { %v1772_v15 = vpop.permute.xlu0 %1771  ;;  %v1944_v14 = vpack.c.bf16 %v1764_v62, %v10635_v28  ;;  %v9713_v28 = vld [vmem:[%s14037_s3 + $0x1c] sm:$0xf] }
 0x54d   :  { %v1945_v9 = vpack.c.bf16 %v1765_v8, %v10641_v31  ;;  %v1774_v23 = vpop.permute.xlu1 %1773  ;;  %v1946_v19 = vpack.c.bf16 %v1766_v7, %v10643_v33  ;;  %v1788_v31 = vrot.slane %v9712_v21, %v10071_v16  ;;  %v1830_v33 = vrot.slane %v9713_v28, %v10071_v16 }
 0x54e   :  { %1981 = vmatprep.subr.bf16.mxu0 %v1944_v14  ;;  %v1781_v27 = vsel %vm255_vm6, %v1772_v15, %v1774_v23  ;;  %v1834_v34 = vrot.slane %v9713_v28, %v10062_v11  ;;  %v1838_v38 = vrot.slane %v9713_v28, %v10075_v18  ;;  %v1842_v39 = vrot.slane %v9713_v28, %v10073_v17 }
 0x54f   :  { %1982 = vmatpush1.bf16.msra.mxu0 %v1943_v12  ;;  %2022 = vmatprep.subr.bf16.mxu1 %v1946_v19  ;;  %v1805_v42 = vmul.f32 %v1788_v31, %v1781_v27 }
 0x550   :  { %2023 = vmatpush1.bf16.msra.mxu1 %v1945_v9  ;;  %v1776_v25 = vpop.permute.xlu0 %1775 }
 0x551   :  { %v1778_v20 = vpop.permute.xlu1 %1777  ;;  %v1780_v36 = vsel %vm255_vm6, %v1774_v23, %v1776_v25 }
 0x552   :  { %v1779_v40 = vsel %vm255_vm6, %v1776_v25, %v1778_v20  ;;  %v1782_v41 = vsel %vm255_vm6, %v1778_v20, %v1772_v15  ;;  %v1806_v47 = vmul.f32 %v1792_v24, %v1780_v36  ;;  %v9715_v20 = vld [vmem:[%s14038_s1 + $0xc] sm:$0xf] }
 0x553   :  { %v1807_v51 = vmul.f32 %v1796_v29, %v1779_v40  ;;  %v1808_v52 = vmul.f32 %v1800_v37, %v1782_v41  ;;  %v9729_v41 = vld [vmem:[%s14036_s2 + $0x20] sm:$0xff] }
 0x554   :  { %v1814_v22 = vpop.permute.xlu0 %1813 }
 0x555   :  { %v1816_v26 = vpop.permute.xlu1 %1815 }
 0x556   :  { %v1823_v30 = vsel %vm299_vm5, %v1814_v22, %v1816_v26 }
 0x557   :  { %v1847_v43 = vmul.f32 %v1830_v33, %v1823_v30 }
 0x558   :  { %v1818_v32 = vpop.permute.xlu0 %1817 }
 0x559   :  { %v1822_v44 = vsel %vm299_vm5, %v1816_v26, %v1818_v32  ;;  %v1820_v45 = vpop.permute.xlu1 %1819  ;;  %v1947_v57 = vpack.c.bf16 %v1847_v43, %v1805_v42  ;;  %v2075_v43 = vld [vmem:[%s14037_s3] sm:$0xf] }
 0x55a   :  { %v1848_v48 = vmul.f32 %v1834_v34, %v1822_v44  ;;  %v1821_v49 = vsel %vm299_vm5, %v1818_v32, %v1820_v45  ;;  %v1824_v50 = vsel %vm299_vm5, %v1820_v45, %v1814_v22  ;;  %v9721_v45 = vld [vmem:[%s14037_s3 + $0x4] sm:$0xf] }
 0x55b   :  { %v1849_v53 = vmul.f32 %v1838_v38, %v1821_v49  ;;  %v1850_v54 = vmul.f32 %v1842_v39, %v1824_v50 }
 0x55c   :  { %v1856_v55 = vpop.permute.xlu0 %1855  ;;  %v1948_v56 = vpack.c.bf16 %v1848_v48, %v1806_v47  ;;  %v2084_v47 = vrot.slane %v2075_v43, %v10062_v11  ;;  %v2126_v48 = vrot.slane %v9721_v45, %v10062_v11 }
 0x55d   :  { %v1949_v58 = vpack.c.bf16 %v1849_v53, %v1807_v51  ;;  %v1858_v59 = vpop.permute.xlu1 %1857  ;;  %v1950_v60 = vpack.c.bf16 %v1850_v54, %v1808_v52  ;;  %v2080_v52 = vrot.slane %v2075_v43, %v10071_v16  ;;  %v2092_v53 = vrot.slane %v2075_v43, %v10073_v17 }
 0x55e   :  { %v1865_v3 = vsel %vm343_vm7, %v1856_v55, %v1858_v59  ;;  %1983 = vmatprep.subr.bf16.mxu0 %v1948_v56 }
 0x55f   :  { %v1889_v1 = vmul.f32 %v1872_v46, %v1865_v3  ;;  %1984 = vmatpush1.bf16.msra.mxu0 %v1947_v57  ;;  %2024 = vmatprep.subr.bf16.mxu1 %v1950_v60  ;;  %v2088_v60 = vrot.slane %v2075_v43, %v10075_v18 }
 0x560   :  { %2025 = vmatpush1.bf16.msra.mxu1 %v1949_v58  ;;  %v1860_v6 = vpop.permute.xlu0 %1859  ;;  %v2122_v58 = vrot.slane %v9721_v45, %v10071_v16 }
 0x561   :  { %v1864_v13 = vsel %vm343_vm7, %v1858_v59, %v1860_v6  ;;  %v1862_v62 = vpop.permute.xlu1 %1861  ;;  %v1951_v63 = vpack.c.bf16 %v1889_v1, %v1889_v1  ;;  %v2134_v59 = vrot.slane %v9721_v45, %v10073_v17 }
 0x562   :  { %v1890_v5 = vmul.f32 %v1876_v0, %v1864_v13  ;;  %v1863_v8 = vsel %vm343_vm7, %v1860_v6, %v1862_v62  ;;  %v1866_v7 = vsel %vm343_vm7, %v1862_v62, %v1856_v55  ;;  %v2130_v55 = vrot.slane %v9721_v45, %v10075_v18 }
 0x563   :  { %v1891_v15 = vmul.f32 %v1880_v2, %v1863_v8  ;;  %v1892_v14 = vmul.f32 %v1884_v61, %v1866_v7  ;;  %v1966_v19 = vsel %vm446_vm8, %v1951_v63, 0 }
 0x564   :  { %v1952_v12 = vpack.c.bf16 %v1890_v5, %v1890_v5 }
 0x565   :  { %v1953_v9 = vpack.c.bf16 %v1891_v15, %v1891_v15  ;;  %v1954_v23 = vpack.c.bf16 %v1892_v14, %v1892_v14 }
 0x566   :  { %9717 = vmatprep.subr.msk.bf16.mxu0 %vm446_vm8, %v1952_v12 }
 0x567   :  { %1986 = vmatpush1.bf16.msra.mxu0 %v1966_v19  ;;  %9719 = vmatprep.subr.msk.bf16.mxu1 %vm446_vm8, %v1954_v23  ;;  %v1972_v25 = vsel %vm446_vm8, %v1953_v9, 0 }
 0x568   :  { %2027 = vmatpush1.bf16.msra.mxu1 %v1972_v25 }
 0x56a   :  { %9718 = vmatmul.mubr.msk.bf16.vlgmr.msra.gmra.mrb[12].mxu0 %vm442_vm9, %v9715_v20 }
 0x56b   :  { %9720 = vmatmul.mubr.msk.bf16.vlgmr.msra.gmra.mrb[12].mxu1 %vm442_vm9, %v9715_v20  ;;  %2515 = vmatprep.mubr.bf16.mxu0 %v9942_v4 }
 0x56c   :  { %2556 = vmatprep.mubr.bf16.mxu1 %v9942_v4 }
 0x571   :  { %v1960_v21 = vpop.permute.xlu0 %1959 }
 0x63d   :  { %v2011_v28 = vpop.f32.mrb[12].mxu0 }
 0x63e   :  { %v2012_v22 = vadd.f32 %v2011_v28, %v1960_v21  ;;  %v2013_v31 = vpop.f32.mrb[13].mxu0  ;;  %v2052_v24 = vpop.f32.mrb[12].mxu1 }
 0x63f   :  { %v2014_v33 = vadd.f32 %v2013_v31, %v1960_v21  ;;  %v2015_v26 = vpop.f32.mrb[14].mxu0  ;;  %v2054_v27 = vpop.f32.mrb[13].mxu1  ;;  %v2053_v30 = vadd.f32 %v2052_v24, %v1960_v21 }
 0x640   :  { %v10843_v29 = vmax.f32 %v2012_v22, 0.0  ;;  %v2016_v34 = vpop.f32.mrb[15].mxu0  ;;  %v2056_v35 = vpop.f32.mrb[14].mxu1  ;;  %v2055_v37 = vadd.f32 %v2054_v27, %v1960_v21  ;;  %v9722_v21 = vld [vmem:[%s14037_s3 + $0x8] sm:$0xf] }
 0x641   :  { %v10845_v36 = vmax.f32 %v2014_v33, 0.0  ;;  %v2057_v38 = vpop.f32.mrb[15].mxu1  ;;  %v10851_v39 = vmax.f32 %v2053_v30, 0.0  ;;  %v9723_v22 = vld [vmem:[%s14037_s3 + $0xc] sm:$0xf]  ;;  %v2168_v24 = vrot.slane %v9722_v21, %v10062_v11  ;;  %v2164_v34 = vrot.slane %v9722_v21, %v10071_v16 }
 0x642   :  { %2063 = vrot.lane.b32.xlu1 %v10843_v29, %s9935_s19  ;;  %v10853_v40 = vmax.f32 %v2055_v37, 0.0  ;;  %v2210_v33 = vrot.slane %v9723_v22, %v10062_v11  ;;  %v2176_v35 = vrot.slane %v9722_v21, %v10073_v17  ;;  %v2214_v38 = vrot.slane %v9723_v22, %v10075_v18 }
 0x643   :  { %2065 = vrot.lane.b32.xlu0 %v10845_v36, %s9935_s19  ;;  %v2218_v43 = vrot.slane %v9723_v22, %v10073_v17 }
 0x646   :  { %2067 = vrot.lane.b32.xlu1 %v10851_v39, %s9935_s19 }
 0x647   :  { %2069 = vrot.lane.b32.xlu0 %v10853_v40, %s9935_s19 }
 0x64a   :  { %2105 = vrot.lane.b32.xlu1 %v10843_v29, %s9936_s24 }
 0x64b   :  { %2107 = vrot.lane.b32.xlu0 %v10845_v36, %s9936_s24 }
 0x64e   :  { %2109 = vrot.lane.b32.xlu1 %v10851_v39, %s9936_s24 }
 0x64f   :  { %2111 = vrot.lane.b32.xlu0 %v10853_v40, %s9936_s24 }
 0x652   :  { %2147 = vrot.lane.b32.xlu1 %v10843_v29, %s9937_s0 }
 0x653   :  { %2149 = vrot.lane.b32.xlu0 %v10845_v36, %s9937_s0 }
 0x656   :  { %2151 = vrot.lane.b32.xlu1 %v10851_v39, %s9937_s0 }
 0x657   :  { %2153 = vrot.lane.b32.xlu0 %v10853_v40, %s9937_s0 }
 0x65a   :  { %2189 = vrot.lane.b32.xlu1 %v10843_v29, %s9938_s25 }
 0x65b   :  { %2191 = vrot.lane.b32.xlu0 %v10845_v36, %s9938_s25 }
 0x65e   :  { %2193 = vrot.lane.b32.xlu1 %v10851_v39, %s9938_s25 }
 0x65f   :  { %2195 = vrot.lane.b32.xlu0 %v10853_v40, %s9938_s25 }
 0x662   :  { %2235 = vrot.lane.b32.xlu1 %v10843_v29, %s9939_s26 }
 0x663   :  { %2237 = vrot.lane.b32.xlu0 %v10845_v36, %s9939_s26 }
 0x666   :  { %2239 = vrot.lane.b32.xlu1 %v10851_v39, %s9939_s26 }
 0x667   :  { %2241 = vrot.lane.b32.xlu0 %v10853_v40, %s9939_s26 }
 0x66a   :  { %2277 = vrot.lane.b32.xlu1 %v10843_v29, %s9940_s27 }
 0x66b   :  { %2279 = vrot.lane.b32.xlu0 %v10845_v36, %s9940_s27 }
 0x66e   :  { %2281 = vrot.lane.b32.xlu1 %v10851_v39, %s9940_s27 }
 0x66f   :  { %2283 = vrot.lane.b32.xlu0 %v10853_v40, %s9940_s27 }
 0x672   :  { %2319 = vrot.lane.b32.xlu1 %v10843_v29, %s9941_s28 }
 0x673   :  { %2321 = vrot.lane.b32.xlu0 %v10845_v36, %s9941_s28 }
 0x676   :  { %2323 = vrot.lane.b32.xlu1 %v10851_v39, %s9941_s28 }
 0x677   :  { %2325 = vrot.lane.b32.xlu0 %v10853_v40, %s9941_s28 }
 0x67a   :  { %2361 = vrot.lane.b32.xlu1 %v10843_v29, %s9943_s29 }
 0x67b   :  { %2363 = vrot.lane.b32.xlu0 %v10845_v36, %s9943_s29 }
 0x67e   :  { %2365 = vrot.lane.b32.xlu1 %v10851_v39, %s9943_s29 }
 0x67f   :  { %2367 = vrot.lane.b32.xlu0 %v10853_v40, %s9943_s29 }
 0x682   :  { %2465 = vperm.xlu1 %9934, %v9729_v41  }
 0x6b4   :  { %v2064_v32 = vpop.permute.xlu1 %2063 }
 0x6b5   :  { %v2066_v42 = vpop.permute.xlu0 %2065 }
 0x6b6   :  { %v2073_v49 = vsel %vm32_vm0, %v2064_v32, %v2066_v42 }
 0x6b7   :  { %v2098_v56 = vmul.f32 %v2084_v47, %v2073_v49 }
 0x6b8   :  { %v2068_v44 = vpop.permute.xlu1 %2067 }
 0x6b9   :  { %v2070_v46 = vpop.permute.xlu0 %2069  ;;  %v2072_v2 = vsel %vm32_vm0, %v2066_v42, %v2068_v44  ;;  %v2206_v42 = vrot.slane %v9723_v22, %v10071_v16 }
 0x6ba   :  { %v2071_v3 = vsel %vm32_vm0, %v2068_v44, %v2070_v46  ;;  %v2074_v0 = vsel %vm32_vm0, %v2070_v46, %v2064_v32  ;;  %v2099_v12 = vmul.f32 %v2088_v60, %v2072_v2  ;;  %v2172_v44 = vrot.slane %v9722_v21, %v10075_v18 }
 0x6bb   :  { %v2097_v8 = vmul.f32 %v2080_v52, %v2074_v0  ;;  %v2100_v7 = vmul.f32 %v2092_v53, %v2071_v3 }
 0x6bc   :  { %v2106_v50 = vpop.permute.xlu1 %2105 }
 0x6bd   :  { %v2108_v51 = vpop.permute.xlu0 %2107 }
 0x6be   :  { %v2115_v54 = vsel %vm75_vm1, %v2106_v50, %v2108_v51 }
 0x6bf   :  { %v2140_v57 = vmul.f32 %v2126_v48, %v2115_v54 }
 0x6c0   :  { %v2110_v1 = vpop.permute.xlu1 %2109 }
 0x6c1   :  { %v2114_v61 = vsel %vm75_vm1, %v2108_v51, %v2110_v1  ;;  %v2112_v6 = vpop.permute.xlu0 %2111  ;;  %v2442_v13 = vpack.c.bf16 %v2140_v57, %v2098_v56 }
 0x6c2   :  { %v2141_v62 = vmul.f32 %v2130_v55, %v2114_v61  ;;  %v2113_v63 = vsel %vm75_vm1, %v2110_v1, %v2112_v6  ;;  %v2116_v5 = vsel %vm75_vm1, %v2112_v6, %v2106_v50  ;;  %v9724_v55 = vld [vmem:[%s14037_s3 + $0x14] sm:$0xf] }
 0x6c3   :  { %v2139_v15 = vmul.f32 %v2122_v58, %v2116_v5  ;;  %v2142_v14 = vmul.f32 %v2134_v59, %v2113_v63  ;;  %2483 = vmatprep.subr.bf16.mxu0 %v2442_v13  ;;  %v2252_v1 = vrot.slane %v9724_v55, %v10071_v16  ;;  %v2260_v63 = vrot.slane %v9724_v55, %v10075_v18 }
 0x6c4   :  { %v2148_v9 = vpop.permute.xlu1 %2147  ;;  %v2443_v20 = vpack.c.bf16 %v2141_v62, %v2099_v12  ;;  %v2256_v62 = vrot.slane %v9724_v55, %v10062_v11  ;;  %v2264_v5 = vrot.slane %v9724_v55, %v10073_v17 }
 0x6c5   :  { %v2441_v23 = vpack.c.bf16 %v2139_v15, %v2097_v8  ;;  %v2150_v19 = vpop.permute.xlu0 %2149  ;;  %v2444_v25 = vpack.c.bf16 %v2142_v14, %v2100_v7 }
 0x6c6   :  { %v2157_v26 = vsel %vm119_vm2, %v2148_v9, %v2150_v19 }
 0x6c7   :  { %2484 = vmatpush1.bf16.msra.mxu0 %v2441_v23  ;;  %2524 = vmatprep.subr.bf16.mxu1 %v2444_v25  ;;  %v2182_v41 = vmul.f32 %v2168_v24, %v2157_v26 }
 0x6c8   :  { %2525 = vmatpush1.bf16.msra.mxu1 %v2443_v20  ;;  %v2152_v28 = vpop.permute.xlu1 %2151 }
 0x6c9   :  { %v2154_v31 = vpop.permute.xlu0 %2153  ;;  %v2156_v48 = vsel %vm119_vm2, %v2150_v19, %v2152_v28 }
 0x6ca   :  { %v2155_v45 = vsel %vm119_vm2, %v2152_v28, %v2154_v31  ;;  %v2158_v46 = vsel %vm119_vm2, %v2154_v31, %v2148_v9  ;;  %v2183_v60 = vmul.f32 %v2172_v44, %v2156_v48 }
 0x6cb   :  { %v2181_v56 = vmul.f32 %v2164_v34, %v2158_v46  ;;  %v2184_v57 = vmul.f32 %v2176_v35, %v2155_v45 }
 0x6cc   :  { %v2190_v27 = vpop.permute.xlu1 %2189 }
 0x6cd   :  { %v2192_v30 = vpop.permute.xlu0 %2191 }
 0x6ce   :  { %v2199_v37 = vsel %vm163_vm3, %v2190_v27, %v2192_v30 }
 0x6cf   :  { %v2224_v32 = vmul.f32 %v2210_v33, %v2199_v37 }
 0x6d0   :  { %v2194_v47 = vpop.permute.xlu1 %2193 }
 0x6d1   :  { %v2198_v49 = vsel %vm163_vm3, %v2192_v30, %v2194_v47  ;;  %v2196_v50 = vpop.permute.xlu0 %2195  ;;  %v2446_v51 = vpack.c.bf16 %v2224_v32, %v2182_v41  ;;  %v9727_v32 = vld [vmem:[%s14037_s3 + $0x20] sm:$0xf] }
 0x6d2   :  { %v2225_v52 = vmul.f32 %v2214_v38, %v2198_v49  ;;  %v2197_v53 = vsel %vm163_vm3, %v2194_v47, %v2196_v50  ;;  %v2200_v54 = vsel %vm163_vm3, %v2196_v50, %v2190_v27  ;;  %v9725_v27 = vld [vmem:[%s14037_s3 + $0x18] sm:$0xf] }
 0x6d3   :  { %v2223_v58 = vmul.f32 %v2206_v42, %v2200_v54  ;;  %v2226_v59 = vmul.f32 %v2218_v43, %v2197_v53  ;;  %2485 = vmatprep.subr.bf16.mxu0 %v2446_v51  ;;  %v2298_v30 = vrot.slane %v9725_v27, %v10062_v11  ;;  %v2302_v37 = vrot.slane %v9725_v27, %v10075_v18 }
 0x6d4   :  { %v2236_v3 = vpop.permute.xlu1 %2235  ;;  %v2447_v6 = vpack.c.bf16 %v2225_v52, %v2183_v60  ;;  %v2306_v43 = vrot.slane %v9725_v27, %v10073_v17  ;;  %v2378_v53 = vrot.slane %v9727_v32, %v10071_v16 }
 0x6d5   :  { %v2445_v0 = vpack.c.bf16 %v2223_v58, %v2181_v56  ;;  %v2238_v2 = vpop.permute.xlu0 %2237  ;;  %v2448_v61 = vpack.c.bf16 %v2226_v59, %v2184_v57 }
 0x6d6   :  { %v2245_v13 = vsel %vm211_vm4, %v2236_v3, %v2238_v2 }
 0x6d7   :  { %2486 = vmatpush1.bf16.msra.mxu0 %v2445_v0  ;;  %2526 = vmatprep.subr.bf16.mxu1 %v2448_v61  ;;  %v2269_v7 = vmul.f32 %v2252_v1, %v2245_v13 }
 0x6d8   :  { %2527 = vmatpush1.bf16.msra.mxu1 %v2447_v6  ;;  %v2240_v8 = vpop.permute.xlu1 %2239 }
 0x6d9   :  { %v2244_v15 = vsel %vm211_vm4, %v2238_v2, %v2240_v8  ;;  %v2242_v14 = vpop.permute.xlu0 %2241  ;;  %v2449_v28 = vpack.c.bf16 %v2269_v7, %v10843_v29  ;;  %v2390_v7 = vrot.slane %v9727_v32, %v10073_v17 }
 0x6da   :  { %v2270_v12 = vmul.f32 %v2256_v62, %v2244_v15  ;;  %v2243_v9 = vsel %vm211_vm4, %v2240_v8, %v2242_v14  ;;  %v2246_v23 = vsel %vm211_vm4, %v2242_v14, %v2236_v3  ;;  %v2386_v8 = vrot.slane %v9727_v32, %v10075_v18 }
 0x6db   :  { %v2271_v19 = vmul.f32 %v2260_v63, %v2243_v9  ;;  %v2272_v25 = vmul.f32 %v2264_v5, %v2246_v23  ;;  %v2382_v63 = vrot.slane %v9727_v32, %v10062_v11 }
 0x6dc   :  { %v2278_v20 = vpop.permute.xlu1 %2277  ;;  %v2450_v21 = vpack.c.bf16 %v2270_v12, %v10845_v36  ;;  %v9726_v36 = vld [vmem:[%s14037_s3 + $0x1c] sm:$0xf] }
 0x6dd   :  { %v2451_v22 = vpack.c.bf16 %v2271_v19, %v10851_v39  ;;  %v2280_v31 = vpop.permute.xlu0 %2279  ;;  %v2452_v24 = vpack.c.bf16 %v2272_v25, %v10853_v40  ;;  %v2294_v39 = vrot.slane %v9725_v27, %v10071_v16  ;;  %v2336_v40 = vrot.slane %v9726_v36, %v10071_v16 }
 0x6de   :  { %2487 = vmatprep.subr.bf16.mxu0 %v2450_v21  ;;  %v2287_v35 = vsel %vm255_vm6, %v2278_v20, %v2280_v31  ;;  %v2340_v41 = vrot.slane %v9726_v36, %v10062_v11  ;;  %v2344_v44 = vrot.slane %v9726_v36, %v10075_v18  ;;  %v2348_v45 = vrot.slane %v9726_v36, %v10073_v17 }
 0x6df   :  { %2488 = vmatpush1.bf16.msra.mxu0 %v2449_v28  ;;  %2528 = vmatprep.subr.bf16.mxu1 %v2452_v24  ;;  %v2311_v49 = vmul.f32 %v2294_v39, %v2287_v35 }
 0x6e0   :  { %2529 = vmatpush1.bf16.msra.mxu1 %v2451_v22  ;;  %v2282_v33 = vpop.permute.xlu1 %2281 }
 0x6e1   :  { %v2284_v26 = vpop.permute.xlu0 %2283  ;;  %v2286_v42 = vsel %vm255_vm6, %v2280_v31, %v2282_v33 }
 0x6e2   :  { %v2285_v46 = vsel %vm255_vm6, %v2282_v33, %v2284_v26  ;;  %v2288_v47 = vsel %vm255_vm6, %v2284_v26, %v2278_v20  ;;  %v2312_v54 = vmul.f32 %v2298_v30, %v2286_v42  ;;  %v9728_v26 = vld [vmem:[%s14038_s1 + $0x10] sm:$0xf] }
 0x6e3   :  { %v2313_v58 = vmul.f32 %v2302_v37, %v2285_v46  ;;  %v2314_v59 = vmul.f32 %v2306_v43, %v2288_v47  ;;  %v9742_v47 = vld [vmem:[%s14036_s2 + $0x28] sm:$0xff] }
 0x6e4   :  { %v2320_v29 = vpop.permute.xlu1 %2319 }
 0x6e5   :  { %v2322_v34 = vpop.permute.xlu0 %2321 }
 0x6e6   :  { %v2329_v38 = vsel %vm299_vm5, %v2320_v29, %v2322_v34 }
 0x6e7   :  { %v2353_v50 = vmul.f32 %v2336_v40, %v2329_v38 }
 0x6e8   :  { %v2324_v48 = vpop.permute.xlu1 %2323 }
 0x6e9   :  { %v2328_v51 = vsel %vm299_vm5, %v2322_v34, %v2324_v48  ;;  %v2326_v52 = vpop.permute.xlu0 %2325  ;;  %v2453_v2 = vpack.c.bf16 %v2353_v50, %v2311_v49  ;;  %v2581_v50 = vld [vmem:[%s14037_s3] sm:$0xf] }
 0x6ea   :  { %v2354_v55 = vmul.f32 %v2340_v41, %v2328_v51  ;;  %v2327_v56 = vsel %vm299_vm5, %v2324_v48, %v2326_v52  ;;  %v2330_v57 = vsel %vm299_vm5, %v2326_v52, %v2320_v29  ;;  %v9734_v52 = vld [vmem:[%s14037_s3 + $0x4] sm:$0xf] }
 0x6eb   :  { %v2355_v60 = vmul.f32 %v2344_v44, %v2327_v56  ;;  %v2356_v3 = vmul.f32 %v2348_v45, %v2330_v57 }
 0x6ec   :  { %v2362_v0 = vpop.permute.xlu1 %2361  ;;  %v2454_v1 = vpack.c.bf16 %v2354_v55, %v2312_v54  ;;  %v2590_v54 = vrot.slane %v2581_v50, %v10062_v11  ;;  %v2632_v55 = vrot.slane %v9734_v52, %v10062_v11 }
 0x6ed   :  { %v2455_v61 = vpack.c.bf16 %v2355_v60, %v2313_v58  ;;  %v2364_v6 = vpop.permute.xlu0 %2363  ;;  %v2456_v13 = vpack.c.bf16 %v2356_v3, %v2314_v59  ;;  %v2586_v59 = vrot.slane %v2581_v50, %v10071_v16  ;;  %v2598_v60 = vrot.slane %v2581_v50, %v10073_v17 }
 0x6ee   :  { %v2371_v62 = vsel %vm343_vm7, %v2362_v0, %v2364_v6  ;;  %2489 = vmatprep.subr.bf16.mxu0 %v2454_v1 }
 0x6ef   :  { %v2395_v5 = vmul.f32 %v2378_v53, %v2371_v62  ;;  %2490 = vmatpush1.bf16.msra.mxu0 %v2453_v2  ;;  %2530 = vmatprep.subr.bf16.mxu1 %v2456_v13  ;;  %v2594_v13 = vrot.slane %v2581_v50, %v10075_v18 }
 0x6f0   :  { %2531 = vmatpush1.bf16.msra.mxu1 %v2455_v61  ;;  %v2366_v15 = vpop.permute.xlu1 %2365  ;;  %v2628_v61 = vrot.slane %v9734_v52, %v10071_v16 }
 0x6f1   :  { %v2370_v14 = vsel %vm343_vm7, %v2364_v6, %v2366_v15  ;;  %v2368_v12 = vpop.permute.xlu0 %2367  ;;  %v2457_v9 = vpack.c.bf16 %v2395_v5, %v2395_v5  ;;  %v2640_v6 = vrot.slane %v9734_v52, %v10073_v17 }
 0x6f2   :  { %v2396_v23 = vmul.f32 %v2382_v63, %v2370_v14  ;;  %v2369_v19 = vsel %vm343_vm7, %v2366_v15, %v2368_v12  ;;  %v2372_v25 = vsel %vm343_vm7, %v2368_v12, %v2362_v0  ;;  %v2636_v0 = vrot.slane %v9734_v52, %v10075_v18 }
 0x6f3   :  { %v2397_v20 = vmul.f32 %v2386_v8, %v2369_v19  ;;  %v2398_v21 = vmul.f32 %v2390_v7, %v2372_v25  ;;  %v2472_v24 = vsel %vm446_vm8, %v2457_v9, 0 }
 0x6f4   :  { %v2458_v28 = vpack.c.bf16 %v2396_v23, %v2396_v23 }
 0x6f5   :  { %v2459_v22 = vpack.c.bf16 %v2397_v20, %v2397_v20  ;;  %v2460_v31 = vpack.c.bf16 %v2398_v21, %v2398_v21 }
 0x6f6   :  { %9730 = vmatprep.subr.msk.bf16.mxu0 %vm446_vm8, %v2458_v28 }
 0x6f7   :  { %2492 = vmatpush1.bf16.msra.mxu0 %v2472_v24  ;;  %9732 = vmatprep.subr.msk.bf16.mxu1 %vm446_vm8, %v2460_v31  ;;  %v2478_v33 = vsel %vm446_vm8, %v2459_v22, 0 }
 0x6f8   :  { %2533 = vmatpush1.bf16.msra.mxu1 %v2478_v33 }
 0x6fa   :  { %9731 = vmatmul.mubr.msk.bf16.vlgmr.msra.gmra.mrb[16].mxu0 %vm442_vm9, %v9728_v26 }
 0x6fb   :  { %9733 = vmatmul.mubr.msk.bf16.vlgmr.msra.gmra.mrb[16].mxu1 %vm442_vm9, %v9728_v26  ;;  %3021 = vmatprep.mubr.bf16.mxu0 %v9942_v4 }
 0x6fc   :  { %3062 = vmatprep.mubr.bf16.mxu1 %v9942_v4 }
 0x701   :  { %v2466_v27 = vpop.permute.xlu1 %2465 }
 0x7cd   :  { %v2517_v36 = vpop.f32.mrb[16].mxu0 }
 0x7ce   :  { %v2518_v29 = vadd.f32 %v2517_v36, %v2466_v27  ;;  %v2519_v39 = vpop.f32.mrb[17].mxu0  ;;  %v2558_v30 = vpop.f32.mrb[16].mxu1 }
 0x7cf   :  { %v2520_v40 = vadd.f32 %v2519_v39, %v2466_v27  ;;  %v2521_v34 = vpop.f32.mrb[18].mxu0  ;;  %v2560_v35 = vpop.f32.mrb[17].mxu1  ;;  %v2559_v38 = vadd.f32 %v2558_v30, %v2466_v27 }
 0x7d0   :  { %v11053_v37 = vmax.f32 %v2518_v29, 0.0  ;;  %v2522_v41 = vpop.f32.mrb[19].mxu0  ;;  %v2562_v32 = vpop.f32.mrb[18].mxu1  ;;  %v2561_v43 = vadd.f32 %v2560_v35, %v2466_v27  ;;  %v9735_v27 = vld [vmem:[%s14037_s3 + $0x8] sm:$0xf] }
 0x7d1   :  { %v11055_v42 = vmax.f32 %v2520_v40, 0.0  ;;  %v2563_v44 = vpop.f32.mrb[19].mxu1  ;;  %v11061_v45 = vmax.f32 %v2559_v38, 0.0  ;;  %v9736_v29 = vld [vmem:[%s14037_s3 + $0xc] sm:$0xf]  ;;  %v2674_v30 = vrot.slane %v9735_v27, %v10062_v11  ;;  %v2670_v41 = vrot.slane %v9735_v27, %v10071_v16 }
 0x7d2   :  { %2569 = vrot.lane.b32.xlu0 %v11053_v37, %s9935_s19  ;;  %v11063_v46 = vmax.f32 %v2561_v43, 0.0  ;;  %v2716_v40 = vrot.slane %v9736_v29, %v10062_v11  ;;  %v2682_v32 = vrot.slane %v9735_v27, %v10073_v17  ;;  %v2720_v44 = vrot.slane %v9736_v29, %v10075_v18 }
 0x7d3   :  { %2571 = vrot.lane.b32.xlu1 %v11055_v42, %s9935_s19  ;;  %v2724_v50 = vrot.slane %v9736_v29, %v10073_v17 }
 0x7d6   :  { %2573 = vrot.lane.b32.xlu0 %v11061_v45, %s9935_s19 }
 0x7d7   :  { %2575 = vrot.lane.b32.xlu1 %v11063_v46, %s9935_s19 }
 0x7da   :  { %2611 = vrot.lane.b32.xlu0 %v11053_v37, %s9936_s24 }
 0x7db   :  { %2613 = vrot.lane.b32.xlu1 %v11055_v42, %s9936_s24 }
 0x7de   :  { %2615 = vrot.lane.b32.xlu0 %v11061_v45, %s9936_s24 }
 0x7df   :  { %2617 = vrot.lane.b32.xlu1 %v11063_v46, %s9936_s24 }
 0x7e2   :  { %2653 = vrot.lane.b32.xlu0 %v11053_v37, %s9937_s0 }
 0x7e3   :  { %2655 = vrot.lane.b32.xlu1 %v11055_v42, %s9937_s0 }
 0x7e6   :  { %2657 = vrot.lane.b32.xlu0 %v11061_v45, %s9937_s0 }
 0x7e7   :  { %2659 = vrot.lane.b32.xlu1 %v11063_v46, %s9937_s0 }
 0x7ea   :  { %2695 = vrot.lane.b32.xlu0 %v11053_v37, %s9938_s25 }
 0x7eb   :  { %2697 = vrot.lane.b32.xlu1 %v11055_v42, %s9938_s25 }
 0x7ee   :  { %2699 = vrot.lane.b32.xlu0 %v11061_v45, %s9938_s25 }
 0x7ef   :  { %2701 = vrot.lane.b32.xlu1 %v11063_v46, %s9938_s25 }
 0x7f2   :  { %2741 = vrot.lane.b32.xlu0 %v11053_v37, %s9939_s26 }
 0x7f3   :  { %2743 = vrot.lane.b32.xlu1 %v11055_v42, %s9939_s26 }
 0x7f6   :  { %2745 = vrot.lane.b32.xlu0 %v11061_v45, %s9939_s26 }
 0x7f7   :  { %2747 = vrot.lane.b32.xlu1 %v11063_v46, %s9939_s26 }
 0x7fa   :  { %2783 = vrot.lane.b32.xlu0 %v11053_v37, %s9940_s27 }
 0x7fb   :  { %2785 = vrot.lane.b32.xlu1 %v11055_v42, %s9940_s27 }
 0x7fe   :  { %2787 = vrot.lane.b32.xlu0 %v11061_v45, %s9940_s27 }
 0x7ff   :  { %2789 = vrot.lane.b32.xlu1 %v11063_v46, %s9940_s27 }
 0x802   :  { %2825 = vrot.lane.b32.xlu0 %v11053_v37, %s9941_s28 }
 0x803   :  { %2827 = vrot.lane.b32.xlu1 %v11055_v42, %s9941_s28 }
 0x806   :  { %2829 = vrot.lane.b32.xlu0 %v11061_v45, %s9941_s28 }
 0x807   :  { %2831 = vrot.lane.b32.xlu1 %v11063_v46, %s9941_s28 }
 0x80a   :  { %2867 = vrot.lane.b32.xlu0 %v11053_v37, %s9943_s29 }
 0x80b   :  { %2869 = vrot.lane.b32.xlu1 %v11055_v42, %s9943_s29 }
 0x80e   :  { %2871 = vrot.lane.b32.xlu0 %v11061_v45, %s9943_s29 }
 0x80f   :  { %2873 = vrot.lane.b32.xlu1 %v11063_v46, %s9943_s29 }
 0x812   :  { %2971 = vperm.xlu0 %9933, %v9742_v47  }
 0x844   :  { %v2570_v48 = vpop.permute.xlu0 %2569 }
 0x845   :  { %v2572_v49 = vpop.permute.xlu1 %2571 }
 0x846   :  { %v2579_v56 = vsel %vm32_vm0, %v2570_v48, %v2572_v49 }
 0x847   :  { %v2604_v1 = vmul.f32 %v2590_v54, %v2579_v56 }
 0x848   :  { %v2574_v51 = vpop.permute.xlu0 %2573 }
 0x849   :  { %v2576_v53 = vpop.permute.xlu1 %2575  ;;  %v2578_v8 = vsel %vm32_vm0, %v2572_v49, %v2574_v51  ;;  %v2712_v49 = vrot.slane %v9736_v29, %v10071_v16 }
 0x84a   :  { %v2577_v62 = vsel %vm32_vm0, %v2574_v51, %v2576_v53  ;;  %v2580_v63 = vsel %vm32_vm0, %v2576_v53, %v2570_v48  ;;  %v2605_v28 = vmul.f32 %v2594_v13, %v2578_v8  ;;  %v2678_v51 = vrot.slane %v9735_v27, %v10075_v18 }
 0x84b   :  { %v2603_v19 = vmul.f32 %v2586_v59, %v2580_v63  ;;  %v2606_v25 = vmul.f32 %v2598_v60, %v2577_v62 }
 0x84c   :  { %v2612_v57 = vpop.permute.xlu0 %2611 }
 0x84d   :  { %v2614_v58 = vpop.permute.xlu1 %2613 }
 0x84e   :  { %v2621_v3 = vsel %vm75_vm1, %v2612_v57, %v2614_v58 }
 0x84f   :  { %v2646_v2 = vmul.f32 %v2632_v55, %v2621_v3 }
 0x850   :  { %v2616_v5 = vpop.permute.xlu0 %2615 }
 0x851   :  { %v2620_v7 = vsel %vm75_vm1, %v2614_v58, %v2616_v5  ;;  %v2618_v15 = vpop.permute.xlu1 %2617  ;;  %v2948_v14 = vpack.c.bf16 %v2646_v2, %v2604_v1 }
 0x852   :  { %v2647_v12 = vmul.f32 %v2636_v0, %v2620_v7  ;;  %v2619_v9 = vsel %vm75_vm1, %v2616_v5, %v2618_v15  ;;  %v2622_v23 = vsel %vm75_vm1, %v2618_v15, %v2612_v57  ;;  %v9737_v0 = vld [vmem:[%s14037_s3 + $0x14] sm:$0xf] }
 0x853   :  { %v2645_v20 = vmul.f32 %v2628_v61, %v2622_v23  ;;  %v2648_v21 = vmul.f32 %v2640_v6, %v2619_v9  ;;  %2989 = vmatprep.subr.bf16.mxu0 %v2948_v14  ;;  %v2758_v5 = vrot.slane %v9737_v0, %v10071_v16  ;;  %v2766_v9 = vrot.slane %v9737_v0, %v10075_v18 }
 0x854   :  { %v2654_v22 = vpop.permute.xlu0 %2653  ;;  %v2949_v26 = vpack.c.bf16 %v2647_v12, %v2605_v28  ;;  %v2762_v12 = vrot.slane %v9737_v0, %v10062_v11  ;;  %v2770_v23 = vrot.slane %v9737_v0, %v10073_v17 }
 0x855   :  { %v2947_v31 = vpack.c.bf16 %v2645_v20, %v2603_v19  ;;  %v2656_v24 = vpop.permute.xlu1 %2655  ;;  %v2950_v33 = vpack.c.bf16 %v2648_v21, %v2606_v25 }
 0x856   :  { %v2663_v34 = vsel %vm119_vm2, %v2654_v22, %v2656_v24 }
 0x857   :  { %2990 = vmatpush1.bf16.msra.mxu0 %v2947_v31  ;;  %3030 = vmatprep.subr.bf16.mxu1 %v2950_v33  ;;  %v2688_v47 = vmul.f32 %v2674_v30, %v2663_v34 }
 0x858   :  { %3031 = vmatpush1.bf16.msra.mxu1 %v2949_v26  ;;  %v2658_v36 = vpop.permute.xlu0 %2657 }
 0x859   :  { %v2660_v39 = vpop.permute.xlu1 %2659  ;;  %v2662_v55 = vsel %vm119_vm2, %v2656_v24, %v2658_v36 }
 0x85a   :  { %v2661_v52 = vsel %vm119_vm2, %v2658_v36, %v2660_v39  ;;  %v2664_v53 = vsel %vm119_vm2, %v2660_v39, %v2654_v22  ;;  %v2689_v13 = vmul.f32 %v2678_v51, %v2662_v55 }
 0x85b   :  { %v2687_v1 = vmul.f32 %v2670_v41, %v2664_v53  ;;  %v2690_v2 = vmul.f32 %v2682_v32, %v2661_v52 }
 0x85c   :  { %v2696_v35 = vpop.permute.xlu0 %2695 }
 0x85d   :  { %v2698_v38 = vpop.permute.xlu1 %2697 }
 0x85e   :  { %v2705_v43 = vsel %vm163_vm3, %v2696_v35, %v2698_v38 }
 0x85f   :  { %v2730_v48 = vmul.f32 %v2716_v40, %v2705_v43 }
 0x860   :  { %v2700_v54 = vpop.permute.xlu0 %2699 }
 0x861   :  { %v2704_v56 = vsel %vm163_vm3, %v2698_v38, %v2700_v54  ;;  %v2702_v57 = vpop.permute.xlu1 %2701  ;;  %v2952_v58 = vpack.c.bf16 %v2730_v48, %v2688_v47  ;;  %v9740_v48 = vld [vmem:[%s14037_s3 + $0x20] sm:$0xf] }
 0x862   :  { %v2731_v59 = vmul.f32 %v2720_v44, %v2704_v56  ;;  %v2703_v60 = vsel %vm163_vm3, %v2700_v54, %v2702_v57  ;;  %v2706_v3 = vsel %vm163_vm3, %v2702_v57, %v2696_v35  ;;  %v9738_v35 = vld [vmem:[%s14037_s3 + $0x18] sm:$0xf] }
 0x863   :  { %v2729_v61 = vmul.f32 %v2712_v49, %v2706_v3  ;;  %v2732_v6 = vmul.f32 %v2724_v50, %v2703_v60  ;;  %2991 = vmatprep.subr.bf16.mxu0 %v2952_v58  ;;  %v2804_v38 = vrot.slane %v9738_v35, %v10062_v11  ;;  %v2808_v43 = vrot.slane %v9738_v35, %v10075_v18 }
 0x864   :  { %v2742_v62 = vpop.permute.xlu0 %2741  ;;  %v2953_v15 = vpack.c.bf16 %v2731_v59, %v2689_v13  ;;  %v2812_v50 = vrot.slane %v9738_v35, %v10073_v17  ;;  %v2884_v60 = vrot.slane %v9740_v48, %v10071_v16 }
 0x865   :  { %v2951_v63 = vpack.c.bf16 %v2729_v61, %v2687_v1  ;;  %v2744_v8 = vpop.permute.xlu1 %2743  ;;  %v2954_v7 = vpack.c.bf16 %v2732_v6, %v2690_v2 }
 0x866   :  { %v2751_v14 = vsel %vm211_vm4, %v2742_v62, %v2744_v8 }
 0x867   :  { %2992 = vmatpush1.bf16.msra.mxu0 %v2951_v63  ;;  %3032 = vmatprep.subr.bf16.mxu1 %v2954_v7  ;;  %v2775_v25 = vmul.f32 %v2758_v5, %v2751_v14 }
 0x868   :  { %3033 = vmatpush1.bf16.msra.mxu1 %v2953_v15  ;;  %v2746_v19 = vpop.permute.xlu0 %2745 }
 0x869   :  { %v2750_v20 = vsel %vm211_vm4, %v2744_v8, %v2746_v19  ;;  %v2748_v21 = vpop.permute.xlu1 %2747  ;;  %v2955_v36 = vpack.c.bf16 %v2775_v25, %v11053_v37  ;;  %v2896_v25 = vrot.slane %v9740_v48, %v10073_v17 }
 0x86a   :  { %v2776_v28 = vmul.f32 %v2762_v12, %v2750_v20  ;;  %v2749_v22 = vsel %vm211_vm4, %v2746_v19, %v2748_v21  ;;  %v2752_v31 = vsel %vm211_vm4, %v2748_v21, %v2742_v62  ;;  %v2892_v19 = vrot.slane %v9740_v48, %v10075_v18 }
 0x86b   :  { %v2777_v24 = vmul.f32 %v2766_v9, %v2749_v22  ;;  %v2778_v33 = vmul.f32 %v2770_v23, %v2752_v31  ;;  %v2888_v9 = vrot.slane %v9740_v48, %v10062_v11 }
 0x86c   :  { %v2784_v26 = vpop.permute.xlu0 %2783  ;;  %v2956_v27 = vpack.c.bf16 %v2776_v28, %v11055_v42  ;;  %v9739_v42 = vld [vmem:[%s14037_s3 + $0x1c] sm:$0xf] }
 0x86d   :  { %v2957_v29 = vpack.c.bf16 %v2777_v24, %v11061_v45  ;;  %v2786_v39 = vpop.permute.xlu1 %2785  ;;  %v2958_v30 = vpack.c.bf16 %v2778_v33, %v11063_v46  ;;  %v2800_v45 = vrot.slane %v9738_v35, %v10071_v16  ;;  %v2842_v46 = vrot.slane %v9739_v42, %v10071_v16 }
 0x86e   :  { %2993 = vmatprep.subr.bf16.mxu0 %v2956_v27  ;;  %v2793_v32 = vsel %vm255_vm6, %v2784_v26, %v2786_v39  ;;  %v2846_v47 = vrot.slane %v9739_v42, %v10062_v11  ;;  %v2850_v51 = vrot.slane %v9739_v42, %v10075_v18  ;;  %v2854_v52 = vrot.slane %v9739_v42, %v10073_v17 }
 0x86f   :  { %2994 = vmatpush1.bf16.msra.mxu0 %v2955_v36  ;;  %3034 = vmatprep.subr.bf16.mxu1 %v2958_v30  ;;  %v2817_v56 = vmul.f32 %v2800_v45, %v2793_v32 }
 0x870   :  { %3035 = vmatpush1.bf16.msra.mxu1 %v2957_v29  ;;  %v2788_v40 = vpop.permute.xlu0 %2787 }
 0x871   :  { %v2790_v34 = vpop.permute.xlu1 %2789  ;;  %v2792_v49 = vsel %vm255_vm6, %v2786_v39, %v2788_v40 }
 0x872   :  { %v2791_v53 = vsel %vm255_vm6, %v2788_v40, %v2790_v34  ;;  %v2794_v54 = vsel %vm255_vm6, %v2790_v34, %v2784_v26  ;;  %v2818_v3 = vmul.f32 %v2804_v38, %v2792_v49  ;;  %v9741_v34 = vld [vmem:[%s14038_s1 + $0x14] sm:$0xf] }
 0x873   :  { %v2819_v61 = vmul.f32 %v2808_v43, %v2791_v53  ;;  %v2820_v6 = vmul.f32 %v2812_v50, %v2794_v54  ;;  %v9755_v54 = vld [vmem:[%s14036_s2 + $0x30] sm:$0xff] }
 0x874   :  { %v2826_v37 = vpop.permute.xlu0 %2825 }
 0x875   :  { %v2828_v41 = vpop.permute.xlu1 %2827 }
 0x876   :  { %v2835_v44 = vsel %vm299_vm5, %v2826_v37, %v2828_v41 }
 0x877   :  { %v2859_v57 = vmul.f32 %v2842_v46, %v2835_v44 }
 0x878   :  { %v2830_v55 = vpop.permute.xlu0 %2829 }
 0x879   :  { %v2834_v58 = vsel %vm299_vm5, %v2828_v41, %v2830_v55  ;;  %v2832_v59 = vpop.permute.xlu1 %2831  ;;  %v2959_v8 = vpack.c.bf16 %v2859_v57, %v2817_v56  ;;  %v3087_v57 = vld [vmem:[%s14037_s3] sm:$0xf] }
 0x87a   :  { %v2860_v0 = vmul.f32 %v2846_v47, %v2834_v58  ;;  %v2833_v1 = vsel %vm299_vm5, %v2830_v55, %v2832_v59  ;;  %v2836_v2 = vsel %vm299_vm5, %v2832_v59, %v2826_v37  ;;  %v9747_v59 = vld [vmem:[%s14037_s3 + $0x4] sm:$0xf] }
 0x87b   :  { %v2861_v13 = vmul.f32 %v2850_v51, %v2833_v1  ;;  %v2862_v62 = vmul.f32 %v2854_v52, %v2836_v2 }
 0x87c   :  { %v2868_v63 = vpop.permute.xlu0 %2867  ;;  %v2960_v5 = vpack.c.bf16 %v2860_v0, %v2818_v3  ;;  %v3096_v3 = vrot.slane %v3087_v57, %v10062_v11  ;;  %v3138_v0 = vrot.slane %v9747_v59, %v10062_v11 }
 0x87d   :  { %v2961_v7 = vpack.c.bf16 %v2861_v13, %v2819_v61  ;;  %v2870_v15 = vpop.permute.xlu1 %2869  ;;  %v2962_v14 = vpack.c.bf16 %v2862_v62, %v2820_v6  ;;  %v3092_v6 = vrot.slane %v3087_v57, %v10071_v16  ;;  %v3104_v13 = vrot.slane %v3087_v57, %v10073_v17 }
 0x87e   :  { %v2877_v12 = vsel %vm343_vm7, %v2868_v63, %v2870_v15  ;;  %2995 = vmatprep.subr.bf16.mxu0 %v2960_v5 }
 0x87f   :  { %v2901_v23 = vmul.f32 %v2884_v60, %v2877_v12  ;;  %2996 = vmatpush1.bf16.msra.mxu0 %v2959_v8  ;;  %3036 = vmatprep.subr.bf16.mxu1 %v2962_v14  ;;  %v3100_v14 = vrot.slane %v3087_v57, %v10075_v18 }
 0x880   :  { %3037 = vmatpush1.bf16.msra.mxu1 %v2961_v7  ;;  %v2872_v20 = vpop.permute.xlu0 %2871  ;;  %v3134_v7 = vrot.slane %v9747_v59, %v10071_v16 }
 0x881   :  { %v2876_v21 = vsel %vm343_vm7, %v2870_v15, %v2872_v20  ;;  %v2874_v28 = vpop.permute.xlu1 %2873  ;;  %v2963_v22 = vpack.c.bf16 %v2901_v23, %v2901_v23  ;;  %v3146_v15 = vrot.slane %v9747_v59, %v10073_v17 }
 0x882   :  { %v2902_v31 = vmul.f32 %v2888_v9, %v2876_v21  ;;  %v2875_v24 = vsel %vm343_vm7, %v2872_v20, %v2874_v28  ;;  %v2878_v33 = vsel %vm343_vm7, %v2874_v28, %v2868_v63  ;;  %v3142_v63 = vrot.slane %v9747_v59, %v10075_v18 }
 0x883   :  { %v2903_v26 = vmul.f32 %v2892_v19, %v2875_v24  ;;  %v2904_v27 = vmul.f32 %v2896_v25, %v2878_v33  ;;  %v2978_v30 = vsel %vm446_vm8, %v2963_v22, 0 }
 0x884   :  { %v2964_v36 = vpack.c.bf16 %v2902_v31, %v2902_v31 }
 0x885   :  { %v2965_v29 = vpack.c.bf16 %v2903_v26, %v2903_v26  ;;  %v2966_v39 = vpack.c.bf16 %v2904_v27, %v2904_v27 }
 0x886   :  { %9743 = vmatprep.subr.msk.bf16.mxu0 %vm446_vm8, %v2964_v36 }
 0x887   :  { %2998 = vmatpush1.bf16.msra.mxu0 %v2978_v30  ;;  %9745 = vmatprep.subr.msk.bf16.mxu1 %vm446_vm8, %v2966_v39  ;;  %v2984_v40 = vsel %vm446_vm8, %v2965_v29, 0 }
 0x888   :  { %3039 = vmatpush1.bf16.msra.mxu1 %v2984_v40 }
 0x88a   :  { %9744 = vmatmul.mubr.msk.bf16.vlgmr.msra.gmra.mrb[20].mxu0 %vm442_vm9, %v9741_v34 }
 0x88b   :  { %9746 = vmatmul.mubr.msk.bf16.vlgmr.msra.gmra.mrb[20].mxu1 %vm442_vm9, %v9741_v34  ;;  %3527 = vmatprep.mubr.bf16.mxu0 %v9942_v4 }
 0x88c   :  { %3568 = vmatprep.mubr.bf16.mxu1 %v9942_v4 }
 0x891   :  { %v2972_v35 = vpop.permute.xlu0 %2971 }
 0x95d   :  { %v3023_v42 = vpop.f32.mrb[20].mxu0 }
 0x95e   :  { %v3024_v37 = vadd.f32 %v3023_v42, %v2972_v35  ;;  %v3025_v45 = vpop.f32.mrb[21].mxu0  ;;  %v3064_v38 = vpop.f32.mrb[20].mxu1 }
 0x95f   :  { %v3026_v46 = vadd.f32 %v3025_v45, %v2972_v35  ;;  %v3027_v41 = vpop.f32.mrb[22].mxu0  ;;  %v3066_v32 = vpop.f32.mrb[21].mxu1  ;;  %v3065_v44 = vadd.f32 %v3064_v38, %v2972_v35 }
 0x960   :  { %v11263_v43 = vmax.f32 %v3024_v37, 0.0  ;;  %v3028_v47 = vpop.f32.mrb[23].mxu0  ;;  %v3068_v48 = vpop.f32.mrb[22].mxu1  ;;  %v3067_v50 = vadd.f32 %v3066_v32, %v2972_v35  ;;  %v9748_v35 = vld [vmem:[%s14037_s3 + $0x8] sm:$0xf] }
 0x961   :  { %v11265_v49 = vmax.f32 %v3026_v46, 0.0  ;;  %v3069_v51 = vpop.f32.mrb[23].mxu1  ;;  %v11271_v52 = vmax.f32 %v3065_v44, 0.0  ;;  %v9749_v37 = vld [vmem:[%s14037_s3 + $0xc] sm:$0xf]  ;;  %v3180_v38 = vrot.slane %v9748_v35, %v10062_v11  ;;  %v3176_v47 = vrot.slane %v9748_v35, %v10071_v16 }
 0x962   :  { %3075 = vrot.lane.b32.xlu1 %v11263_v43, %s9935_s19  ;;  %v11273_v53 = vmax.f32 %v3067_v50, 0.0  ;;  %v3222_v46 = vrot.slane %v9749_v37, %v10062_v11  ;;  %v3188_v48 = vrot.slane %v9748_v35, %v10073_v17  ;;  %v3226_v51 = vrot.slane %v9749_v37, %v10075_v18 }
 0x963   :  { %3077 = vrot.lane.b32.xlu0 %v11265_v49, %s9935_s19  ;;  %v3230_v57 = vrot.slane %v9749_v37, %v10073_v17 }
 0x966   :  { %3079 = vrot.lane.b32.xlu1 %v11271_v52, %s9935_s19 }
 0x967   :  { %3081 = vrot.lane.b32.xlu0 %v11273_v53, %s9935_s19 }
 0x96a   :  { %3117 = vrot.lane.b32.xlu1 %v11263_v43, %s9936_s24 }
 0x96b   :  { %3119 = vrot.lane.b32.xlu0 %v11265_v49, %s9936_s24 }
 0x96e   :  { %3121 = vrot.lane.b32.xlu1 %v11271_v52, %s9936_s24 }
 0x96f   :  { %3123 = vrot.lane.b32.xlu0 %v11273_v53, %s9936_s24 }
 0x972   :  { %3159 = vrot.lane.b32.xlu1 %v11263_v43, %s9937_s0 }
 0x973   :  { %3161 = vrot.lane.b32.xlu0 %v11265_v49, %s9937_s0 }
 0x976   :  { %3163 = vrot.lane.b32.xlu1 %v11271_v52, %s9937_s0 }
 0x977   :  { %3165 = vrot.lane.b32.xlu0 %v11273_v53, %s9937_s0 }
 0x97a   :  { %3201 = vrot.lane.b32.xlu1 %v11263_v43, %s9938_s25 }
 0x97b   :  { %3203 = vrot.lane.b32.xlu0 %v11265_v49, %s9938_s25 }
 0x97e   :  { %3205 = vrot.lane.b32.xlu1 %v11271_v52, %s9938_s25 }
 0x97f   :  { %3207 = vrot.lane.b32.xlu0 %v11273_v53, %s9938_s25 }
 0x982   :  { %3247 = vrot.lane.b32.xlu1 %v11263_v43, %s9939_s26 }
 0x983   :  { %3249 = vrot.lane.b32.xlu0 %v11265_v49, %s9939_s26 }
 0x986   :  { %3251 = vrot.lane.b32.xlu1 %v11271_v52, %s9939_s26 }
 0x987   :  { %3253 = vrot.lane.b32.xlu0 %v11273_v53, %s9939_s26 }
 0x98a   :  { %3289 = vrot.lane.b32.xlu1 %v11263_v43, %s9940_s27 }
 0x98b   :  { %3291 = vrot.lane.b32.xlu0 %v11265_v49, %s9940_s27 }
 0x98e   :  { %3293 = vrot.lane.b32.xlu1 %v11271_v52, %s9940_s27 }
 0x98f   :  { %3295 = vrot.lane.b32.xlu0 %v11273_v53, %s9940_s27 }
 0x992   :  { %3331 = vrot.lane.b32.xlu1 %v11263_v43, %s9941_s28 }
 0x993   :  { %3333 = vrot.lane.b32.xlu0 %v11265_v49, %s9941_s28 }
 0x996   :  { %3335 = vrot.lane.b32.xlu1 %v11271_v52, %s9941_s28 }
 0x997   :  { %3337 = vrot.lane.b32.xlu0 %v11273_v53, %s9941_s28 }
 0x99a   :  { %3373 = vrot.lane.b32.xlu1 %v11263_v43, %s9943_s29 }
 0x99b   :  { %3375 = vrot.lane.b32.xlu0 %v11265_v49, %s9943_s29 }
 0x99e   :  { %3377 = vrot.lane.b32.xlu1 %v11271_v52, %s9943_s29 }
 0x99f   :  { %3379 = vrot.lane.b32.xlu0 %v11273_v53, %s9943_s29 }
 0x9a2   :  { %3477 = vperm.xlu1 %9934, %v9755_v54  }
 0x9d4   :  { %v3076_v55 = vpop.permute.xlu1 %3075 }
 0x9d5   :  { %v3078_v56 = vpop.permute.xlu0 %3077 }
 0x9d6   :  { %v3085_v1 = vsel %vm32_vm0, %v3076_v55, %v3078_v56 }
 0x9d7   :  { %v3110_v5 = vmul.f32 %v3096_v3, %v3085_v1 }
 0x9d8   :  { %v3080_v58 = vpop.permute.xlu1 %3079 }
 0x9d9   :  { %v3082_v60 = vpop.permute.xlu0 %3081  ;;  %v3084_v19 = vsel %vm32_vm0, %v3078_v56, %v3080_v58  ;;  %v3218_v56 = vrot.slane %v9749_v37, %v10071_v16 }
 0x9da   :  { %v3083_v12 = vsel %vm32_vm0, %v3080_v58, %v3082_v60  ;;  %v3086_v9 = vsel %vm32_vm0, %v3082_v60, %v3076_v55  ;;  %v3111_v36 = vmul.f32 %v3100_v14, %v3084_v19  ;;  %v3184_v58 = vrot.slane %v9748_v35, %v10075_v18 }
 0x9db   :  { %v3109_v24 = vmul.f32 %v3092_v6, %v3086_v9  ;;  %v3112_v33 = vmul.f32 %v3104_v13, %v3083_v12 }
 0x9dc   :  { %v3118_v2 = vpop.permute.xlu1 %3117 }
 0x9dd   :  { %v3120_v61 = vpop.permute.xlu0 %3119 }
 0x9de   :  { %v3127_v62 = vsel %vm75_vm1, %v3118_v2, %v3120_v61 }
 0x9df   :  { %v3152_v8 = vmul.f32 %v3138_v0, %v3127_v62 }
 0x9e0   :  { %v3122_v23 = vpop.permute.xlu1 %3121 }
 0x9e1   :  { %v3126_v25 = vsel %vm75_vm1, %v3120_v61, %v3122_v23  ;;  %v3124_v20 = vpop.permute.xlu0 %3123  ;;  %v3454_v21 = vpack.c.bf16 %v3152_v8, %v3110_v5 }
 0x9e2   :  { %v3153_v28 = vmul.f32 %v3142_v63, %v3126_v25  ;;  %v3125_v22 = vsel %vm75_vm1, %v3122_v23, %v3124_v20  ;;  %v3128_v31 = vsel %vm75_vm1, %v3124_v20, %v3118_v2  ;;  %v9750_v63 = vld [vmem:[%s14037_s3 + $0x14] sm:$0xf] }
 0x9e3   :  { %v3151_v26 = vmul.f32 %v3134_v7, %v3128_v31  ;;  %v3154_v27 = vmul.f32 %v3146_v15, %v3125_v22  ;;  %3495 = vmatprep.subr.bf16.mxu0 %v3454_v21  ;;  %v3264_v23 = vrot.slane %v9750_v63, %v10071_v16  ;;  %v3272_v22 = vrot.slane %v9750_v63, %v10075_v18 }
 0x9e4   :  { %v3160_v29 = vpop.permute.xlu1 %3159  ;;  %v3455_v34 = vpack.c.bf16 %v3153_v28, %v3111_v36  ;;  %v3268_v28 = vrot.slane %v9750_v63, %v10062_v11  ;;  %v3276_v31 = vrot.slane %v9750_v63, %v10073_v17 }
 0x9e5   :  { %v3453_v39 = vpack.c.bf16 %v3151_v26, %v3109_v24  ;;  %v3162_v30 = vpop.permute.xlu0 %3161  ;;  %v3456_v40 = vpack.c.bf16 %v3154_v27, %v3112_v33 }
 0x9e6   :  { %v3169_v41 = vsel %vm119_vm2, %v3160_v29, %v3162_v30 }
 0x9e7   :  { %3496 = vmatpush1.bf16.msra.mxu0 %v3453_v39  ;;  %3536 = vmatprep.subr.bf16.mxu1 %v3456_v40  ;;  %v3194_v54 = vmul.f32 %v3180_v38, %v3169_v41 }
 0x9e8   :  { %3537 = vmatpush1.bf16.msra.mxu1 %v3455_v34  ;;  %v3164_v42 = vpop.permute.xlu1 %3163 }
 0x9e9   :  { %v3166_v45 = vpop.permute.xlu0 %3165  ;;  %v3168_v0 = vsel %vm119_vm2, %v3162_v30, %v3164_v42 }
 0x9ea   :  { %v3167_v59 = vsel %vm119_vm2, %v3164_v42, %v3166_v45  ;;  %v3170_v60 = vsel %vm119_vm2, %v3166_v45, %v3160_v29  ;;  %v3195_v14 = vmul.f32 %v3184_v58, %v3168_v0 }
 0x9eb   :  { %v3193_v5 = vmul.f32 %v3176_v47, %v3170_v60  ;;  %v3196_v8 = vmul.f32 %v3188_v48, %v3167_v59 }
 0x9ec   :  { %v3202_v32 = vpop.permute.xlu1 %3201 }
 0x9ed   :  { %v3204_v44 = vpop.permute.xlu0 %3203 }
 0x9ee   :  { %v3211_v50 = vsel %vm163_vm3, %v3202_v32, %v3204_v44 }
 0x9ef   :  { %v3236_v55 = vmul.f32 %v3222_v46, %v3211_v50 }
 0x9f0   :  { %v3206_v3 = vpop.permute.xlu1 %3205 }
 0x9f1   :  { %v3210_v1 = vsel %vm163_vm3, %v3204_v44, %v3206_v3  ;;  %v3208_v2 = vpop.permute.xlu0 %3207  ;;  %v3458_v61 = vpack.c.bf16 %v3236_v55, %v3194_v54  ;;  %v9753_v55 = vld [vmem:[%s14037_s3 + $0x20] sm:$0xf] }
 0x9f2   :  { %v3237_v6 = vmul.f32 %v3226_v51, %v3210_v1  ;;  %v3209_v13 = vsel %vm163_vm3, %v3206_v3, %v3208_v2  ;;  %v3212_v62 = vsel %vm163_vm3, %v3208_v2, %v3202_v32  ;;  %v9751_v32 = vld [vmem:[%s14037_s3 + $0x18] sm:$0xf] }
 0x9f3   :  { %v3235_v7 = vmul.f32 %v3218_v56, %v3212_v62  ;;  %v3238_v15 = vmul.f32 %v3230_v57, %v3209_v13  ;;  %3497 = vmatprep.subr.bf16.mxu0 %v3458_v61  ;;  %v3310_v44 = vrot.slane %v9751_v32, %v10062_v11  ;;  %v3314_v50 = vrot.slane %v9751_v32, %v10075_v18 }
 0x9f4   :  { %v3248_v12 = vpop.permute.xlu1 %3247  ;;  %v3459_v20 = vpack.c.bf16 %v3237_v6, %v3195_v14  ;;  %v3318_v57 = vrot.slane %v9751_v32, %v10073_v17  ;;  %v3390_v13 = vrot.slane %v9753_v55, %v10071_v16 }
 0x9f5   :  { %v3457_v9 = vpack.c.bf16 %v3235_v7, %v3193_v5  ;;  %v3250_v19 = vpop.permute.xlu0 %3249  ;;  %v3460_v25 = vpack.c.bf16 %v3238_v15, %v3196_v8 }
 0x9f6   :  { %v3257_v21 = vsel %vm211_vm4, %v3248_v12, %v3250_v19 }
 0x9f7   :  { %3498 = vmatpush1.bf16.msra.mxu0 %v3457_v9  ;;  %3538 = vmatprep.subr.bf16.mxu1 %v3460_v25  ;;  %v3281_v33 = vmul.f32 %v3264_v23, %v3257_v21 }
 0x9f8   :  { %3539 = vmatpush1.bf16.msra.mxu1 %v3459_v20  ;;  %v3252_v24 = vpop.permute.xlu1 %3251 }
 0x9f9   :  { %v3256_v26 = vsel %vm211_vm4, %v3250_v19, %v3252_v24  ;;  %v3254_v27 = vpop.permute.xlu0 %3253  ;;  %v3461_v42 = vpack.c.bf16 %v3281_v33, %v11263_v43  ;;  %v3402_v33 = vrot.slane %v9753_v55, %v10073_v17 }
 0x9fa   :  { %v3282_v36 = vmul.f32 %v3268_v28, %v3256_v26  ;;  %v3255_v29 = vsel %vm211_vm4, %v3252_v24, %v3254_v27  ;;  %v3258_v39 = vsel %vm211_vm4, %v3254_v27, %v3248_v12  ;;  %v3398_v24 = vrot.slane %v9753_v55, %v10075_v18 }
 0x9fb   :  { %v3283_v30 = vmul.f32 %v3272_v22, %v3255_v29  ;;  %v3284_v40 = vmul.f32 %v3276_v31, %v3258_v39  ;;  %v3394_v22 = vrot.slane %v9753_v55, %v10062_v11 }
 0x9fc   :  { %v3290_v34 = vpop.permute.xlu1 %3289  ;;  %v3462_v35 = vpack.c.bf16 %v3282_v36, %v11265_v49  ;;  %v9752_v49 = vld [vmem:[%s14037_s3 + $0x1c] sm:$0xf] }
 0x9fd   :  { %v3463_v37 = vpack.c.bf16 %v3283_v30, %v11271_v52  ;;  %v3292_v45 = vpop.permute.xlu0 %3291  ;;  %v3464_v38 = vpack.c.bf16 %v3284_v40, %v11273_v53  ;;  %v3306_v52 = vrot.slane %v9751_v32, %v10071_v16  ;;  %v3348_v53 = vrot.slane %v9752_v49, %v10071_v16 }
 0x9fe   :  { %3499 = vmatprep.subr.bf16.mxu0 %v3462_v35  ;;  %v3299_v48 = vsel %vm255_vm6, %v3290_v34, %v3292_v45  ;;  %v3352_v54 = vrot.slane %v9752_v49, %v10062_v11  ;;  %v3356_v58 = vrot.slane %v9752_v49, %v10075_v18  ;;  %v3360_v59 = vrot.slane %v9752_v49, %v10073_v17 }
 0x9ff   :  { %3500 = vmatpush1.bf16.msra.mxu0 %v3461_v42  ;;  %3540 = vmatprep.subr.bf16.mxu1 %v3464_v38  ;;  %v3323_v1 = vmul.f32 %v3306_v52, %v3299_v48 }
 0xa00   :  { %3541 = vmatpush1.bf16.msra.mxu1 %v3463_v37  ;;  %v3294_v46 = vpop.permute.xlu1 %3293 }
 0xa01   :  { %v3296_v41 = vpop.permute.xlu0 %3295  ;;  %v3298_v56 = vsel %vm255_vm6, %v3292_v45, %v3294_v46 }
 0xa02   :  { %v3297_v60 = vsel %vm255_vm6, %v3294_v46, %v3296_v41  ;;  %v3300_v3 = vsel %vm255_vm6, %v3296_v41, %v3290_v34  ;;  %v3324_v62 = vmul.f32 %v3310_v44, %v3298_v56  ;;  %v9754_v41 = vld [vmem:[%s14038_s1 + $0x18] sm:$0xf] }
 0xa03   :  { %v3325_v7 = vmul.f32 %v3314_v50, %v3297_v60  ;;  %v3326_v15 = vmul.f32 %v3318_v57, %v3300_v3  ;;  %v9768_v3 = vld [vmem:[%s14036_s2 + $0x38] sm:$0xff] }
 0xa04   :  { %v3332_v43 = vpop.permute.xlu1 %3331 }
 0xa05   :  { %v3334_v47 = vpop.permute.xlu0 %3333 }
 0xa06   :  { %v3341_v51 = vsel %vm299_vm5, %v3332_v43, %v3334_v47 }
 0xa07   :  { %v3365_v2 = vmul.f32 %v3348_v53, %v3341_v51 }
 0xa08   :  { %v3336_v0 = vpop.permute.xlu1 %3335 }
 0xa09   :  { %v3340_v61 = vsel %vm299_vm5, %v3334_v47, %v3336_v0  ;;  %v3338_v6 = vpop.permute.xlu0 %3337  ;;  %v3465_v19 = vpack.c.bf16 %v3365_v2, %v3323_v1  ;;  %v3597_v2 = vld [vmem:[%s14037_s3] sm:$0xf] }
 0xa0a   :  { %v3366_v63 = vmul.f32 %v3352_v54, %v3340_v61  ;;  %v3339_v5 = vsel %vm299_vm5, %v3336_v0, %v3338_v6  ;;  %v3342_v8 = vsel %vm299_vm5, %v3338_v6, %v3332_v43  ;;  %v9760_v6 = vld [vmem:[%s14037_s3 + $0x4] sm:$0xf] }
 0xa0b   :  { %v3367_v14 = vmul.f32 %v3356_v58, %v3339_v5  ;;  %v3368_v12 = vmul.f32 %v3360_v59, %v3342_v8 }
 0xa0c   :  { %v3374_v9 = vpop.permute.xlu1 %3373  ;;  %v3466_v23 = vpack.c.bf16 %v3366_v63, %v3324_v62  ;;  %v3606_v62 = vrot.slane %v3597_v2, %v10062_v11  ;;  %v3648_v63 = vrot.slane %v9760_v6, %v10062_v11 }
 0xa0d   :  { %v3467_v25 = vpack.c.bf16 %v3367_v14, %v3325_v7  ;;  %v3376_v20 = vpop.permute.xlu0 %3375  ;;  %v3468_v21 = vpack.c.bf16 %v3368_v12, %v3326_v15  ;;  %v3602_v15 = vrot.slane %v3597_v2, %v10071_v16  ;;  %v3614_v14 = vrot.slane %v3597_v2, %v10073_v17 }
 0xa0e   :  { %v3383_v28 = vsel %vm343_vm7, %v3374_v9, %v3376_v20  ;;  %3501 = vmatprep.subr.bf16.mxu0 %v3466_v23 }
 0xa0f   :  { %v3407_v31 = vmul.f32 %v3390_v13, %v3383_v28  ;;  %3502 = vmatpush1.bf16.msra.mxu0 %v3465_v19  ;;  %3542 = vmatprep.subr.bf16.mxu1 %v3468_v21  ;;  %v3610_v21 = vrot.slane %v3597_v2, %v10075_v18 }
 0xa10   :  { %3543 = vmatpush1.bf16.msra.mxu1 %v3467_v25  ;;  %v3378_v26 = vpop.permute.xlu1 %3377  ;;  %v3644_v25 = vrot.slane %v9760_v6, %v10071_v16 }
 0xa11   :  { %v3382_v27 = vsel %vm343_vm7, %v3376_v20, %v3378_v26  ;;  %v3380_v36 = vpop.permute.xlu0 %3379  ;;  %v3469_v29 = vpack.c.bf16 %v3407_v31, %v3407_v31  ;;  %v3656_v20 = vrot.slane %v9760_v6, %v10073_v17 }
 0xa12   :  { %v3408_v39 = vmul.f32 %v3394_v22, %v3382_v27  ;;  %v3381_v30 = vsel %vm343_vm7, %v3378_v26, %v3380_v36  ;;  %v3384_v40 = vsel %vm343_vm7, %v3380_v36, %v3374_v9  ;;  %v3652_v9 = vrot.slane %v9760_v6, %v10075_v18 }
 0xa13   :  { %v3409_v34 = vmul.f32 %v3398_v24, %v3381_v30  ;;  %v3410_v35 = vmul.f32 %v3402_v33, %v3384_v40  ;;  %v3484_v38 = vsel %vm446_vm8, %v3469_v29, 0 }
 0xa14   :  { %v3470_v42 = vpack.c.bf16 %v3408_v39, %v3408_v39 }
 0xa15   :  { %v3471_v37 = vpack.c.bf16 %v3409_v34, %v3409_v34  ;;  %v3472_v45 = vpack.c.bf16 %v3410_v35, %v3410_v35 }
 0xa16   :  { %9756 = vmatprep.subr.msk.bf16.mxu0 %vm446_vm8, %v3470_v42 }
 0xa17   :  { %3504 = vmatpush1.bf16.msra.mxu0 %v3484_v38  ;;  %9758 = vmatprep.subr.msk.bf16.mxu1 %vm446_vm8, %v3472_v45  ;;  %v3490_v46 = vsel %vm446_vm8, %v3471_v37, 0 }
 0xa18   :  { %3545 = vmatpush1.bf16.msra.mxu1 %v3490_v46 }
 0xa1a   :  { %9757 = vmatmul.mubr.msk.bf16.vlgmr.msra.gmra.mrb[24].mxu0 %vm442_vm9, %v9754_v41 }
 0xa1b   :  { %9759 = vmatmul.mubr.msk.bf16.vlgmr.msra.gmra.mrb[24].mxu1 %vm442_vm9, %v9754_v41  ;;  %4037 = vmatprep.mubr.bf16.mxu0 %v9942_v4 }
 0xa1c   :  { %4078 = vmatprep.mubr.bf16.mxu1 %v9942_v4 }
 0xa21   :  { %v3478_v32 = vpop.permute.xlu1 %3477 }
 0xaed   :  { %v3529_v49 = vpop.f32.mrb[24].mxu0 }
 0xaee   :  { %v3530_v43 = vadd.f32 %v3529_v49, %v3478_v32  ;;  %v3531_v52 = vpop.f32.mrb[25].mxu0  ;;  %v3570_v44 = vpop.f32.mrb[24].mxu1 }
 0xaef   :  { %v3532_v53 = vadd.f32 %v3531_v52, %v3478_v32  ;;  %v3571_v47 = vadd.f32 %v3570_v44, %v3478_v32  ;;  %v3533_v48 = vpop.f32.mrb[26].mxu0  ;;  %v3572_v50 = vpop.f32.mrb[25].mxu1 }
 0xaf0   :  { %v11473_v51 = vmax.f32 %v3530_v43, 0.0  ;;  %v3573_v54 = vadd.f32 %v3572_v50, %v3478_v32  ;;  %v3534_v55 = vpop.f32.mrb[27].mxu0  ;;  %v3574_v56 = vpop.f32.mrb[26].mxu1  ;;  %v9761_v32 = vld [vmem:[%s14037_s3 + $0x8] sm:$0xf] }
 0xaf1   :  { %v11475_v57 = vmax.f32 %v3532_v53, 0.0  ;;  %v11477_v58 = vmax.f32 %v3571_v47, 0.0  ;;  %v3575_v59 = vpop.f32.mrb[27].mxu1  ;;  %v9762_v43 = vld [vmem:[%s14037_s3 + $0xc] sm:$0xf]  ;;  %v3690_v44 = vrot.slane %v9761_v32, %v10062_v11  ;;  %v3698_v55 = vrot.slane %v9761_v32, %v10073_v17 }
 0xaf2   :  { %v11479_v60 = vmax.f32 %v3573_v54, 0.0  ;;  %3585 = vrot.lane.b32.xlu0 %v11473_v51, %s9935_s19  ;;  %3581 = vst [vmem:[%s14039_s4] sm:$0xff] %v11473_v51  ;;  %v3732_v53 = vrot.slane %v9762_v43, %v10062_v11  ;;  %v3686_v54 = vrot.slane %v9761_v32, %v10071_v16  ;;  %v3736_v59 = vrot.slane %v9762_v43, %v10075_v18 }
 0xaf3   :  { %3587 = vrot.lane.b32.xlu1 %v11475_v57, %s9935_s19  ;;  %3582 = vst [vmem:[%s14039_s4 + $0x8] sm:$0xff] %v11475_v57  ;;  %3583 = vst [vmem:[%s14039_s4 + $0x10] sm:$0xff] %v11477_v58  ;;  %v3740_v2 = vrot.slane %v9762_v43, %v10073_v17 }
 0xaf4   :  { %3584 = vst [vmem:[%s14039_s4 + $0x18] sm:$0xff] %v11479_v60 }
 0xaf6   :  { %3589 = vrot.lane.b32.xlu0 %v11477_v58, %s9935_s19 }
 0xaf7   :  { %3591 = vrot.lane.b32.xlu1 %v11479_v60, %s9935_s19 }
 0xafa   :  { %3627 = vrot.lane.b32.xlu0 %v11473_v51, %s9936_s24 }
 0xafb   :  { %3629 = vrot.lane.b32.xlu1 %v11475_v57, %s9936_s24 }
 0xafe   :  { %3631 = vrot.lane.b32.xlu0 %v11477_v58, %s9936_s24 }
 0xaff   :  { %3633 = vrot.lane.b32.xlu1 %v11479_v60, %s9936_s24 }
 0xb02   :  { %3669 = vrot.lane.b32.xlu0 %v11473_v51, %s9937_s0 }
 0xb03   :  { %3671 = vrot.lane.b32.xlu1 %v11475_v57, %s9937_s0 }
 0xb06   :  { %3673 = vrot.lane.b32.xlu0 %v11477_v58, %s9937_s0 }
 0xb07   :  { %3675 = vrot.lane.b32.xlu1 %v11479_v60, %s9937_s0 }
 0xb0a   :  { %3711 = vrot.lane.b32.xlu0 %v11473_v51, %s9938_s25 }
 0xb0b   :  { %3713 = vrot.lane.b32.xlu1 %v11475_v57, %s9938_s25 }
 0xb0e   :  { %3715 = vrot.lane.b32.xlu0 %v11477_v58, %s9938_s25 }
 0xb0f   :  { %3717 = vrot.lane.b32.xlu1 %v11479_v60, %s9938_s25 }
 0xb12   :  { %3757 = vrot.lane.b32.xlu0 %v11473_v51, %s9939_s26 }
 0xb13   :  { %3759 = vrot.lane.b32.xlu1 %v11475_v57, %s9939_s26 }
 0xb16   :  { %3761 = vrot.lane.b32.xlu0 %v11477_v58, %s9939_s26 }
 0xb17   :  { %3763 = vrot.lane.b32.xlu1 %v11479_v60, %s9939_s26 }
 0xb1a   :  { %3799 = vrot.lane.b32.xlu0 %v11473_v51, %s9940_s27 }
 0xb1b   :  { %3801 = vrot.lane.b32.xlu1 %v11475_v57, %s9940_s27 }
 0xb1e   :  { %3803 = vrot.lane.b32.xlu0 %v11477_v58, %s9940_s27 }
 0xb1f   :  { %3805 = vrot.lane.b32.xlu1 %v11479_v60, %s9940_s27 }
 0xb22   :  { %3841 = vrot.lane.b32.xlu0 %v11473_v51, %s9941_s28 }
 0xb23   :  { %3843 = vrot.lane.b32.xlu1 %v11475_v57, %s9941_s28 }
 0xb26   :  { %3845 = vrot.lane.b32.xlu0 %v11477_v58, %s9941_s28 }
 0xb27   :  { %3847 = vrot.lane.b32.xlu1 %v11479_v60, %s9941_s28 }
 0xb2a   :  { %3883 = vrot.lane.b32.xlu0 %v11473_v51, %s9943_s29 }
 0xb2b   :  { %3885 = vrot.lane.b32.xlu1 %v11475_v57, %s9943_s29 }
 0xb2e   :  { %3887 = vrot.lane.b32.xlu0 %v11477_v58, %s9943_s29 }
 0xb2f   :  { %3889 = vrot.lane.b32.xlu1 %v11479_v60, %s9943_s29 }
 0xb32   :  { %3987 = vperm.xlu0 %9933, %v9768_v3  }
 0xb64   :  { %v3586_v0 = vpop.permute.xlu0 %3585 }
 0xb65   :  { %v3588_v1 = vpop.permute.xlu1 %3587 }
 0xb66   :  { %v3595_v5 = vsel %vm32_vm0, %v3586_v0, %v3588_v1 }
 0xb67   :  { %v3620_v23 = vmul.f32 %v3606_v62, %v3595_v5 }
 0xb68   :  { %v3590_v61 = vpop.permute.xlu0 %3589 }
 0xb69   :  { %v3592_v13 = vpop.permute.xlu1 %3591  ;;  %v3594_v24 = vsel %vm32_vm0, %v3588_v1, %v3590_v61  ;;  %v3728_v1 = vrot.slane %v9762_v43, %v10071_v16 }
 0xb6a   :  { %v3593_v28 = vsel %vm32_vm0, %v3590_v61, %v3592_v13  ;;  %v3596_v22 = vsel %vm32_vm0, %v3592_v13, %v3586_v0  ;;  %v3621_v42 = vmul.f32 %v3610_v21, %v3594_v24  ;;  %v3694_v61 = vrot.slane %v9761_v32, %v10075_v18 }
 0xb6b   :  { %v3619_v30 = vmul.f32 %v3602_v15, %v3596_v22  ;;  %v3622_v40 = vmul.f32 %v3614_v14, %v3593_v28 }
 0xb6c   :  { %v3628_v8 = vpop.permute.xlu0 %3627 }
 0xb6d   :  { %v3630_v7 = vpop.permute.xlu1 %3629 }
 0xb6e   :  { %v3637_v12 = vsel %vm75_vm1, %v3628_v8, %v3630_v7 }
 0xb6f   :  { %v3662_v19 = vmul.f32 %v3648_v63, %v3637_v12 }
 0xb70   :  { %v3632_v31 = vpop.permute.xlu0 %3631 }
 0xb71   :  { %v3636_v33 = vsel %vm75_vm1, %v3630_v7, %v3632_v31  ;;  %v3634_v26 = vpop.permute.xlu1 %3633  ;;  %v3964_v27 = vpack.c.bf16 %v3662_v19, %v3620_v23 }
 0xb72   :  { %v3663_v36 = vmul.f32 %v3652_v9, %v3636_v33  ;;  %v3635_v29 = vsel %vm75_vm1, %v3632_v31, %v3634_v26  ;;  %v3638_v39 = vsel %vm75_vm1, %v3634_v26, %v3628_v8  ;;  %v9763_v9 = vld [vmem:[%s14037_s3 + $0x14] sm:$0xf] }
 0xb73   :  { %v3661_v34 = vmul.f32 %v3644_v25, %v3638_v39  ;;  %v3664_v35 = vmul.f32 %v3656_v20, %v3635_v29  ;;  %4005 = vmatprep.subr.bf16.mxu0 %v3964_v27  ;;  %v3774_v31 = vrot.slane %v9763_v9, %v10071_v16  ;;  %v3782_v29 = vrot.slane %v9763_v9, %v10075_v18 }
 0xb74   :  { %v3670_v37 = vpop.permute.xlu0 %3669  ;;  %v3965_v41 = vpack.c.bf16 %v3663_v36, %v3621_v42  ;;  %v3778_v36 = vrot.slane %v9763_v9, %v10062_v11  ;;  %v3786_v39 = vrot.slane %v9763_v9, %v10073_v17 }
 0xb75   :  { %v3963_v45 = vpack.c.bf16 %v3661_v34, %v3619_v30  ;;  %v3672_v38 = vpop.permute.xlu1 %3671  ;;  %v3966_v46 = vpack.c.bf16 %v3664_v35, %v3622_v40 }
 0xb76   :  { %v3679_v47 = vsel %vm119_vm2, %v3670_v37, %v3672_v38 }
 0xb77   :  { %4006 = vmatpush1.bf16.msra.mxu0 %v3963_v45  ;;  %4046 = vmatprep.subr.bf16.mxu1 %v3966_v46  ;;  %v3704_v3 = vmul.f32 %v3690_v44, %v3679_v47 }
 0xb78   :  { %4047 = vmatpush1.bf16.msra.mxu1 %v3965_v41  ;;  %v3674_v49 = vpop.permute.xlu0 %3673 }
 0xb79   :  { %v3676_v52 = vpop.permute.xlu1 %3675  ;;  %v3678_v63 = vsel %vm119_vm2, %v3672_v38, %v3674_v49 }
 0xb7a   :  { %v3677_v6 = vsel %vm119_vm2, %v3674_v49, %v3676_v52  ;;  %v3680_v13 = vsel %vm119_vm2, %v3676_v52, %v3670_v37  ;;  %v3705_v21 = vmul.f32 %v3694_v61, %v3678_v63 }
 0xb7b   :  { %v3703_v23 = vmul.f32 %v3686_v54, %v3680_v13  ;;  %v3706_v19 = vmul.f32 %v3698_v55, %v3677_v6 }
 0xb7c   :  { %v3712_v48 = vpop.permute.xlu0 %3711 }
 0xb7d   :  { %v3714_v50 = vpop.permute.xlu1 %3713 }
 0xb7e   :  { %v3721_v56 = vsel %vm163_vm3, %v3712_v48, %v3714_v50 }
 0xb7f   :  { %v3746_v0 = vmul.f32 %v3732_v53, %v3721_v56 }
 0xb80   :  { %v3716_v62 = vpop.permute.xlu0 %3715 }
 0xb81   :  { %v3720_v5 = vsel %vm163_vm3, %v3714_v50, %v3716_v62  ;;  %v3718_v8 = vpop.permute.xlu1 %3717  ;;  %v3968_v7 = vpack.c.bf16 %v3746_v0, %v3704_v3  ;;  %v9766_v0 = vld [vmem:[%s14037_s3 + $0x20] sm:$0xf] }
 0xb82   :  { %v3747_v15 = vmul.f32 %v3736_v59, %v3720_v5  ;;  %v3719_v14 = vsel %vm163_vm3, %v3716_v62, %v3718_v8  ;;  %v3722_v12 = vsel %vm163_vm3, %v3718_v8, %v3712_v48  ;;  %v9764_v48 = vld [vmem:[%s14037_s3 + $0x18] sm:$0xf] }
 0xb83   :  { %v3745_v25 = vmul.f32 %v3728_v1, %v3722_v12  ;;  %v3748_v20 = vmul.f32 %v3740_v2, %v3719_v14  ;;  %4007 = vmatprep.subr.bf16.mxu0 %v3968_v7  ;;  %v3820_v50 = vrot.slane %v9764_v48, %v10062_v11  ;;  %v3824_v56 = vrot.slane %v9764_v48, %v10075_v18 }
 0xb84   :  { %v3758_v28 = vpop.permute.xlu0 %3757  ;;  %v3969_v26 = vpack.c.bf16 %v3747_v15, %v3705_v21  ;;  %v3828_v2 = vrot.slane %v9764_v48, %v10073_v17  ;;  %v3900_v14 = vrot.slane %v9766_v0, %v10071_v16 }
 0xb85   :  { %v3967_v22 = vpack.c.bf16 %v3745_v25, %v3703_v23  ;;  %v3760_v24 = vpop.permute.xlu1 %3759  ;;  %v3970_v33 = vpack.c.bf16 %v3748_v20, %v3706_v19 }
 0xb86   :  { %v3767_v27 = vsel %vm211_vm4, %v3758_v28, %v3760_v24 }
 0xb87   :  { %4008 = vmatpush1.bf16.msra.mxu0 %v3967_v22  ;;  %4048 = vmatprep.subr.bf16.mxu1 %v3970_v33  ;;  %v3791_v40 = vmul.f32 %v3774_v31, %v3767_v27 }
 0xb88   :  { %4049 = vmatpush1.bf16.msra.mxu1 %v3969_v26  ;;  %v3762_v30 = vpop.permute.xlu0 %3761 }
 0xb89   :  { %v3766_v34 = vsel %vm211_vm4, %v3760_v24, %v3762_v30  ;;  %v3764_v35 = vpop.permute.xlu1 %3763  ;;  %v3971_v49 = vpack.c.bf16 %v3791_v40, %v11473_v51  ;;  %v3912_v40 = vrot.slane %v9766_v0, %v10073_v17 }
 0xb8a   :  { %v3792_v42 = vmul.f32 %v3778_v36, %v3766_v34  ;;  %v3765_v37 = vsel %vm211_vm4, %v3762_v30, %v3764_v35  ;;  %v3768_v45 = vsel %vm211_vm4, %v3764_v35, %v3758_v28  ;;  %v3908_v30 = vrot.slane %v9766_v0, %v10075_v18 }
 0xb8b   :  { %v3793_v38 = vmul.f32 %v3782_v29, %v3765_v37  ;;  %v3794_v46 = vmul.f32 %v3786_v39, %v3768_v45  ;;  %v3904_v29 = vrot.slane %v9766_v0, %v10062_v11 }
 0xb8c   :  { %v3800_v41 = vpop.permute.xlu0 %3799  ;;  %v3972_v32 = vpack.c.bf16 %v3792_v42, %v11475_v57  ;;  %v9765_v57 = vld [vmem:[%s14037_s3 + $0x1c] sm:$0xf] }
 0xb8d   :  { %v3973_v43 = vpack.c.bf16 %v3793_v38, %v11477_v58  ;;  %v3802_v52 = vpop.permute.xlu1 %3801  ;;  %v3974_v44 = vpack.c.bf16 %v3794_v46, %v11479_v60  ;;  %v3816_v58 = vrot.slane %v9764_v48, %v10071_v16  ;;  %v3858_v60 = vrot.slane %v9765_v57, %v10071_v16 }
 0xb8e   :  { %4009 = vmatprep.subr.bf16.mxu0 %v3972_v32  ;;  %v3809_v55 = vsel %vm255_vm6, %v3800_v41, %v3802_v52  ;;  %v3862_v3 = vrot.slane %v9765_v57, %v10062_v11  ;;  %v3866_v61 = vrot.slane %v9765_v57, %v10075_v18  ;;  %v3870_v6 = vrot.slane %v9765_v57, %v10073_v17 }
 0xb8f   :  { %4010 = vmatpush1.bf16.msra.mxu0 %v3971_v49  ;;  %4050 = vmatprep.subr.bf16.mxu1 %v3974_v44  ;;  %v3833_v5 = vmul.f32 %v3816_v58, %v3809_v55 }
 0xb90   :  { %4051 = vmatpush1.bf16.msra.mxu1 %v3973_v43  ;;  %v3804_v53 = vpop.permute.xlu0 %3803 }
 0xb91   :  { %v3806_v47 = vpop.permute.xlu1 %3805  ;;  %v3808_v1 = vsel %vm255_vm6, %v3802_v52, %v3804_v53 }
 0xb92   :  { %v3807_v13 = vsel %vm255_vm6, %v3804_v53, %v3806_v47  ;;  %v3810_v62 = vsel %vm255_vm6, %v3806_v47, %v3800_v41  ;;  %v3834_v12 = vmul.f32 %v3820_v50, %v3808_v1  ;;  %v9767_v47 = vld [vmem:[%s14038_s1 + $0x1c] sm:$0xf] }
 0xb93   :  { %v3835_v25 = vmul.f32 %v3824_v56, %v3807_v13  ;;  %v3836_v20 = vmul.f32 %v3828_v2, %v3810_v62  ;;  %v9781_v62 = vld [vmem:[%s14036_s2 + $0x40] sm:$0xff] }
 0xb94   :  { %v3842_v51 = vpop.permute.xlu0 %3841 }
 0xb95   :  { %v3844_v54 = vpop.permute.xlu1 %3843 }
 0xb96   :  { %v3851_v59 = vsel %vm299_vm5, %v3842_v51, %v3844_v54 }
 0xb97   :  { %v3875_v8 = vmul.f32 %v3858_v60, %v3851_v59 }
 0xb98   :  { %v3846_v63 = vpop.permute.xlu0 %3845 }
 0xb99   :  { %v3850_v7 = vsel %vm299_vm5, %v3844_v54, %v3846_v63  ;;  %v3848_v15 = vpop.permute.xlu1 %3847  ;;  %v3975_v24 = vpack.c.bf16 %v3875_v8, %v3833_v5  ;;  %v4103_v8 = vld [vmem:[%s14037_s3] sm:$0xf] }
 0xb9a   :  { %v3876_v9 = vmul.f32 %v3862_v3, %v3850_v7  ;;  %v3849_v23 = vsel %vm299_vm5, %v3846_v63, %v3848_v15  ;;  %v3852_v19 = vsel %vm299_vm5, %v3848_v15, %v3842_v51  ;;  %v9773_v15 = vld [vmem:[%s14037_s3 + $0x4] sm:$0xf] }
 0xb9b   :  { %v3877_v21 = vmul.f32 %v3866_v61, %v3849_v23  ;;  %v3878_v28 = vmul.f32 %v3870_v6, %v3852_v19 }
 0xb9c   :  { %v3884_v22 = vpop.permute.xlu0 %3883  ;;  %v3976_v31 = vpack.c.bf16 %v3876_v9, %v3834_v12  ;;  %v4112_v12 = vrot.slane %v4103_v8, %v10062_v11  ;;  %v4154_v9 = vrot.slane %v9773_v15, %v10062_v11 }
 0xb9d   :  { %v3977_v33 = vpack.c.bf16 %v3877_v21, %v3835_v25  ;;  %v3886_v26 = vpop.permute.xlu1 %3885  ;;  %v3978_v27 = vpack.c.bf16 %v3878_v28, %v3836_v20  ;;  %v4108_v20 = vrot.slane %v4103_v8, %v10071_v16  ;;  %v4120_v21 = vrot.slane %v4103_v8, %v10073_v17 }
 0xb9e   :  { %v3893_v36 = vsel %vm343_vm7, %v3884_v22, %v3886_v26  ;;  %4011 = vmatprep.subr.bf16.mxu0 %v3976_v31 }
 0xb9f   :  { %v3917_v39 = vmul.f32 %v3900_v14, %v3893_v36  ;;  %4012 = vmatpush1.bf16.msra.mxu0 %v3975_v24  ;;  %4052 = vmatprep.subr.bf16.mxu1 %v3978_v27  ;;  %v4116_v27 = vrot.slane %v4103_v8, %v10075_v18 }
 0xba0   :  { %4053 = vmatpush1.bf16.msra.mxu1 %v3977_v33  ;;  %v3888_v34 = vpop.permute.xlu0 %3887  ;;  %v4150_v33 = vrot.slane %v9773_v15, %v10071_v16 }
 0xba1   :  { %v3892_v35 = vsel %vm343_vm7, %v3886_v26, %v3888_v34  ;;  %v3890_v42 = vpop.permute.xlu1 %3889  ;;  %v3979_v37 = vpack.c.bf16 %v3917_v39, %v3917_v39  ;;  %v4162_v26 = vrot.slane %v9773_v15, %v10073_v17 }
 0xba2   :  { %v3918_v45 = vmul.f32 %v3904_v29, %v3892_v35  ;;  %v3891_v38 = vsel %vm343_vm7, %v3888_v34, %v3890_v42  ;;  %v3894_v46 = vsel %vm343_vm7, %v3890_v42, %v3884_v22  ;;  %v4158_v22 = vrot.slane %v9773_v15, %v10075_v18 }
 0xba3   :  { %v3919_v41 = vmul.f32 %v3908_v30, %v3891_v38  ;;  %v3920_v32 = vmul.f32 %v3912_v40, %v3894_v46  ;;  %v3994_v44 = vsel %vm446_vm8, %v3979_v37, 0 }
 0xba4   :  { %v3980_v49 = vpack.c.bf16 %v3918_v45, %v3918_v45 }
 0xba5   :  { %v3981_v43 = vpack.c.bf16 %v3919_v41, %v3919_v41  ;;  %v3982_v52 = vpack.c.bf16 %v3920_v32, %v3920_v32 }
 0xba6   :  { %9769 = vmatprep.subr.msk.bf16.mxu0 %vm446_vm8, %v3980_v49 }
 0xba7   :  { %4014 = vmatpush1.bf16.msra.mxu0 %v3994_v44  ;;  %9771 = vmatprep.subr.msk.bf16.mxu1 %vm446_vm8, %v3982_v52  ;;  %v4000_v53 = vsel %vm446_vm8, %v3981_v43, 0 }
 0xba8   :  { %4055 = vmatpush1.bf16.msra.mxu1 %v4000_v53 }
 0xbaa   :  { %9770 = vmatmul.mubr.msk.bf16.vlgmr.msra.gmra.mrb[28].mxu0 %vm442_vm9, %v9767_v47 }
 0xbab   :  { %9772 = vmatmul.mubr.msk.bf16.vlgmr.msra.gmra.mrb[28].mxu1 %vm442_vm9, %v9767_v47  ;;  %4543 = vmatprep.mubr.bf16.mxu0 %v9942_v4 }
 0xbac   :  { %4584 = vmatprep.mubr.bf16.mxu1 %v9942_v4 }
 0xbb1   :  { %v3988_v48 = vpop.permute.xlu0 %3987 }
 0xc7d   :  { %v4039_v57 = vpop.f32.mrb[28].mxu0 }
 0xc7e   :  { %v4040_v51 = vadd.f32 %v4039_v57, %v3988_v48  ;;  %v4041_v58 = vpop.f32.mrb[29].mxu0  ;;  %v4080_v50 = vpop.f32.mrb[28].mxu1 }
 0xc7f   :  { %v4042_v60 = vadd.f32 %v4041_v58, %v3988_v48  ;;  %v4043_v54 = vpop.f32.mrb[30].mxu0  ;;  %v4082_v55 = vpop.f32.mrb[29].mxu1  ;;  %v4081_v59 = vadd.f32 %v4080_v50, %v3988_v48 }
 0xc80   :  { %v11699_v56 = vmax.f32 %v4040_v51, 0.0  ;;  %v4044_v3 = vpop.f32.mrb[31].mxu0  ;;  %v4084_v0 = vpop.f32.mrb[30].mxu1  ;;  %v4083_v2 = vadd.f32 %v4082_v55, %v3988_v48  ;;  %v9774_v48 = vld [vmem:[%s14037_s3 + $0x8] sm:$0xf] }
 0xc81   :  { %v11701_v1 = vmax.f32 %v4042_v60, 0.0  ;;  %v4085_v61 = vpop.f32.mrb[31].mxu1  ;;  %v11707_v6 = vmax.f32 %v4081_v59, 0.0  ;;  %v9775_v51 = vld [vmem:[%s14037_s3 + $0xc] sm:$0xf]  ;;  %v4196_v50 = vrot.slane %v9774_v48, %v10062_v11  ;;  %v4192_v3 = vrot.slane %v9774_v48, %v10071_v16 }
 0xc82   :  { %4091 = vrot.lane.b32.xlu1 %v11699_v56, %s9935_s19  ;;  %v11709_v13 = vmax.f32 %v4083_v2, 0.0  ;;  %v4238_v60 = vrot.slane %v9775_v51, %v10062_v11  ;;  %v4204_v0 = vrot.slane %v9774_v48, %v10073_v17  ;;  %v4242_v61 = vrot.slane %v9775_v51, %v10075_v18 }
 0xc83   :  { %4093 = vrot.lane.b32.xlu0 %v11701_v1, %s9935_s19  ;;  %v4246_v8 = vrot.slane %v9775_v51, %v10073_v17 }
 0xc86   :  { %4095 = vrot.lane.b32.xlu1 %v11707_v6, %s9935_s19 }
 0xc87   :  { %4097 = vrot.lane.b32.xlu0 %v11709_v13, %s9935_s19 }
 0xc8a   :  { %4133 = vrot.lane.b32.xlu1 %v11699_v56, %s9936_s24 }
 0xc8b   :  { %4135 = vrot.lane.b32.xlu0 %v11701_v1, %s9936_s24 }
 0xc8e   :  { %4137 = vrot.lane.b32.xlu1 %v11707_v6, %s9936_s24 }
 0xc8f   :  { %4139 = vrot.lane.b32.xlu0 %v11709_v13, %s9936_s24 }
 0xc92   :  { %4175 = vrot.lane.b32.xlu1 %v11699_v56, %s9937_s0 }
 0xc93   :  { %4177 = vrot.lane.b32.xlu0 %v11701_v1, %s9937_s0 }
 0xc96   :  { %4179 = vrot.lane.b32.xlu1 %v11707_v6, %s9937_s0 }
 0xc97   :  { %4181 = vrot.lane.b32.xlu0 %v11709_v13, %s9937_s0 }
 0xc9a   :  { %4217 = vrot.lane.b32.xlu1 %v11699_v56, %s9938_s25 }
 0xc9b   :  { %4219 = vrot.lane.b32.xlu0 %v11701_v1, %s9938_s25 }
 0xc9e   :  { %4221 = vrot.lane.b32.xlu1 %v11707_v6, %s9938_s25 }
 0xc9f   :  { %4223 = vrot.lane.b32.xlu0 %v11709_v13, %s9938_s25 }
 0xca2   :  { %4263 = vrot.lane.b32.xlu1 %v11699_v56, %s9939_s26 }
 0xca3   :  { %4265 = vrot.lane.b32.xlu0 %v11701_v1, %s9939_s26 }
 0xca6   :  { %4267 = vrot.lane.b32.xlu1 %v11707_v6, %s9939_s26 }
 0xca7   :  { %4269 = vrot.lane.b32.xlu0 %v11709_v13, %s9939_s26 }
 0xcaa   :  { %4305 = vrot.lane.b32.xlu1 %v11699_v56, %s9940_s27 }
 0xcab   :  { %4307 = vrot.lane.b32.xlu0 %v11701_v1, %s9940_s27 }
 0xcae   :  { %4309 = vrot.lane.b32.xlu1 %v11707_v6, %s9940_s27 }
 0xcaf   :  { %4311 = vrot.lane.b32.xlu0 %v11709_v13, %s9940_s27 }
 0xcb2   :  { %4347 = vrot.lane.b32.xlu1 %v11699_v56, %s9941_s28 }
 0xcb3   :  { %4349 = vrot.lane.b32.xlu0 %v11701_v1, %s9941_s28 }
 0xcb6   :  { %4351 = vrot.lane.b32.xlu1 %v11707_v6, %s9941_s28 }
 0xcb7   :  { %4353 = vrot.lane.b32.xlu0 %v11709_v13, %s9941_s28 }
 0xcba   :  { %4389 = vrot.lane.b32.xlu1 %v11699_v56, %s9943_s29 }
 0xcbb   :  { %4391 = vrot.lane.b32.xlu0 %v11701_v1, %s9943_s29 }
 0xcbe   :  { %4393 = vrot.lane.b32.xlu1 %v11707_v6, %s9943_s29 }
 0xcbf   :  { %4395 = vrot.lane.b32.xlu0 %v11709_v13, %s9943_s29 }
 0xcc2   :  { %4493 = vperm.xlu1 %9934, %v9781_v62  }
 0xcf4   :  { %v4092_v63 = vpop.permute.xlu1 %4091 }
 0xcf5   :  { %v4094_v5 = vpop.permute.xlu0 %4093 }
 0xcf6   :  { %v4101_v23 = vsel %vm32_vm0, %v4092_v63, %v4094_v5 }
 0xcf7   :  { %v4126_v31 = vmul.f32 %v4112_v12, %v4101_v23 }
 0xcf8   :  { %v4096_v7 = vpop.permute.xlu1 %4095 }
 0xcf9   :  { %v4098_v14 = vpop.permute.xlu0 %4097  ;;  %v4100_v30 = vsel %vm32_vm0, %v4094_v5, %v4096_v7  ;;  %v4234_v5 = vrot.slane %v9775_v51, %v10071_v16 }
 0xcfa   :  { %v4099_v36 = vsel %vm32_vm0, %v4096_v7, %v4098_v14  ;;  %v4102_v29 = vsel %vm32_vm0, %v4098_v14, %v4092_v63  ;;  %v4127_v49 = vmul.f32 %v4116_v27, %v4100_v30  ;;  %v4200_v7 = vrot.slane %v9774_v48, %v10075_v18 }
 0xcfb   :  { %v4125_v38 = vmul.f32 %v4108_v20, %v4102_v29  ;;  %v4128_v46 = vmul.f32 %v4120_v21, %v4099_v36 }
 0xcfc   :  { %v4134_v19 = vpop.permute.xlu1 %4133 }
 0xcfd   :  { %v4136_v25 = vpop.permute.xlu0 %4135 }
 0xcfe   :  { %v4143_v28 = vsel %vm75_vm1, %v4134_v19, %v4136_v25 }
 0xcff   :  { %v4168_v24 = vmul.f32 %v4154_v9, %v4143_v28 }
 0xd00   :  { %v4138_v39 = vpop.permute.xlu1 %4137 }
 0xd01   :  { %v4142_v40 = vsel %vm75_vm1, %v4136_v25, %v4138_v39  ;;  %v4140_v34 = vpop.permute.xlu0 %4139  ;;  %v4470_v35 = vpack.c.bf16 %v4168_v24, %v4126_v31 }
 0xd02   :  { %v4169_v42 = vmul.f32 %v4158_v22, %v4142_v40  ;;  %v4141_v37 = vsel %vm75_vm1, %v4138_v39, %v4140_v34  ;;  %v4144_v45 = vsel %vm75_vm1, %v4140_v34, %v4134_v19  ;;  %v9776_v22 = vld [vmem:[%s14037_s3 + $0x14] sm:$0xf] }
 0xd03   :  { %v4167_v41 = vmul.f32 %v4150_v33, %v4144_v45  ;;  %v4170_v32 = vmul.f32 %v4162_v26, %v4141_v37  ;;  %4511 = vmatprep.subr.bf16.mxu0 %v4470_v35  ;;  %v4280_v39 = vrot.slane %v9776_v22, %v10071_v16  ;;  %v4288_v37 = vrot.slane %v9776_v22, %v10075_v18 }
 0xd04   :  { %v4176_v43 = vpop.permute.xlu1 %4175  ;;  %v4471_v47 = vpack.c.bf16 %v4169_v42, %v4127_v49  ;;  %v4284_v42 = vrot.slane %v9776_v22, %v10062_v11  ;;  %v4292_v45 = vrot.slane %v9776_v22, %v10073_v17 }
 0xd05   :  { %v4469_v52 = vpack.c.bf16 %v4167_v41, %v4125_v38  ;;  %v4178_v44 = vpop.permute.xlu0 %4177  ;;  %v4472_v53 = vpack.c.bf16 %v4170_v32, %v4128_v46 }
 0xd06   :  { %v4185_v54 = vsel %vm119_vm2, %v4176_v43, %v4178_v44 }
 0xd07   :  { %4512 = vmatpush1.bf16.msra.mxu0 %v4469_v52  ;;  %4552 = vmatprep.subr.bf16.mxu1 %v4472_v53  ;;  %v4210_v62 = vmul.f32 %v4196_v50, %v4185_v54 }
 0xd08   :  { %4553 = vmatpush1.bf16.msra.mxu1 %v4471_v47  ;;  %v4180_v57 = vpop.permute.xlu1 %4179 }
 0xd09   :  { %v4182_v58 = vpop.permute.xlu0 %4181  ;;  %v4184_v9 = vsel %vm119_vm2, %v4178_v44, %v4180_v57 }
 0xd0a   :  { %v4183_v15 = vsel %vm119_vm2, %v4180_v57, %v4182_v58  ;;  %v4186_v14 = vsel %vm119_vm2, %v4182_v58, %v4176_v43  ;;  %v4211_v27 = vmul.f32 %v4200_v7, %v4184_v9 }
 0xd0b   :  { %v4209_v31 = vmul.f32 %v4192_v3, %v4186_v14  ;;  %v4212_v24 = vmul.f32 %v4204_v0, %v4183_v15 }
 0xd0c   :  { %v4218_v55 = vpop.permute.xlu1 %4217 }
 0xd0d   :  { %v4220_v59 = vpop.permute.xlu0 %4219 }
 0xd0e   :  { %v4227_v2 = vsel %vm163_vm3, %v4218_v55, %v4220_v59 }
 0xd0f   :  { %v4252_v63 = vmul.f32 %v4238_v60, %v4227_v2 }
 0xd10   :  { %v4222_v12 = vpop.permute.xlu1 %4221 }
 0xd11   :  { %v4226_v23 = vsel %vm163_vm3, %v4220_v59, %v4222_v12  ;;  %v4224_v19 = vpop.permute.xlu0 %4223  ;;  %v4474_v25 = vpack.c.bf16 %v4252_v63, %v4210_v62  ;;  %v9779_v63 = vld [vmem:[%s14037_s3 + $0x20] sm:$0xf] }
 0xd12   :  { %v4253_v20 = vmul.f32 %v4242_v61, %v4226_v23  ;;  %v4225_v21 = vsel %vm163_vm3, %v4222_v12, %v4224_v19  ;;  %v4228_v28 = vsel %vm163_vm3, %v4224_v19, %v4218_v55  ;;  %v9777_v55 = vld [vmem:[%s14037_s3 + $0x18] sm:$0xf] }
 0xd13   :  { %v4251_v33 = vmul.f32 %v4234_v5, %v4228_v28  ;;  %v4254_v26 = vmul.f32 %v4246_v8, %v4225_v21  ;;  %4513 = vmatprep.subr.bf16.mxu0 %v4474_v25  ;;  %v4326_v59 = vrot.slane %v9777_v55, %v10062_v11  ;;  %v4330_v2 = vrot.slane %v9777_v55, %v10075_v18 }
 0xd14   :  { %v4264_v36 = vpop.permute.xlu1 %4263  ;;  %v4475_v34 = vpack.c.bf16 %v4253_v20, %v4211_v27  ;;  %v4334_v8 = vrot.slane %v9777_v55, %v10073_v17  ;;  %v4406_v21 = vrot.slane %v9779_v63, %v10071_v16 }
 0xd15   :  { %v4473_v29 = vpack.c.bf16 %v4251_v33, %v4209_v31  ;;  %v4266_v30 = vpop.permute.xlu0 %4265  ;;  %v4476_v40 = vpack.c.bf16 %v4254_v26, %v4212_v24 }
 0xd16   :  { %v4273_v35 = vsel %vm211_vm4, %v4264_v36, %v4266_v30 }
 0xd17   :  { %4514 = vmatpush1.bf16.msra.mxu0 %v4473_v29  ;;  %4554 = vmatprep.subr.bf16.mxu1 %v4476_v40  ;;  %v4297_v46 = vmul.f32 %v4280_v39, %v4273_v35 }
 0xd18   :  { %4555 = vmatpush1.bf16.msra.mxu1 %v4475_v34  ;;  %v4268_v38 = vpop.permute.xlu1 %4267 }
 0xd19   :  { %v4272_v41 = vsel %vm211_vm4, %v4266_v30, %v4268_v38  ;;  %v4270_v32 = vpop.permute.xlu0 %4269  ;;  %v4477_v57 = vpack.c.bf16 %v4297_v46, %v11699_v56  ;;  %v4418_v46 = vrot.slane %v9779_v63, %v10073_v17 }
 0xd1a   :  { %v4298_v49 = vmul.f32 %v4284_v42, %v4272_v41  ;;  %v4271_v43 = vsel %vm211_vm4, %v4268_v38, %v4270_v32  ;;  %v4274_v52 = vsel %vm211_vm4, %v4270_v32, %v4264_v36  ;;  %v4414_v38 = vrot.slane %v9779_v63, %v10075_v18 }
 0xd1b   :  { %v4299_v44 = vmul.f32 %v4288_v37, %v4271_v43  ;;  %v4300_v53 = vmul.f32 %v4292_v45, %v4274_v52  ;;  %v4410_v37 = vrot.slane %v9779_v63, %v10062_v11 }
 0xd1c   :  { %v4306_v47 = vpop.permute.xlu1 %4305  ;;  %v4478_v48 = vpack.c.bf16 %v4298_v49, %v11701_v1  ;;  %v9778_v1 = vld [vmem:[%s14037_s3 + $0x1c] sm:$0xf] }
 0xd1d   :  { %v4479_v51 = vpack.c.bf16 %v4299_v44, %v11707_v6  ;;  %v4308_v58 = vpop.permute.xlu0 %4307  ;;  %v4480_v50 = vpack.c.bf16 %v4300_v53, %v11709_v13  ;;  %v4322_v6 = vrot.slane %v9777_v55, %v10071_v16  ;;  %v4364_v13 = vrot.slane %v9778_v1, %v10071_v16 }
 0xd1e   :  { %4515 = vmatprep.subr.bf16.mxu0 %v4478_v48  ;;  %v4315_v0 = vsel %vm255_vm6, %v4306_v47, %v4308_v58  ;;  %v4368_v62 = vrot.slane %v9778_v1, %v10062_v11  ;;  %v4372_v7 = vrot.slane %v9778_v1, %v10075_v18  ;;  %v4376_v15 = vrot.slane %v9778_v1, %v10073_v17 }
 0xd1f   :  { %4516 = vmatpush1.bf16.msra.mxu0 %v4477_v57  ;;  %4556 = vmatprep.subr.bf16.mxu1 %v4480_v50  ;;  %v4339_v23 = vmul.f32 %v4322_v6, %v4315_v0 }
 0xd20   :  { %4557 = vmatpush1.bf16.msra.mxu1 %v4479_v51  ;;  %v4310_v60 = vpop.permute.xlu1 %4309 }
 0xd21   :  { %v4312_v54 = vpop.permute.xlu0 %4311  ;;  %v4314_v5 = vsel %vm255_vm6, %v4308_v58, %v4310_v60 }
 0xd22   :  { %v4313_v14 = vsel %vm255_vm6, %v4310_v60, %v4312_v54  ;;  %v4316_v12 = vsel %vm255_vm6, %v4312_v54, %v4306_v47  ;;  %v4340_v28 = vmul.f32 %v4326_v59, %v4314_v5  ;;  %v9780_v54 = vld [vmem:[%s14038_s1 + $0x20] sm:$0xf] }
 0xd23   :  { %v4341_v33 = vmul.f32 %v4330_v2, %v4313_v14  ;;  %v4342_v26 = vmul.f32 %v4334_v8, %v4316_v12  ;;  %v9794_v12 = vld [vmem:[%s14036_s2 + $0x48] sm:$0xff] }
 0xd24   :  { %v4348_v56 = vpop.permute.xlu1 %4347 }
 0xd25   :  { %v4350_v3 = vpop.permute.xlu0 %4349 }
 0xd26   :  { %v4357_v61 = vsel %vm299_vm5, %v4348_v56, %v4350_v3 }
 0xd27   :  { %v4381_v19 = vmul.f32 %v4364_v13, %v4357_v61 }
 0xd28   :  { %v4352_v9 = vpop.permute.xlu1 %4351 }
 0xd29   :  { %v4356_v25 = vsel %vm299_vm5, %v4350_v3, %v4352_v9  ;;  %v4354_v20 = vpop.permute.xlu0 %4353  ;;  %v4481_v30 = vpack.c.bf16 %v4381_v19, %v4339_v23  ;;  %v4609_v19 = vld [vmem:[%s14037_s3] sm:$0xf] }
 0xd2a   :  { %v4382_v22 = vmul.f32 %v4368_v62, %v4356_v25  ;;  %v4355_v31 = vsel %vm299_vm5, %v4352_v9, %v4354_v20  ;;  %v4358_v24 = vsel %vm299_vm5, %v4354_v20, %v4348_v56  ;;  %v9786_v20 = vld [vmem:[%s14037_s3 + $0x4] sm:$0xf] }
 0xd2b   :  { %v4383_v27 = vmul.f32 %v4372_v7, %v4355_v31  ;;  %v4384_v36 = vmul.f32 %v4376_v15, %v4358_v24 }
 0xd2c   :  { %v4390_v29 = vpop.permute.xlu1 %4389  ;;  %v4482_v39 = vpack.c.bf16 %v4382_v22, %v4340_v28  ;;  %v4618_v28 = vrot.slane %v4609_v19, %v10062_v11  ;;  %v4660_v22 = vrot.slane %v9786_v20, %v10062_v11 }
 0xd2d   :  { %v4483_v40 = vpack.c.bf16 %v4383_v27, %v4341_v33  ;;  %v4392_v34 = vpop.permute.xlu0 %4391  ;;  %v4484_v35 = vpack.c.bf16 %v4384_v36, %v4342_v26  ;;  %v4614_v26 = vrot.slane %v4609_v19, %v10071_v16  ;;  %v4626_v27 = vrot.slane %v4609_v19, %v10073_v17 }
 0xd2e   :  { %v4399_v42 = vsel %vm343_vm7, %v4390_v29, %v4392_v34  ;;  %4517 = vmatprep.subr.bf16.mxu0 %v4482_v39 }
 0xd2f   :  { %v4423_v45 = vmul.f32 %v4406_v21, %v4399_v42  ;;  %4518 = vmatpush1.bf16.msra.mxu0 %v4481_v30  ;;  %4558 = vmatprep.subr.bf16.mxu1 %v4484_v35  ;;  %v4622_v35 = vrot.slane %v4609_v19, %v10075_v18 }
 0xd30   :  { %4559 = vmatpush1.bf16.msra.mxu1 %v4483_v40  ;;  %v4394_v41 = vpop.permute.xlu1 %4393  ;;  %v4656_v40 = vrot.slane %v9786_v20, %v10071_v16 }
 0xd31   :  { %v4398_v32 = vsel %vm343_vm7, %v4392_v34, %v4394_v41  ;;  %v4396_v49 = vpop.permute.xlu0 %4395  ;;  %v4485_v43 = vpack.c.bf16 %v4423_v45, %v4423_v45  ;;  %v4668_v34 = vrot.slane %v9786_v20, %v10073_v17 }
 0xd32   :  { %v4424_v52 = vmul.f32 %v4410_v37, %v4398_v32  ;;  %v4397_v44 = vsel %vm343_vm7, %v4394_v41, %v4396_v49  ;;  %v4400_v53 = vsel %vm343_vm7, %v4396_v49, %v4390_v29  ;;  %v4664_v29 = vrot.slane %v9786_v20, %v10075_v18 }
 0xd33   :  { %v4425_v47 = vmul.f32 %v4414_v38, %v4397_v44  ;;  %v4426_v48 = vmul.f32 %v4418_v46, %v4400_v53  ;;  %v4500_v50 = vsel %vm446_vm8, %v4485_v43, 0 }
 0xd34   :  { %v4486_v57 = vpack.c.bf16 %v4424_v52, %v4424_v52 }
 0xd35   :  { %v4487_v51 = vpack.c.bf16 %v4425_v47, %v4425_v47  ;;  %v4488_v58 = vpack.c.bf16 %v4426_v48, %v4426_v48 }
 0xd36   :  { %9782 = vmatprep.subr.msk.bf16.mxu0 %vm446_vm8, %v4486_v57 }
 0xd37   :  { %4520 = vmatpush1.bf16.msra.mxu0 %v4500_v50  ;;  %9784 = vmatprep.subr.msk.bf16.mxu1 %vm446_vm8, %v4488_v58  ;;  %v4506_v60 = vsel %vm446_vm8, %v4487_v51, 0 }
 0xd38   :  { %4561 = vmatpush1.bf16.msra.mxu1 %v4506_v60 }
 0xd3a   :  { %9783 = vmatmul.mubr.msk.bf16.vlgmr.msra.gmra.mrb[32].mxu0 %vm442_vm9, %v9780_v54 }
 0xd3b   :  { %9785 = vmatmul.mubr.msk.bf16.vlgmr.msra.gmra.mrb[32].mxu1 %vm442_vm9, %v9780_v54  ;;  %5049 = vmatprep.mubr.bf16.mxu0 %v9942_v4 }
 0xd3c   :  { %5090 = vmatprep.mubr.bf16.mxu1 %v9942_v4 }
 0xd41   :  { %v4494_v55 = vpop.permute.xlu1 %4493 }
 0xe0d   :  { %v4545_v1 = vpop.f32.mrb[32].mxu0 }
 0xe0e   :  { %v4546_v56 = vadd.f32 %v4545_v1, %v4494_v55  ;;  %v4547_v6 = vpop.f32.mrb[33].mxu0  ;;  %v4586_v59 = vpop.f32.mrb[32].mxu1 }
 0xe0f   :  { %v4548_v13 = vadd.f32 %v4547_v6, %v4494_v55  ;;  %v4549_v3 = vpop.f32.mrb[34].mxu0  ;;  %v4588_v0 = vpop.f32.mrb[33].mxu1  ;;  %v4587_v61 = vadd.f32 %v4586_v59, %v4494_v55 }
 0xe10   :  { %v11909_v2 = vmax.f32 %v4546_v56, 0.0  ;;  %v4550_v62 = vpop.f32.mrb[35].mxu0  ;;  %v4590_v63 = vpop.f32.mrb[34].mxu1  ;;  %v4589_v8 = vadd.f32 %v4588_v0, %v4494_v55  ;;  %v9787_v55 = vld [vmem:[%s14037_s3 + $0x8] sm:$0xf] }
 0xe11   :  { %v11911_v5 = vmax.f32 %v4548_v13, 0.0  ;;  %v4591_v7 = vpop.f32.mrb[35].mxu1  ;;  %v11917_v15 = vmax.f32 %v4587_v61, 0.0  ;;  %v9788_v56 = vld [vmem:[%s14037_s3 + $0xc] sm:$0xf]  ;;  %v4702_v59 = vrot.slane %v9787_v55, %v10062_v11  ;;  %v4698_v62 = vrot.slane %v9787_v55, %v10071_v16 }
 0xe12   :  { %4597 = vrot.lane.b32.xlu0 %v11909_v2, %s9935_s19  ;;  %v11919_v14 = vmax.f32 %v4589_v8, 0.0  ;;  %v4744_v13 = vrot.slane %v9788_v56, %v10062_v11  ;;  %v4710_v63 = vrot.slane %v9787_v55, %v10073_v17  ;;  %v4748_v7 = vrot.slane %v9788_v56, %v10075_v18 }
 0xe13   :  { %4599 = vrot.lane.b32.xlu1 %v11911_v5, %s9935_s19  ;;  %v4752_v19 = vrot.slane %v9788_v56, %v10073_v17 }
 0xe16   :  { %4601 = vrot.lane.b32.xlu0 %v11917_v15, %s9935_s19 }
 0xe17   :  { %4603 = vrot.lane.b32.xlu1 %v11919_v14, %s9935_s19 }
 0xe1a   :  { %4639 = vrot.lane.b32.xlu0 %v11909_v2, %s9936_s24 }
 0xe1b   :  { %4641 = vrot.lane.b32.xlu1 %v11911_v5, %s9936_s24 }
 0xe1e   :  { %4643 = vrot.lane.b32.xlu0 %v11917_v15, %s9936_s24 }
 0xe1f   :  { %4645 = vrot.lane.b32.xlu1 %v11919_v14, %s9936_s24 }
 0xe22   :  { %4681 = vrot.lane.b32.xlu0 %v11909_v2, %s9937_s0 }
 0xe23   :  { %4683 = vrot.lane.b32.xlu1 %v11911_v5, %s9937_s0 }
 0xe26   :  { %4685 = vrot.lane.b32.xlu0 %v11917_v15, %s9937_s0 }
 0xe27   :  { %4687 = vrot.lane.b32.xlu1 %v11919_v14, %s9937_s0 }
 0xe2a   :  { %4723 = vrot.lane.b32.xlu0 %v11909_v2, %s9938_s25 }
 0xe2b   :  { %4725 = vrot.lane.b32.xlu1 %v11911_v5, %s9938_s25 }
 0xe2e   :  { %4727 = vrot.lane.b32.xlu0 %v11917_v15, %s9938_s25 }
 0xe2f   :  { %4729 = vrot.lane.b32.xlu1 %v11919_v14, %s9938_s25 }
 0xe32   :  { %4769 = vrot.lane.b32.xlu0 %v11909_v2, %s9939_s26 }
 0xe33   :  { %4771 = vrot.lane.b32.xlu1 %v11911_v5, %s9939_s26 }
 0xe36   :  { %4773 = vrot.lane.b32.xlu0 %v11917_v15, %s9939_s26 }
 0xe37   :  { %4775 = vrot.lane.b32.xlu1 %v11919_v14, %s9939_s26 }
 0xe3a   :  { %4811 = vrot.lane.b32.xlu0 %v11909_v2, %s9940_s27 }
 0xe3b   :  { %4813 = vrot.lane.b32.xlu1 %v11911_v5, %s9940_s27 }
 0xe3e   :  { %4815 = vrot.lane.b32.xlu0 %v11917_v15, %s9940_s27 }
 0xe3f   :  { %4817 = vrot.lane.b32.xlu1 %v11919_v14, %s9940_s27 }
 0xe42   :  { %4853 = vrot.lane.b32.xlu0 %v11909_v2, %s9941_s28 }
 0xe43   :  { %4855 = vrot.lane.b32.xlu1 %v11911_v5, %s9941_s28 }
 0xe46   :  { %4857 = vrot.lane.b32.xlu0 %v11917_v15, %s9941_s28 }
 0xe47   :  { %4859 = vrot.lane.b32.xlu1 %v11919_v14, %s9941_s28 }
 0xe4a   :  { %4895 = vrot.lane.b32.xlu0 %v11909_v2, %s9943_s29 }
 0xe4b   :  { %4897 = vrot.lane.b32.xlu1 %v11911_v5, %s9943_s29 }
 0xe4e   :  { %4899 = vrot.lane.b32.xlu0 %v11917_v15, %s9943_s29 }
 0xe4f   :  { %4901 = vrot.lane.b32.xlu1 %v11919_v14, %s9943_s29 }
 0xe52   :  { %4999 = vperm.xlu0 %9933, %v9794_v12  }
 0xe84   :  { %v4598_v9 = vpop.permute.xlu0 %4597 }
 0xe85   :  { %v4600_v23 = vpop.permute.xlu1 %4599 }
 0xe86   :  { %v4607_v31 = vsel %vm32_vm0, %v4598_v9, %v4600_v23 }
 0xe87   :  { %v4632_v39 = vmul.f32 %v4618_v28, %v4607_v31 }
 0xe88   :  { %v4602_v25 = vpop.permute.xlu0 %4601 }
 0xe89   :  { %v4604_v21 = vpop.permute.xlu1 %4603  ;;  %v4606_v38 = vsel %vm32_vm0, %v4600_v23, %v4602_v25  ;;  %v4740_v23 = vrot.slane %v9788_v56, %v10071_v16 }
 0xe8a   :  { %v4605_v42 = vsel %vm32_vm0, %v4602_v25, %v4604_v21  ;;  %v4608_v37 = vsel %vm32_vm0, %v4604_v21, %v4598_v9  ;;  %v4633_v57 = vmul.f32 %v4622_v35, %v4606_v38  ;;  %v4706_v25 = vrot.slane %v9787_v55, %v10075_v18 }
 0xe8b   :  { %v4631_v44 = vmul.f32 %v4614_v26, %v4608_v37  ;;  %v4634_v53 = vmul.f32 %v4626_v27, %v4605_v42 }
 0xe8c   :  { %v4640_v24 = vpop.permute.xlu0 %4639 }
 0xe8d   :  { %v4642_v33 = vpop.permute.xlu1 %4641 }
 0xe8e   :  { %v4649_v36 = vsel %vm75_vm1, %v4640_v24, %v4642_v33 }
 0xe8f   :  { %v4674_v30 = vmul.f32 %v4660_v22, %v4649_v36 }
 0xe90   :  { %v4644_v45 = vpop.permute.xlu0 %4643 }
 0xe91   :  { %v4648_v46 = vsel %vm75_vm1, %v4642_v33, %v4644_v45  ;;  %v4646_v41 = vpop.permute.xlu1 %4645  ;;  %v4976_v32 = vpack.c.bf16 %v4674_v30, %v4632_v39 }
 0xe92   :  { %v4675_v49 = vmul.f32 %v4664_v29, %v4648_v46  ;;  %v4647_v43 = vsel %vm75_vm1, %v4644_v45, %v4646_v41  ;;  %v4650_v52 = vsel %vm75_vm1, %v4646_v41, %v4640_v24  ;;  %v9789_v29 = vld [vmem:[%s14037_s3 + $0x14] sm:$0xf] }
 0xe93   :  { %v4673_v47 = vmul.f32 %v4656_v40, %v4650_v52  ;;  %v4676_v48 = vmul.f32 %v4668_v34, %v4647_v43  ;;  %5017 = vmatprep.subr.bf16.mxu0 %v4976_v32  ;;  %v4786_v45 = vrot.slane %v9789_v29, %v10071_v16  ;;  %v4794_v43 = vrot.slane %v9789_v29, %v10075_v18 }
 0xe94   :  { %v4682_v51 = vpop.permute.xlu0 %4681  ;;  %v4977_v54 = vpack.c.bf16 %v4675_v49, %v4633_v57  ;;  %v4790_v49 = vrot.slane %v9789_v29, %v10062_v11  ;;  %v4798_v52 = vrot.slane %v9789_v29, %v10073_v17 }
 0xe95   :  { %v4975_v58 = vpack.c.bf16 %v4673_v47, %v4631_v44  ;;  %v4684_v50 = vpop.permute.xlu1 %4683  ;;  %v4978_v60 = vpack.c.bf16 %v4676_v48, %v4634_v53 }
 0xe96   :  { %v4691_v3 = vsel %vm119_vm2, %v4682_v51, %v4684_v50 }
 0xe97   :  { %5018 = vmatpush1.bf16.msra.mxu0 %v4975_v58  ;;  %5058 = vmatprep.subr.bf16.mxu1 %v4978_v60  ;;  %v4716_v12 = vmul.f32 %v4702_v59, %v4691_v3 }
 0xe98   :  { %5059 = vmatpush1.bf16.msra.mxu1 %v4977_v54  ;;  %v4686_v1 = vpop.permute.xlu0 %4685 }
 0xe99   :  { %v4688_v6 = vpop.permute.xlu1 %4687  ;;  %v4690_v22 = vsel %vm119_vm2, %v4684_v50, %v4686_v1 }
 0xe9a   :  { %v4689_v20 = vsel %vm119_vm2, %v4686_v1, %v4688_v6  ;;  %v4692_v21 = vsel %vm119_vm2, %v4688_v6, %v4682_v51  ;;  %v4717_v35 = vmul.f32 %v4706_v25, %v4690_v22 }
 0xe9b   :  { %v4715_v39 = vmul.f32 %v4698_v62, %v4692_v21  ;;  %v4718_v30 = vmul.f32 %v4710_v63, %v4689_v20 }
 0xe9c   :  { %v4724_v0 = vpop.permute.xlu0 %4723 }
 0xe9d   :  { %v4726_v61 = vpop.permute.xlu1 %4725 }
 0xe9e   :  { %v4733_v8 = vsel %vm163_vm3, %v4724_v0, %v4726_v61 }
 0xe9f   :  { %v4758_v9 = vmul.f32 %v4744_v13, %v4733_v8 }
 0xea0   :  { %v4728_v28 = vpop.permute.xlu0 %4727 }
 0xea1   :  { %v4732_v31 = vsel %vm163_vm3, %v4726_v61, %v4728_v28  ;;  %v4730_v24 = vpop.permute.xlu1 %4729  ;;  %v4980_v33 = vpack.c.bf16 %v4758_v9, %v4716_v12  ;;  %v9792_v9 = vld [vmem:[%s14037_s3 + $0x20] sm:$0xf] }
 0xea2   :  { %v4759_v26 = vmul.f32 %v4748_v7, %v4732_v31  ;;  %v4731_v27 = vsel %vm163_vm3, %v4728_v28, %v4730_v24  ;;  %v4734_v36 = vsel %vm163_vm3, %v4730_v24, %v4724_v0  ;;  %v9790_v0 = vld [vmem:[%s14037_s3 + $0x18] sm:$0xf] }
 0xea3   :  { %v4757_v40 = vmul.f32 %v4740_v23, %v4734_v36  ;;  %v4760_v34 = vmul.f32 %v4752_v19, %v4731_v27  ;;  %5019 = vmatprep.subr.bf16.mxu0 %v4980_v33  ;;  %v4832_v61 = vrot.slane %v9790_v0, %v10062_v11  ;;  %v4836_v8 = vrot.slane %v9790_v0, %v10075_v18 }
 0xea4   :  { %v4770_v42 = vpop.permute.xlu0 %4769  ;;  %v4981_v41 = vpack.c.bf16 %v4759_v26, %v4717_v35  ;;  %v4840_v19 = vrot.slane %v9790_v0, %v10073_v17  ;;  %v4912_v27 = vrot.slane %v9792_v9, %v10071_v16 }
 0xea5   :  { %v4979_v37 = vpack.c.bf16 %v4757_v40, %v4715_v39  ;;  %v4772_v38 = vpop.permute.xlu1 %4771  ;;  %v4982_v46 = vpack.c.bf16 %v4760_v34, %v4718_v30 }
 0xea6   :  { %v4779_v32 = vsel %vm211_vm4, %v4770_v42, %v4772_v38 }
 0xea7   :  { %5020 = vmatpush1.bf16.msra.mxu0 %v4979_v37  ;;  %5060 = vmatprep.subr.bf16.mxu1 %v4982_v46  ;;  %v4803_v53 = vmul.f32 %v4786_v45, %v4779_v32 }
 0xea8   :  { %5061 = vmatpush1.bf16.msra.mxu1 %v4981_v41  ;;  %v4774_v44 = vpop.permute.xlu0 %4773 }
 0xea9   :  { %v4778_v47 = vsel %vm211_vm4, %v4772_v38, %v4774_v44  ;;  %v4776_v48 = vpop.permute.xlu1 %4775  ;;  %v4983_v1 = vpack.c.bf16 %v4803_v53, %v11909_v2  ;;  %v4924_v53 = vrot.slane %v9792_v9, %v10073_v17 }
 0xeaa   :  { %v4804_v57 = vmul.f32 %v4790_v49, %v4778_v47  ;;  %v4777_v51 = vsel %vm211_vm4, %v4774_v44, %v4776_v48  ;;  %v4780_v58 = vsel %vm211_vm4, %v4776_v48, %v4770_v42  ;;  %v4920_v44 = vrot.slane %v9792_v9, %v10075_v18 }
 0xeab   :  { %v4805_v50 = vmul.f32 %v4794_v43, %v4777_v51  ;;  %v4806_v60 = vmul.f32 %v4798_v52, %v4780_v58  ;;  %v4916_v43 = vrot.slane %v9792_v9, %v10062_v11 }
 0xeac   :  { %v4812_v54 = vpop.permute.xlu0 %4811  ;;  %v4984_v55 = vpack.c.bf16 %v4804_v57, %v11911_v5  ;;  %v9791_v5 = vld [vmem:[%s14037_s3 + $0x1c] sm:$0xf] }
 0xead   :  { %v4985_v56 = vpack.c.bf16 %v4805_v50, %v11917_v15  ;;  %v4814_v6 = vpop.permute.xlu1 %4813  ;;  %v4986_v59 = vpack.c.bf16 %v4806_v60, %v11919_v14  ;;  %v4828_v15 = vrot.slane %v9790_v0, %v10071_v16  ;;  %v4870_v14 = vrot.slane %v9791_v5, %v10071_v16 }
 0xeae   :  { %5021 = vmatprep.subr.bf16.mxu0 %v4984_v55  ;;  %v4821_v63 = vsel %vm255_vm6, %v4812_v54, %v4814_v6  ;;  %v4874_v12 = vrot.slane %v9791_v5, %v10062_v11  ;;  %v4878_v25 = vrot.slane %v9791_v5, %v10075_v18  ;;  %v4882_v20 = vrot.slane %v9791_v5, %v10073_v17 }
 0xeaf   :  { %5022 = vmatpush1.bf16.msra.mxu0 %v4983_v1  ;;  %5062 = vmatprep.subr.bf16.mxu1 %v4986_v59  ;;  %v4845_v31 = vmul.f32 %v4828_v15, %v4821_v63 }
 0xeb0   :  { %5063 = vmatpush1.bf16.msra.mxu1 %v4985_v56  ;;  %v4816_v13 = vpop.permute.xlu0 %4815 }
 0xeb1   :  { %v4818_v3 = vpop.permute.xlu1 %4817  ;;  %v4820_v23 = vsel %vm255_vm6, %v4814_v6, %v4816_v13 }
 0xeb2   :  { %v4819_v21 = vsel %vm255_vm6, %v4816_v13, %v4818_v3  ;;  %v4822_v28 = vsel %vm255_vm6, %v4818_v3, %v4812_v54  ;;  %v4846_v36 = vmul.f32 %v4832_v61, %v4820_v23  ;;  %v9793_v3 = vld [vmem:[%s14038_s1 + $0x24] sm:$0xf] }
 0xeb3   :  { %v4847_v40 = vmul.f32 %v4836_v8, %v4819_v21  ;;  %v4848_v34 = vmul.f32 %v4840_v19, %v4822_v28  ;;  %v9807_v28 = vld [vmem:[%s14036_s2 + $0x50] sm:$0xff] }
 0xeb4   :  { %v4854_v2 = vpop.permute.xlu0 %4853 }
 0xeb5   :  { %v4856_v62 = vpop.permute.xlu1 %4855 }
 0xeb6   :  { %v4863_v7 = vsel %vm299_vm5, %v4854_v2, %v4856_v62 }
 0xeb7   :  { %v4887_v24 = vmul.f32 %v4870_v14, %v4863_v7 }
 0xeb8   :  { %v4858_v22 = vpop.permute.xlu0 %4857 }
 0xeb9   :  { %v4862_v33 = vsel %vm299_vm5, %v4856_v62, %v4858_v22  ;;  %v4860_v26 = vpop.permute.xlu1 %4859  ;;  %v4987_v38 = vpack.c.bf16 %v4887_v24, %v4845_v31  ;;  %v5115_v24 = vld [vmem:[%s14037_s3] sm:$0xf] }
 0xeba   :  { %v4888_v29 = vmul.f32 %v4874_v12, %v4862_v33  ;;  %v4861_v39 = vsel %vm299_vm5, %v4858_v22, %v4860_v26  ;;  %v4864_v30 = vsel %vm299_vm5, %v4860_v26, %v4854_v2  ;;  %v9799_v26 = vld [vmem:[%s14037_s3 + $0x4] sm:$0xf] }
 0xebb   :  { %v4889_v35 = vmul.f32 %v4878_v25, %v4861_v39  ;;  %v4890_v42 = vmul.f32 %v4882_v20, %v4864_v30 }
 0xebc   :  { %v4896_v37 = vpop.permute.xlu0 %4895  ;;  %v4988_v45 = vpack.c.bf16 %v4888_v29, %v4846_v36  ;;  %v5124_v36 = vrot.slane %v5115_v24, %v10062_v11  ;;  %v5166_v29 = vrot.slane %v9799_v26, %v10062_v11 }
 0xebd   :  { %v4989_v46 = vpack.c.bf16 %v4889_v35, %v4847_v40  ;;  %v4898_v41 = vpop.permute.xlu1 %4897  ;;  %v4990_v32 = vpack.c.bf16 %v4890_v42, %v4848_v34  ;;  %v5120_v34 = vrot.slane %v5115_v24, %v10071_v16  ;;  %v5132_v35 = vrot.slane %v5115_v24, %v10073_v17 }
 0xebe   :  { %v4905_v49 = vsel %vm343_vm7, %v4896_v37, %v4898_v41  ;;  %5023 = vmatprep.subr.bf16.mxu0 %v4988_v45 }
 0xebf   :  { %v4929_v52 = vmul.f32 %v4912_v27, %v4905_v49  ;;  %5024 = vmatpush1.bf16.msra.mxu0 %v4987_v38  ;;  %5064 = vmatprep.subr.bf16.mxu1 %v4990_v32  ;;  %v5128_v32 = vrot.slane %v5115_v24, %v10075_v18 }
 0xec0   :  { %5065 = vmatpush1.bf16.msra.mxu1 %v4989_v46  ;;  %v4900_v47 = vpop.permute.xlu0 %4899  ;;  %v5162_v46 = vrot.slane %v9799_v26, %v10071_v16 }
 0xec1   :  { %v4904_v48 = vsel %vm343_vm7, %v4898_v41, %v4900_v47  ;;  %v4902_v57 = vpop.permute.xlu1 %4901  ;;  %v4991_v51 = vpack.c.bf16 %v4929_v52, %v4929_v52  ;;  %v5174_v41 = vrot.slane %v9799_v26, %v10073_v17 }
 0xec2   :  { %v4930_v58 = vmul.f32 %v4916_v43, %v4904_v48  ;;  %v4903_v50 = vsel %vm343_vm7, %v4900_v47, %v4902_v57  ;;  %v4906_v60 = vsel %vm343_vm7, %v4902_v57, %v4896_v37  ;;  %v5170_v37 = vrot.slane %v9799_v26, %v10075_v18 }
 0xec3   :  { %v4931_v54 = vmul.f32 %v4920_v44, %v4903_v50  ;;  %v4932_v55 = vmul.f32 %v4924_v53, %v4906_v60  ;;  %v5006_v59 = vsel %vm446_vm8, %v4991_v51, 0 }
 0xec4   :  { %v4992_v1 = vpack.c.bf16 %v4930_v58, %v4930_v58 }
 0xec5   :  { %v4993_v56 = vpack.c.bf16 %v4931_v54, %v4931_v54  ;;  %v4994_v6 = vpack.c.bf16 %v4932_v55, %v4932_v55 }
 0xec6   :  { %9795 = vmatprep.subr.msk.bf16.mxu0 %vm446_vm8, %v4992_v1 }
 0xec7   :  { %5026 = vmatpush1.bf16.msra.mxu0 %v5006_v59  ;;  %9797 = vmatprep.subr.msk.bf16.mxu1 %vm446_vm8, %v4994_v6  ;;  %v5012_v13 = vsel %vm446_vm8, %v4993_v56, 0 }
 0xec8   :  { %5067 = vmatpush1.bf16.msra.mxu1 %v5012_v13 }
 0xeca   :  { %9796 = vmatmul.mubr.msk.bf16.vlgmr.msra.gmra.mrb[36].mxu0 %vm442_vm9, %v9793_v3 }
 0xecb   :  { %9798 = vmatmul.mubr.msk.bf16.vlgmr.msra.gmra.mrb[36].mxu1 %vm442_vm9, %v9793_v3  ;;  %5555 = vmatprep.mubr.bf16.mxu0 %v9942_v4 }
 0xecc   :  { %5596 = vmatprep.mubr.bf16.mxu1 %v9942_v4 }
 0xed1   :  { %v5000_v0 = vpop.permute.xlu0 %4999 }
 0xf9d   :  { %v5051_v5 = vpop.f32.mrb[36].mxu0 }
 0xf9e   :  { %v5052_v2 = vadd.f32 %v5051_v5, %v5000_v0  ;;  %v5053_v15 = vpop.f32.mrb[37].mxu0  ;;  %v5092_v61 = vpop.f32.mrb[36].mxu1 }
 0xf9f   :  { %v5054_v14 = vadd.f32 %v5053_v15, %v5000_v0  ;;  %v5055_v62 = vpop.f32.mrb[38].mxu0  ;;  %v5094_v63 = vpop.f32.mrb[37].mxu1  ;;  %v5093_v7 = vadd.f32 %v5092_v61, %v5000_v0 }
 0xfa0   :  { %v12119_v8 = vmax.f32 %v5052_v2, 0.0  ;;  %v5056_v12 = vpop.f32.mrb[39].mxu0  ;;  %v5096_v9 = vpop.f32.mrb[38].mxu1  ;;  %v5095_v19 = vadd.f32 %v5094_v63, %v5000_v0  ;;  %v9800_v0 = vld [vmem:[%s14037_s3 + $0x8] sm:$0xf] }
 0xfa1   :  { %v12121_v23 = vmax.f32 %v5054_v14, 0.0  ;;  %v5097_v25 = vpop.f32.mrb[39].mxu1  ;;  %v12127_v20 = vmax.f32 %v5093_v7, 0.0  ;;  %v9801_v2 = vld [vmem:[%s14037_s3 + $0xc] sm:$0xf]  ;;  %v5208_v61 = vrot.slane %v9800_v0, %v10062_v11  ;;  %v5204_v12 = vrot.slane %v9800_v0, %v10071_v16 }
 0xfa2   :  { %5103 = vrot.lane.b32.xlu1 %v12119_v8, %s9935_s19  ;;  %v12129_v21 = vmax.f32 %v5095_v19, 0.0  ;;  %v5250_v14 = vrot.slane %v9801_v2, %v10062_v11  ;;  %v5216_v9 = vrot.slane %v9800_v0, %v10073_v17  ;;  %v5254_v25 = vrot.slane %v9801_v2, %v10075_v18 }
 0xfa3   :  { %5105 = vrot.lane.b32.xlu0 %v12121_v23, %s9935_s19  ;;  %v5258_v24 = vrot.slane %v9801_v2, %v10073_v17 }
 0xfa6   :  { %5107 = vrot.lane.b32.xlu1 %v12127_v20, %s9935_s19 }
 0xfa7   :  { %5109 = vrot.lane.b32.xlu0 %v12129_v21, %s9935_s19 }
 0xfaa   :  { %5145 = vrot.lane.b32.xlu1 %v12119_v8, %s9936_s24 }
 0xfab   :  { %5147 = vrot.lane.b32.xlu0 %v12121_v23, %s9936_s24 }
 0xfae   :  { %5149 = vrot.lane.b32.xlu1 %v12127_v20, %s9936_s24 }
 0xfaf   :  { %5151 = vrot.lane.b32.xlu0 %v12129_v21, %s9936_s24 }
 0xfb2   :  { %5187 = vrot.lane.b32.xlu1 %v12119_v8, %s9937_s0 }
 0xfb3   :  { %5189 = vrot.lane.b32.xlu0 %v12121_v23, %s9937_s0 }
 0xfb6   :  { %5191 = vrot.lane.b32.xlu1 %v12127_v20, %s9937_s0 }
 0xfb7   :  { %5193 = vrot.lane.b32.xlu0 %v12129_v21, %s9937_s0 }
 0xfba   :  { %5229 = vrot.lane.b32.xlu1 %v12119_v8, %s9938_s25 }
 0xfbb   :  { %5231 = vrot.lane.b32.xlu0 %v12121_v23, %s9938_s25 }
 0xfbe   :  { %5233 = vrot.lane.b32.xlu1 %v12127_v20, %s9938_s25 }
 0xfbf   :  { %5235 = vrot.lane.b32.xlu0 %v12129_v21, %s9938_s25 }
 0xfc2   :  { %5275 = vrot.lane.b32.xlu1 %v12119_v8, %s9939_s26 }
 0xfc3   :  { %5277 = vrot.lane.b32.xlu0 %v12121_v23, %s9939_s26 }
 0xfc6   :  { %5279 = vrot.lane.b32.xlu1 %v12127_v20, %s9939_s26 }
 0xfc7   :  { %5281 = vrot.lane.b32.xlu0 %v12129_v21, %s9939_s26 }
 0xfca   :  { %5317 = vrot.lane.b32.xlu1 %v12119_v8, %s9940_s27 }
 0xfcb   :  { %5319 = vrot.lane.b32.xlu0 %v12121_v23, %s9940_s27 }
 0xfce   :  { %5321 = vrot.lane.b32.xlu1 %v12127_v20, %s9940_s27 }
 0xfcf   :  { %5323 = vrot.lane.b32.xlu0 %v12129_v21, %s9940_s27 }
 0xfd2   :  { %5359 = vrot.lane.b32.xlu1 %v12119_v8, %s9941_s28 }
 0xfd3   :  { %5361 = vrot.lane.b32.xlu0 %v12121_v23, %s9941_s28 }
 0xfd6   :  { %5363 = vrot.lane.b32.xlu1 %v12127_v20, %s9941_s28 }
 0xfd7   :  { %5365 = vrot.lane.b32.xlu0 %v12129_v21, %s9941_s28 }
 0xfda   :  { %5401 = vrot.lane.b32.xlu1 %v12119_v8, %s9943_s29 }
 0xfdb   :  { %5403 = vrot.lane.b32.xlu0 %v12121_v23, %s9943_s29 }
 0xfde   :  { %5405 = vrot.lane.b32.xlu1 %v12127_v20, %s9943_s29 }
 0xfdf   :  { %5407 = vrot.lane.b32.xlu0 %v12129_v21, %s9943_s29 }
 0xfe2   :  { %5505 = vperm.xlu1 %9934, %v9807_v28  }
0x1014   :  { %v5104_v22 = vpop.permute.xlu1 %5103 }
0x1015   :  { %v5106_v31 = vpop.permute.xlu0 %5105 }
0x1016   :  { %v5113_v39 = vsel %vm32_vm0, %v5104_v22, %v5106_v31 }
0x1017   :  { %v5138_v45 = vmul.f32 %v5124_v36, %v5113_v39 }
0x1018   :  { %v5108_v33 = vpop.permute.xlu1 %5107 }
0x1019   :  { %v5110_v27 = vpop.permute.xlu0 %5109  ;;  %v5112_v44 = vsel %vm32_vm0, %v5106_v31, %v5108_v33  ;;  %v5246_v31 = vrot.slane %v9801_v2, %v10071_v16 }
0x101a   :  { %v5111_v49 = vsel %vm32_vm0, %v5108_v33, %v5110_v27  ;;  %v5114_v43 = vsel %vm32_vm0, %v5110_v27, %v5104_v22  ;;  %v5139_v1 = vmul.f32 %v5128_v32, %v5112_v44  ;;  %v5212_v33 = vrot.slane %v9800_v0, %v10075_v18 }
0x101b   :  { %v5137_v50 = vmul.f32 %v5120_v34, %v5114_v43  ;;  %v5140_v60 = vmul.f32 %v5132_v35, %v5111_v49 }
0x101c   :  { %v5146_v30 = vpop.permute.xlu1 %5145 }
0x101d   :  { %v5148_v40 = vpop.permute.xlu0 %5147 }
0x101e   :  { %v5155_v42 = vsel %vm75_vm1, %v5146_v30, %v5148_v40 }
0x101f   :  { %v5180_v38 = vmul.f32 %v5166_v29, %v5155_v42 }
0x1020   :  { %v5150_v52 = vpop.permute.xlu1 %5149 }
0x1021   :  { %v5154_v53 = vsel %vm75_vm1, %v5148_v40, %v5150_v52  ;;  %v5152_v47 = vpop.permute.xlu0 %5151  ;;  %v5482_v48 = vpack.c.bf16 %v5180_v38, %v5138_v45 }
0x1022   :  { %v5181_v57 = vmul.f32 %v5170_v37, %v5154_v53  ;;  %v5153_v51 = vsel %vm75_vm1, %v5150_v52, %v5152_v47  ;;  %v5156_v58 = vsel %vm75_vm1, %v5152_v47, %v5146_v30  ;;  %v9802_v37 = vld [vmem:[%s14037_s3 + $0x14] sm:$0xf] }
0x1023   :  { %v5179_v54 = vmul.f32 %v5162_v46, %v5156_v58  ;;  %v5182_v55 = vmul.f32 %v5174_v41, %v5153_v51  ;;  %5523 = vmatprep.subr.bf16.mxu0 %v5482_v48  ;;  %v5292_v52 = vrot.slane %v9802_v37, %v10071_v16  ;;  %v5300_v51 = vrot.slane %v9802_v37, %v10075_v18 }
0x1024   :  { %v5188_v56 = vpop.permute.xlu1 %5187  ;;  %v5483_v3 = vpack.c.bf16 %v5181_v57, %v5139_v1  ;;  %v5296_v57 = vrot.slane %v9802_v37, %v10062_v11  ;;  %v5304_v58 = vrot.slane %v9802_v37, %v10073_v17 }
0x1025   :  { %v5481_v6 = vpack.c.bf16 %v5179_v54, %v5137_v50  ;;  %v5190_v59 = vpop.permute.xlu0 %5189  ;;  %v5484_v13 = vpack.c.bf16 %v5182_v55, %v5140_v60 }
0x1026   :  { %v5197_v62 = vsel %vm119_vm2, %v5188_v56, %v5190_v59 }
0x1027   :  { %5524 = vmatpush1.bf16.msra.mxu0 %v5481_v6  ;;  %5564 = vmatprep.subr.bf16.mxu1 %v5484_v13  ;;  %v5222_v28 = vmul.f32 %v5208_v61, %v5197_v62 }
0x1028   :  { %5565 = vmatpush1.bf16.msra.mxu1 %v5483_v3  ;;  %v5192_v5 = vpop.permute.xlu1 %5191 }
0x1029   :  { %v5194_v15 = vpop.permute.xlu0 %5193  ;;  %v5196_v29 = vsel %vm119_vm2, %v5190_v59, %v5192_v5 }
0x102a   :  { %v5195_v26 = vsel %vm119_vm2, %v5192_v5, %v5194_v15  ;;  %v5198_v27 = vsel %vm119_vm2, %v5194_v15, %v5188_v56  ;;  %v5223_v32 = vmul.f32 %v5212_v33, %v5196_v29 }
0x102b   :  { %v5221_v45 = vmul.f32 %v5204_v12, %v5198_v27  ;;  %v5224_v38 = vmul.f32 %v5216_v9, %v5195_v26 }
0x102c   :  { %v5230_v63 = vpop.permute.xlu1 %5229 }
0x102d   :  { %v5232_v7 = vpop.permute.xlu0 %5231 }
0x102e   :  { %v5239_v19 = vsel %vm163_vm3, %v5230_v63, %v5232_v7 }
0x102f   :  { %v5264_v22 = vmul.f32 %v5250_v14, %v5239_v19 }
0x1030   :  { %v5234_v36 = vpop.permute.xlu1 %5233 }
0x1031   :  { %v5238_v39 = vsel %vm163_vm3, %v5232_v7, %v5234_v36  ;;  %v5236_v30 = vpop.permute.xlu0 %5235  ;;  %v5486_v40 = vpack.c.bf16 %v5264_v22, %v5222_v28  ;;  %v9805_v22 = vld [vmem:[%s14037_s3 + $0x20] sm:$0xf] }
0x1032   :  { %v5265_v34 = vmul.f32 %v5254_v25, %v5238_v39  ;;  %v5237_v35 = vsel %vm163_vm3, %v5234_v36, %v5236_v30  ;;  %v5240_v42 = vsel %vm163_vm3, %v5236_v30, %v5230_v63  ;;  %v9803_v63 = vld [vmem:[%s14037_s3 + $0x18] sm:$0xf] }
0x1033   :  { %v5263_v46 = vmul.f32 %v5246_v31, %v5240_v42  ;;  %v5266_v41 = vmul.f32 %v5258_v24, %v5237_v35  ;;  %5525 = vmatprep.subr.bf16.mxu0 %v5486_v40  ;;  %v5338_v7 = vrot.slane %v9803_v63, %v10062_v11  ;;  %v5342_v19 = vrot.slane %v9803_v63, %v10075_v18 }
0x1034   :  { %v5276_v49 = vpop.permute.xlu1 %5275  ;;  %v5487_v47 = vpack.c.bf16 %v5265_v34, %v5223_v32  ;;  %v5346_v24 = vrot.slane %v9803_v63, %v10073_v17  ;;  %v5418_v35 = vrot.slane %v9805_v22, %v10071_v16 }
0x1035   :  { %v5485_v43 = vpack.c.bf16 %v5263_v46, %v5221_v45  ;;  %v5278_v44 = vpop.permute.xlu0 %5277  ;;  %v5488_v53 = vpack.c.bf16 %v5266_v41, %v5224_v38 }
0x1036   :  { %v5285_v48 = vsel %vm211_vm4, %v5276_v49, %v5278_v44 }
0x1037   :  { %5526 = vmatpush1.bf16.msra.mxu0 %v5485_v43  ;;  %5566 = vmatprep.subr.bf16.mxu1 %v5488_v53  ;;  %v5309_v60 = vmul.f32 %v5292_v52, %v5285_v48 }
0x1038   :  { %5567 = vmatpush1.bf16.msra.mxu1 %v5487_v47  ;;  %v5280_v50 = vpop.permute.xlu1 %5279 }
0x1039   :  { %v5284_v54 = vsel %vm211_vm4, %v5278_v44, %v5280_v50  ;;  %v5282_v55 = vpop.permute.xlu0 %5281  ;;  %v5489_v5 = vpack.c.bf16 %v5309_v60, %v12119_v8  ;;  %v5430_v60 = vrot.slane %v9805_v22, %v10073_v17 }
0x103a   :  { %v5310_v1 = vmul.f32 %v5296_v57, %v5284_v54  ;;  %v5283_v56 = vsel %vm211_vm4, %v5280_v50, %v5282_v55  ;;  %v5286_v6 = vsel %vm211_vm4, %v5282_v55, %v5276_v49  ;;  %v5426_v50 = vrot.slane %v9805_v22, %v10075_v18 }
0x103b   :  { %v5311_v59 = vmul.f32 %v5300_v51, %v5283_v56  ;;  %v5312_v13 = vmul.f32 %v5304_v58, %v5286_v6  ;;  %v5422_v51 = vrot.slane %v9805_v22, %v10062_v11 }
0x103c   :  { %v5318_v3 = vpop.permute.xlu1 %5317  ;;  %v5490_v0 = vpack.c.bf16 %v5310_v1, %v12121_v23  ;;  %v9804_v23 = vld [vmem:[%s14037_s3 + $0x1c] sm:$0xf] }
0x103d   :  { %v5491_v2 = vpack.c.bf16 %v5311_v59, %v12127_v20  ;;  %v5320_v15 = vpop.permute.xlu0 %5319  ;;  %v5492_v61 = vpack.c.bf16 %v5312_v13, %v12129_v21  ;;  %v5334_v20 = vrot.slane %v9803_v63, %v10071_v16  ;;  %v5376_v21 = vrot.slane %v9804_v23, %v10071_v16 }
0x103e   :  { %5527 = vmatprep.subr.bf16.mxu0 %v5490_v0  ;;  %v5327_v9 = vsel %vm255_vm6, %v5318_v3, %v5320_v15  ;;  %v5380_v28 = vrot.slane %v9804_v23, %v10062_v11  ;;  %v5384_v33 = vrot.slane %v9804_v23, %v10075_v18  ;;  %v5388_v26 = vrot.slane %v9804_v23, %v10073_v17 }
0x103f   :  { %5528 = vmatpush1.bf16.msra.mxu0 %v5489_v5  ;;  %5568 = vmatprep.subr.bf16.mxu1 %v5492_v61  ;;  %v5351_v39 = vmul.f32 %v5334_v20, %v5327_v9 }
0x1040   :  { %5569 = vmatpush1.bf16.msra.mxu1 %v5491_v2  ;;  %v5322_v14 = vpop.permute.xlu1 %5321 }
0x1041   :  { %v5324_v62 = vpop.permute.xlu0 %5323  ;;  %v5326_v31 = vsel %vm255_vm6, %v5320_v15, %v5322_v14 }
0x1042   :  { %v5325_v27 = vsel %vm255_vm6, %v5322_v14, %v5324_v62  ;;  %v5328_v36 = vsel %vm255_vm6, %v5324_v62, %v5318_v3  ;;  %v5352_v42 = vmul.f32 %v5338_v7, %v5326_v31  ;;  %v9806_v62 = vld [vmem:[%s14038_s1 + $0x28] sm:$0xf] }
0x1043   :  { %v5353_v46 = vmul.f32 %v5342_v19, %v5325_v27  ;;  %v5354_v41 = vmul.f32 %v5346_v24, %v5328_v36  ;;  %v9820_v36 = vld [vmem:[%s14036_s2 + $0x58] sm:$0xff] }
0x1044   :  { %v5360_v8 = vpop.permute.xlu1 %5359 }
0x1045   :  { %v5362_v12 = vpop.permute.xlu0 %5361 }
0x1046   :  { %v5369_v25 = vsel %vm299_vm5, %v5360_v8, %v5362_v12 }
0x1047   :  { %v5393_v30 = vmul.f32 %v5376_v21, %v5369_v25 }
0x1048   :  { %v5364_v29 = vpop.permute.xlu1 %5363 }
0x1049   :  { %v5368_v40 = vsel %vm299_vm5, %v5362_v12, %v5364_v29  ;;  %v5366_v34 = vpop.permute.xlu0 %5365  ;;  %v5493_v44 = vpack.c.bf16 %v5393_v30, %v5351_v39  ;;  %v5621_v30 = vld [vmem:[%s14037_s3] sm:$0xf] }
0x104a   :  { %v5394_v37 = vmul.f32 %v5380_v28, %v5368_v40  ;;  %v5367_v45 = vsel %vm299_vm5, %v5364_v29, %v5366_v34  ;;  %v5370_v38 = vsel %vm299_vm5, %v5366_v34, %v5360_v8  ;;  %v9812_v34 = vld [vmem:[%s14037_s3 + $0x4] sm:$0xf] }
0x104b   :  { %v5395_v32 = vmul.f32 %v5384_v33, %v5367_v45  ;;  %v5396_v49 = vmul.f32 %v5388_v26, %v5370_v38 }
0x104c   :  { %v5402_v43 = vpop.permute.xlu1 %5401  ;;  %v5494_v52 = vpack.c.bf16 %v5394_v37, %v5352_v42  ;;  %v5630_v42 = vrot.slane %v5621_v30, %v10062_v11  ;;  %v5672_v37 = vrot.slane %v9812_v34, %v10062_v11 }
0x104d   :  { %v5495_v53 = vpack.c.bf16 %v5395_v32, %v5353_v46  ;;  %v5404_v47 = vpop.permute.xlu0 %5403  ;;  %v5496_v48 = vpack.c.bf16 %v5396_v49, %v5354_v41  ;;  %v5626_v41 = vrot.slane %v5621_v30, %v10071_v16  ;;  %v5638_v32 = vrot.slane %v5621_v30, %v10073_v17 }
0x104e   :  { %v5411_v57 = vsel %vm343_vm7, %v5402_v43, %v5404_v47  ;;  %5529 = vmatprep.subr.bf16.mxu0 %v5494_v52 }
0x104f   :  { %v5435_v58 = vmul.f32 %v5418_v35, %v5411_v57  ;;  %5530 = vmatpush1.bf16.msra.mxu0 %v5493_v44  ;;  %5570 = vmatprep.subr.bf16.mxu1 %v5496_v48  ;;  %v5634_v48 = vrot.slane %v5621_v30, %v10075_v18 }
0x1050   :  { %5571 = vmatpush1.bf16.msra.mxu1 %v5495_v53  ;;  %v5406_v54 = vpop.permute.xlu1 %5405  ;;  %v5668_v53 = vrot.slane %v9812_v34, %v10071_v16 }
0x1051   :  { %v5410_v55 = vsel %vm343_vm7, %v5404_v47, %v5406_v54  ;;  %v5408_v1 = vpop.permute.xlu0 %5407  ;;  %v5497_v56 = vpack.c.bf16 %v5435_v58, %v5435_v58  ;;  %v5680_v47 = vrot.slane %v9812_v34, %v10073_v17 }
0x1052   :  { %v5436_v6 = vmul.f32 %v5422_v51, %v5410_v55  ;;  %v5409_v59 = vsel %vm343_vm7, %v5406_v54, %v5408_v1  ;;  %v5412_v13 = vsel %vm343_vm7, %v5408_v1, %v5402_v43  ;;  %v5676_v43 = vrot.slane %v9812_v34, %v10075_v18 }
0x1053   :  { %v5437_v3 = vmul.f32 %v5426_v50, %v5409_v59  ;;  %v5438_v0 = vmul.f32 %v5430_v60, %v5412_v13  ;;  %v5512_v61 = vsel %vm446_vm8, %v5497_v56, 0 }
0x1054   :  { %v5498_v5 = vpack.c.bf16 %v5436_v6, %v5436_v6 }
0x1055   :  { %v5499_v2 = vpack.c.bf16 %v5437_v3, %v5437_v3  ;;  %v5500_v15 = vpack.c.bf16 %v5438_v0, %v5438_v0 }
0x1056   :  { %9808 = vmatprep.subr.msk.bf16.mxu0 %vm446_vm8, %v5498_v5 }
0x1057   :  { %5532 = vmatpush1.bf16.msra.mxu0 %v5512_v61  ;;  %9810 = vmatprep.subr.msk.bf16.mxu1 %vm446_vm8, %v5500_v15  ;;  %v5518_v14 = vsel %vm446_vm8, %v5499_v2, 0 }
0x1058   :  { %5573 = vmatpush1.bf16.msra.mxu1 %v5518_v14 }
0x105a   :  { %9809 = vmatmul.mubr.msk.bf16.vlgmr.msra.gmra.mrb[40].mxu0 %vm442_vm9, %v9806_v62 }
0x105b   :  { %9811 = vmatmul.mubr.msk.bf16.vlgmr.msra.gmra.mrb[40].mxu1 %vm442_vm9, %v9806_v62  ;;  %6061 = vmatprep.mubr.bf16.mxu0 %v9942_v4 }
0x105c   :  { %6102 = vmatprep.mubr.bf16.mxu1 %v9942_v4 }
0x1061   :  { %v5506_v63 = vpop.permute.xlu1 %5505 }
0x112d   :  { %v5557_v23 = vpop.f32.mrb[40].mxu0 }
0x112e   :  { %v5558_v8 = vadd.f32 %v5557_v23, %v5506_v63  ;;  %v5559_v20 = vpop.f32.mrb[41].mxu0  ;;  %v5598_v7 = vpop.f32.mrb[40].mxu1 }
0x112f   :  { %v5560_v21 = vadd.f32 %v5559_v20, %v5506_v63  ;;  %v5561_v12 = vpop.f32.mrb[42].mxu0  ;;  %v5600_v9 = vpop.f32.mrb[41].mxu1  ;;  %v5599_v25 = vadd.f32 %v5598_v7, %v5506_v63 }
0x1130   :  { %v12329_v19 = vmax.f32 %v5558_v8, 0.0  ;;  %v5562_v28 = vpop.f32.mrb[43].mxu0  ;;  %v5602_v22 = vpop.f32.mrb[42].mxu1  ;;  %v5601_v24 = vadd.f32 %v5600_v9, %v5506_v63  ;;  %v9813_v63 = vld [vmem:[%s14037_s3 + $0x8] sm:$0xf] }
0x1131   :  { %v12331_v31 = vmax.f32 %v5560_v21, 0.0  ;;  %v5603_v33 = vpop.f32.mrb[43].mxu1  ;;  %v12337_v26 = vmax.f32 %v5599_v25, 0.0  ;;  %v9814_v8 = vld [vmem:[%s14037_s3 + $0xc] sm:$0xf]  ;;  %v5714_v7 = vrot.slane %v9813_v63, %v10062_v11  ;;  %v5710_v28 = vrot.slane %v9813_v63, %v10071_v16 }
0x1132   :  { %5609 = vrot.lane.b32.xlu0 %v12329_v19, %s9935_s19  ;;  %v12339_v27 = vmax.f32 %v5601_v24, 0.0  ;;  %v5756_v21 = vrot.slane %v9814_v8, %v10062_v11  ;;  %v5722_v22 = vrot.slane %v9813_v63, %v10073_v17  ;;  %v5760_v33 = vrot.slane %v9814_v8, %v10075_v18 }
0x1133   :  { %5611 = vrot.lane.b32.xlu1 %v12331_v31, %s9935_s19  ;;  %v5764_v30 = vrot.slane %v9814_v8, %v10073_v17 }
0x1136   :  { %5613 = vrot.lane.b32.xlu0 %v12337_v26, %s9935_s19 }
0x1137   :  { %5615 = vrot.lane.b32.xlu1 %v12339_v27, %s9935_s19 }
0x113a   :  { %5651 = vrot.lane.b32.xlu0 %v12329_v19, %s9936_s24 }
0x113b   :  { %5653 = vrot.lane.b32.xlu1 %v12331_v31, %s9936_s24 }
0x113e   :  { %5655 = vrot.lane.b32.xlu0 %v12337_v26, %s9936_s24 }
0x113f   :  { %5657 = vrot.lane.b32.xlu1 %v12339_v27, %s9936_s24 }
0x1142   :  { %5693 = vrot.lane.b32.xlu0 %v12329_v19, %s9937_s0 }
0x1143   :  { %5695 = vrot.lane.b32.xlu1 %v12331_v31, %s9937_s0 }
0x1146   :  { %5697 = vrot.lane.b32.xlu0 %v12337_v26, %s9937_s0 }
0x1147   :  { %5699 = vrot.lane.b32.xlu1 %v12339_v27, %s9937_s0 }
0x114a   :  { %5735 = vrot.lane.b32.xlu0 %v12329_v19, %s9938_s25 }
0x114b   :  { %5737 = vrot.lane.b32.xlu1 %v12331_v31, %s9938_s25 }
0x114e   :  { %5739 = vrot.lane.b32.xlu0 %v12337_v26, %s9938_s25 }
0x114f   :  { %5741 = vrot.lane.b32.xlu1 %v12339_v27, %s9938_s25 }
0x1152   :  { %5781 = vrot.lane.b32.xlu0 %v12329_v19, %s9939_s26 }
0x1153   :  { %5783 = vrot.lane.b32.xlu1 %v12331_v31, %s9939_s26 }
0x1156   :  { %5785 = vrot.lane.b32.xlu0 %v12337_v26, %s9939_s26 }
0x1157   :  { %5787 = vrot.lane.b32.xlu1 %v12339_v27, %s9939_s26 }
0x115a   :  { %5823 = vrot.lane.b32.xlu0 %v12329_v19, %s9940_s27 }
0x115b   :  { %5825 = vrot.lane.b32.xlu1 %v12331_v31, %s9940_s27 }
0x115e   :  { %5827 = vrot.lane.b32.xlu0 %v12337_v26, %s9940_s27 }
0x115f   :  { %5829 = vrot.lane.b32.xlu1 %v12339_v27, %s9940_s27 }
0x1162   :  { %5865 = vrot.lane.b32.xlu0 %v12329_v19, %s9941_s28 }
0x1163   :  { %5867 = vrot.lane.b32.xlu1 %v12331_v31, %s9941_s28 }
0x1166   :  { %5869 = vrot.lane.b32.xlu0 %v12337_v26, %s9941_s28 }
0x1167   :  { %5871 = vrot.lane.b32.xlu1 %v12339_v27, %s9941_s28 }
0x116a   :  { %5907 = vrot.lane.b32.xlu0 %v12329_v19, %s9943_s29 }
0x116b   :  { %5909 = vrot.lane.b32.xlu1 %v12331_v31, %s9943_s29 }
0x116e   :  { %5911 = vrot.lane.b32.xlu0 %v12337_v26, %s9943_s29 }
0x116f   :  { %5913 = vrot.lane.b32.xlu1 %v12339_v27, %s9943_s29 }
0x1172   :  { %6011 = vperm.xlu0 %9933, %v9820_v36  }
0x11a4   :  { %v5610_v29 = vpop.permute.xlu0 %5609 }
0x11a5   :  { %v5612_v39 = vpop.permute.xlu1 %5611 }
0x11a6   :  { %v5619_v45 = vsel %vm32_vm0, %v5610_v29, %v5612_v39 }
0x11a7   :  { %v5644_v52 = vmul.f32 %v5630_v42, %v5619_v45 }
0x11a8   :  { %v5614_v40 = vpop.permute.xlu0 %5613 }
0x11a9   :  { %v5616_v35 = vpop.permute.xlu1 %5615  ;;  %v5618_v50 = vsel %vm32_vm0, %v5612_v39, %v5614_v40  ;;  %v5752_v39 = vrot.slane %v9814_v8, %v10071_v16 }
0x11aa   :  { %v5617_v57 = vsel %vm32_vm0, %v5614_v40, %v5616_v35  ;;  %v5620_v51 = vsel %vm32_vm0, %v5616_v35, %v5610_v29  ;;  %v5645_v5 = vmul.f32 %v5634_v48, %v5618_v50  ;;  %v5718_v40 = vrot.slane %v9813_v63, %v10075_v18 }
0x11ab   :  { %v5643_v59 = vmul.f32 %v5626_v41, %v5620_v51  ;;  %v5646_v13 = vmul.f32 %v5638_v32, %v5617_v57 }
0x11ac   :  { %v5652_v38 = vpop.permute.xlu0 %5651 }
0x11ad   :  { %v5654_v46 = vpop.permute.xlu1 %5653 }
0x11ae   :  { %v5661_v49 = vsel %vm75_vm1, %v5652_v38, %v5654_v46 }
0x11af   :  { %v5686_v44 = vmul.f32 %v5672_v37, %v5661_v49 }
0x11b0   :  { %v5656_v58 = vpop.permute.xlu0 %5655 }
0x11b1   :  { %v5660_v60 = vsel %vm75_vm1, %v5654_v46, %v5656_v58  ;;  %v5658_v54 = vpop.permute.xlu1 %5657  ;;  %v5988_v55 = vpack.c.bf16 %v5686_v44, %v5644_v52 }
0x11b2   :  { %v5687_v1 = vmul.f32 %v5676_v43, %v5660_v60  ;;  %v5659_v56 = vsel %vm75_vm1, %v5656_v58, %v5658_v54  ;;  %v5662_v6 = vsel %vm75_vm1, %v5658_v54, %v5652_v38  ;;  %v9815_v43 = vld [vmem:[%s14037_s3 + $0x14] sm:$0xf] }
0x11b3   :  { %v5685_v3 = vmul.f32 %v5668_v53, %v5662_v6  ;;  %v5688_v0 = vmul.f32 %v5680_v47, %v5659_v56  ;;  %6029 = vmatprep.subr.bf16.mxu0 %v5988_v55  ;;  %v5798_v58 = vrot.slane %v9815_v43, %v10071_v16  ;;  %v5806_v56 = vrot.slane %v9815_v43, %v10075_v18 }
0x11b4   :  { %v5694_v2 = vpop.permute.xlu0 %5693  ;;  %v5989_v62 = vpack.c.bf16 %v5687_v1, %v5645_v5  ;;  %v5802_v1 = vrot.slane %v9815_v43, %v10062_v11  ;;  %v5810_v6 = vrot.slane %v9815_v43, %v10073_v17 }
0x11b5   :  { %v5987_v15 = vpack.c.bf16 %v5685_v3, %v5643_v59  ;;  %v5696_v61 = vpop.permute.xlu1 %5695  ;;  %v5990_v14 = vpack.c.bf16 %v5688_v0, %v5646_v13 }
0x11b6   :  { %v5703_v12 = vsel %vm119_vm2, %v5694_v2, %v5696_v61 }
0x11b7   :  { %6030 = vmatpush1.bf16.msra.mxu0 %v5987_v15  ;;  %6070 = vmatprep.subr.bf16.mxu1 %v5990_v14  ;;  %v5728_v36 = vmul.f32 %v5714_v7, %v5703_v12 }
0x11b8   :  { %6071 = vmatpush1.bf16.msra.mxu1 %v5989_v62  ;;  %v5698_v23 = vpop.permute.xlu0 %5697 }
0x11b9   :  { %v5700_v20 = vpop.permute.xlu1 %5699  ;;  %v5702_v37 = vsel %vm119_vm2, %v5696_v61, %v5698_v23 }
0x11ba   :  { %v5701_v34 = vsel %vm119_vm2, %v5698_v23, %v5700_v20  ;;  %v5704_v35 = vsel %vm119_vm2, %v5700_v20, %v5694_v2  ;;  %v5729_v48 = vmul.f32 %v5718_v40, %v5702_v37 }
0x11bb   :  { %v5727_v52 = vmul.f32 %v5710_v28, %v5704_v35  ;;  %v5730_v44 = vmul.f32 %v5722_v22, %v5701_v34 }
0x11bc   :  { %v5736_v9 = vpop.permute.xlu0 %5735 }
0x11bd   :  { %v5738_v25 = vpop.permute.xlu1 %5737 }
0x11be   :  { %v5745_v24 = vsel %vm163_vm3, %v5736_v9, %v5738_v25 }
0x11bf   :  { %v5770_v29 = vmul.f32 %v5756_v21, %v5745_v24 }
0x11c0   :  { %v5740_v42 = vpop.permute.xlu0 %5739 }
0x11c1   :  { %v5744_v45 = vsel %vm163_vm3, %v5738_v25, %v5740_v42  ;;  %v5742_v38 = vpop.permute.xlu1 %5741  ;;  %v5992_v46 = vpack.c.bf16 %v5770_v29, %v5728_v36  ;;  %v9818_v29 = vld [vmem:[%s14037_s3 + $0x20] sm:$0xf] }
0x11c2   :  { %v5771_v41 = vmul.f32 %v5760_v33, %v5744_v45  ;;  %v5743_v32 = vsel %vm163_vm3, %v5740_v42, %v5742_v38  ;;  %v5746_v49 = vsel %vm163_vm3, %v5742_v38, %v5736_v9  ;;  %v9816_v9 = vld [vmem:[%s14037_s3 + $0x18] sm:$0xf] }
0x11c3   :  { %v5769_v53 = vmul.f32 %v5752_v39, %v5746_v49  ;;  %v5772_v47 = vmul.f32 %v5764_v30, %v5743_v32  ;;  %6031 = vmatprep.subr.bf16.mxu0 %v5992_v46  ;;  %v5844_v25 = vrot.slane %v9816_v9, %v10062_v11  ;;  %v5848_v24 = vrot.slane %v9816_v9, %v10075_v18 }
0x11c4   :  { %v5782_v57 = vpop.permute.xlu0 %5781  ;;  %v5993_v54 = vpack.c.bf16 %v5771_v41, %v5729_v48  ;;  %v5852_v30 = vrot.slane %v9816_v9, %v10073_v17  ;;  %v5924_v32 = vrot.slane %v9818_v29, %v10071_v16 }
0x11c5   :  { %v5991_v51 = vpack.c.bf16 %v5769_v53, %v5727_v52  ;;  %v5784_v50 = vpop.permute.xlu1 %5783  ;;  %v5994_v60 = vpack.c.bf16 %v5772_v47, %v5730_v44 }
0x11c6   :  { %v5791_v55 = vsel %vm211_vm4, %v5782_v57, %v5784_v50 }
0x11c7   :  { %6032 = vmatpush1.bf16.msra.mxu0 %v5991_v51  ;;  %6072 = vmatprep.subr.bf16.mxu1 %v5994_v60  ;;  %v5815_v13 = vmul.f32 %v5798_v58, %v5791_v55 }
0x11c8   :  { %6073 = vmatpush1.bf16.msra.mxu1 %v5993_v54  ;;  %v5786_v59 = vpop.permute.xlu0 %5785 }
0x11c9   :  { %v5790_v3 = vsel %vm211_vm4, %v5784_v50, %v5786_v59  ;;  %v5788_v0 = vpop.permute.xlu1 %5787  ;;  %v5995_v23 = vpack.c.bf16 %v5815_v13, %v12329_v19  ;;  %v5936_v13 = vrot.slane %v9818_v29, %v10073_v17 }
0x11ca   :  { %v5816_v5 = vmul.f32 %v5802_v1, %v5790_v3  ;;  %v5789_v2 = vsel %vm211_vm4, %v5786_v59, %v5788_v0  ;;  %v5792_v15 = vsel %vm211_vm4, %v5788_v0, %v5782_v57  ;;  %v5932_v59 = vrot.slane %v9818_v29, %v10075_v18 }
0x11cb   :  { %v5817_v61 = vmul.f32 %v5806_v56, %v5789_v2  ;;  %v5818_v14 = vmul.f32 %v5810_v6, %v5792_v15  ;;  %v5928_v56 = vrot.slane %v9818_v29, %v10062_v11 }
0x11cc   :  { %v5824_v62 = vpop.permute.xlu0 %5823  ;;  %v5996_v63 = vpack.c.bf16 %v5816_v5, %v12331_v31  ;;  %v9817_v31 = vld [vmem:[%s14037_s3 + $0x1c] sm:$0xf] }
0x11cd   :  { %v5997_v8 = vpack.c.bf16 %v5817_v61, %v12337_v26  ;;  %v5826_v20 = vpop.permute.xlu1 %5825  ;;  %v5998_v7 = vpack.c.bf16 %v5818_v14, %v12339_v27  ;;  %v5840_v26 = vrot.slane %v9816_v9, %v10071_v16  ;;  %v5882_v27 = vrot.slane %v9817_v31, %v10071_v16 }
0x11ce   :  { %6033 = vmatprep.subr.bf16.mxu0 %v5996_v63  ;;  %v5833_v22 = vsel %vm255_vm6, %v5824_v62, %v5826_v20  ;;  %v5886_v36 = vrot.slane %v9817_v31, %v10062_v11  ;;  %v5890_v40 = vrot.slane %v9817_v31, %v10075_v18  ;;  %v5894_v34 = vrot.slane %v9817_v31, %v10073_v17 }
0x11cf   :  { %6034 = vmatpush1.bf16.msra.mxu0 %v5995_v23  ;;  %6074 = vmatprep.subr.bf16.mxu1 %v5998_v7  ;;  %v5857_v45 = vmul.f32 %v5840_v26, %v5833_v22 }
0x11d0   :  { %6075 = vmatpush1.bf16.msra.mxu1 %v5997_v8  ;;  %v5828_v21 = vpop.permute.xlu0 %5827 }
0x11d1   :  { %v5830_v12 = vpop.permute.xlu1 %5829  ;;  %v5832_v39 = vsel %vm255_vm6, %v5826_v20, %v5828_v21 }
0x11d2   :  { %v5831_v35 = vsel %vm255_vm6, %v5828_v21, %v5830_v12  ;;  %v5834_v42 = vsel %vm255_vm6, %v5830_v12, %v5824_v62  ;;  %v5858_v49 = vmul.f32 %v5844_v25, %v5832_v39  ;;  %v9819_v12 = vld [vmem:[%s14038_s1 + $0x2c] sm:$0xf] }
0x11d3   :  { %v5859_v53 = vmul.f32 %v5848_v24, %v5831_v35  ;;  %v5860_v47 = vmul.f32 %v5852_v30, %v5834_v42  ;;  %v9833_v42 = vld [vmem:[%s14036_s2 + $0x60] sm:$0xff] }
0x11d4   :  { %v5866_v19 = vpop.permute.xlu0 %5865 }
0x11d5   :  { %v5868_v28 = vpop.permute.xlu1 %5867 }
0x11d6   :  { %v5875_v33 = vsel %vm299_vm5, %v5866_v19, %v5868_v28 }
0x11d7   :  { %v5899_v38 = vmul.f32 %v5882_v27, %v5875_v33 }
0x11d8   :  { %v5870_v37 = vpop.permute.xlu0 %5869 }
0x11d9   :  { %v5874_v46 = vsel %vm299_vm5, %v5868_v28, %v5870_v37  ;;  %v5872_v41 = vpop.permute.xlu1 %5871  ;;  %v5999_v50 = vpack.c.bf16 %v5899_v38, %v5857_v45  ;;  %v6127_v38 = vld [vmem:[%s14037_s3] sm:$0xf] }
0x11da   :  { %v5900_v43 = vmul.f32 %v5886_v36, %v5874_v46  ;;  %v5873_v52 = vsel %vm299_vm5, %v5870_v37, %v5872_v41  ;;  %v5876_v44 = vsel %vm299_vm5, %v5872_v41, %v5866_v19  ;;  %v9825_v41 = vld [vmem:[%s14037_s3 + $0x4] sm:$0xf] }
0x11db   :  { %v5901_v48 = vmul.f32 %v5890_v40, %v5873_v52  ;;  %v5902_v57 = vmul.f32 %v5894_v34, %v5876_v44 }
0x11dc   :  { %v5908_v51 = vpop.permute.xlu0 %5907  ;;  %v6000_v58 = vpack.c.bf16 %v5900_v43, %v5858_v49  ;;  %v6136_v49 = vrot.slane %v6127_v38, %v10062_v11  ;;  %v6178_v43 = vrot.slane %v9825_v41, %v10062_v11 }
0x11dd   :  { %v6001_v60 = vpack.c.bf16 %v5901_v48, %v5859_v53  ;;  %v5910_v54 = vpop.permute.xlu1 %5909  ;;  %v6002_v55 = vpack.c.bf16 %v5902_v57, %v5860_v47  ;;  %v6132_v47 = vrot.slane %v6127_v38, %v10071_v16  ;;  %v6144_v48 = vrot.slane %v6127_v38, %v10073_v17 }
0x11de   :  { %v5917_v1 = vsel %vm343_vm7, %v5908_v51, %v5910_v54  ;;  %6035 = vmatprep.subr.bf16.mxu0 %v6000_v58 }
0x11df   :  { %v5941_v6 = vmul.f32 %v5924_v32, %v5917_v1  ;;  %6036 = vmatpush1.bf16.msra.mxu0 %v5999_v50  ;;  %6076 = vmatprep.subr.bf16.mxu1 %v6002_v55  ;;  %v6140_v55 = vrot.slane %v6127_v38, %v10075_v18 }
0x11e0   :  { %6077 = vmatpush1.bf16.msra.mxu1 %v6001_v60  ;;  %v5912_v3 = vpop.permute.xlu0 %5911  ;;  %v6174_v60 = vrot.slane %v9825_v41, %v10071_v16 }
0x11e1   :  { %v5916_v0 = vsel %vm343_vm7, %v5910_v54, %v5912_v3  ;;  %v5914_v5 = vpop.permute.xlu1 %5913  ;;  %v6003_v2 = vpack.c.bf16 %v5941_v6, %v5941_v6  ;;  %v6186_v54 = vrot.slane %v9825_v41, %v10073_v17 }
0x11e2   :  { %v5942_v15 = vmul.f32 %v5928_v56, %v5916_v0  ;;  %v5915_v61 = vsel %vm343_vm7, %v5912_v3, %v5914_v5  ;;  %v5918_v14 = vsel %vm343_vm7, %v5914_v5, %v5908_v51  ;;  %v6182_v51 = vrot.slane %v9825_v41, %v10075_v18 }
0x11e3   :  { %v5943_v62 = vmul.f32 %v5932_v59, %v5915_v61  ;;  %v5944_v63 = vmul.f32 %v5936_v13, %v5918_v14  ;;  %v6018_v7 = vsel %vm446_vm8, %v6003_v2, 0 }
0x11e4   :  { %v6004_v23 = vpack.c.bf16 %v5942_v15, %v5942_v15 }
0x11e5   :  { %v6005_v8 = vpack.c.bf16 %v5943_v62, %v5943_v62  ;;  %v6006_v20 = vpack.c.bf16 %v5944_v63, %v5944_v63 }
0x11e6   :  { %9821 = vmatprep.subr.msk.bf16.mxu0 %vm446_vm8, %v6004_v23 }
0x11e7   :  { %6038 = vmatpush1.bf16.msra.mxu0 %v6018_v7  ;;  %9823 = vmatprep.subr.msk.bf16.mxu1 %vm446_vm8, %v6006_v20  ;;  %v6024_v21 = vsel %vm446_vm8, %v6005_v8, 0 }
0x11e8   :  { %6079 = vmatpush1.bf16.msra.mxu1 %v6024_v21 }
0x11ea   :  { %9822 = vmatmul.mubr.msk.bf16.vlgmr.msra.gmra.mrb[44].mxu0 %vm442_vm9, %v9819_v12 }
0x11eb   :  { %9824 = vmatmul.mubr.msk.bf16.vlgmr.msra.gmra.mrb[44].mxu1 %vm442_vm9, %v9819_v12  ;;  %6567 = vmatprep.mubr.bf16.mxu0 %v9942_v4 }
0x11ec   :  { %6608 = vmatprep.mubr.bf16.mxu1 %v9942_v4 }
0x11f1   :  { %v6012_v9 = vpop.permute.xlu0 %6011 }
0x12bd   :  { %v6063_v31 = vpop.f32.mrb[44].mxu0 }
0x12be   :  { %v6064_v19 = vadd.f32 %v6063_v31, %v6012_v9  ;;  %v6065_v26 = vpop.f32.mrb[45].mxu0  ;;  %v6104_v25 = vpop.f32.mrb[44].mxu1 }
0x12bf   :  { %v6066_v27 = vadd.f32 %v6065_v26, %v6012_v9  ;;  %v6067_v28 = vpop.f32.mrb[46].mxu0  ;;  %v6106_v22 = vpop.f32.mrb[45].mxu1  ;;  %v6105_v33 = vadd.f32 %v6104_v25, %v6012_v9 }
0x12c0   :  { %v12539_v24 = vmax.f32 %v6064_v19, 0.0  ;;  %v6068_v36 = vpop.f32.mrb[47].mxu0  ;;  %v6108_v29 = vpop.f32.mrb[46].mxu1  ;;  %v6107_v30 = vadd.f32 %v6106_v22, %v6012_v9  ;;  %v9826_v9 = vld [vmem:[%s14037_s3 + $0x8] sm:$0xf] }
0x12c1   :  { %v12541_v39 = vmax.f32 %v6066_v27, 0.0  ;;  %v6109_v40 = vpop.f32.mrb[47].mxu1  ;;  %v12547_v34 = vmax.f32 %v6105_v33, 0.0  ;;  %v9827_v19 = vld [vmem:[%s14037_s3 + $0xc] sm:$0xf]  ;;  %v6220_v25 = vrot.slane %v9826_v9, %v10062_v11  ;;  %v6216_v36 = vrot.slane %v9826_v9, %v10071_v16 }
0x12c2   :  { %6115 = vrot.lane.b32.xlu1 %v12539_v24, %s9935_s19  ;;  %v12549_v35 = vmax.f32 %v6107_v30, 0.0  ;;  %v6262_v27 = vrot.slane %v9827_v19, %v10062_v11  ;;  %v6228_v29 = vrot.slane %v9826_v9, %v10073_v17  ;;  %v6266_v40 = vrot.slane %v9827_v19, %v10075_v18 }
0x12c3   :  { %6117 = vrot.lane.b32.xlu0 %v12541_v39, %s9935_s19  ;;  %v6270_v38 = vrot.slane %v9827_v19, %v10073_v17 }
0x12c6   :  { %6119 = vrot.lane.b32.xlu1 %v12547_v34, %s9935_s19 }
0x12c7   :  { %6121 = vrot.lane.b32.xlu0 %v12549_v35, %s9935_s19 }
0x12ca   :  { %6157 = vrot.lane.b32.xlu1 %v12539_v24, %s9936_s24 }
0x12cb   :  { %6159 = vrot.lane.b32.xlu0 %v12541_v39, %s9936_s24 }
0x12ce   :  { %6161 = vrot.lane.b32.xlu1 %v12547_v34, %s9936_s24 }
0x12cf   :  { %6163 = vrot.lane.b32.xlu0 %v12549_v35, %s9936_s24 }
0x12d2   :  { %6199 = vrot.lane.b32.xlu1 %v12539_v24, %s9937_s0 }
0x12d3   :  { %6201 = vrot.lane.b32.xlu0 %v12541_v39, %s9937_s0 }
0x12d6   :  { %6203 = vrot.lane.b32.xlu1 %v12547_v34, %s9937_s0 }
0x12d7   :  { %6205 = vrot.lane.b32.xlu0 %v12549_v35, %s9937_s0 }
0x12da   :  { %6241 = vrot.lane.b32.xlu1 %v12539_v24, %s9938_s25 }
0x12db   :  { %6243 = vrot.lane.b32.xlu0 %v12541_v39, %s9938_s25 }
0x12de   :  { %6245 = vrot.lane.b32.xlu1 %v12547_v34, %s9938_s25 }
0x12df   :  { %6247 = vrot.lane.b32.xlu0 %v12549_v35, %s9938_s25 }
0x12e2   :  { %6287 = vrot.lane.b32.xlu1 %v12539_v24, %s9939_s26 }
0x12e3   :  { %6289 = vrot.lane.b32.xlu0 %v12541_v39, %s9939_s26 }
0x12e6   :  { %6291 = vrot.lane.b32.xlu1 %v12547_v34, %s9939_s26 }
0x12e7   :  { %6293 = vrot.lane.b32.xlu0 %v12549_v35, %s9939_s26 }
0x12ea   :  { %6329 = vrot.lane.b32.xlu1 %v12539_v24, %s9940_s27 }
0x12eb   :  { %6331 = vrot.lane.b32.xlu0 %v12541_v39, %s9940_s27 }
0x12ee   :  { %6333 = vrot.lane.b32.xlu1 %v12547_v34, %s9940_s27 }
0x12ef   :  { %6335 = vrot.lane.b32.xlu0 %v12549_v35, %s9940_s27 }
0x12f2   :  { %6371 = vrot.lane.b32.xlu1 %v12539_v24, %s9941_s28 }
0x12f3   :  { %6373 = vrot.lane.b32.xlu0 %v12541_v39, %s9941_s28 }
0x12f6   :  { %6375 = vrot.lane.b32.xlu1 %v12547_v34, %s9941_s28 }
0x12f7   :  { %6377 = vrot.lane.b32.xlu0 %v12549_v35, %s9941_s28 }
0x12fa   :  { %6413 = vrot.lane.b32.xlu1 %v12539_v24, %s9943_s29 }
0x12fb   :  { %6415 = vrot.lane.b32.xlu0 %v12541_v39, %s9943_s29 }
0x12fe   :  { %6417 = vrot.lane.b32.xlu1 %v12547_v34, %s9943_s29 }
0x12ff   :  { %6419 = vrot.lane.b32.xlu0 %v12549_v35, %s9943_s29 }
0x1302   :  { %6517 = vperm.xlu1 %9934, %v9833_v42  }
0x1334   :  { %v6116_v37 = vpop.permute.xlu1 %6115 }
0x1335   :  { %v6118_v45 = vpop.permute.xlu0 %6117 }
0x1336   :  { %v6125_v52 = vsel %vm32_vm0, %v6116_v37, %v6118_v45 }
0x1337   :  { %v6150_v58 = vmul.f32 %v6136_v49, %v6125_v52 }
0x1338   :  { %v6120_v46 = vpop.permute.xlu1 %6119 }
0x1339   :  { %v6122_v32 = vpop.permute.xlu0 %6121  ;;  %v6124_v59 = vsel %vm32_vm0, %v6118_v45, %v6120_v46  ;;  %v6258_v45 = vrot.slane %v9827_v19, %v10071_v16 }
0x133a   :  { %v6123_v1 = vsel %vm32_vm0, %v6120_v46, %v6122_v32  ;;  %v6126_v56 = vsel %vm32_vm0, %v6122_v32, %v6116_v37  ;;  %v6151_v23 = vmul.f32 %v6140_v55, %v6124_v59  ;;  %v6224_v46 = vrot.slane %v9826_v9, %v10075_v18 }
0x133b   :  { %v6149_v61 = vmul.f32 %v6132_v47, %v6126_v56  ;;  %v6152_v14 = vmul.f32 %v6144_v48, %v6123_v1 }
0x133c   :  { %v6158_v44 = vpop.permute.xlu1 %6157 }
0x133d   :  { %v6160_v53 = vpop.permute.xlu0 %6159 }
0x133e   :  { %v6167_v57 = vsel %vm75_vm1, %v6158_v44, %v6160_v53 }
0x133f   :  { %v6192_v50 = vmul.f32 %v6178_v43, %v6167_v57 }
0x1340   :  { %v6162_v6 = vpop.permute.xlu1 %6161 }
0x1341   :  { %v6166_v13 = vsel %vm75_vm1, %v6160_v53, %v6162_v6  ;;  %v6164_v3 = vpop.permute.xlu0 %6163  ;;  %v6494_v0 = vpack.c.bf16 %v6192_v50, %v6150_v58 }
0x1342   :  { %v6193_v5 = vmul.f32 %v6182_v51, %v6166_v13  ;;  %v6165_v2 = vsel %vm75_vm1, %v6162_v6, %v6164_v3  ;;  %v6168_v15 = vsel %vm75_vm1, %v6164_v3, %v6158_v44  ;;  %v9828_v51 = vld [vmem:[%s14037_s3 + $0x14] sm:$0xf] }
0x1343   :  { %v6191_v62 = vmul.f32 %v6174_v60, %v6168_v15  ;;  %v6194_v63 = vmul.f32 %v6186_v54, %v6165_v2  ;;  %6535 = vmatprep.subr.bf16.mxu0 %v6494_v0  ;;  %v6304_v6 = vrot.slane %v9828_v51, %v10071_v16  ;;  %v6312_v2 = vrot.slane %v9828_v51, %v10075_v18 }
0x1344   :  { %v6200_v8 = vpop.permute.xlu1 %6199  ;;  %v6495_v12 = vpack.c.bf16 %v6193_v5, %v6151_v23  ;;  %v6308_v5 = vrot.slane %v9828_v51, %v10062_v11  ;;  %v6316_v15 = vrot.slane %v9828_v51, %v10073_v17 }
0x1345   :  { %v6493_v20 = vpack.c.bf16 %v6191_v62, %v6149_v61  ;;  %v6202_v7 = vpop.permute.xlu0 %6201  ;;  %v6496_v21 = vpack.c.bf16 %v6194_v63, %v6152_v14 }
0x1346   :  { %v6209_v28 = vsel %vm119_vm2, %v6200_v8, %v6202_v7 }
0x1347   :  { %6536 = vmatpush1.bf16.msra.mxu0 %v6493_v20  ;;  %6576 = vmatprep.subr.bf16.mxu1 %v6496_v21  ;;  %v6234_v42 = vmul.f32 %v6220_v25, %v6209_v28 }
0x1348   :  { %6577 = vmatpush1.bf16.msra.mxu1 %v6495_v12  ;;  %v6204_v31 = vpop.permute.xlu1 %6203 }
0x1349   :  { %v6206_v26 = vpop.permute.xlu0 %6205  ;;  %v6208_v43 = vsel %vm119_vm2, %v6202_v7, %v6204_v31 }
0x134a   :  { %v6207_v41 = vsel %vm119_vm2, %v6204_v31, %v6206_v26  ;;  %v6210_v32 = vsel %vm119_vm2, %v6206_v26, %v6200_v8  ;;  %v6235_v55 = vmul.f32 %v6224_v46, %v6208_v43 }
0x134b   :  { %v6233_v58 = vmul.f32 %v6216_v36, %v6210_v32  ;;  %v6236_v50 = vmul.f32 %v6228_v29, %v6207_v41 }
0x134c   :  { %v6242_v22 = vpop.permute.xlu1 %6241 }
0x134d   :  { %v6244_v33 = vpop.permute.xlu0 %6243 }
0x134e   :  { %v6251_v30 = vsel %vm163_vm3, %v6242_v22, %v6244_v33 }
0x134f   :  { %v6276_v37 = vmul.f32 %v6262_v27, %v6251_v30 }
0x1350   :  { %v6246_v49 = vpop.permute.xlu1 %6245 }
0x1351   :  { %v6250_v52 = vsel %vm163_vm3, %v6244_v33, %v6246_v49  ;;  %v6248_v44 = vpop.permute.xlu0 %6247  ;;  %v6498_v53 = vpack.c.bf16 %v6276_v37, %v6234_v42  ;;  %v9831_v37 = vld [vmem:[%s14037_s3 + $0x20] sm:$0xf] }
0x1352   :  { %v6277_v47 = vmul.f32 %v6266_v40, %v6250_v52  ;;  %v6249_v48 = vsel %vm163_vm3, %v6246_v49, %v6248_v44  ;;  %v6252_v57 = vsel %vm163_vm3, %v6248_v44, %v6242_v22  ;;  %v9829_v22 = vld [vmem:[%s14037_s3 + $0x18] sm:$0xf] }
0x1353   :  { %v6275_v60 = vmul.f32 %v6258_v45, %v6252_v57  ;;  %v6278_v54 = vmul.f32 %v6270_v38, %v6249_v48  ;;  %6537 = vmatprep.subr.bf16.mxu0 %v6498_v53  ;;  %v6350_v33 = vrot.slane %v9829_v22, %v10062_v11  ;;  %v6354_v30 = vrot.slane %v9829_v22, %v10075_v18 }
0x1354   :  { %v6288_v1 = vpop.permute.xlu1 %6287  ;;  %v6499_v3 = vpack.c.bf16 %v6277_v47, %v6235_v55  ;;  %v6358_v38 = vrot.slane %v9829_v22, %v10073_v17  ;;  %v6430_v48 = vrot.slane %v9831_v37, %v10071_v16 }
0x1355   :  { %v6497_v56 = vpack.c.bf16 %v6275_v60, %v6233_v58  ;;  %v6290_v59 = vpop.permute.xlu0 %6289  ;;  %v6500_v13 = vpack.c.bf16 %v6278_v54, %v6236_v50 }
0x1356   :  { %v6297_v0 = vsel %vm211_vm4, %v6288_v1, %v6290_v59 }
0x1357   :  { %6538 = vmatpush1.bf16.msra.mxu0 %v6497_v56  ;;  %6578 = vmatprep.subr.bf16.mxu1 %v6500_v13  ;;  %v6321_v14 = vmul.f32 %v6304_v6, %v6297_v0 }
0x1358   :  { %6579 = vmatpush1.bf16.msra.mxu1 %v6499_v3  ;;  %v6292_v61 = vpop.permute.xlu1 %6291 }
0x1359   :  { %v6296_v62 = vsel %vm211_vm4, %v6290_v59, %v6292_v61  ;;  %v6294_v63 = vpop.permute.xlu0 %6293  ;;  %v6501_v31 = vpack.c.bf16 %v6321_v14, %v12539_v24  ;;  %v6442_v14 = vrot.slane %v9831_v37, %v10073_v17 }
0x135a   :  { %v6322_v23 = vmul.f32 %v6308_v5, %v6296_v62  ;;  %v6295_v8 = vsel %vm211_vm4, %v6292_v61, %v6294_v63  ;;  %v6298_v20 = vsel %vm211_vm4, %v6294_v63, %v6288_v1  ;;  %v6438_v61 = vrot.slane %v9831_v37, %v10075_v18 }
0x135b   :  { %v6323_v7 = vmul.f32 %v6312_v2, %v6295_v8  ;;  %v6324_v21 = vmul.f32 %v6316_v15, %v6298_v20  ;;  %v6434_v2 = vrot.slane %v9831_v37, %v10062_v11 }
0x135c   :  { %v6330_v12 = vpop.permute.xlu1 %6329  ;;  %v6502_v9 = vpack.c.bf16 %v6322_v23, %v12541_v39  ;;  %v9830_v39 = vld [vmem:[%s14037_s3 + $0x1c] sm:$0xf] }
0x135d   :  { %v6503_v19 = vpack.c.bf16 %v6323_v7, %v12547_v34  ;;  %v6332_v26 = vpop.permute.xlu0 %6331  ;;  %v6504_v25 = vpack.c.bf16 %v6324_v21, %v12549_v35  ;;  %v6346_v34 = vrot.slane %v9829_v22, %v10071_v16  ;;  %v6388_v35 = vrot.slane %v9830_v39, %v10071_v16 }
0x135e   :  { %6539 = vmatprep.subr.bf16.mxu0 %v6502_v9  ;;  %v6339_v29 = vsel %vm255_vm6, %v6330_v12, %v6332_v26  ;;  %v6392_v42 = vrot.slane %v9830_v39, %v10062_v11  ;;  %v6396_v46 = vrot.slane %v9830_v39, %v10075_v18  ;;  %v6400_v41 = vrot.slane %v9830_v39, %v10073_v17 }
0x135f   :  { %6540 = vmatpush1.bf16.msra.mxu0 %v6501_v31  ;;  %6580 = vmatprep.subr.bf16.mxu1 %v6504_v25  ;;  %v6363_v52 = vmul.f32 %v6346_v34, %v6339_v29 }
0x1360   :  { %6581 = vmatpush1.bf16.msra.mxu1 %v6503_v19  ;;  %v6334_v27 = vpop.permute.xlu1 %6333 }
0x1361   :  { %v6336_v28 = vpop.permute.xlu0 %6335  ;;  %v6338_v45 = vsel %vm255_vm6, %v6332_v26, %v6334_v27 }
0x1362   :  { %v6337_v32 = vsel %vm255_vm6, %v6334_v27, %v6336_v28  ;;  %v6340_v49 = vsel %vm255_vm6, %v6336_v28, %v6330_v12  ;;  %v6364_v57 = vmul.f32 %v6350_v33, %v6338_v45  ;;  %v9832_v28 = vld [vmem:[%s14038_s1 + $0x30] sm:$0xf] }
0x1363   :  { %v6365_v60 = vmul.f32 %v6354_v30, %v6337_v32  ;;  %v6366_v54 = vmul.f32 %v6358_v38, %v6340_v49  ;;  %v9846_v49 = vld [vmem:[%s14036_s2 + $0x68] sm:$0xff] }
0x1364   :  { %v6372_v24 = vpop.permute.xlu1 %6371 }
0x1365   :  { %v6374_v36 = vpop.permute.xlu0 %6373 }
0x1366   :  { %v6381_v40 = vsel %vm299_vm5, %v6372_v24, %v6374_v36 }
0x1367   :  { %v6405_v44 = vmul.f32 %v6388_v35, %v6381_v40 }
0x1368   :  { %v6376_v43 = vpop.permute.xlu1 %6375 }
0x1369   :  { %v6380_v53 = vsel %vm299_vm5, %v6374_v36, %v6376_v43  ;;  %v6378_v47 = vpop.permute.xlu0 %6377  ;;  %v6505_v59 = vpack.c.bf16 %v6405_v44, %v6363_v52  ;;  %v6633_v44 = vld [vmem:[%s14037_s3] sm:$0xf] }
0x136a   :  { %v6406_v51 = vmul.f32 %v6392_v42, %v6380_v53  ;;  %v6379_v58 = vsel %vm299_vm5, %v6376_v43, %v6378_v47  ;;  %v6382_v50 = vsel %vm299_vm5, %v6378_v47, %v6372_v24  ;;  %v9838_v47 = vld [vmem:[%s14037_s3 + $0x4] sm:$0xf] }
0x136b   :  { %v6407_v55 = vmul.f32 %v6396_v46, %v6379_v58  ;;  %v6408_v1 = vmul.f32 %v6400_v41, %v6382_v50 }
0x136c   :  { %v6414_v56 = vpop.permute.xlu1 %6413  ;;  %v6506_v6 = vpack.c.bf16 %v6406_v51, %v6364_v57  ;;  %v6642_v57 = vrot.slane %v6633_v44, %v10062_v11  ;;  %v6684_v51 = vrot.slane %v9838_v47, %v10062_v11 }
0x136d   :  { %v6507_v13 = vpack.c.bf16 %v6407_v55, %v6365_v60  ;;  %v6416_v3 = vpop.permute.xlu0 %6415  ;;  %v6508_v0 = vpack.c.bf16 %v6408_v1, %v6366_v54  ;;  %v6638_v54 = vrot.slane %v6633_v44, %v10071_v16  ;;  %v6650_v55 = vrot.slane %v6633_v44, %v10073_v17 }
0x136e   :  { %v6423_v5 = vsel %vm343_vm7, %v6414_v56, %v6416_v3  ;;  %6541 = vmatprep.subr.bf16.mxu0 %v6506_v6 }
0x136f   :  { %v6447_v15 = vmul.f32 %v6430_v48, %v6423_v5  ;;  %6542 = vmatpush1.bf16.msra.mxu0 %v6505_v59  ;;  %6582 = vmatprep.subr.bf16.mxu1 %v6508_v0  ;;  %v6646_v0 = vrot.slane %v6633_v44, %v10075_v18 }
0x1370   :  { %6583 = vmatpush1.bf16.msra.mxu1 %v6507_v13  ;;  %v6418_v62 = vpop.permute.xlu1 %6417  ;;  %v6680_v13 = vrot.slane %v9838_v47, %v10071_v16 }
0x1371   :  { %v6422_v63 = vsel %vm343_vm7, %v6416_v3, %v6418_v62  ;;  %v6420_v23 = vpop.permute.xlu0 %6419  ;;  %v6509_v8 = vpack.c.bf16 %v6447_v15, %v6447_v15  ;;  %v6692_v3 = vrot.slane %v9838_v47, %v10073_v17 }
0x1372   :  { %v6448_v20 = vmul.f32 %v6434_v2, %v6422_v63  ;;  %v6421_v7 = vsel %vm343_vm7, %v6418_v62, %v6420_v23  ;;  %v6424_v21 = vsel %vm343_vm7, %v6420_v23, %v6414_v56  ;;  %v6688_v56 = vrot.slane %v9838_v47, %v10075_v18 }
0x1373   :  { %v6449_v12 = vmul.f32 %v6438_v61, %v6421_v7  ;;  %v6450_v9 = vmul.f32 %v6442_v14, %v6424_v21  ;;  %v6524_v25 = vsel %vm446_vm8, %v6509_v8, 0 }
0x1374   :  { %v6510_v31 = vpack.c.bf16 %v6448_v20, %v6448_v20 }
0x1375   :  { %v6511_v19 = vpack.c.bf16 %v6449_v12, %v6449_v12  ;;  %v6512_v26 = vpack.c.bf16 %v6450_v9, %v6450_v9 }
0x1376   :  { %9834 = vmatprep.subr.msk.bf16.mxu0 %vm446_vm8, %v6510_v31 }
0x1377   :  { %6544 = vmatpush1.bf16.msra.mxu0 %v6524_v25  ;;  %9836 = vmatprep.subr.msk.bf16.mxu1 %vm446_vm8, %v6512_v26  ;;  %v6530_v27 = vsel %vm446_vm8, %v6511_v19, 0 }
0x1378   :  { %6585 = vmatpush1.bf16.msra.mxu1 %v6530_v27 }
0x137a   :  { %9835 = vmatmul.mubr.msk.bf16.vlgmr.msra.gmra.mrb[48].mxu0 %vm442_vm9, %v9832_v28 }
0x137b   :  { %9837 = vmatmul.mubr.msk.bf16.vlgmr.msra.gmra.mrb[48].mxu1 %vm442_vm9, %v9832_v28  ;;  %7073 = vmatprep.mubr.bf16.mxu0 %v9942_v4 }
0x137c   :  { %7114 = vmatprep.mubr.bf16.mxu1 %v9942_v4 }
0x1381   :  { %v6518_v22 = vpop.permute.xlu1 %6517 }
0x144d   :  { %v6569_v39 = vpop.f32.mrb[48].mxu0 }
0x144e   :  { %v6570_v24 = vadd.f32 %v6569_v39, %v6518_v22  ;;  %v6571_v34 = vpop.f32.mrb[49].mxu0  ;;  %v6610_v33 = vpop.f32.mrb[48].mxu1 }
0x144f   :  { %v6572_v35 = vadd.f32 %v6571_v34, %v6518_v22  ;;  %v6573_v36 = vpop.f32.mrb[50].mxu0  ;;  %v6612_v29 = vpop.f32.mrb[49].mxu1  ;;  %v6611_v40 = vadd.f32 %v6610_v33, %v6518_v22 }
0x1450   :  { %v12749_v30 = vmax.f32 %v6570_v24, 0.0  ;;  %v6574_v42 = vpop.f32.mrb[51].mxu0  ;;  %v6614_v37 = vpop.f32.mrb[50].mxu1  ;;  %v6613_v38 = vadd.f32 %v6612_v29, %v6518_v22  ;;  %v9839_v22 = vld [vmem:[%s14037_s3 + $0x8] sm:$0xf] }
0x1451   :  { %v12751_v45 = vmax.f32 %v6572_v35, 0.0  ;;  %v6615_v46 = vpop.f32.mrb[51].mxu1  ;;  %v12757_v41 = vmax.f32 %v6611_v40, 0.0  ;;  %v9840_v24 = vld [vmem:[%s14037_s3 + $0xc] sm:$0xf]  ;;  %v6726_v33 = vrot.slane %v9839_v22, %v10062_v11  ;;  %v6722_v42 = vrot.slane %v9839_v22, %v10071_v16 }
0x1452   :  { %6621 = vrot.lane.b32.xlu0 %v12749_v30, %s9935_s19  ;;  %v12759_v32 = vmax.f32 %v6613_v38, 0.0  ;;  %v6768_v35 = vrot.slane %v9840_v24, %v10062_v11  ;;  %v6734_v37 = vrot.slane %v9839_v22, %v10073_v17  ;;  %v6772_v46 = vrot.slane %v9840_v24, %v10075_v18 }
0x1453   :  { %6623 = vrot.lane.b32.xlu1 %v12751_v45, %s9935_s19  ;;  %v6776_v44 = vrot.slane %v9840_v24, %v10073_v17 }
0x1456   :  { %6625 = vrot.lane.b32.xlu0 %v12757_v41, %s9935_s19 }
0x1457   :  { %6627 = vrot.lane.b32.xlu1 %v12759_v32, %s9935_s19 }
0x145a   :  { %6663 = vrot.lane.b32.xlu0 %v12749_v30, %s9936_s24 }
0x145b   :  { %6665 = vrot.lane.b32.xlu1 %v12751_v45, %s9936_s24 }
0x145e   :  { %6667 = vrot.lane.b32.xlu0 %v12757_v41, %s9936_s24 }
0x145f   :  { %6669 = vrot.lane.b32.xlu1 %v12759_v32, %s9936_s24 }
0x1462   :  { %6705 = vrot.lane.b32.xlu0 %v12749_v30, %s9937_s0 }
0x1463   :  { %6707 = vrot.lane.b32.xlu1 %v12751_v45, %s9937_s0 }
0x1466   :  { %6709 = vrot.lane.b32.xlu0 %v12757_v41, %s9937_s0 }
0x1467   :  { %6711 = vrot.lane.b32.xlu1 %v12759_v32, %s9937_s0 }
0x146a   :  { %6747 = vrot.lane.b32.xlu0 %v12749_v30, %s9938_s25 }
0x146b   :  { %6749 = vrot.lane.b32.xlu1 %v12751_v45, %s9938_s25 }
0x146e   :  { %6751 = vrot.lane.b32.xlu0 %v12757_v41, %s9938_s25 }
0x146f   :  { %6753 = vrot.lane.b32.xlu1 %v12759_v32, %s9938_s25 }
0x1472   :  { %6793 = vrot.lane.b32.xlu0 %v12749_v30, %s9939_s26 }
0x1473   :  { %6795 = vrot.lane.b32.xlu1 %v12751_v45, %s9939_s26 }
0x1476   :  { %6797 = vrot.lane.b32.xlu0 %v12757_v41, %s9939_s26 }
0x1477   :  { %6799 = vrot.lane.b32.xlu1 %v12759_v32, %s9939_s26 }
0x147a   :  { %6835 = vrot.lane.b32.xlu0 %v12749_v30, %s9940_s27 }
0x147b   :  { %6837 = vrot.lane.b32.xlu1 %v12751_v45, %s9940_s27 }
0x147e   :  { %6839 = vrot.lane.b32.xlu0 %v12757_v41, %s9940_s27 }
0x147f   :  { %6841 = vrot.lane.b32.xlu1 %v12759_v32, %s9940_s27 }
0x1482   :  { %6877 = vrot.lane.b32.xlu0 %v12749_v30, %s9941_s28 }
0x1483   :  { %6879 = vrot.lane.b32.xlu1 %v12751_v45, %s9941_s28 }
0x1486   :  { %6881 = vrot.lane.b32.xlu0 %v12757_v41, %s9941_s28 }
0x1487   :  { %6883 = vrot.lane.b32.xlu1 %v12759_v32, %s9941_s28 }
0x148a   :  { %6919 = vrot.lane.b32.xlu0 %v12749_v30, %s9943_s29 }
0x148b   :  { %6921 = vrot.lane.b32.xlu1 %v12751_v45, %s9943_s29 }
0x148e   :  { %6923 = vrot.lane.b32.xlu0 %v12757_v41, %s9943_s29 }
0x148f   :  { %6925 = vrot.lane.b32.xlu1 %v12759_v32, %s9943_s29 }
0x1492   :  { %7023 = vperm.xlu0 %9933, %v9846_v49  }
0x14c4   :  { %v6622_v43 = vpop.permute.xlu0 %6621 }
0x14c5   :  { %v6624_v52 = vpop.permute.xlu1 %6623 }
0x14c6   :  { %v6631_v58 = vsel %vm32_vm0, %v6622_v43, %v6624_v52 }
0x14c7   :  { %v6656_v6 = vmul.f32 %v6642_v57, %v6631_v58 }
0x14c8   :  { %v6626_v53 = vpop.permute.xlu0 %6625 }
0x14c9   :  { %v6628_v48 = vpop.permute.xlu1 %6627  ;;  %v6630_v61 = vsel %vm32_vm0, %v6624_v52, %v6626_v53  ;;  %v6764_v52 = vrot.slane %v9840_v24, %v10071_v16 }
0x14ca   :  { %v6629_v5 = vsel %vm32_vm0, %v6626_v53, %v6628_v48  ;;  %v6632_v2 = vsel %vm32_vm0, %v6628_v48, %v6622_v43  ;;  %v6657_v31 = vmul.f32 %v6646_v0, %v6630_v61  ;;  %v6730_v53 = vrot.slane %v9839_v22, %v10075_v18 }
0x14cb   :  { %v6655_v7 = vmul.f32 %v6638_v54, %v6632_v2  ;;  %v6658_v21 = vmul.f32 %v6650_v55, %v6629_v5 }
0x14cc   :  { %v6664_v50 = vpop.permute.xlu0 %6663 }
0x14cd   :  { %v6666_v60 = vpop.permute.xlu1 %6665 }
0x14ce   :  { %v6673_v1 = vsel %vm75_vm1, %v6664_v50, %v6666_v60 }
0x14cf   :  { %v6698_v59 = vmul.f32 %v6684_v51, %v6673_v1 }
0x14d0   :  { %v6668_v15 = vpop.permute.xlu0 %6667 }
0x14d1   :  { %v6672_v14 = vsel %vm75_vm1, %v6666_v60, %v6668_v15  ;;  %v6670_v62 = vpop.permute.xlu1 %6669  ;;  %v7000_v63 = vpack.c.bf16 %v6698_v59, %v6656_v6 }
0x14d2   :  { %v6699_v23 = vmul.f32 %v6688_v56, %v6672_v14  ;;  %v6671_v8 = vsel %vm75_vm1, %v6668_v15, %v6670_v62  ;;  %v6674_v20 = vsel %vm75_vm1, %v6670_v62, %v6664_v50  ;;  %v9841_v56 = vld [vmem:[%s14037_s3 + $0x14] sm:$0xf] }
0x14d3   :  { %v6697_v12 = vmul.f32 %v6680_v13, %v6674_v20  ;;  %v6700_v9 = vmul.f32 %v6692_v3, %v6671_v8  ;;  %7041 = vmatprep.subr.bf16.mxu0 %v7000_v63  ;;  %v6810_v15 = vrot.slane %v9841_v56, %v10071_v16  ;;  %v6818_v8 = vrot.slane %v9841_v56, %v10075_v18 }
0x14d4   :  { %v6706_v19 = vpop.permute.xlu0 %6705  ;;  %v7001_v28 = vpack.c.bf16 %v6699_v23, %v6657_v31  ;;  %v6814_v23 = vrot.slane %v9841_v56, %v10062_v11  ;;  %v6822_v20 = vrot.slane %v9841_v56, %v10073_v17 }
0x14d5   :  { %v6999_v26 = vpack.c.bf16 %v6697_v12, %v6655_v7  ;;  %v6708_v25 = vpop.permute.xlu1 %6707  ;;  %v7002_v27 = vpack.c.bf16 %v6700_v9, %v6658_v21 }
0x14d6   :  { %v6715_v36 = vsel %vm119_vm2, %v6706_v19, %v6708_v25 }
0x14d7   :  { %7042 = vmatpush1.bf16.msra.mxu0 %v6999_v26  ;;  %7082 = vmatprep.subr.bf16.mxu1 %v7002_v27  ;;  %v6740_v49 = vmul.f32 %v6726_v33, %v6715_v36 }
0x14d8   :  { %7083 = vmatpush1.bf16.msra.mxu1 %v7001_v28  ;;  %v6710_v39 = vpop.permute.xlu0 %6709 }
0x14d9   :  { %v6712_v34 = vpop.permute.xlu1 %6711  ;;  %v6714_v51 = vsel %vm119_vm2, %v6708_v25, %v6710_v39 }
0x14da   :  { %v6713_v47 = vsel %vm119_vm2, %v6710_v39, %v6712_v34  ;;  %v6716_v48 = vsel %vm119_vm2, %v6712_v34, %v6706_v19  ;;  %v6741_v0 = vmul.f32 %v6730_v53, %v6714_v51 }
0x14db   :  { %v6739_v6 = vmul.f32 %v6722_v42, %v6716_v48  ;;  %v6742_v59 = vmul.f32 %v6734_v37, %v6713_v47 }
0x14dc   :  { %v6748_v29 = vpop.permute.xlu0 %6747 }
0x14dd   :  { %v6750_v40 = vpop.permute.xlu1 %6749 }
0x14de   :  { %v6757_v38 = vsel %vm163_vm3, %v6748_v29, %v6750_v40 }
0x14df   :  { %v6782_v43 = vmul.f32 %v6768_v35, %v6757_v38 }
0x14e0   :  { %v6752_v57 = vpop.permute.xlu0 %6751 }
0x14e1   :  { %v6756_v58 = vsel %vm163_vm3, %v6750_v40, %v6752_v57  ;;  %v6754_v50 = vpop.permute.xlu1 %6753  ;;  %v7004_v60 = vpack.c.bf16 %v6782_v43, %v6740_v49  ;;  %v9844_v43 = vld [vmem:[%s14037_s3 + $0x20] sm:$0xf] }
0x14e2   :  { %v6783_v54 = vmul.f32 %v6772_v46, %v6756_v58  ;;  %v6755_v55 = vsel %vm163_vm3, %v6752_v57, %v6754_v50  ;;  %v6758_v1 = vsel %vm163_vm3, %v6754_v50, %v6748_v29  ;;  %v9842_v29 = vld [vmem:[%s14037_s3 + $0x18] sm:$0xf] }
0x14e3   :  { %v6781_v13 = vmul.f32 %v6764_v52, %v6758_v1  ;;  %v6784_v3 = vmul.f32 %v6776_v44, %v6755_v55  ;;  %7043 = vmatprep.subr.bf16.mxu0 %v7004_v60  ;;  %v6856_v40 = vrot.slane %v9842_v29, %v10062_v11  ;;  %v6860_v38 = vrot.slane %v9842_v29, %v10075_v18 }
0x14e4   :  { %v6794_v5 = vpop.permute.xlu0 %6793  ;;  %v7005_v62 = vpack.c.bf16 %v6783_v54, %v6741_v0  ;;  %v6864_v44 = vrot.slane %v9842_v29, %v10073_v17  ;;  %v6936_v55 = vrot.slane %v9844_v43, %v10071_v16 }
0x14e5   :  { %v7003_v2 = vpack.c.bf16 %v6781_v13, %v6739_v6  ;;  %v6796_v61 = vpop.permute.xlu1 %6795  ;;  %v7006_v14 = vpack.c.bf16 %v6784_v3, %v6742_v59 }
0x14e6   :  { %v6803_v63 = vsel %vm211_vm4, %v6794_v5, %v6796_v61 }
0x14e7   :  { %7044 = vmatpush1.bf16.msra.mxu0 %v7003_v2  ;;  %7084 = vmatprep.subr.bf16.mxu1 %v7006_v14  ;;  %v6827_v21 = vmul.f32 %v6810_v15, %v6803_v63 }
0x14e8   :  { %7085 = vmatpush1.bf16.msra.mxu1 %v7005_v62  ;;  %v6798_v7 = vpop.permute.xlu0 %6797 }
0x14e9   :  { %v6802_v12 = vsel %vm211_vm4, %v6796_v61, %v6798_v7  ;;  %v6800_v9 = vpop.permute.xlu1 %6799  ;;  %v7007_v39 = vpack.c.bf16 %v6827_v21, %v12749_v30  ;;  %v6948_v21 = vrot.slane %v9844_v43, %v10073_v17 }
0x14ea   :  { %v6828_v31 = vmul.f32 %v6814_v23, %v6802_v12  ;;  %v6801_v19 = vsel %vm211_vm4, %v6798_v7, %v6800_v9  ;;  %v6804_v26 = vsel %vm211_vm4, %v6800_v9, %v6794_v5  ;;  %v6944_v7 = vrot.slane %v9844_v43, %v10075_v18 }
0x14eb   :  { %v6829_v25 = vmul.f32 %v6818_v8, %v6801_v19  ;;  %v6830_v27 = vmul.f32 %v6822_v20, %v6804_v26  ;;  %v6940_v8 = vrot.slane %v9844_v43, %v10062_v11 }
0x14ec   :  { %v6836_v28 = vpop.permute.xlu0 %6835  ;;  %v7008_v22 = vpack.c.bf16 %v6828_v31, %v12751_v45  ;;  %v9843_v45 = vld [vmem:[%s14037_s3 + $0x1c] sm:$0xf] }
0x14ed   :  { %v7009_v24 = vpack.c.bf16 %v6829_v25, %v12757_v41  ;;  %v6838_v34 = vpop.permute.xlu1 %6837  ;;  %v7010_v33 = vpack.c.bf16 %v6830_v27, %v12759_v32  ;;  %v6852_v41 = vrot.slane %v9842_v29, %v10071_v16  ;;  %v6894_v32 = vrot.slane %v9843_v45, %v10071_v16 }
0x14ee   :  { %7045 = vmatprep.subr.bf16.mxu0 %v7008_v22  ;;  %v6845_v37 = vsel %vm255_vm6, %v6836_v28, %v6838_v34  ;;  %v6898_v49 = vrot.slane %v9843_v45, %v10062_v11  ;;  %v6902_v53 = vrot.slane %v9843_v45, %v10075_v18  ;;  %v6906_v47 = vrot.slane %v9843_v45, %v10073_v17 }
0x14ef   :  { %7046 = vmatpush1.bf16.msra.mxu0 %v7007_v39  ;;  %7086 = vmatprep.subr.bf16.mxu1 %v7010_v33  ;;  %v6869_v58 = vmul.f32 %v6852_v41, %v6845_v37 }
0x14f0   :  { %7087 = vmatpush1.bf16.msra.mxu1 %v7009_v24  ;;  %v6840_v35 = vpop.permute.xlu0 %6839 }
0x14f1   :  { %v6842_v36 = vpop.permute.xlu1 %6841  ;;  %v6844_v52 = vsel %vm255_vm6, %v6838_v34, %v6840_v35 }
0x14f2   :  { %v6843_v48 = vsel %vm255_vm6, %v6840_v35, %v6842_v36  ;;  %v6846_v57 = vsel %vm255_vm6, %v6842_v36, %v6836_v28  ;;  %v6870_v1 = vmul.f32 %v6856_v40, %v6844_v52  ;;  %v9845_v36 = vld [vmem:[%s14038_s1 + $0x34] sm:$0xf] }
0x14f3   :  { %v6871_v13 = vmul.f32 %v6860_v38, %v6843_v48  ;;  %v6872_v3 = vmul.f32 %v6864_v44, %v6846_v57  ;;  %v9863_v57 = vld [vmem:[%s14036_s2 + $0x70] sm:$0xff] }
0x14f4   :  { %v6878_v30 = vpop.permute.xlu0 %6877 }
0x14f5   :  { %v6880_v42 = vpop.permute.xlu1 %6879 }
0x14f6   :  { %v6887_v46 = vsel %vm299_vm5, %v6878_v30, %v6880_v42 }
0x14f7   :  { %v6911_v50 = vmul.f32 %v6894_v32, %v6887_v46 }
0x14f8   :  { %v6882_v51 = vpop.permute.xlu0 %6881 }
0x14f9   :  { %v6886_v60 = vsel %vm299_vm5, %v6880_v42, %v6882_v51  ;;  %v6884_v54 = vpop.permute.xlu1 %6883  ;;  %v7011_v61 = vpack.c.bf16 %v6911_v50, %v6869_v58  ;;  %v7144_v50 = vld [vmem:[%s14037_s3] sm:$0xf] }
0x14fa   :  { %v6912_v56 = vmul.f32 %v6898_v49, %v6886_v60  ;;  %v6885_v6 = vsel %vm299_vm5, %v6882_v51, %v6884_v54  ;;  %v6888_v59 = vsel %vm299_vm5, %v6884_v54, %v6878_v30  ;;  %v9855_v54 = vld [vmem:[%s14037_s3 + $0x4] sm:$0xf] }
0x14fb   :  { %v6913_v0 = vmul.f32 %v6902_v53, %v6885_v6  ;;  %v6914_v5 = vmul.f32 %v6906_v47, %v6888_v59 }
0x14fc   :  { %v6920_v2 = vpop.permute.xlu0 %6919  ;;  %v7012_v15 = vpack.c.bf16 %v6912_v56, %v6870_v1  ;;  %v7153_v1 = vrot.slane %v7144_v50, %v10062_v11  ;;  %v7195_v56 = vrot.slane %v9855_v54, %v10062_v11 }
0x14fd   :  { %v7013_v14 = vpack.c.bf16 %v6913_v0, %v6871_v13  ;;  %v6922_v62 = vpop.permute.xlu1 %6921  ;;  %v7014_v63 = vpack.c.bf16 %v6914_v5, %v6872_v3  ;;  %v7149_v3 = vrot.slane %v7144_v50, %v10071_v16  ;;  %v7161_v0 = vrot.slane %v7144_v50, %v10073_v17 }
0x14fe   :  { %v6929_v23 = vsel %vm343_vm7, %v6920_v2, %v6922_v62  ;;  %7047 = vmatprep.subr.bf16.mxu0 %v7012_v15 }
0x14ff   :  { %v6953_v20 = vmul.f32 %v6936_v55, %v6929_v23  ;;  %7048 = vmatpush1.bf16.msra.mxu0 %v7011_v61  ;;  %7088 = vmatprep.subr.bf16.mxu1 %v7014_v63  ;;  %v7157_v63 = vrot.slane %v7144_v50, %v10075_v18 }
0x1500   :  { %7089 = vmatpush1.bf16.msra.mxu1 %v7013_v14  ;;  %v6924_v12 = vpop.permute.xlu0 %6923  ;;  %v7191_v14 = vrot.slane %v9855_v54, %v10071_v16 }
0x1501   :  { %v6928_v9 = vsel %vm343_vm7, %v6922_v62, %v6924_v12  ;;  %v6926_v31 = vpop.permute.xlu1 %6925  ;;  %v7015_v19 = vpack.c.bf16 %v6953_v20, %v6953_v20  ;;  %v7203_v62 = vrot.slane %v9855_v54, %v10073_v17 }
0x1502   :  { %v6954_v26 = vmul.f32 %v6940_v8, %v6928_v9  ;;  %v6927_v25 = vsel %vm343_vm7, %v6924_v12, %v6926_v31  ;;  %v6930_v27 = vsel %vm343_vm7, %v6926_v31, %v6920_v2  ;;  %v7199_v2 = vrot.slane %v9855_v54, %v10075_v18 }
0x1503   :  { %v6955_v28 = vmul.f32 %v6944_v7, %v6927_v25  ;;  %v6956_v22 = vmul.f32 %v6948_v21, %v6930_v27  ;;  %v7030_v33 = vsel %vm446_vm8, %v7015_v19, 0 }
0x1504   :  { %v7016_v39 = vpack.c.bf16 %v6954_v26, %v6954_v26 }
0x1505   :  { %v7017_v24 = vpack.c.bf16 %v6955_v28, %v6955_v28  ;;  %v7018_v34 = vpack.c.bf16 %v6956_v22, %v6956_v22 }
0x1506   :  { %9847 = vmatprep.subr.msk.bf16.mxu0 %vm446_vm8, %v7016_v39 }
0x1507   :  { %7050 = vmatpush1.bf16.msra.mxu0 %v7030_v33  ;;  %9849 = vmatprep.subr.msk.bf16.mxu1 %vm446_vm8, %v7018_v34  ;;  %v7036_v35 = vsel %vm446_vm8, %v7017_v24, 0 }
0x1508   :  { %7091 = vmatpush1.bf16.msra.mxu1 %v7036_v35 }
0x150a   :  { %9848 = vmatmul.mubr.msk.bf16.vlgmr.msra.gmra.mrb[52].mxu0 %vm442_vm9, %v9845_v36 }
0x150b   :  { %9850 = vmatmul.mubr.msk.bf16.vlgmr.msra.gmra.mrb[52].mxu1 %vm442_vm9, %v9845_v36  ;;  %7584 = vmatprep.mubr.bf16.mxu0 %v9942_v4 }
0x150c   :  { %7625 = vmatprep.mubr.bf16.mxu1 %v9942_v4 }
0x1511   :  { %v7024_v29 = vpop.permute.xlu0 %7023 }
0x15dd   :  { %v7075_v45 = vpop.f32.mrb[52].mxu0 }
0x15de   :  { %v7076_v30 = vadd.f32 %v7075_v45, %v7024_v29  ;;  %v7077_v41 = vpop.f32.mrb[53].mxu0  ;;  %v7116_v40 = vpop.f32.mrb[52].mxu1 }
0x15df   :  { %v7078_v32 = vadd.f32 %v7077_v41, %v7024_v29  ;;  %v7117_v42 = vadd.f32 %v7116_v40, %v7024_v29  ;;  %v7079_v37 = vpop.f32.mrb[54].mxu0  ;;  %v7118_v38 = vpop.f32.mrb[53].mxu1 }
0x15e0   :  { %v12959_v46 = vmax.f32 %v7076_v30, 0.0  ;;  %v7119_v49 = vadd.f32 %v7118_v38, %v7024_v29  ;;  %v7080_v43 = vpop.f32.mrb[55].mxu0  ;;  %v7120_v52 = vpop.f32.mrb[54].mxu1  ;;  %v9856_v29 = vld [vmem:[%s14037_s3 + $0x8] sm:$0xf] }
0x15e1   :  { %v12961_v44 = vmax.f32 %v7078_v32, 0.0  ;;  %v12963_v53 = vmax.f32 %v7117_v42, 0.0  ;;  %v7121_v47 = vpop.f32.mrb[55].mxu1  ;;  %v9857_v30 = vld [vmem:[%s14037_s3 + $0xc] sm:$0xf]  ;;  %v7237_v40 = vrot.slane %v9856_v29, %v10062_v11  ;;  %v7245_v43 = vrot.slane %v9856_v29, %v10073_v17 }
0x15e2   :  { %v12965_v48 = vmax.f32 %v7119_v49, 0.0  ;;  %7132 = vrot.lane.b32.xlu1 %v12959_v46, %s9935_s19  ;;  %9851 = vst [vmem:[%s14039_s4 + $0x20] sm:$0xff] %v12959_v46  ;;  %v7279_v32 = vrot.slane %v9857_v30, %v10062_v11  ;;  %v7233_v49 = vrot.slane %v9856_v29, %v10071_v16  ;;  %v7283_v47 = vrot.slane %v9857_v30, %v10075_v18 }
0x15e3   :  { %7134 = vrot.lane.b32.xlu0 %v12961_v44, %s9935_s19  ;;  %9852 = vst [vmem:[%s14039_s4 + $0x28] sm:$0xff] %v12961_v44  ;;  %9853 = vst [vmem:[%s14039_s4 + $0x30] sm:$0xff] %v12963_v53  ;;  %v7287_v50 = vrot.slane %v9857_v30, %v10073_v17 }
0x15e4   :  { %9854 = vst [vmem:[%s14039_s4 + $0x38] sm:$0xff] %v12965_v48 }
0x15e6   :  { %7136 = vrot.lane.b32.xlu1 %v12963_v53, %s9935_s19 }
0x15e7   :  { %7138 = vrot.lane.b32.xlu0 %v12965_v48, %s9935_s19 }
0x15ea   :  { %7174 = vrot.lane.b32.xlu1 %v12959_v46, %s9936_s24 }
0x15eb   :  { %7176 = vrot.lane.b32.xlu0 %v12961_v44, %s9936_s24 }
0x15ee   :  { %7178 = vrot.lane.b32.xlu1 %v12963_v53, %s9936_s24 }
0x15ef   :  { %7180 = vrot.lane.b32.xlu0 %v12965_v48, %s9936_s24 }
0x15f2   :  { %7216 = vrot.lane.b32.xlu1 %v12959_v46, %s9937_s0 }
0x15f3   :  { %7218 = vrot.lane.b32.xlu0 %v12961_v44, %s9937_s0 }
0x15f6   :  { %7220 = vrot.lane.b32.xlu1 %v12963_v53, %s9937_s0 }
0x15f7   :  { %7222 = vrot.lane.b32.xlu0 %v12965_v48, %s9937_s0 }
0x15fa   :  { %7258 = vrot.lane.b32.xlu1 %v12959_v46, %s9938_s25 }
0x15fb   :  { %7260 = vrot.lane.b32.xlu0 %v12961_v44, %s9938_s25 }
0x15fe   :  { %7262 = vrot.lane.b32.xlu1 %v12963_v53, %s9938_s25 }
0x15ff   :  { %7264 = vrot.lane.b32.xlu0 %v12965_v48, %s9938_s25 }
0x1602   :  { %7304 = vrot.lane.b32.xlu1 %v12959_v46, %s9939_s26 }
0x1603   :  { %7306 = vrot.lane.b32.xlu0 %v12961_v44, %s9939_s26 }
0x1606   :  { %7308 = vrot.lane.b32.xlu1 %v12963_v53, %s9939_s26 }
0x1607   :  { %7310 = vrot.lane.b32.xlu0 %v12965_v48, %s9939_s26 }
0x160a   :  { %7346 = vrot.lane.b32.xlu1 %v12959_v46, %s9940_s27 }
0x160b   :  { %7348 = vrot.lane.b32.xlu0 %v12961_v44, %s9940_s27 }
0x160e   :  { %7350 = vrot.lane.b32.xlu1 %v12963_v53, %s9940_s27 }
0x160f   :  { %7352 = vrot.lane.b32.xlu0 %v12965_v48, %s9940_s27 }
0x1612   :  { %7388 = vrot.lane.b32.xlu1 %v12959_v46, %s9941_s28 }
0x1613   :  { %7390 = vrot.lane.b32.xlu0 %v12961_v44, %s9941_s28 }
0x1616   :  { %7392 = vrot.lane.b32.xlu1 %v12963_v53, %s9941_s28 }
0x1617   :  { %7394 = vrot.lane.b32.xlu0 %v12965_v48, %s9941_s28 }
0x161a   :  { %7430 = vrot.lane.b32.xlu1 %v12959_v46, %s9943_s29 }
0x161b   :  { %7432 = vrot.lane.b32.xlu0 %v12961_v44, %s9943_s29 }
0x161e   :  { %7434 = vrot.lane.b32.xlu1 %v12963_v53, %s9943_s29 }
0x161f   :  { %7436 = vrot.lane.b32.xlu0 %v12965_v48, %s9943_s29 }
0x1622   :  { %7534 = vperm.xlu1 %9934, %v9863_v57  }
0x1654   :  { %v7133_v51 = vpop.permute.xlu1 %7132 }
0x1655   :  { %v7135_v58 = vpop.permute.xlu0 %7134 }
0x1656   :  { %v7142_v6 = vsel %vm32_vm0, %v7133_v51, %v7135_v58 }
0x1657   :  { %v7167_v15 = vmul.f32 %v7153_v1, %v7142_v6 }
0x1658   :  { %v7137_v60 = vpop.permute.xlu1 %7136 }
0x1659   :  { %v7139_v55 = vpop.permute.xlu0 %7138  ;;  %v7141_v7 = vsel %vm32_vm0, %v7135_v58, %v7137_v60  ;;  %v7275_v58 = vrot.slane %v9857_v30, %v10071_v16 }
0x165a   :  { %v7140_v23 = vsel %vm32_vm0, %v7137_v60, %v7139_v55  ;;  %v7143_v8 = vsel %vm32_vm0, %v7139_v55, %v7133_v51  ;;  %v7168_v39 = vmul.f32 %v7157_v63, %v7141_v7  ;;  %v7241_v60 = vrot.slane %v9856_v29, %v10075_v18 }
0x165b   :  { %v7166_v25 = vmul.f32 %v7149_v3, %v7143_v8  ;;  %v7169_v27 = vmul.f32 %v7161_v0, %v7140_v23 }
0x165c   :  { %v7175_v59 = vpop.permute.xlu1 %7174 }
0x165d   :  { %v7177_v13 = vpop.permute.xlu0 %7176 }
0x165e   :  { %v7184_v5 = vsel %vm75_vm1, %v7175_v59, %v7177_v13 }
0x165f   :  { %v7209_v61 = vmul.f32 %v7195_v56, %v7184_v5 }
0x1660   :  { %v7179_v20 = vpop.permute.xlu1 %7178 }
0x1661   :  { %v7183_v21 = vsel %vm75_vm1, %v7177_v13, %v7179_v20  ;;  %v7181_v12 = vpop.permute.xlu0 %7180  ;;  %v7511_v9 = vpack.c.bf16 %v7209_v61, %v7167_v15 }
0x1662   :  { %v7210_v31 = vmul.f32 %v7199_v2, %v7183_v21  ;;  %v7182_v19 = vsel %vm75_vm1, %v7179_v20, %v7181_v12  ;;  %v7185_v26 = vsel %vm75_vm1, %v7181_v12, %v7175_v59  ;;  %v9858_v2 = vld [vmem:[%s14037_s3 + $0x14] sm:$0xf] }
0x1663   :  { %v7208_v28 = vmul.f32 %v7191_v14, %v7185_v26  ;;  %v7211_v22 = vmul.f32 %v7203_v62, %v7182_v19  ;;  %7552 = vmatprep.subr.bf16.mxu0 %v7511_v9  ;;  %v7321_v20 = vrot.slane %v9858_v2, %v10071_v16  ;;  %v7329_v19 = vrot.slane %v9858_v2, %v10075_v18 }
0x1664   :  { %v7217_v24 = vpop.permute.xlu1 %7216  ;;  %v7512_v36 = vpack.c.bf16 %v7210_v31, %v7168_v39  ;;  %v7325_v31 = vrot.slane %v9858_v2, %v10062_v11  ;;  %v7333_v26 = vrot.slane %v9858_v2, %v10073_v17 }
0x1665   :  { %v7510_v34 = vpack.c.bf16 %v7208_v28, %v7166_v25  ;;  %v7219_v33 = vpop.permute.xlu0 %7218  ;;  %v7513_v35 = vpack.c.bf16 %v7211_v22, %v7169_v27 }
0x1666   :  { %v7226_v42 = vsel %vm119_vm2, %v7217_v24, %v7219_v33 }
0x1667   :  { %7553 = vmatpush1.bf16.msra.mxu0 %v7510_v34  ;;  %7593 = vmatprep.subr.bf16.mxu1 %v7513_v35  ;;  %v7251_v57 = vmul.f32 %v7237_v40, %v7226_v42 }
0x1668   :  { %7594 = vmatpush1.bf16.msra.mxu1 %v7512_v36  ;;  %v7221_v45 = vpop.permute.xlu1 %7220 }
0x1669   :  { %v7223_v41 = vpop.permute.xlu0 %7222  ;;  %v7225_v56 = vsel %vm119_vm2, %v7219_v33, %v7221_v45 }
0x166a   :  { %v7224_v54 = vsel %vm119_vm2, %v7221_v45, %v7223_v41  ;;  %v7227_v55 = vsel %vm119_vm2, %v7223_v41, %v7217_v24  ;;  %v7252_v63 = vmul.f32 %v7241_v60, %v7225_v56 }
0x166b   :  { %v7250_v15 = vmul.f32 %v7233_v49, %v7227_v55  ;;  %v7253_v61 = vmul.f32 %v7245_v43, %v7224_v54 }
0x166c   :  { %v7259_v37 = vpop.permute.xlu1 %7258 }
0x166d   :  { %v7261_v38 = vpop.permute.xlu0 %7260 }
0x166e   :  { %v7268_v52 = vsel %vm163_vm3, %v7259_v37, %v7261_v38 }
0x166f   :  { %v7293_v51 = vmul.f32 %v7279_v32, %v7268_v52 }
0x1670   :  { %v7263_v1 = vpop.permute.xlu1 %7262 }
0x1671   :  { %v7267_v6 = vsel %vm163_vm3, %v7261_v38, %v7263_v1  ;;  %v7265_v59 = vpop.permute.xlu0 %7264  ;;  %v7515_v13 = vpack.c.bf16 %v7293_v51, %v7251_v57  ;;  %v9861_v51 = vld [vmem:[%s14037_s3 + $0x20] sm:$0xf] }
0x1672   :  { %v7294_v3 = vmul.f32 %v7283_v47, %v7267_v6  ;;  %v7266_v0 = vsel %vm163_vm3, %v7263_v1, %v7265_v59  ;;  %v7269_v5 = vsel %vm163_vm3, %v7265_v59, %v7259_v37  ;;  %v9859_v37 = vld [vmem:[%s14037_s3 + $0x18] sm:$0xf] }
0x1673   :  { %v7292_v14 = vmul.f32 %v7275_v58, %v7269_v5  ;;  %v7295_v62 = vmul.f32 %v7287_v50, %v7266_v0  ;;  %7554 = vmatprep.subr.bf16.mxu0 %v7515_v13  ;;  %v7367_v38 = vrot.slane %v9859_v37, %v10062_v11  ;;  %v7371_v52 = vrot.slane %v9859_v37, %v10075_v18 }
0x1674   :  { %v7305_v23 = vpop.permute.xlu1 %7304  ;;  %v7516_v12 = vpack.c.bf16 %v7294_v3, %v7252_v63  ;;  %v7375_v50 = vrot.slane %v9859_v37, %v10073_v17  ;;  %v7447_v0 = vrot.slane %v9861_v51, %v10071_v16 }
0x1675   :  { %v7514_v8 = vpack.c.bf16 %v7292_v14, %v7250_v15  ;;  %v7307_v7 = vpop.permute.xlu0 %7306  ;;  %v7517_v21 = vpack.c.bf16 %v7295_v62, %v7253_v61 }
0x1676   :  { %v7314_v9 = vsel %vm211_vm4, %v7305_v23, %v7307_v7 }
0x1677   :  { %7555 = vmatpush1.bf16.msra.mxu0 %v7514_v8  ;;  %7595 = vmatprep.subr.bf16.mxu1 %v7517_v21  ;;  %v7338_v27 = vmul.f32 %v7321_v20, %v7314_v9 }
0x1678   :  { %7596 = vmatpush1.bf16.msra.mxu1 %v7516_v12  ;;  %v7309_v25 = vpop.permute.xlu1 %7308 }
0x1679   :  { %v7313_v28 = vsel %vm211_vm4, %v7307_v7, %v7309_v25  ;;  %v7311_v22 = vpop.permute.xlu0 %7310  ;;  %v7518_v45 = vpack.c.bf16 %v7338_v27, %v12959_v46  ;;  %v7459_v27 = vrot.slane %v9861_v51, %v10073_v17 }
0x167a   :  { %v7339_v39 = vmul.f32 %v7325_v31, %v7313_v28  ;;  %v7312_v24 = vsel %vm211_vm4, %v7309_v25, %v7311_v22  ;;  %v7315_v34 = vsel %vm211_vm4, %v7311_v22, %v7305_v23  ;;  %v7455_v25 = vrot.slane %v9861_v51, %v10075_v18 }
0x167b   :  { %v7340_v33 = vmul.f32 %v7329_v19, %v7312_v24  ;;  %v7341_v35 = vmul.f32 %v7333_v26, %v7315_v34  ;;  %v7451_v19 = vrot.slane %v9861_v51, %v10062_v11 }
0x167c   :  { %v7347_v36 = vpop.permute.xlu1 %7346  ;;  %v7519_v29 = vpack.c.bf16 %v7339_v39, %v12961_v44  ;;  %v9860_v44 = vld [vmem:[%s14037_s3 + $0x1c] sm:$0xf] }
0x167d   :  { %v7520_v30 = vpack.c.bf16 %v7340_v33, %v12963_v53  ;;  %v7349_v41 = vpop.permute.xlu0 %7348  ;;  %v7521_v40 = vpack.c.bf16 %v7341_v35, %v12965_v48  ;;  %v7363_v53 = vrot.slane %v9859_v37, %v10071_v16  ;;  %v7405_v48 = vrot.slane %v9860_v44, %v10071_v16 }
0x167e   :  { %7556 = vmatprep.subr.bf16.mxu0 %v7519_v29  ;;  %v7356_v43 = vsel %vm255_vm6, %v7347_v36, %v7349_v41  ;;  %v7409_v57 = vrot.slane %v9860_v44, %v10062_v11  ;;  %v7413_v60 = vrot.slane %v9860_v44, %v10075_v18  ;;  %v7417_v54 = vrot.slane %v9860_v44, %v10073_v17 }
0x167f   :  { %7557 = vmatpush1.bf16.msra.mxu0 %v7518_v45  ;;  %7597 = vmatprep.subr.bf16.mxu1 %v7521_v40  ;;  %v7380_v6 = vmul.f32 %v7363_v53, %v7356_v43 }
0x1680   :  { %7598 = vmatpush1.bf16.msra.mxu1 %v7520_v30  ;;  %v7351_v32 = vpop.permute.xlu1 %7350 }
0x1681   :  { %v7353_v42 = vpop.permute.xlu0 %7352  ;;  %v7355_v58 = vsel %vm255_vm6, %v7349_v41, %v7351_v32 }
0x1682   :  { %v7354_v55 = vsel %vm255_vm6, %v7351_v32, %v7353_v42  ;;  %v7357_v1 = vsel %vm255_vm6, %v7353_v42, %v7347_v36  ;;  %v7381_v5 = vmul.f32 %v7367_v38, %v7355_v58  ;;  %v9862_v42 = vld [vmem:[%s14038_s1 + $0x38] sm:$0xf] }
0x1683   :  { %v7382_v14 = vmul.f32 %v7371_v52, %v7354_v55  ;;  %v7383_v62 = vmul.f32 %v7375_v50, %v7357_v1  ;;  %v9876_v1 = vld [vmem:[%s14036_s2 + $0x78] sm:$0xff] }
0x1684   :  { %v7389_v46 = vpop.permute.xlu1 %7388 }
0x1685   :  { %v7391_v49 = vpop.permute.xlu0 %7390 }
0x1686   :  { %v7398_v47 = vsel %vm299_vm5, %v7389_v46, %v7391_v49 }
0x1687   :  { %v7422_v59 = vmul.f32 %v7405_v48, %v7398_v47 }
0x1688   :  { %v7393_v56 = vpop.permute.xlu1 %7392 }
0x1689   :  { %v7397_v13 = vsel %vm299_vm5, %v7391_v49, %v7393_v56  ;;  %v7395_v3 = vpop.permute.xlu0 %7394  ;;  %v7522_v7 = vpack.c.bf16 %v7422_v59, %v7380_v6  ;;  %v7650_v59 = vld [vmem:[%s14037_s3] sm:$0xf] }
0x168a   :  { %v7423_v2 = vmul.f32 %v7409_v57, %v7397_v13  ;;  %v7396_v15 = vsel %vm299_vm5, %v7393_v56, %v7395_v3  ;;  %v7399_v61 = vsel %vm299_vm5, %v7395_v3, %v7389_v46  ;;  %v9868_v3 = vld [vmem:[%s14037_s3 + $0x4] sm:$0xf] }
0x168b   :  { %v7424_v63 = vmul.f32 %v7413_v60, %v7396_v15  ;;  %v7425_v23 = vmul.f32 %v7417_v54, %v7399_v61 }
0x168c   :  { %v7431_v8 = vpop.permute.xlu1 %7430  ;;  %v7523_v20 = vpack.c.bf16 %v7423_v2, %v7381_v5  ;;  %v7659_v5 = vrot.slane %v7650_v59, %v10062_v11  ;;  %v7701_v2 = vrot.slane %v9868_v3, %v10062_v11 }
0x168d   :  { %v7524_v21 = vpack.c.bf16 %v7424_v63, %v7382_v14  ;;  %v7433_v12 = vpop.permute.xlu0 %7432  ;;  %v7525_v9 = vpack.c.bf16 %v7425_v23, %v7383_v62  ;;  %v7655_v62 = vrot.slane %v7650_v59, %v10071_v16  ;;  %v7667_v63 = vrot.slane %v7650_v59, %v10073_v17 }
0x168e   :  { %v7440_v31 = vsel %vm343_vm7, %v7431_v8, %v7433_v12  ;;  %7558 = vmatprep.subr.bf16.mxu0 %v7523_v20 }
0x168f   :  { %v7464_v26 = vmul.f32 %v7447_v0, %v7440_v31  ;;  %7559 = vmatpush1.bf16.msra.mxu0 %v7522_v7  ;;  %7599 = vmatprep.subr.bf16.mxu1 %v7525_v9  ;;  %v7663_v9 = vrot.slane %v7650_v59, %v10075_v18 }
0x1690   :  { %7600 = vmatpush1.bf16.msra.mxu1 %v7524_v21  ;;  %v7435_v28 = vpop.permute.xlu1 %7434  ;;  %v7697_v21 = vrot.slane %v9868_v3, %v10071_v16 }
0x1691   :  { %v7439_v22 = vsel %vm343_vm7, %v7433_v12, %v7435_v28  ;;  %v7437_v39 = vpop.permute.xlu0 %7436  ;;  %v7526_v24 = vpack.c.bf16 %v7464_v26, %v7464_v26  ;;  %v7709_v12 = vrot.slane %v9868_v3, %v10073_v17 }
0x1692   :  { %v7465_v34 = vmul.f32 %v7451_v19, %v7439_v22  ;;  %v7438_v33 = vsel %vm343_vm7, %v7435_v28, %v7437_v39  ;;  %v7441_v35 = vsel %vm343_vm7, %v7437_v39, %v7431_v8  ;;  %v7705_v8 = vrot.slane %v9868_v3, %v10075_v18 }
0x1693   :  { %v7466_v36 = vmul.f32 %v7455_v25, %v7438_v33  ;;  %v7467_v29 = vmul.f32 %v7459_v27, %v7441_v35  ;;  %v7541_v40 = vsel %vm446_vm8, %v7526_v24, 0 }
0x1694   :  { %v7527_v45 = vpack.c.bf16 %v7465_v34, %v7465_v34 }
0x1695   :  { %v7528_v30 = vpack.c.bf16 %v7466_v36, %v7466_v36  ;;  %v7529_v41 = vpack.c.bf16 %v7467_v29, %v7467_v29 }
0x1696   :  { %9864 = vmatprep.subr.msk.bf16.mxu0 %vm446_vm8, %v7527_v45 }
0x1697   :  { %7561 = vmatpush1.bf16.msra.mxu0 %v7541_v40  ;;  %9866 = vmatprep.subr.msk.bf16.mxu1 %vm446_vm8, %v7529_v41  ;;  %v7547_v32 = vsel %vm446_vm8, %v7528_v30, 0 }
0x1698   :  { %7602 = vmatpush1.bf16.msra.mxu1 %v7547_v32 }
0x169a   :  { %9865 = vmatmul.mubr.msk.bf16.vlgmr.msra.gmra.mrb[56].mxu0 %vm442_vm9, %v9862_v42 }
0x169b   :  { %9867 = vmatmul.mubr.msk.bf16.vlgmr.msra.gmra.mrb[56].mxu1 %vm442_vm9, %v9862_v42  ;;  %8090 = vmatprep.mubr.bf16.mxu0 %v9942_v4 }
0x169c   :  { %8131 = vmatprep.mubr.bf16.mxu1 %v9942_v4 }
0x16a1   :  { %v7535_v37 = vpop.permute.xlu1 %7534 }
0x176d   :  { %v7586_v44 = vpop.f32.mrb[56].mxu0 }
0x176e   :  { %v7587_v46 = vadd.f32 %v7586_v44, %v7535_v37  ;;  %v7588_v53 = vpop.f32.mrb[57].mxu0  ;;  %v7627_v38 = vpop.f32.mrb[56].mxu1 }
0x176f   :  { %v7589_v48 = vadd.f32 %v7588_v53, %v7535_v37  ;;  %v7590_v49 = vpop.f32.mrb[58].mxu0  ;;  %v7629_v43 = vpop.f32.mrb[57].mxu1  ;;  %v7628_v47 = vadd.f32 %v7627_v38, %v7535_v37 }
0x1770   :  { %v13185_v52 = vmax.f32 %v7587_v46, 0.0  ;;  %v7591_v57 = vpop.f32.mrb[59].mxu0  ;;  %v7631_v51 = vpop.f32.mrb[58].mxu1  ;;  %v7630_v50 = vadd.f32 %v7629_v43, %v7535_v37  ;;  %v9869_v37 = vld [vmem:[%s14037_s3 + $0x8] sm:$0xf] }
0x1771   :  { %v13187_v58 = vmax.f32 %v7589_v48, 0.0  ;;  %v7632_v60 = vpop.f32.mrb[59].mxu1  ;;  %v13193_v54 = vmax.f32 %v7628_v47, 0.0  ;;  %v9870_v46 = vld [vmem:[%s14037_s3 + $0xc] sm:$0xf]  ;;  %v7743_v38 = vrot.slane %v9869_v37, %v10062_v11  ;;  %v7739_v57 = vrot.slane %v9869_v37, %v10071_v16 }
0x1772   :  { %7638 = vrot.lane.b32.xlu0 %v13185_v52, %s9935_s19  ;;  %v13195_v55 = vmax.f32 %v7630_v50, 0.0  ;;  %v7785_v48 = vrot.slane %v9870_v46, %v10062_v11  ;;  %v7751_v51 = vrot.slane %v9869_v37, %v10073_v17  ;;  %v7789_v60 = vrot.slane %v9870_v46, %v10075_v18 }
0x1773   :  { %7640 = vrot.lane.b32.xlu1 %v13187_v58, %s9935_s19  ;;  %v7793_v59 = vrot.slane %v9870_v46, %v10073_v17 }
0x1776   :  { %7642 = vrot.lane.b32.xlu0 %v13193_v54, %s9935_s19 }
0x1777   :  { %7644 = vrot.lane.b32.xlu1 %v13195_v55, %s9935_s19 }
0x177a   :  { %7680 = vrot.lane.b32.xlu0 %v13185_v52, %s9936_s24 }
0x177b   :  { %7682 = vrot.lane.b32.xlu1 %v13187_v58, %s9936_s24 }
0x177e   :  { %7684 = vrot.lane.b32.xlu0 %v13193_v54, %s9936_s24 }
0x177f   :  { %7686 = vrot.lane.b32.xlu1 %v13195_v55, %s9936_s24 }
0x1782   :  { %7722 = vrot.lane.b32.xlu0 %v13185_v52, %s9937_s0 }
0x1783   :  { %7724 = vrot.lane.b32.xlu1 %v13187_v58, %s9937_s0 }
0x1786   :  { %7726 = vrot.lane.b32.xlu0 %v13193_v54, %s9937_s0 }
0x1787   :  { %7728 = vrot.lane.b32.xlu1 %v13195_v55, %s9937_s0 }
0x178a   :  { %7764 = vrot.lane.b32.xlu0 %v13185_v52, %s9938_s25 }
0x178b   :  { %7766 = vrot.lane.b32.xlu1 %v13187_v58, %s9938_s25 }
0x178e   :  { %7768 = vrot.lane.b32.xlu0 %v13193_v54, %s9938_s25 }
0x178f   :  { %7770 = vrot.lane.b32.xlu1 %v13195_v55, %s9938_s25 }
0x1792   :  { %7810 = vrot.lane.b32.xlu0 %v13185_v52, %s9939_s26 }
0x1793   :  { %7812 = vrot.lane.b32.xlu1 %v13187_v58, %s9939_s26 }
0x1796   :  { %7814 = vrot.lane.b32.xlu0 %v13193_v54, %s9939_s26 }
0x1797   :  { %7816 = vrot.lane.b32.xlu1 %v13195_v55, %s9939_s26 }
0x179a   :  { %7852 = vrot.lane.b32.xlu0 %v13185_v52, %s9940_s27 }
0x179b   :  { %7854 = vrot.lane.b32.xlu1 %v13187_v58, %s9940_s27 }
0x179e   :  { %7856 = vrot.lane.b32.xlu0 %v13193_v54, %s9940_s27 }
0x179f   :  { %7858 = vrot.lane.b32.xlu1 %v13195_v55, %s9940_s27 }
0x17a2   :  { %7894 = vrot.lane.b32.xlu0 %v13185_v52, %s9941_s28 }
0x17a3   :  { %7896 = vrot.lane.b32.xlu1 %v13187_v58, %s9941_s28 }
0x17a6   :  { %7898 = vrot.lane.b32.xlu0 %v13193_v54, %s9941_s28 }
0x17a7   :  { %7900 = vrot.lane.b32.xlu1 %v13195_v55, %s9941_s28 }
0x17aa   :  { %7936 = vrot.lane.b32.xlu0 %v13185_v52, %s9943_s29 }
0x17ab   :  { %7938 = vrot.lane.b32.xlu1 %v13187_v58, %s9943_s29 }
0x17ae   :  { %7940 = vrot.lane.b32.xlu0 %v13193_v54, %s9943_s29 }
0x17af   :  { %7942 = vrot.lane.b32.xlu1 %v13195_v55, %s9943_s29 }
0x17b2   :  { %8040 = vperm.xlu0 %9933, %v9876_v1  }
0x17e4   :  { %v7639_v56 = vpop.permute.xlu0 %7638 }
0x17e5   :  { %v7641_v6 = vpop.permute.xlu1 %7640 }
0x17e6   :  { %v7648_v15 = vsel %vm32_vm0, %v7639_v56, %v7641_v6 }
0x17e7   :  { %v7673_v20 = vmul.f32 %v7659_v5, %v7648_v15 }
0x17e8   :  { %v7643_v13 = vpop.permute.xlu0 %7642 }
0x17e9   :  { %v7645_v0 = vpop.permute.xlu1 %7644  ;;  %v7647_v25 = vsel %vm32_vm0, %v7641_v6, %v7643_v13  ;;  %v7781_v6 = vrot.slane %v9870_v46, %v10071_v16 }
0x17ea   :  { %v7646_v31 = vsel %vm32_vm0, %v7643_v13, %v7645_v0  ;;  %v7649_v19 = vsel %vm32_vm0, %v7645_v0, %v7639_v56  ;;  %v7674_v45 = vmul.f32 %v7663_v9, %v7647_v25  ;;  %v7747_v13 = vrot.slane %v9869_v37, %v10075_v18 }
0x17eb   :  { %v7672_v33 = vmul.f32 %v7655_v62, %v7649_v19  ;;  %v7675_v35 = vmul.f32 %v7667_v63, %v7646_v31 }
0x17ec   :  { %v7681_v61 = vpop.permute.xlu0 %7680 }
0x17ed   :  { %v7683_v14 = vpop.permute.xlu1 %7682 }
0x17ee   :  { %v7690_v23 = vsel %vm75_vm1, %v7681_v61, %v7683_v14 }
0x17ef   :  { %v7715_v7 = vmul.f32 %v7701_v2, %v7690_v23 }
0x17f0   :  { %v7685_v26 = vpop.permute.xlu0 %7684 }
0x17f1   :  { %v7689_v27 = vsel %vm75_vm1, %v7683_v14, %v7685_v26  ;;  %v7687_v28 = vpop.permute.xlu1 %7686  ;;  %v8017_v22 = vpack.c.bf16 %v7715_v7, %v7673_v20 }
0x17f2   :  { %v7716_v39 = vmul.f32 %v7705_v8, %v7689_v27  ;;  %v7688_v24 = vsel %vm75_vm1, %v7685_v26, %v7687_v28  ;;  %v7691_v34 = vsel %vm75_vm1, %v7687_v28, %v7681_v61  ;;  %v9871_v8 = vld [vmem:[%s14037_s3 + $0x14] sm:$0xf] }
0x17f3   :  { %v7714_v36 = vmul.f32 %v7697_v21, %v7691_v34  ;;  %v7717_v29 = vmul.f32 %v7709_v12, %v7688_v24  ;;  %8058 = vmatprep.subr.bf16.mxu0 %v8017_v22  ;;  %v7827_v26 = vrot.slane %v9871_v8, %v10071_v16  ;;  %v7835_v24 = vrot.slane %v9871_v8, %v10075_v18 }
0x17f4   :  { %v7723_v30 = vpop.permute.xlu0 %7722  ;;  %v8018_v42 = vpack.c.bf16 %v7716_v39, %v7674_v45  ;;  %v7831_v39 = vrot.slane %v9871_v8, %v10062_v11  ;;  %v7839_v34 = vrot.slane %v9871_v8, %v10073_v17 }
0x17f5   :  { %v8016_v41 = vpack.c.bf16 %v7714_v36, %v7672_v33  ;;  %v7725_v40 = vpop.permute.xlu1 %7724  ;;  %v8019_v32 = vpack.c.bf16 %v7717_v29, %v7675_v35 }
0x17f6   :  { %v7732_v49 = vsel %vm119_vm2, %v7723_v30, %v7725_v40 }
0x17f7   :  { %8059 = vmatpush1.bf16.msra.mxu0 %v8016_v41  ;;  %8099 = vmatprep.subr.bf16.mxu1 %v8019_v32  ;;  %v7757_v1 = vmul.f32 %v7743_v38, %v7732_v49 }
0x17f8   :  { %8100 = vmatpush1.bf16.msra.mxu1 %v8018_v42  ;;  %v7727_v44 = vpop.permute.xlu0 %7726 }
0x17f9   :  { %v7729_v53 = vpop.permute.xlu1 %7728  ;;  %v7731_v2 = vsel %vm119_vm2, %v7725_v40, %v7727_v44 }
0x17fa   :  { %v7730_v3 = vsel %vm119_vm2, %v7727_v44, %v7729_v53  ;;  %v7733_v0 = vsel %vm119_vm2, %v7729_v53, %v7723_v30  ;;  %v7758_v9 = vmul.f32 %v7747_v13, %v7731_v2 }
0x17fb   :  { %v7756_v20 = vmul.f32 %v7739_v57, %v7733_v0  ;;  %v7759_v7 = vmul.f32 %v7751_v51, %v7730_v3 }
0x17fc   :  { %v7765_v43 = vpop.permute.xlu0 %7764 }
0x17fd   :  { %v7767_v47 = vpop.permute.xlu1 %7766 }
0x17fe   :  { %v7774_v50 = vsel %vm163_vm3, %v7765_v43, %v7767_v47 }
0x17ff   :  { %v7799_v56 = vmul.f32 %v7785_v48, %v7774_v50 }
0x1800   :  { %v7769_v5 = vpop.permute.xlu0 %7768 }
0x1801   :  { %v7773_v15 = vsel %vm163_vm3, %v7767_v47, %v7769_v5  ;;  %v7771_v61 = vpop.permute.xlu1 %7770  ;;  %v8021_v14 = vpack.c.bf16 %v7799_v56, %v7757_v1  ;;  %v9874_v56 = vld [vmem:[%s14037_s3 + $0x20] sm:$0xf] }
0x1802   :  { %v7800_v62 = vmul.f32 %v7789_v60, %v7773_v15  ;;  %v7772_v63 = vsel %vm163_vm3, %v7769_v5, %v7771_v61  ;;  %v7775_v23 = vsel %vm163_vm3, %v7771_v61, %v7765_v43  ;;  %v9872_v43 = vld [vmem:[%s14037_s3 + $0x18] sm:$0xf] }
0x1803   :  { %v7798_v21 = vmul.f32 %v7781_v6, %v7775_v23  ;;  %v7801_v12 = vmul.f32 %v7793_v59, %v7772_v63  ;;  %8060 = vmatprep.subr.bf16.mxu0 %v8021_v14  ;;  %v7873_v47 = vrot.slane %v9872_v43, %v10062_v11  ;;  %v7877_v50 = vrot.slane %v9872_v43, %v10075_v18 }
0x1804   :  { %v7811_v31 = vpop.permute.xlu0 %7810  ;;  %v8022_v28 = vpack.c.bf16 %v7800_v62, %v7758_v9  ;;  %v7881_v59 = vrot.slane %v9872_v43, %v10073_v17  ;;  %v7953_v63 = vrot.slane %v9874_v56, %v10071_v16 }
0x1805   :  { %v8020_v19 = vpack.c.bf16 %v7798_v21, %v7756_v20  ;;  %v7813_v25 = vpop.permute.xlu1 %7812  ;;  %v8023_v27 = vpack.c.bf16 %v7801_v12, %v7759_v7 }
0x1806   :  { %v7820_v22 = vsel %vm211_vm4, %v7811_v31, %v7813_v25 }
0x1807   :  { %8061 = vmatpush1.bf16.msra.mxu0 %v8020_v19  ;;  %8101 = vmatprep.subr.bf16.mxu1 %v8023_v27  ;;  %v7844_v35 = vmul.f32 %v7827_v26, %v7820_v22 }
0x1808   :  { %8102 = vmatpush1.bf16.msra.mxu1 %v8022_v28  ;;  %v7815_v33 = vpop.permute.xlu0 %7814 }
0x1809   :  { %v7819_v36 = vsel %vm211_vm4, %v7813_v25, %v7815_v33  ;;  %v7817_v29 = vpop.permute.xlu1 %7816  ;;  %v8024_v44 = vpack.c.bf16 %v7844_v35, %v13185_v52  ;;  %v7965_v35 = vrot.slane %v9874_v56, %v10073_v17 }
0x180a   :  { %v7845_v45 = vmul.f32 %v7831_v39, %v7819_v36  ;;  %v7818_v30 = vsel %vm211_vm4, %v7815_v33, %v7817_v29  ;;  %v7821_v41 = vsel %vm211_vm4, %v7817_v29, %v7811_v31  ;;  %v7961_v33 = vrot.slane %v9874_v56, %v10075_v18 }
0x180b   :  { %v7846_v40 = vmul.f32 %v7835_v24, %v7818_v30  ;;  %v7847_v32 = vmul.f32 %v7839_v34, %v7821_v41  ;;  %v7957_v24 = vrot.slane %v9874_v56, %v10062_v11 }
0x180c   :  { %v7853_v42 = vpop.permute.xlu0 %7852  ;;  %v8025_v37 = vpack.c.bf16 %v7845_v45, %v13187_v58  ;;  %v9873_v58 = vld [vmem:[%s14037_s3 + $0x1c] sm:$0xf] }
0x180d   :  { %v8026_v46 = vpack.c.bf16 %v7846_v40, %v13193_v54  ;;  %v7855_v53 = vpop.permute.xlu1 %7854  ;;  %v8027_v38 = vpack.c.bf16 %v7847_v32, %v13195_v55  ;;  %v7869_v54 = vrot.slane %v9872_v43, %v10071_v16  ;;  %v7911_v55 = vrot.slane %v9873_v58, %v10071_v16 }
0x180e   :  { %8062 = vmatprep.subr.bf16.mxu0 %v8025_v37  ;;  %v7862_v51 = vsel %vm255_vm6, %v7853_v42, %v7855_v53  ;;  %v7915_v1 = vrot.slane %v9873_v58, %v10062_v11  ;;  %v7919_v13 = vrot.slane %v9873_v58, %v10075_v18  ;;  %v7923_v3 = vrot.slane %v9873_v58, %v10073_v17 }
0x180f   :  { %8063 = vmatpush1.bf16.msra.mxu0 %v8024_v44  ;;  %8103 = vmatprep.subr.bf16.mxu1 %v8027_v38  ;;  %v7886_v15 = vmul.f32 %v7869_v54, %v7862_v51 }
0x1810   :  { %8104 = vmatpush1.bf16.msra.mxu1 %v8026_v46  ;;  %v7857_v48 = vpop.permute.xlu0 %7856 }
0x1811   :  { %v7859_v49 = vpop.permute.xlu1 %7858  ;;  %v7861_v6 = vsel %vm255_vm6, %v7855_v53, %v7857_v48 }
0x1812   :  { %v7860_v0 = vsel %vm255_vm6, %v7857_v48, %v7859_v49  ;;  %v7863_v5 = vsel %vm255_vm6, %v7859_v49, %v7853_v42  ;;  %v7887_v23 = vmul.f32 %v7873_v47, %v7861_v6  ;;  %v9875_v49 = vld [vmem:[%s14038_s1 + $0x3c] sm:$0xf] }
0x1813   :  { %v7888_v21 = vmul.f32 %v7877_v50, %v7860_v0  ;;  %v7889_v12 = vmul.f32 %v7881_v59, %v7863_v5  ;;  %v9889_v5 = vld [vmem:[%s14036_s2 + $0x80] sm:$0xff] }
0x1814   :  { %v7895_v52 = vpop.permute.xlu0 %7894 }
0x1815   :  { %v7897_v57 = vpop.permute.xlu1 %7896 }
0x1816   :  { %v7904_v60 = vsel %vm299_vm5, %v7895_v52, %v7897_v57 }
0x1817   :  { %v7928_v61 = vmul.f32 %v7911_v55, %v7904_v60 }
0x1818   :  { %v7899_v2 = vpop.permute.xlu0 %7898 }
0x1819   :  { %v7903_v14 = vsel %vm299_vm5, %v7897_v57, %v7899_v2  ;;  %v7901_v62 = vpop.permute.xlu1 %7900  ;;  %v8028_v25 = vpack.c.bf16 %v7928_v61, %v7886_v15  ;;  %v8156_v61 = vld [vmem:[%s14037_s3] sm:$0xf] }
0x181a   :  { %v7929_v8 = vmul.f32 %v7915_v1, %v7903_v14  ;;  %v7902_v20 = vsel %vm299_vm5, %v7899_v2, %v7901_v62  ;;  %v7905_v7 = vsel %vm299_vm5, %v7901_v62, %v7895_v52  ;;  %v9881_v62 = vld [vmem:[%s14037_s3 + $0x4] sm:$0xf] }
0x181b   :  { %v7930_v9 = vmul.f32 %v7919_v13, %v7902_v20  ;;  %v7931_v31 = vmul.f32 %v7923_v3, %v7905_v7 }
0x181c   :  { %v7937_v19 = vpop.permute.xlu0 %7936  ;;  %v8029_v26 = vpack.c.bf16 %v7929_v8, %v7887_v23  ;;  %v8165_v23 = vrot.slane %v8156_v61, %v10062_v11  ;;  %v8207_v8 = vrot.slane %v9881_v62, %v10062_v11 }
0x181d   :  { %v8030_v27 = vpack.c.bf16 %v7930_v9, %v7888_v21  ;;  %v7939_v28 = vpop.permute.xlu1 %7938  ;;  %v8031_v22 = vpack.c.bf16 %v7931_v31, %v7889_v12  ;;  %v8161_v12 = vrot.slane %v8156_v61, %v10071_v16  ;;  %v8173_v9 = vrot.slane %v8156_v61, %v10073_v17 }
0x181e   :  { %v7946_v39 = vsel %vm343_vm7, %v7937_v19, %v7939_v28  ;;  %8064 = vmatprep.subr.bf16.mxu0 %v8029_v26 }
0x181f   :  { %v7970_v34 = vmul.f32 %v7953_v63, %v7946_v39  ;;  %8065 = vmatpush1.bf16.msra.mxu0 %v8028_v25  ;;  %8105 = vmatprep.subr.bf16.mxu1 %v8031_v22  ;;  %v8169_v22 = vrot.slane %v8156_v61, %v10075_v18 }
0x1820   :  { %8106 = vmatpush1.bf16.msra.mxu1 %v8030_v27  ;;  %v7941_v36 = vpop.permute.xlu0 %7940  ;;  %v8203_v27 = vrot.slane %v9881_v62, %v10071_v16 }
0x1821   :  { %v7945_v29 = vsel %vm343_vm7, %v7939_v28, %v7941_v36  ;;  %v7943_v45 = vpop.permute.xlu1 %7942  ;;  %v8032_v30 = vpack.c.bf16 %v7970_v34, %v7970_v34  ;;  %v8215_v28 = vrot.slane %v9881_v62, %v10073_v17 }
0x1822   :  { %v7971_v41 = vmul.f32 %v7957_v24, %v7945_v29  ;;  %v7944_v40 = vsel %vm343_vm7, %v7941_v36, %v7943_v45  ;;  %v7947_v32 = vsel %vm343_vm7, %v7943_v45, %v7937_v19  ;;  %v8211_v19 = vrot.slane %v9881_v62, %v10075_v18 }
0x1823   :  { %v7972_v42 = vmul.f32 %v7961_v33, %v7944_v40  ;;  %v7973_v37 = vmul.f32 %v7965_v35, %v7947_v32  ;;  %v8047_v38 = vsel %vm446_vm8, %v8032_v30, 0 }
0x1824   :  { %v8033_v44 = vpack.c.bf16 %v7971_v41, %v7971_v41 }
0x1825   :  { %v8034_v46 = vpack.c.bf16 %v7972_v42, %v7972_v42  ;;  %v8035_v53 = vpack.c.bf16 %v7973_v37, %v7973_v37 }
0x1826   :  { %9877 = vmatprep.subr.msk.bf16.mxu0 %vm446_vm8, %v8033_v44 }
0x1827   :  { %8067 = vmatpush1.bf16.msra.mxu0 %v8047_v38  ;;  %9879 = vmatprep.subr.msk.bf16.mxu1 %vm446_vm8, %v8035_v53  ;;  %v8053_v48 = vsel %vm446_vm8, %v8034_v46, 0 }
0x1828   :  { %8108 = vmatpush1.bf16.msra.mxu1 %v8053_v48 }
0x182a   :  { %9878 = vmatmul.mubr.msk.bf16.vlgmr.msra.gmra.mrb[60].mxu0 %vm442_vm9, %v9875_v49 }
0x182b   :  { %9880 = vmatmul.mubr.msk.bf16.vlgmr.msra.gmra.mrb[60].mxu1 %vm442_vm9, %v9875_v49  ;;  %8596 = vmatprep.mubr.bf16.mxu0 %v9942_v4 }
0x182c   :  { %8637 = vmatprep.mubr.bf16.mxu1 %v9942_v4 }
0x1831   :  { %v8041_v43 = vpop.permute.xlu0 %8040 }
0x18fd   :  { %v8092_v58 = vpop.f32.mrb[60].mxu0 }
0x18fe   :  { %v8093_v52 = vadd.f32 %v8092_v58, %v8041_v43  ;;  %v8094_v54 = vpop.f32.mrb[61].mxu0  ;;  %v8133_v47 = vpop.f32.mrb[60].mxu1 }
0x18ff   :  { %v8095_v55 = vadd.f32 %v8094_v54, %v8041_v43  ;;  %v8096_v57 = vpop.f32.mrb[62].mxu0  ;;  %v8135_v51 = vpop.f32.mrb[61].mxu1  ;;  %v8134_v60 = vadd.f32 %v8133_v47, %v8041_v43 }
0x1900   :  { %v13395_v50 = vmax.f32 %v8093_v52, 0.0  ;;  %v8097_v1 = vpop.f32.mrb[63].mxu0  ;;  %v8137_v56 = vpop.f32.mrb[62].mxu1  ;;  %v8136_v59 = vadd.f32 %v8135_v51, %v8041_v43  ;;  %v9882_v43 = vld [vmem:[%s14037_s3 + $0x8] sm:$0xf] }
0x1901   :  { %v13397_v6 = vmax.f32 %v8095_v55, 0.0  ;;  %v8138_v13 = vpop.f32.mrb[63].mxu1  ;;  %v13403_v3 = vmax.f32 %v8134_v60, 0.0  ;;  %v9883_v52 = vld [vmem:[%s14037_s3 + $0xc] sm:$0xf]  ;;  %v8249_v47 = vrot.slane %v9882_v43, %v10062_v11  ;;  %v8245_v1 = vrot.slane %v9882_v43, %v10071_v16 }
0x1902   :  { %8144 = vrot.lane.b32.xlu1 %v13395_v50, %s9935_s19  ;;  %v13405_v0 = vmax.f32 %v8136_v59, 0.0  ;;  %v8291_v55 = vrot.slane %v9883_v52, %v10062_v11  ;;  %v8257_v56 = vrot.slane %v9882_v43, %v10073_v17  ;;  %v8295_v13 = vrot.slane %v9883_v52, %v10075_v18 }
0x1903   :  { %8146 = vrot.lane.b32.xlu0 %v13397_v6, %s9935_s19  ;;  %v8299_v61 = vrot.slane %v9883_v52, %v10073_v17 }
0x1906   :  { %8148 = vrot.lane.b32.xlu1 %v13403_v3, %s9935_s19 }
0x1907   :  { %8150 = vrot.lane.b32.xlu0 %v13405_v0, %s9935_s19 }
0x190a   :  { %8186 = vrot.lane.b32.xlu1 %v13395_v50, %s9936_s24 }
0x190b   :  { %8188 = vrot.lane.b32.xlu0 %v13397_v6, %s9936_s24 }
0x190e   :  { %8190 = vrot.lane.b32.xlu1 %v13403_v3, %s9936_s24 }
0x190f   :  { %8192 = vrot.lane.b32.xlu0 %v13405_v0, %s9936_s24 }
0x1912   :  { %8228 = vrot.lane.b32.xlu1 %v13395_v50, %s9937_s0 }
0x1913   :  { %8230 = vrot.lane.b32.xlu0 %v13397_v6, %s9937_s0 }
0x1916   :  { %8232 = vrot.lane.b32.xlu1 %v13403_v3, %s9937_s0 }
0x1917   :  { %8234 = vrot.lane.b32.xlu0 %v13405_v0, %s9937_s0 }
0x191a   :  { %8270 = vrot.lane.b32.xlu1 %v13395_v50, %s9938_s25 }
0x191b   :  { %8272 = vrot.lane.b32.xlu0 %v13397_v6, %s9938_s25 }
0x191e   :  { %8274 = vrot.lane.b32.xlu1 %v13403_v3, %s9938_s25 }
0x191f   :  { %8276 = vrot.lane.b32.xlu0 %v13405_v0, %s9938_s25 }
0x1922   :  { %8316 = vrot.lane.b32.xlu1 %v13395_v50, %s9939_s26 }
0x1923   :  { %8318 = vrot.lane.b32.xlu0 %v13397_v6, %s9939_s26 }
0x1926   :  { %8320 = vrot.lane.b32.xlu1 %v13403_v3, %s9939_s26 }
0x1927   :  { %8322 = vrot.lane.b32.xlu0 %v13405_v0, %s9939_s26 }
0x192a   :  { %8358 = vrot.lane.b32.xlu1 %v13395_v50, %s9940_s27 }
0x192b   :  { %8360 = vrot.lane.b32.xlu0 %v13397_v6, %s9940_s27 }
0x192e   :  { %8362 = vrot.lane.b32.xlu1 %v13403_v3, %s9940_s27 }
0x192f   :  { %8364 = vrot.lane.b32.xlu0 %v13405_v0, %s9940_s27 }
0x1932   :  { %8400 = vrot.lane.b32.xlu1 %v13395_v50, %s9941_s28 }
0x1933   :  { %8402 = vrot.lane.b32.xlu0 %v13397_v6, %s9941_s28 }
0x1936   :  { %8404 = vrot.lane.b32.xlu1 %v13403_v3, %s9941_s28 }
0x1937   :  { %8406 = vrot.lane.b32.xlu0 %v13405_v0, %s9941_s28 }
0x193a   :  { %8442 = vrot.lane.b32.xlu1 %v13395_v50, %s9943_s29 }
0x193b   :  { %8444 = vrot.lane.b32.xlu0 %v13397_v6, %s9943_s29 }
0x193e   :  { %8446 = vrot.lane.b32.xlu1 %v13403_v3, %s9943_s29 }
0x193f   :  { %8448 = vrot.lane.b32.xlu0 %v13405_v0, %s9943_s29 }
0x1942   :  { %8546 = vperm.xlu1 %9934, %v9889_v5  }
0x1974   :  { %v8145_v2 = vpop.permute.xlu1 %8144 }
0x1975   :  { %v8147_v15 = vpop.permute.xlu0 %8146 }
0x1976   :  { %v8154_v20 = vsel %vm32_vm0, %v8145_v2, %v8147_v15 }
0x1977   :  { %v8179_v26 = vmul.f32 %v8165_v23, %v8154_v20 }
0x1978   :  { %v8149_v14 = vpop.permute.xlu1 %8148 }
0x1979   :  { %v8151_v63 = vpop.permute.xlu0 %8150  ;;  %v8153_v33 = vsel %vm32_vm0, %v8147_v15, %v8149_v14  ;;  %v8287_v15 = vrot.slane %v9883_v52, %v10071_v16 }
0x197a   :  { %v8152_v39 = vsel %vm32_vm0, %v8149_v14, %v8151_v63  ;;  %v8155_v24 = vsel %vm32_vm0, %v8151_v63, %v8145_v2  ;;  %v8180_v44 = vmul.f32 %v8169_v22, %v8153_v33  ;;  %v8253_v14 = vrot.slane %v9882_v43, %v10075_v18 }
0x197b   :  { %v8178_v40 = vmul.f32 %v8161_v12, %v8155_v24  ;;  %v8181_v32 = vmul.f32 %v8173_v9, %v8152_v39 }
0x197c   :  { %v8187_v7 = vpop.permute.xlu1 %8186 }
0x197d   :  { %v8189_v21 = vpop.permute.xlu0 %8188 }
0x197e   :  { %v8196_v31 = vsel %vm75_vm1, %v8187_v7, %v8189_v21 }
0x197f   :  { %v8221_v25 = vmul.f32 %v8207_v8, %v8196_v31 }
0x1980   :  { %v8191_v34 = vpop.permute.xlu1 %8190 }
0x1981   :  { %v8195_v35 = vsel %vm75_vm1, %v8189_v21, %v8191_v34  ;;  %v8193_v36 = vpop.permute.xlu0 %8192  ;;  %v8523_v29 = vpack.c.bf16 %v8221_v25, %v8179_v26 }
0x1982   :  { %v8222_v45 = vmul.f32 %v8211_v19, %v8195_v35  ;;  %v8194_v30 = vsel %vm75_vm1, %v8191_v34, %v8193_v36  ;;  %v8197_v41 = vsel %vm75_vm1, %v8193_v36, %v8187_v7  ;;  %v9884_v19 = vld [vmem:[%s14037_s3 + $0x14] sm:$0xf] }
0x1983   :  { %v8220_v42 = vmul.f32 %v8203_v27, %v8197_v41  ;;  %v8223_v37 = vmul.f32 %v8215_v28, %v8194_v30  ;;  %8564 = vmatprep.subr.bf16.mxu0 %v8523_v29  ;;  %v8333_v34 = vrot.slane %v9884_v19, %v10071_v16  ;;  %v8341_v30 = vrot.slane %v9884_v19, %v10075_v18 }
0x1984   :  { %v8229_v46 = vpop.permute.xlu1 %8228  ;;  %v8524_v49 = vpack.c.bf16 %v8222_v45, %v8180_v44  ;;  %v8337_v45 = vrot.slane %v9884_v19, %v10062_v11  ;;  %v8345_v41 = vrot.slane %v9884_v19, %v10073_v17 }
0x1985   :  { %v8522_v53 = vpack.c.bf16 %v8220_v42, %v8178_v40  ;;  %v8231_v38 = vpop.permute.xlu0 %8230  ;;  %v8525_v48 = vpack.c.bf16 %v8223_v37, %v8181_v32 }
0x1986   :  { %v8238_v57 = vsel %vm119_vm2, %v8229_v46, %v8231_v38 }
0x1987   :  { %8565 = vmatpush1.bf16.msra.mxu0 %v8522_v53  ;;  %8605 = vmatprep.subr.bf16.mxu1 %v8525_v48  ;;  %v8263_v5 = vmul.f32 %v8249_v47, %v8238_v57 }
0x1988   :  { %8606 = vmatpush1.bf16.msra.mxu1 %v8524_v49  ;;  %v8233_v58 = vpop.permute.xlu1 %8232 }
0x1989   :  { %v8235_v54 = vpop.permute.xlu0 %8234  ;;  %v8237_v8 = vsel %vm119_vm2, %v8231_v38, %v8233_v58 }
0x198a   :  { %v8236_v62 = vsel %vm119_vm2, %v8233_v58, %v8235_v54  ;;  %v8239_v63 = vsel %vm119_vm2, %v8235_v54, %v8229_v46  ;;  %v8264_v22 = vmul.f32 %v8253_v14, %v8237_v8 }
0x198b   :  { %v8262_v26 = vmul.f32 %v8245_v1, %v8239_v63  ;;  %v8265_v25 = vmul.f32 %v8257_v56, %v8236_v62 }
0x198c   :  { %v8271_v51 = vpop.permute.xlu1 %8270 }
0x198d   :  { %v8273_v60 = vpop.permute.xlu0 %8272 }
0x198e   :  { %v8280_v59 = vsel %vm163_vm3, %v8271_v51, %v8273_v60 }
0x198f   :  { %v8305_v2 = vmul.f32 %v8291_v55, %v8280_v59 }
0x1990   :  { %v8275_v23 = vpop.permute.xlu1 %8274 }
0x1991   :  { %v8279_v20 = vsel %vm163_vm3, %v8273_v60, %v8275_v23  ;;  %v8277_v7 = vpop.permute.xlu0 %8276  ;;  %v8527_v21 = vpack.c.bf16 %v8305_v2, %v8263_v5  ;;  %v9887_v2 = vld [vmem:[%s14037_s3 + $0x20] sm:$0xf] }
0x1992   :  { %v8306_v12 = vmul.f32 %v8295_v13, %v8279_v20  ;;  %v8278_v9 = vsel %vm163_vm3, %v8275_v23, %v8277_v7  ;;  %v8281_v31 = vsel %vm163_vm3, %v8277_v7, %v8271_v51  ;;  %v9885_v51 = vld [vmem:[%s14037_s3 + $0x18] sm:$0xf] }
0x1993   :  { %v8304_v27 = vmul.f32 %v8287_v15, %v8281_v31  ;;  %v8307_v28 = vmul.f32 %v8299_v61, %v8278_v9  ;;  %8566 = vmatprep.subr.bf16.mxu0 %v8527_v21  ;;  %v8379_v60 = vrot.slane %v9885_v51, %v10062_v11  ;;  %v8383_v59 = vrot.slane %v9885_v51, %v10075_v18 }
0x1994   :  { %v8317_v39 = vpop.permute.xlu1 %8316  ;;  %v8528_v36 = vpack.c.bf16 %v8306_v12, %v8264_v22  ;;  %v8387_v61 = vrot.slane %v9885_v51, %v10073_v17  ;;  %v8459_v9 = vrot.slane %v9887_v2, %v10071_v16 }
0x1995   :  { %v8526_v24 = vpack.c.bf16 %v8304_v27, %v8262_v26  ;;  %v8319_v33 = vpop.permute.xlu0 %8318  ;;  %v8529_v35 = vpack.c.bf16 %v8307_v28, %v8265_v25 }
0x1996   :  { %v8326_v29 = vsel %vm211_vm4, %v8317_v39, %v8319_v33 }
0x1997   :  { %8567 = vmatpush1.bf16.msra.mxu0 %v8526_v24  ;;  %8607 = vmatprep.subr.bf16.mxu1 %v8529_v35  ;;  %v8350_v32 = vmul.f32 %v8333_v34, %v8326_v29 }
0x1998   :  { %8608 = vmatpush1.bf16.msra.mxu1 %v8528_v36  ;;  %v8321_v40 = vpop.permute.xlu1 %8320 }
0x1999   :  { %v8325_v42 = vsel %vm211_vm4, %v8319_v33, %v8321_v40  ;;  %v8323_v37 = vpop.permute.xlu0 %8322  ;;  %v8530_v58 = vpack.c.bf16 %v8350_v32, %v13395_v50  ;;  %v8471_v32 = vrot.slane %v9887_v2, %v10073_v17 }
0x199a   :  { %v8351_v44 = vmul.f32 %v8337_v45, %v8325_v42  ;;  %v8324_v46 = vsel %vm211_vm4, %v8321_v40, %v8323_v37  ;;  %v8327_v53 = vsel %vm211_vm4, %v8323_v37, %v8317_v39  ;;  %v8467_v40 = vrot.slane %v9887_v2, %v10075_v18 }
0x199b   :  { %v8352_v38 = vmul.f32 %v8341_v30, %v8324_v46  ;;  %v8353_v48 = vmul.f32 %v8345_v41, %v8327_v53  ;;  %v8463_v30 = vrot.slane %v9887_v2, %v10062_v11 }
0x199c   :  { %v8359_v49 = vpop.permute.xlu1 %8358  ;;  %v8531_v43 = vpack.c.bf16 %v8351_v44, %v13397_v6  ;;  %v9886_v6 = vld [vmem:[%s14037_s3 + $0x1c] sm:$0xf] }
0x199d   :  { %v8532_v52 = vpack.c.bf16 %v8352_v38, %v13403_v3  ;;  %v8361_v54 = vpop.permute.xlu0 %8360  ;;  %v8533_v47 = vpack.c.bf16 %v8353_v48, %v13405_v0  ;;  %v8375_v3 = vrot.slane %v9885_v51, %v10071_v16  ;;  %v8417_v0 = vrot.slane %v9886_v6, %v10071_v16 }
0x199e   :  { %8568 = vmatprep.subr.bf16.mxu0 %v8531_v43  ;;  %v8368_v56 = vsel %vm255_vm6, %v8359_v49, %v8361_v54  ;;  %v8421_v5 = vrot.slane %v9886_v6, %v10062_v11  ;;  %v8425_v14 = vrot.slane %v9886_v6, %v10075_v18  ;;  %v8429_v62 = vrot.slane %v9886_v6, %v10073_v17 }
0x199f   :  { %8569 = vmatpush1.bf16.msra.mxu0 %v8530_v58  ;;  %8609 = vmatprep.subr.bf16.mxu1 %v8533_v47  ;;  %v8392_v20 = vmul.f32 %v8375_v3, %v8368_v56 }
0x19a0   :  { %8610 = vmatpush1.bf16.msra.mxu1 %v8532_v52  ;;  %v8363_v55 = vpop.permute.xlu1 %8362 }
0x19a1   :  { %v8365_v57 = vpop.permute.xlu0 %8364  ;;  %v8367_v15 = vsel %vm255_vm6, %v8361_v54, %v8363_v55 }
0x19a2   :  { %v8366_v63 = vsel %vm255_vm6, %v8363_v55, %v8365_v57  ;;  %v8369_v23 = vsel %vm255_vm6, %v8365_v57, %v8359_v49  ;;  %v8393_v31 = vmul.f32 %v8379_v60, %v8367_v15  ;;  %v9888_v57 = vld [vmem:[%s14038_s1 + $0x40] sm:$0xf] }
0x19a3   :  { %v8394_v27 = vmul.f32 %v8383_v59, %v8366_v63  ;;  %v8395_v28 = vmul.f32 %v8387_v61, %v8369_v23  ;;  %v9902_v23 = vld [vmem:[%s14036_s2 + $0x88] sm:$0xff] }
0x19a4   :  { %v8401_v50 = vpop.permute.xlu1 %8400 }
0x19a5   :  { %v8403_v1 = vpop.permute.xlu0 %8402 }
0x19a6   :  { %v8410_v13 = vsel %vm299_vm5, %v8401_v50, %v8403_v1 }
0x19a7   :  { %v8434_v7 = vmul.f32 %v8417_v0, %v8410_v13 }
0x19a8   :  { %v8405_v8 = vpop.permute.xlu1 %8404 }
0x19a9   :  { %v8409_v21 = vsel %vm299_vm5, %v8403_v1, %v8405_v8  ;;  %v8407_v12 = vpop.permute.xlu0 %8406  ;;  %v8534_v33 = vpack.c.bf16 %v8434_v7, %v8392_v20  ;;  %v8662_v7 = vld [vmem:[%s14037_s3] sm:$0xf] }
0x19aa   :  { %v8435_v19 = vmul.f32 %v8421_v5, %v8409_v21  ;;  %v8408_v26 = vsel %vm299_vm5, %v8405_v8, %v8407_v12  ;;  %v8411_v25 = vsel %vm299_vm5, %v8407_v12, %v8401_v50  ;;  %v9894_v12 = vld [vmem:[%s14037_s3 + $0x4] sm:$0xf] }
0x19ab   :  { %v8436_v22 = vmul.f32 %v8425_v14, %v8408_v26  ;;  %v8437_v39 = vmul.f32 %v8429_v62, %v8411_v25 }
0x19ac   :  { %v8443_v24 = vpop.permute.xlu1 %8442  ;;  %v8535_v34 = vpack.c.bf16 %v8435_v19, %v8393_v31  ;;  %v8671_v31 = vrot.slane %v8662_v7, %v10062_v11  ;;  %v8713_v19 = vrot.slane %v9894_v12, %v10062_v11 }
0x19ad   :  { %v8536_v35 = vpack.c.bf16 %v8436_v22, %v8394_v27  ;;  %v8445_v36 = vpop.permute.xlu0 %8444  ;;  %v8537_v29 = vpack.c.bf16 %v8437_v39, %v8395_v28  ;;  %v8667_v28 = vrot.slane %v8662_v7, %v10071_v16  ;;  %v8679_v22 = vrot.slane %v8662_v7, %v10073_v17 }
0x19ae   :  { %v8452_v45 = vsel %vm343_vm7, %v8443_v24, %v8445_v36  ;;  %8570 = vmatprep.subr.bf16.mxu0 %v8535_v34 }
0x19af   :  { %v8476_v41 = vmul.f32 %v8459_v9, %v8452_v45  ;;  %8571 = vmatpush1.bf16.msra.mxu0 %v8534_v33  ;;  %8611 = vmatprep.subr.bf16.mxu1 %v8537_v29  ;;  %v8675_v29 = vrot.slane %v8662_v7, %v10075_v18 }
0x19b0   :  { %8612 = vmatpush1.bf16.msra.mxu1 %v8536_v35  ;;  %v8447_v42 = vpop.permute.xlu1 %8446  ;;  %v8709_v35 = vrot.slane %v9894_v12, %v10071_v16 }
0x19b1   :  { %v8451_v37 = vsel %vm343_vm7, %v8445_v36, %v8447_v42  ;;  %v8449_v44 = vpop.permute.xlu0 %8448  ;;  %v8538_v46 = vpack.c.bf16 %v8476_v41, %v8476_v41  ;;  %v8721_v36 = vrot.slane %v9894_v12, %v10073_v17 }
0x19b2   :  { %v8477_v53 = vmul.f32 %v8463_v30, %v8451_v37  ;;  %v8450_v38 = vsel %vm343_vm7, %v8447_v42, %v8449_v44  ;;  %v8453_v48 = vsel %vm343_vm7, %v8449_v44, %v8443_v24  ;;  %v8717_v24 = vrot.slane %v9894_v12, %v10075_v18 }
0x19b3   :  { %v8478_v49 = vmul.f32 %v8467_v40, %v8450_v38  ;;  %v8479_v43 = vmul.f32 %v8471_v32, %v8453_v48  ;;  %v8553_v47 = vsel %vm446_vm8, %v8538_v46, 0 }
0x19b4   :  { %v8539_v58 = vpack.c.bf16 %v8477_v53, %v8477_v53 }
0x19b5   :  { %v8540_v52 = vpack.c.bf16 %v8478_v49, %v8478_v49  ;;  %v8541_v54 = vpack.c.bf16 %v8479_v43, %v8479_v43 }
0x19b6   :  { %9890 = vmatprep.subr.msk.bf16.mxu0 %vm446_vm8, %v8539_v58 }
0x19b7   :  { %8573 = vmatpush1.bf16.msra.mxu0 %v8553_v47  ;;  %9892 = vmatprep.subr.msk.bf16.mxu1 %vm446_vm8, %v8541_v54  ;;  %v8559_v55 = vsel %vm446_vm8, %v8540_v52, 0 }
0x19b8   :  { %8614 = vmatpush1.bf16.msra.mxu1 %v8559_v55 }
0x19ba   :  { %9891 = vmatmul.mubr.msk.bf16.vlgmr.msra.gmra.mrb[64].mxu0 %vm442_vm9, %v9888_v57 }
0x19bb   :  { %9893 = vmatmul.mubr.msk.bf16.vlgmr.msra.gmra.mrb[64].mxu1 %vm442_vm9, %v9888_v57  ;;  %9102 = vmatprep.mubr.bf16.mxu0 %v9942_v4 }
0x19bc   :  { %9143 = vmatprep.mubr.bf16.mxu1 %v9942_v4 }
0x19c1   :  { %v8547_v51 = vpop.permute.xlu1 %8546 }
0x1a8d   :  { %v8598_v6 = vpop.f32.mrb[64].mxu0 }
0x1a8e   :  { %v8599_v50 = vadd.f32 %v8598_v6, %v8547_v51  ;;  %v8600_v3 = vpop.f32.mrb[65].mxu0  ;;  %v8639_v60 = vpop.f32.mrb[64].mxu1 }
0x1a8f   :  { %v8601_v0 = vadd.f32 %v8600_v3, %v8547_v51  ;;  %v8602_v1 = vpop.f32.mrb[66].mxu0  ;;  %v8641_v56 = vpop.f32.mrb[65].mxu1  ;;  %v8640_v13 = vadd.f32 %v8639_v60, %v8547_v51 }
0x1a90   :  { %v13605_v59 = vmax.f32 %v8599_v50, 0.0  ;;  %v8603_v5 = vpop.f32.mrb[67].mxu0  ;;  %v8643_v2 = vpop.f32.mrb[66].mxu1  ;;  %v8642_v61 = vadd.f32 %v8641_v56, %v8547_v51  ;;  %v9895_v51 = vld [vmem:[%s14037_s3 + $0x8] sm:$0xf] }
0x1a91   :  { %v13607_v15 = vmax.f32 %v8601_v0, 0.0  ;;  %v8644_v14 = vpop.f32.mrb[67].mxu1  ;;  %v13613_v62 = vmax.f32 %v8640_v13, 0.0  ;;  %v9896_v50 = vld [vmem:[%s14037_s3 + $0xc] sm:$0xf]  ;;  %v8755_v60 = vrot.slane %v9895_v51, %v10062_v11  ;;  %v8751_v5 = vrot.slane %v9895_v51, %v10071_v16 }
0x1a92   :  { %8650 = vrot.lane.b32.xlu0 %v13605_v59, %s9935_s19  ;;  %v13615_v63 = vmax.f32 %v8642_v61, 0.0  ;;  %v8797_v0 = vrot.slane %v9896_v50, %v10062_v11  ;;  %v8763_v2 = vrot.slane %v9895_v51, %v10073_v17  ;;  %v8801_v14 = vrot.slane %v9896_v50, %v10075_v18 }
0x1a93   :  { %8652 = vrot.lane.b32.xlu1 %v13607_v15, %s9935_s19  ;;  %v8805_v7 = vrot.slane %v9896_v50, %v10073_v17 }
0x1a96   :  { %8654 = vrot.lane.b32.xlu0 %v13613_v62, %s9935_s19 }
0x1a97   :  { %8656 = vrot.lane.b32.xlu1 %v13615_v63, %s9935_s19 }
0x1a9a   :  { %8692 = vrot.lane.b32.xlu0 %v13605_v59, %s9936_s24 }
0x1a9b   :  { %8694 = vrot.lane.b32.xlu1 %v13607_v15, %s9936_s24 }
0x1a9e   :  { %8696 = vrot.lane.b32.xlu0 %v13613_v62, %s9936_s24 }
0x1a9f   :  { %8698 = vrot.lane.b32.xlu1 %v13615_v63, %s9936_s24 }
0x1aa2   :  { %8734 = vrot.lane.b32.xlu0 %v13605_v59, %s9937_s0 }
0x1aa3   :  { %8736 = vrot.lane.b32.xlu1 %v13607_v15, %s9937_s0 }
0x1aa6   :  { %8738 = vrot.lane.b32.xlu0 %v13613_v62, %s9937_s0 }
0x1aa7   :  { %8740 = vrot.lane.b32.xlu1 %v13615_v63, %s9937_s0 }
0x1aaa   :  { %8776 = vrot.lane.b32.xlu0 %v13605_v59, %s9938_s25 }
0x1aab   :  { %8778 = vrot.lane.b32.xlu1 %v13607_v15, %s9938_s25 }
0x1aae   :  { %8780 = vrot.lane.b32.xlu0 %v13613_v62, %s9938_s25 }
0x1aaf   :  { %8782 = vrot.lane.b32.xlu1 %v13615_v63, %s9938_s25 }
0x1ab2   :  { %8822 = vrot.lane.b32.xlu0 %v13605_v59, %s9939_s26 }
0x1ab3   :  { %8824 = vrot.lane.b32.xlu1 %v13607_v15, %s9939_s26 }
0x1ab6   :  { %8826 = vrot.lane.b32.xlu0 %v13613_v62, %s9939_s26 }
0x1ab7   :  { %8828 = vrot.lane.b32.xlu1 %v13615_v63, %s9939_s26 }
0x1aba   :  { %8864 = vrot.lane.b32.xlu0 %v13605_v59, %s9940_s27 }
0x1abb   :  { %8866 = vrot.lane.b32.xlu1 %v13607_v15, %s9940_s27 }
0x1abe   :  { %8868 = vrot.lane.b32.xlu0 %v13613_v62, %s9940_s27 }
0x1abf   :  { %8870 = vrot.lane.b32.xlu1 %v13615_v63, %s9940_s27 }
0x1ac2   :  { %8906 = vrot.lane.b32.xlu0 %v13605_v59, %s9941_s28 }
0x1ac3   :  { %8908 = vrot.lane.b32.xlu1 %v13607_v15, %s9941_s28 }
0x1ac6   :  { %8910 = vrot.lane.b32.xlu0 %v13613_v62, %s9941_s28 }
0x1ac7   :  { %8912 = vrot.lane.b32.xlu1 %v13615_v63, %s9941_s28 }
0x1aca   :  { %8948 = vrot.lane.b32.xlu0 %v13605_v59, %s9943_s29 }
0x1acb   :  { %8950 = vrot.lane.b32.xlu1 %v13607_v15, %s9943_s29 }
0x1ace   :  { %8952 = vrot.lane.b32.xlu0 %v13613_v62, %s9943_s29 }
0x1acf   :  { %8954 = vrot.lane.b32.xlu1 %v13615_v63, %s9943_s29 }
0x1ad2   :  { %9052 = vperm.xlu0 %9933, %v9902_v23  }
0x1b04   :  { %v8651_v8 = vpop.permute.xlu0 %8650 }
0x1b05   :  { %v8653_v20 = vpop.permute.xlu1 %8652 }
0x1b06   :  { %v8660_v26 = vsel %vm32_vm0, %v8651_v8, %v8653_v20 }
0x1b07   :  { %v8685_v34 = vmul.f32 %v8671_v31, %v8660_v26 }
0x1b08   :  { %v8655_v21 = vpop.permute.xlu0 %8654 }
0x1b09   :  { %v8657_v9 = vpop.permute.xlu1 %8656  ;;  %v8659_v40 = vsel %vm32_vm0, %v8653_v20, %v8655_v21  ;;  %v8793_v20 = vrot.slane %v9896_v50, %v10071_v16 }
0x1b0a   :  { %v8658_v45 = vsel %vm32_vm0, %v8655_v21, %v8657_v9  ;;  %v8661_v30 = vsel %vm32_vm0, %v8657_v9, %v8651_v8  ;;  %v8686_v58 = vmul.f32 %v8675_v29, %v8659_v40  ;;  %v8759_v21 = vrot.slane %v9895_v51, %v10075_v18 }
0x1b0b   :  { %v8684_v38 = vmul.f32 %v8667_v28, %v8661_v30  ;;  %v8687_v48 = vmul.f32 %v8679_v22, %v8658_v45 }
0x1b0c   :  { %v8693_v25 = vpop.permute.xlu0 %8692 }
0x1b0d   :  { %v8695_v27 = vpop.permute.xlu1 %8694 }
0x1b0e   :  { %v8702_v39 = vsel %vm75_vm1, %v8693_v25, %v8695_v27 }
0x1b0f   :  { %v8727_v33 = vmul.f32 %v8713_v19, %v8702_v39 }
0x1b10   :  { %v8697_v41 = vpop.permute.xlu0 %8696 }
0x1b11   :  { %v8701_v32 = vsel %vm75_vm1, %v8695_v27, %v8697_v41  ;;  %v8699_v42 = vpop.permute.xlu1 %8698  ;;  %v9029_v37 = vpack.c.bf16 %v8727_v33, %v8685_v34 }
0x1b12   :  { %v8728_v44 = vmul.f32 %v8717_v24, %v8701_v32  ;;  %v8700_v46 = vsel %vm75_vm1, %v8697_v41, %v8699_v42  ;;  %v8703_v53 = vsel %vm75_vm1, %v8699_v42, %v8693_v25  ;;  %v9897_v24 = vld [vmem:[%s14037_s3 + $0x14] sm:$0xf] }
0x1b13   :  { %v8726_v49 = vmul.f32 %v8709_v35, %v8703_v53  ;;  %v8729_v43 = vmul.f32 %v8721_v36, %v8700_v46  ;;  %9070 = vmatprep.subr.bf16.mxu0 %v9029_v37  ;;  %v8839_v41 = vrot.slane %v9897_v24, %v10071_v16  ;;  %v8847_v46 = vrot.slane %v9897_v24, %v10075_v18 }
0x1b14   :  { %v8735_v52 = vpop.permute.xlu0 %8734  ;;  %v9030_v57 = vpack.c.bf16 %v8728_v44, %v8686_v58  ;;  %v8843_v44 = vrot.slane %v9897_v24, %v10062_v11  ;;  %v8851_v53 = vrot.slane %v9897_v24, %v10073_v17 }
0x1b15   :  { %v9028_v54 = vpack.c.bf16 %v8726_v49, %v8684_v38  ;;  %v8737_v47 = vpop.permute.xlu1 %8736  ;;  %v9031_v55 = vpack.c.bf16 %v8729_v43, %v8687_v48 }
0x1b16   :  { %v8744_v1 = vsel %vm119_vm2, %v8735_v52, %v8737_v47 }
0x1b17   :  { %9071 = vmatpush1.bf16.msra.mxu0 %v9028_v54  ;;  %9111 = vmatprep.subr.bf16.mxu1 %v9031_v55  ;;  %v8769_v23 = vmul.f32 %v8755_v60, %v8744_v1 }
0x1b18   :  { %9112 = vmatpush1.bf16.msra.mxu1 %v9030_v57  ;;  %v8739_v6 = vpop.permute.xlu0 %8738 }
0x1b19   :  { %v8741_v3 = vpop.permute.xlu1 %8740  ;;  %v8743_v19 = vsel %vm119_vm2, %v8737_v47, %v8739_v6 }
0x1b1a   :  { %v8742_v12 = vsel %vm119_vm2, %v8739_v6, %v8741_v3  ;;  %v8745_v9 = vsel %vm119_vm2, %v8741_v3, %v8735_v52  ;;  %v8770_v29 = vmul.f32 %v8759_v21, %v8743_v19 }
0x1b1b   :  { %v8768_v34 = vmul.f32 %v8751_v5, %v8745_v9  ;;  %v8771_v33 = vmul.f32 %v8763_v2, %v8742_v12 }
0x1b1c   :  { %v8777_v56 = vpop.permute.xlu0 %8776 }
0x1b1d   :  { %v8779_v13 = vpop.permute.xlu1 %8778 }
0x1b1e   :  { %v8786_v61 = vsel %vm163_vm3, %v8777_v56, %v8779_v13 }
0x1b1f   :  { %v8811_v8 = vmul.f32 %v8797_v0, %v8786_v61 }
0x1b20   :  { %v8781_v31 = vpop.permute.xlu0 %8780 }
0x1b21   :  { %v8785_v26 = vsel %vm163_vm3, %v8779_v13, %v8781_v31  ;;  %v8783_v25 = vpop.permute.xlu1 %8782  ;;  %v9033_v27 = vpack.c.bf16 %v8811_v8, %v8769_v23  ;;  %v9900_v8 = vld [vmem:[%s14037_s3 + $0x20] sm:$0xf] }
0x1b22   :  { %v8812_v28 = vmul.f32 %v8801_v14, %v8785_v26  ;;  %v8784_v22 = vsel %vm163_vm3, %v8781_v31, %v8783_v25  ;;  %v8787_v39 = vsel %vm163_vm3, %v8783_v25, %v8777_v56  ;;  %v9898_v56 = vld [vmem:[%s14037_s3 + $0x18] sm:$0xf] }
0x1b23   :  { %v8810_v35 = vmul.f32 %v8793_v20, %v8787_v39  ;;  %v8813_v36 = vmul.f32 %v8805_v7, %v8784_v22  ;;  %9072 = vmatprep.subr.bf16.mxu0 %v9033_v27  ;;  %v8885_v13 = vrot.slane %v9898_v56, %v10062_v11  ;;  %v8889_v61 = vrot.slane %v9898_v56, %v10075_v18 }
0x1b24   :  { %v8823_v45 = vpop.permute.xlu0 %8822  ;;  %v9034_v42 = vpack.c.bf16 %v8812_v28, %v8770_v29  ;;  %v8893_v7 = vrot.slane %v9898_v56, %v10073_v17  ;;  %v8965_v22 = vrot.slane %v9900_v8, %v10071_v16 }
0x1b25   :  { %v9032_v30 = vpack.c.bf16 %v8810_v35, %v8768_v34  ;;  %v8825_v40 = vpop.permute.xlu1 %8824  ;;  %v9035_v32 = vpack.c.bf16 %v8813_v36, %v8771_v33 }
0x1b26   :  { %v8832_v37 = vsel %vm211_vm4, %v8823_v45, %v8825_v40 }
0x1b27   :  { %9073 = vmatpush1.bf16.msra.mxu0 %v9032_v30  ;;  %9113 = vmatprep.subr.bf16.mxu1 %v9035_v32  ;;  %v8856_v48 = vmul.f32 %v8839_v41, %v8832_v37 }
0x1b28   :  { %9114 = vmatpush1.bf16.msra.mxu1 %v9034_v42  ;;  %v8827_v38 = vpop.permute.xlu0 %8826 }
0x1b29   :  { %v8831_v49 = vsel %vm211_vm4, %v8825_v40, %v8827_v38  ;;  %v8829_v43 = vpop.permute.xlu1 %8828  ;;  %v9036_v6 = vpack.c.bf16 %v8856_v48, %v13605_v59  ;;  %v8977_v48 = vrot.slane %v9900_v8, %v10073_v17 }
0x1b2a   :  { %v8857_v58 = vmul.f32 %v8843_v44, %v8831_v49  ;;  %v8830_v52 = vsel %vm211_vm4, %v8827_v38, %v8829_v43  ;;  %v8833_v54 = vsel %vm211_vm4, %v8829_v43, %v8823_v45  ;;  %v8973_v38 = vrot.slane %v9900_v8, %v10075_v18 }
0x1b2b   :  { %v8858_v47 = vmul.f32 %v8847_v46, %v8830_v52  ;;  %v8859_v55 = vmul.f32 %v8851_v53, %v8833_v54  ;;  %v8969_v46 = vrot.slane %v9900_v8, %v10062_v11 }
0x1b2c   :  { %v8865_v57 = vpop.permute.xlu0 %8864  ;;  %v9037_v51 = vpack.c.bf16 %v8857_v58, %v13607_v15  ;;  %v9899_v15 = vld [vmem:[%s14037_s3 + $0x1c] sm:$0xf] }
0x1b2d   :  { %v9038_v50 = vpack.c.bf16 %v8858_v47, %v13613_v62  ;;  %v8867_v3 = vpop.permute.xlu1 %8866  ;;  %v9039_v60 = vpack.c.bf16 %v8859_v55, %v13615_v63  ;;  %v8881_v62 = vrot.slane %v9898_v56, %v10071_v16  ;;  %v8923_v63 = vrot.slane %v9899_v15, %v10071_v16 }
0x1b2e   :  { %9074 = vmatprep.subr.bf16.mxu0 %v9037_v51  ;;  %v8874_v2 = vsel %vm255_vm6, %v8865_v57, %v8867_v3  ;;  %v8927_v23 = vrot.slane %v9899_v15, %v10062_v11  ;;  %v8931_v21 = vrot.slane %v9899_v15, %v10075_v18  ;;  %v8935_v12 = vrot.slane %v9899_v15, %v10073_v17 }
0x1b2f   :  { %9075 = vmatpush1.bf16.msra.mxu0 %v9036_v6  ;;  %9115 = vmatprep.subr.bf16.mxu1 %v9039_v60  ;;  %v8898_v26 = vmul.f32 %v8881_v62, %v8874_v2 }
0x1b30   :  { %9116 = vmatpush1.bf16.msra.mxu1 %v9038_v50  ;;  %v8869_v0 = vpop.permute.xlu0 %8868 }
0x1b31   :  { %v8871_v1 = vpop.permute.xlu1 %8870  ;;  %v8873_v20 = vsel %vm255_vm6, %v8867_v3, %v8869_v0 }
0x1b32   :  { %v8872_v9 = vsel %vm255_vm6, %v8869_v0, %v8871_v1  ;;  %v8875_v31 = vsel %vm255_vm6, %v8871_v1, %v8865_v57  ;;  %v8899_v39 = vmul.f32 %v8885_v13, %v8873_v20  ;;  %v9901_v1 = vld [vmem:[%s14038_s1 + $0x44] sm:$0xf] }
0x1b33   :  { %v8900_v35 = vmul.f32 %v8889_v61, %v8872_v9  ;;  %v8901_v36 = vmul.f32 %v8893_v7, %v8875_v31  ;;  %v9915_v9 = vld [vmem:[%s14036_s2 + $0x90] sm:$0xff] }
0x1b34   :  { %v8907_v59 = vpop.permute.xlu0 %8906 }
0x1b35   :  { %v8909_v5 = vpop.permute.xlu1 %8908 }
0x1b36   :  { %v8916_v14 = vsel %vm299_vm5, %v8907_v59, %v8909_v5 }
0x1b37   :  { %v8940_v25 = vmul.f32 %v8923_v63, %v8916_v14 }
0x1b38   :  { %v8911_v19 = vpop.permute.xlu0 %8910 }
0x1b39   :  { %v8915_v27 = vsel %vm299_vm5, %v8909_v5, %v8911_v19  ;;  %v8913_v28 = vpop.permute.xlu1 %8912  ;;  %v9040_v40 = vpack.c.bf16 %v8940_v25, %v8898_v26  ;;  %v9168_v26 = vld [vmem:[%s14037_s3] sm:$0xf] }
0x1b3a   :  { %v8941_v24 = vmul.f32 %v8927_v23, %v8915_v27  ;;  %v8914_v34 = vsel %vm299_vm5, %v8911_v19, %v8913_v28  ;;  %v8917_v33 = vsel %vm299_vm5, %v8913_v28, %v8907_v59  ;;  %v9907_v27 = vld [vmem:[%s14037_s3 + $0x4] sm:$0xf] }
0x1b3b   :  { %v8942_v29 = vmul.f32 %v8931_v21, %v8914_v34  ;;  %v8943_v45 = vmul.f32 %v8935_v12, %v8917_v33 }
0x1b3c   :  { %v8949_v30 = vpop.permute.xlu0 %8948  ;;  %v9041_v41 = vpack.c.bf16 %v8941_v24, %v8899_v39  ;;  %v9219_v39 = vrot.slane %v9907_v27, %v10062_v11 }
0x1b3d   :  { %v9042_v32 = vpack.c.bf16 %v8942_v29, %v8900_v35  ;;  %v8951_v42 = vpop.permute.xlu1 %8950  ;;  %v9043_v37 = vpack.c.bf16 %v8943_v45, %v8901_v36  ;;  %v9173_v35 = vrot.slane %v9168_v26, %v10071_v16  ;;  %v9185_v36 = vrot.slane %v9168_v26, %v10073_v17 }
0x1b3e   :  { %v8958_v44 = vsel %vm343_vm7, %v8949_v30, %v8951_v42  ;;  %9076 = vmatprep.subr.bf16.mxu0 %v9041_v41  ;;  %v9223_v45 = vrot.slane %v9907_v27, %v10075_v18 }
0x1b3f   :  { %v8982_v53 = vmul.f32 %v8965_v22, %v8958_v44  ;;  %9077 = vmatpush1.bf16.msra.mxu0 %v9040_v40  ;;  %9117 = vmatprep.subr.bf16.mxu1 %v9043_v37  ;;  %v9177_v22 = vrot.slane %v9168_v26, %v10062_v11  ;;  %v9215_v40 = vrot.slane %v9907_v27, %v10071_v16 }
0x1b40   :  { %9118 = vmatpush1.bf16.msra.mxu1 %v9042_v32  ;;  %v8953_v49 = vpop.permute.xlu0 %8952  ;;  %v9227_v32 = vrot.slane %v9907_v27, %v10073_v17 }
0x1b41   :  { %v8957_v43 = vsel %vm343_vm7, %v8951_v42, %v8953_v49  ;;  %v8955_v58 = vpop.permute.xlu1 %8954  ;;  %v9044_v52 = vpack.c.bf16 %v8982_v53, %v8982_v53  ;;  %v9181_v42 = vrot.slane %v9168_v26, %v10075_v18 }
0x1b42   :  { %v8983_v54 = vmul.f32 %v8969_v46, %v8957_v43  ;;  %v8956_v47 = vsel %vm343_vm7, %v8953_v49, %v8955_v58  ;;  %v8959_v55 = vsel %vm343_vm7, %v8955_v58, %v8949_v30 }
0x1b43   :  { %v8984_v57 = vmul.f32 %v8973_v38, %v8956_v47  ;;  %v8985_v51 = vmul.f32 %v8977_v48, %v8959_v55  ;;  %v9059_v60 = vsel %vm446_vm8, %v9044_v52, 0 }
0x1b44   :  { %v9045_v6 = vpack.c.bf16 %v8983_v54, %v8983_v54 }
0x1b45   :  { %v9046_v50 = vpack.c.bf16 %v8984_v57, %v8984_v57  ;;  %v9047_v3 = vpack.c.bf16 %v8985_v51, %v8985_v51 }
0x1b46   :  { %9903 = vmatprep.subr.msk.bf16.mxu0 %vm446_vm8, %v9045_v6 }
0x1b47   :  { %9079 = vmatpush1.bf16.msra.mxu0 %v9059_v60  ;;  %9905 = vmatprep.subr.msk.bf16.mxu1 %vm446_vm8, %v9047_v3  ;;  %v9065_v0 = vsel %vm446_vm8, %v9046_v50, 0 }
0x1b48   :  { %9120 = vmatpush1.bf16.msra.mxu1 %v9065_v0 }
0x1b4a   :  { %9904 = vmatmul.mubr.msk.bf16.vlgmr.msra.gmra.mrb[68].mxu0 %vm442_vm9, %v9901_v1 }
0x1b4b   :  { %9906 = vmatmul.mubr.msk.bf16.vlgmr.msra.gmra.mrb[68].mxu1 %vm442_vm9, %v9901_v1  ;;  %9608 = vmatprep.mubr.bf16.mxu0 %v9942_v4  ;;  %v9908_v1 = vld [vmem:[%s14037_s3 + $0x8] sm:$0xf] }
0x1b4c   :  { %9649 = vmatprep.mubr.bf16.mxu1 %v9942_v4  ;;  %v9265_v26 = vrot.slane %v9908_v1, %v10075_v18 }
0x1b51   :  { %v9053_v56 = vpop.permute.xlu0 %9052 }
0x1c1d   :  { %v9104_v15 = vpop.f32.mrb[68].mxu0 }
0x1c1e   :  { %v9105_v59 = vadd.f32 %v9104_v15, %v9053_v56  ;;  %v9106_v62 = vpop.f32.mrb[69].mxu0  ;;  %v9145_v13 = vpop.f32.mrb[68].mxu1  ;;  %v9909_v15 = vld [vmem:[%s14037_s3 + $0xc] sm:$0xf] }
0x1c1f   :  { %v9107_v63 = vadd.f32 %v9106_v62, %v9053_v56  ;;  %v9108_v5 = vpop.f32.mrb[70].mxu0  ;;  %v9147_v2 = vpop.f32.mrb[69].mxu1  ;;  %v9146_v14 = vadd.f32 %v9145_v13, %v9053_v56  ;;  %v9261_v62 = vrot.slane %v9908_v1, %v10062_v11  ;;  %v9303_v13 = vrot.slane %v9909_v15, %v10062_v11 }
0x1c20   :  { %v13815_v61 = vmax.f32 %v9105_v59, 0.0  ;;  %v9109_v23 = vpop.f32.mrb[71].mxu0  ;;  %v9149_v8 = vpop.f32.mrb[70].mxu1  ;;  %v9148_v7 = vadd.f32 %v9147_v2, %v9053_v56 }
0x1c21   :  { %v13817_v20 = vmax.f32 %v9107_v63, 0.0  ;;  %v9150_v21 = vpop.f32.mrb[71].mxu1  ;;  %v13823_v4 = vmax.f32 %v9146_v14, 0.0  ;;  %v9257_v14 = vrot.slane %v9908_v1, %v10071_v16  ;;  %v9269_v23 = vrot.slane %v9908_v1, %v10073_v17 }
0x1c22   :  { %9156 = vrot.lane.b32.xlu1 %v13815_v61, %s9935_s19  ;;  %v13825_v12 = vmax.f32 %v9148_v7, 0.0  ;;  %v9307_v7 = vrot.slane %v9909_v15, %v10075_v18 }
0x1c23   :  { %9158 = vrot.lane.b32.xlu0 %v13817_v20, %s9935_s19 }
0x1c26   :  { %9160 = vrot.lane.b32.xlu1 %v13823_v4, %s9935_s19 }
0x1c27   :  { %9162 = vrot.lane.b32.xlu0 %v13825_v12, %s9935_s19 }
0x1c2a   :  { %9198 = vrot.lane.b32.xlu1 %v13815_v61, %s9936_s24 }
0x1c2b   :  { %9200 = vrot.lane.b32.xlu0 %v13817_v20, %s9936_s24 }
0x1c2e   :  { %9202 = vrot.lane.b32.xlu1 %v13823_v4, %s9936_s24 }
0x1c2f   :  { %9204 = vrot.lane.b32.xlu0 %v13825_v12, %s9936_s24 }
0x1c32   :  { %9240 = vrot.lane.b32.xlu1 %v13815_v61, %s9937_s0 }
0x1c33   :  { %9242 = vrot.lane.b32.xlu0 %v13817_v20, %s9937_s0 }
0x1c36   :  { %9244 = vrot.lane.b32.xlu1 %v13823_v4, %s9937_s0 }
0x1c37   :  { %9246 = vrot.lane.b32.xlu0 %v13825_v12, %s9937_s0 }
0x1c3a   :  { %9282 = vrot.lane.b32.xlu1 %v13815_v61, %s9938_s25 }
0x1c3b   :  { %9284 = vrot.lane.b32.xlu0 %v13817_v20, %s9938_s25 }
0x1c3e   :  { %9286 = vrot.lane.b32.xlu1 %v13823_v4, %s9938_s25 }
0x1c3f   :  { %9288 = vrot.lane.b32.xlu0 %v13825_v12, %s9938_s25 }
0x1c42   :  { %9328 = vrot.lane.b32.xlu1 %v13815_v61, %s9939_s26 }
0x1c43   :  { %9330 = vrot.lane.b32.xlu0 %v13817_v20, %s9939_s26 }
0x1c46   :  { %9332 = vrot.lane.b32.xlu1 %v13823_v4, %s9939_s26 }
0x1c47   :  { %9334 = vrot.lane.b32.xlu0 %v13825_v12, %s9939_s26 }
0x1c4a   :  { %9370 = vrot.lane.b32.xlu1 %v13815_v61, %s9940_s27 }
0x1c4b   :  { %9372 = vrot.lane.b32.xlu0 %v13817_v20, %s9940_s27 }
0x1c4e   :  { %9374 = vrot.lane.b32.xlu1 %v13823_v4, %s9940_s27 }
0x1c4f   :  { %9376 = vrot.lane.b32.xlu0 %v13825_v12, %s9940_s27 }
0x1c52   :  { %9412 = vrot.lane.b32.xlu1 %v13815_v61, %s9941_s28 }
0x1c53   :  { %9414 = vrot.lane.b32.xlu0 %v13817_v20, %s9941_s28 }
0x1c56   :  { %9416 = vrot.lane.b32.xlu1 %v13823_v4, %s9941_s28 }
0x1c57   :  { %9418 = vrot.lane.b32.xlu0 %v13825_v12, %s9941_s28 }
0x1c5a   :  { %9454 = vrot.lane.b32.xlu1 %v13815_v61, %s9943_s29 }
0x1c5b   :  { %9456 = vrot.lane.b32.xlu0 %v13817_v20, %s9943_s29 }
0x1c5e   :  { %9458 = vrot.lane.b32.xlu1 %v13823_v4, %s9943_s29 }
0x1c5f   :  { %9460 = vrot.lane.b32.xlu0 %v13825_v12, %s9943_s29 }
0x1c62   :  { %9558 = vperm.xlu1 %9934, %v9915_v9  }
0x1c94   :  { %v9157_v31 = vpop.permute.xlu1 %9156 }
0x1c95   :  { %v9159_v19 = vpop.permute.xlu0 %9158 }
0x1c96   :  { %v9166_v24 = vsel %vm32_vm0, %v9157_v31, %v9159_v19 }
0x1c97   :  { %v9191_v30 = vmul.f32 %v9177_v22, %v9166_v24 }
0x1c98   :  { %v9161_v25 = vpop.permute.xlu1 %9160 }
0x1c99   :  { %v9163_v28 = vpop.permute.xlu0 %9162  ;;  %v9165_v53 = vsel %vm32_vm0, %v9159_v19, %v9161_v25  ;;  %v9311_v19 = vrot.slane %v9909_v15, %v10073_v17 }
0x1c9a   :  { %v9164_v37 = vsel %vm32_vm0, %v9161_v25, %v9163_v28  ;;  %v9167_v44 = vsel %vm32_vm0, %v9163_v28, %v9157_v31  ;;  %v9192_v51 = vmul.f32 %v9181_v42, %v9165_v53  ;;  %v9299_v31 = vrot.slane %v9909_v15, %v10071_v16 }
0x1c9b   :  { %v9190_v54 = vmul.f32 %v9173_v35, %v9167_v44  ;;  %v9193_v47 = vmul.f32 %v9185_v36, %v9164_v37 }
0x1c9c   :  { %v9199_v34 = vpop.permute.xlu1 %9198 }
0x1c9d   :  { %v9201_v33 = vpop.permute.xlu0 %9200 }
0x1c9e   :  { %v9208_v29 = vsel %vm75_vm1, %v9199_v34, %v9201_v33 }
0x1c9f   :  { %v9233_v41 = vmul.f32 %v9219_v39, %v9208_v29  ;;  %v9910_v29 = vld [vmem:[%s14037_s3 + $0x14] sm:$0xf] }
0x1ca0   :  { %v9203_v46 = vpop.permute.xlu1 %9202  ;;  %v9345_v44 = vrot.slane %v9910_v29, %v10071_v16 }
0x1ca1   :  { %v9207_v38 = vsel %vm75_vm1, %v9201_v33, %v9203_v46  ;;  %v9205_v48 = vpop.permute.xlu0 %9204  ;;  %v9535_v49 = vpack.c.bf16 %v9233_v41, %v9191_v30 }
0x1ca2   :  { %v9234_v43 = vmul.f32 %v9223_v45, %v9207_v38  ;;  %v9206_v58 = vsel %vm75_vm1, %v9203_v46, %v9205_v48  ;;  %v9209_v52 = vsel %vm75_vm1, %v9205_v48, %v9199_v34 }
0x1ca3   :  { %v9232_v55 = vmul.f32 %v9215_v40, %v9209_v52  ;;  %v9235_v57 = vmul.f32 %v9227_v32, %v9206_v58  ;;  %9576 = vmatprep.subr.bf16.mxu0 %v9535_v49  ;;  %v9349_v49 = vrot.slane %v9910_v29, %v10062_v11  ;;  %v9357_v58 = vrot.slane %v9910_v29, %v10073_v17 }
0x1ca4   :  { %v9241_v6 = vpop.permute.xlu1 %9240  ;;  %v9536_v0 = vpack.c.bf16 %v9234_v43, %v9192_v51  ;;  %v9353_v43 = vrot.slane %v9910_v29, %v10075_v18 }
0x1ca5   :  { %v9534_v50 = vpack.c.bf16 %v9232_v55, %v9190_v54  ;;  %v9243_v3 = vpop.permute.xlu0 %9242  ;;  %v9537_v60 = vpack.c.bf16 %v9235_v57, %v9193_v47 }
0x1ca6   :  { %v9250_v63 = vsel %vm119_vm2, %v9241_v6, %v9243_v3 }
0x1ca7   :  { %9577 = vmatpush1.bf16.msra.mxu0 %v9534_v50  ;;  %9617 = vmatprep.subr.bf16.mxu1 %v9537_v60  ;;  %v9275_v21 = vmul.f32 %v9261_v62, %v9250_v63  ;;  %v9911_v63 = vld [vmem:[%s14037_s3 + $0x18] sm:$0xf] }
0x1ca8   :  { %9618 = vmatpush1.bf16.msra.mxu1 %v9536_v0  ;;  %v9245_v56 = vpop.permute.xlu1 %9244 }
0x1ca9   :  { %v9247_v59 = vpop.permute.xlu0 %9246  ;;  %v9249_v22 = vsel %vm119_vm2, %v9243_v3, %v9245_v56 }
0x1caa   :  { %v9248_v25 = vsel %vm119_vm2, %v9245_v56, %v9247_v59  ;;  %v9251_v27 = vsel %vm119_vm2, %v9247_v59, %v9241_v6  ;;  %v9276_v32 = vmul.f32 %v9265_v26, %v9249_v22 }
0x1cab   :  { %v9274_v45 = vmul.f32 %v9257_v14, %v9251_v27  ;;  %v9277_v30 = vmul.f32 %v9269_v23, %v9248_v25  ;;  %v9395_v23 = vrot.slane %v9911_v63, %v10075_v18 }
0x1cac   :  { %v9283_v5 = vpop.permute.xlu1 %9282 }
0x1cad   :  { %v9285_v2 = vpop.permute.xlu0 %9284 }
0x1cae   :  { %v9292_v8 = vsel %vm163_vm3, %v9283_v5, %v9285_v2 }
0x1caf   :  { %v9317_v9 = vmul.f32 %v9303_v13, %v9292_v8 }
0x1cb0   :  { %v9287_v28 = vpop.permute.xlu1 %9286 }
0x1cb1   :  { %v9291_v39 = vsel %vm163_vm3, %v9285_v2, %v9287_v28  ;;  %v9289_v24 = vpop.permute.xlu0 %9288  ;;  %v9539_v34 = vpack.c.bf16 %v9317_v9, %v9275_v21  ;;  %v9913_v21 = vld [vmem:[%s14037_s3 + $0x20] sm:$0xf] }
0x1cb2   :  { %v9318_v33 = vmul.f32 %v9307_v7, %v9291_v39  ;;  %v9290_v35 = vsel %vm163_vm3, %v9287_v28, %v9289_v24  ;;  %v9293_v36 = vsel %vm163_vm3, %v9289_v24, %v9283_v5  ;;  %v9391_v5 = vrot.slane %v9911_v63, %v10062_v11 }
0x1cb3   :  { %v9316_v41 = vmul.f32 %v9299_v31, %v9293_v36  ;;  %v9319_v40 = vmul.f32 %v9311_v19, %v9290_v35  ;;  %9578 = vmatprep.subr.bf16.mxu0 %v9539_v34  ;;  %v9399_v31 = vrot.slane %v9911_v63, %v10073_v17 }
0x1cb4   :  { %v9329_v42 = vpop.permute.xlu1 %9328  ;;  %v9540_v38 = vpack.c.bf16 %v9318_v33, %v9276_v32  ;;  %v9471_v33 = vrot.slane %v9913_v21, %v10071_v16 }
0x1cb5   :  { %v9538_v37 = vpack.c.bf16 %v9316_v41, %v9274_v45  ;;  %v9331_v46 = vpop.permute.xlu0 %9330  ;;  %v9541_v53 = vpack.c.bf16 %v9319_v40, %v9277_v30 }
0x1cb6   :  { %v9338_v48 = vsel %vm211_vm4, %v9329_v42, %v9331_v46 }
0x1cb7   :  { %9579 = vmatpush1.bf16.msra.mxu0 %v9538_v37  ;;  %9619 = vmatprep.subr.bf16.mxu1 %v9541_v53  ;;  %v9362_v54 = vmul.f32 %v9345_v44, %v9338_v48  ;;  %v9475_v48 = vrot.slane %v9913_v21, %v10062_v11 }
0x1cb8   :  { %9620 = vmatpush1.bf16.msra.mxu1 %v9540_v38  ;;  %v9333_v52 = vpop.permute.xlu1 %9332 }
0x1cb9   :  { %v9337_v47 = vsel %vm211_vm4, %v9331_v46, %v9333_v52  ;;  %v9335_v55 = vpop.permute.xlu0 %9334  ;;  %v9542_v1 = vpack.c.bf16 %v9362_v54, %v13815_v61 }
0x1cba   :  { %v9363_v57 = vmul.f32 %v9349_v49, %v9337_v47  ;;  %v9336_v51 = vsel %vm211_vm4, %v9333_v52, %v9335_v55  ;;  %v9339_v6 = vsel %vm211_vm4, %v9335_v55, %v9329_v42 }
0x1cbb   :  { %v9364_v50 = vmul.f32 %v9353_v43, %v9336_v51  ;;  %v9365_v3 = vmul.f32 %v9357_v58, %v9339_v6  ;;  %v9479_v43 = vrot.slane %v9913_v21, %v10075_v18  ;;  %v9483_v58 = vrot.slane %v9913_v21, %v10073_v17 }
0x1cbc   :  { %v9371_v60 = vpop.permute.xlu1 %9370  ;;  %v9543_v0 = vpack.c.bf16 %v9363_v57, %v13817_v20  ;;  %v9912_v20 = vld [vmem:[%s14037_s3 + $0x1c] sm:$0xf] }
0x1cbd   :  { %v9544_v56 = vpack.c.bf16 %v9364_v50, %v13823_v4  ;;  %v9373_v15 = vpop.permute.xlu0 %9372  ;;  %v9545_v59 = vpack.c.bf16 %v9365_v3, %v13825_v12  ;;  %v9387_v4 = vrot.slane %v9911_v63, %v10071_v16  ;;  %v9429_v12 = vrot.slane %v9912_v20, %v10071_v16 }
0x1cbe   :  { %9580 = vmatprep.subr.bf16.mxu0 %v9543_v0  ;;  %v9380_v14 = vsel %vm255_vm6, %v9371_v60, %v9373_v15  ;;  %v9433_v7 = vrot.slane %v9912_v20, %v10062_v11  ;;  %v9437_v19 = vrot.slane %v9912_v20, %v10075_v18  ;;  %v9441_v26 = vrot.slane %v9912_v20, %v10073_v17 }
0x1cbf   :  { %9581 = vmatpush1.bf16.msra.mxu0 %v9542_v1  ;;  %9621 = vmatprep.subr.bf16.mxu1 %v9545_v59  ;;  %v9404_v22 = vmul.f32 %v9387_v4, %v9380_v14  ;;  %v9914_v1 = vld [vmem:[%s14038_s1 + $0x48] sm:$0xf] }
0x1cc0   :  { %9622 = vmatpush1.bf16.msra.mxu1 %v9544_v56  ;;  %v9375_v62 = vpop.permute.xlu1 %9374 }
0x1cc1   :  { %v9377_v13 = vpop.permute.xlu0 %9376  ;;  %v9379_v9 = vsel %vm255_vm6, %v9373_v15, %v9375_v62 }
0x1cc2   :  { %v9378_v25 = vsel %vm255_vm6, %v9375_v62, %v9377_v13  ;;  %v9381_v27 = vsel %vm255_vm6, %v9377_v13, %v9371_v60  ;;  %v9405_v35 = vmul.f32 %v9391_v5, %v9379_v9 }
0x1cc3   :  { %v9406_v30 = vmul.f32 %v9395_v23, %v9378_v25  ;;  %v9407_v41 = vmul.f32 %v9399_v31, %v9381_v27 }
0x1cc4   :  { %v9413_v61 = vpop.permute.xlu1 %9412 }
0x1cc5   :  { %v9415_v2 = vpop.permute.xlu0 %9414 }
0x1cc6   :  { %v9422_v8 = vsel %vm299_vm5, %v9413_v61, %v9415_v2 }
0x1cc7   :  { %v9446_v39 = vmul.f32 %v9429_v12, %v9422_v8 }
0x1cc8   :  { %v9417_v28 = vpop.permute.xlu1 %9416 }
0x1cc9   :  { %v9421_v24 = vsel %vm299_vm5, %v9415_v2, %v9417_v28  ;;  %v9419_v34 = vpop.permute.xlu0 %9418  ;;  %v9546_v44 = vpack.c.bf16 %v9446_v39, %v9404_v22 }
0x1cca   :  { %v9447_v36 = vmul.f32 %v9433_v7, %v9421_v24  ;;  %v9420_v29 = vsel %vm299_vm5, %v9417_v28, %v9419_v34  ;;  %v9423_v45 = vsel %vm299_vm5, %v9419_v34, %v9413_v61 }
0x1ccb   :  { %v9448_v40 = vmul.f32 %v9437_v19, %v9420_v29  ;;  %v9449_v32 = vmul.f32 %v9441_v26, %v9423_v45 }
0x1ccc   :  { %v9455_v42 = vpop.permute.xlu1 %9454  ;;  %v9547_v37 = vpack.c.bf16 %v9447_v36, %v9405_v35 }
0x1ccd   :  { %v9548_v46 = vpack.c.bf16 %v9448_v40, %v9406_v30  ;;  %v9457_v53 = vpop.permute.xlu0 %9456  ;;  %v9549_v38 = vpack.c.bf16 %v9449_v32, %v9407_v41 }
0x1cce   :  { %v9464_v16 = vsel %vm343_vm7, %v9455_v42, %v9457_v53  ;;  %9582 = vmatprep.subr.bf16.mxu0 %v9547_v37 }
0x1ccf   :  { %v9488_v49 = vmul.f32 %v9471_v33, %v9464_v16  ;;  %9583 = vmatpush1.bf16.msra.mxu0 %v9546_v44  ;;  %9623 = vmatprep.subr.bf16.mxu1 %v9549_v38 }
0x1cd0   :  { %9624 = vmatpush1.bf16.msra.mxu1 %v9548_v46  ;;  %v9459_v52 = vpop.permute.xlu1 %9458 }
0x1cd1   :  { %v9463_v54 = vsel %vm343_vm7, %v9457_v53, %v9459_v52  ;;  %v9461_v47 = vpop.permute.xlu0 %9460  ;;  %v9550_v55 = vpack.c.bf16 %v9488_v49, %v9488_v49 }
0x1cd2   :  { %v9489_v57 = vmul.f32 %v9475_v48, %v9463_v54  ;;  %v9462_v51 = vsel %vm343_vm7, %v9459_v52, %v9461_v47  ;;  %v9465_v11 = vsel %vm343_vm7, %v9461_v47, %v9455_v42 }
0x1cd3   :  { %v9490_v6 = vmul.f32 %v9479_v43, %v9462_v51  ;;  %v9491_v50 = vmul.f32 %v9483_v58, %v9465_v11  ;;  %v9565_v17 = vsel %vm446_vm8, %v9550_v55, 0 }
0x1cd4   :  { %v9551_v3 = vpack.c.bf16 %v9489_v57, %v9489_v57 }
0x1cd5   :  { %v9552_v18 = vpack.c.bf16 %v9490_v6, %v9490_v6  ;;  %v9553_v60 = vpack.c.bf16 %v9491_v50, %v9491_v50 }
0x1cd6   :  { %9916 = vmatprep.subr.msk.bf16.mxu0 %vm446_vm8, %v9551_v3 }
0x1cd7   :  { %9585 = vmatpush1.bf16.msra.mxu0 %v9565_v17  ;;  %9918 = vmatprep.subr.msk.bf16.mxu1 %vm446_vm8, %v9553_v60  ;;  %v9571_v0 = vsel %vm446_vm8, %v9552_v18, 0 }
0x1cd8   :  { %9626 = vmatpush1.bf16.msra.mxu1 %v9571_v0 }
0x1cda   :  { %9917 = vmatmul.mubr.msk.bf16.vlgmr.msra.gmra.mrb[72].mxu0 %vm442_vm9, %v9914_v1 }
0x1cdb   :  { %9919 = vmatmul.mubr.msk.bf16.vlgmr.msra.gmra.mrb[72].mxu1 %vm442_vm9, %v9914_v1 }
0x1ce1   :  { %v9559_v10 = vpop.permute.xlu1 %9558 }
0x1dad   :  { %v9610_v56 = vpop.f32.mrb[72].mxu0 }
0x1dae   :  { %v9611_v15 = vadd.f32 %v9610_v56, %v9559_v10  ;;  %v9612_v59 = vpop.f32.mrb[73].mxu0  ;;  %v9651_v62 = vpop.f32.mrb[72].mxu1 }
0x1daf   :  { %v9613_v13 = vadd.f32 %v9612_v59, %v9559_v10  ;;  %v9652_v63 = vadd.f32 %v9651_v62, %v9559_v10  ;;  %v9614_v20 = vpop.f32.mrb[74].mxu0  ;;  %v9653_v61 = vpop.f32.mrb[73].mxu1 }
0x1db0   :  { %v9658_v4 = vmax.f32 %v9611_v15, 0.0  ;;  %v9654_v5 = vadd.f32 %v9653_v61, %v9559_v10  ;;  %v9615_v12 = vpop.f32.mrb[75].mxu0  ;;  %v9655_v2 = vpop.f32.mrb[74].mxu1 }
0x1db1   :  { %v9659_v14 = vmax.f32 %v9613_v13, 0.0  ;;  %v9660_v23 = vmax.f32 %v9652_v63, 0.0  ;;  %v9656_v8 = vpop.f32.mrb[75].mxu1 }
0x1db2   :  { %9920 = vst [vmem:[%s14039_s4 + $0x40] sm:$0xff] %v9658_v4  ;;  %v9661_v7 = vmax.f32 %v9654_v5, 0.0 }
0x1db3   :  { %9921 = vst [vmem:[%s14039_s4 + $0x48] sm:$0xff] %v9659_v14  ;;  %9922 = vst [vmem:[%s14039_s4 + $0x50] sm:$0xff] %v9660_v23 }
0x1db4   :  { %9923 = vst [vmem:[%s14039_s4 + $0x58] sm:$0xff] %v9661_v7 }

</bundles_post_ra>
